<compile_context>
chip_gen: v6e
topology: v6e:2x2x1
jax: 0.10.0
libtpu: 0.0.40
codegen_flags: <defaults>
</compile_context>

<pallas_src>
import jax
import jax.numpy as jnp
from jax.experimental import pallas as pl
from jax.experimental.pallas import tpu as pltpu

NEG_SLOPE = 0.01            # nn.LeakyReLU() default negative_slope
N_BATCH = 2
C_IN, H, W = 3, 32, 32      # LeNet geometry: 32 -> 28 -> 14 -> 10 -> 5 -> 1
HW = H * W
KS = 5                      # kernel size of all three convs

# Widths of the progressively truncated "wide anchored" maps.
W0 = N_BATCH * HW                    # 2048  flattened input
W1 = W0 - (KS - 1) * (W + 1)         # 1916  conv1 + LeakyReLU
W2 = W1 - (W + 1)                    # 1883  avgpool1 (anchor stride 2)
W3 = W2 - 2 * (KS - 1) * (W + 1)     # 1619  conv2 + LeakyReLU
W4 = W3 - 2 * (W + 1)                # 1553  avgpool2 (anchor stride 4)

CIN1P = 4                            # conv1 Cin padded 3 -> 4 (zero channel)
K1 = KS * KS * CIN1P                 # 100   conv1 stacked contraction
K2 = KS * KS * 6                     # 150   conv2 stacked contraction
K3 = KS * KS * 16                    # 400   conv3 stacked contraction

# Packed-parameter row offsets (all multiples of 16 -> bf16 tile aligned).
R_CONV3, R_FC1, R_FC2, R_CONV1, R_CONV2 = 0, 128, 224, 240, 256
R_TOTAL, C_TOTAL = 272, 400


def _leaky(v):
    # max(v, 0.01*v) == LeakyReLU(v) for 0 < slope < 1 (2 VALU ops, not 3).
    return jnp.maximum(v, NEG_SLOPE * v)


def _net_kernel(x_ref, w_ref, b_ref, o_ref,
                rhs1, pool1_s, rhs2, pool2_s, rhs3):
    # ---- conv1: stage 25 shifted taps into one K-stacked RHS, single GEMM ---
    x = x_ref[...]                                        # (4, 2048) bf16
    for t in range(KS * KS):
        di, dj = divmod(t, KS)
        off = di * W + dj
        rhs1[CIN1P * t:CIN1P * (t + 1), :] = x[:, off:off + W1]
    act1 = _leaky(
        jnp.dot(w_ref[R_CONV1:R_CONV1 + 6, :K1], rhs1[...],
                preferred_element_type=jnp.float32)
        + b_ref[R_CONV1:R_CONV1 + 6, :])                  # (6, W1) f32

    # ---- AvgPool2d(2): mean of 4 window taps, anchor stride 1 -> 2 ----------
    pool1_s[...] = (0.25 * (act1[:, 0:W2] + act1[:, 1:1 + W2]
                            + act1[:, W:W + W2]
                            + act1[:, W + 1:W + 1 + W2])).astype(jnp.bfloat16)

    # ---- conv2: stacked RHS (150, W3), tap offsets doubled ------------------
    for t in range(KS * KS):
        di, dj = divmod(t, KS)
        off = 2 * (di * W + dj)
        rhs2[6 * t:6 * (t + 1), :] = pool1_s[:, off:off + W3]
    act2 = _leaky(
        jnp.dot(w_ref[R_CONV2:R_CONV2 + 16, :K2], rhs2[...],
                preferred_element_type=jnp.float32)
        + b_ref[R_CONV2:R_CONV2 + 16, :])                 # (16, W3) f32

    # ---- AvgPool2d(2): anchor stride 2 -> 4 ---------------------------------
    pool2_s[...] = (0.25 * (act2[:, 0:W4] + act2[:, 2:2 + W4]
                            + act2[:, 2 * W:2 * W + W4]
                            + act2[:, 2 * W + 2:2 * W + 2 + W4])
                    ).astype(jnp.bfloat16)

    # ---- gather the 25 stride-4 anchors of every sample -> (400, N) tail ----
    for t in range(KS * KS):
        di, dj = divmod(t, KS)
        off = 4 * (di * W + dj)
        for n in range(N_BATCH):
            col = n * HW + off
            rhs3[16 * t:16 * (t + 1), n:n + 1] = pool2_s[:, col:col + 1]

    # ---- conv3 (5x5 on 5x5 map == dense) + fc1 + fc2, batched over lanes ----
    h = _leaky(jnp.dot(w_ref[R_CONV3:R_CONV3 + 120, :K3], rhs3[...],
                       preferred_element_type=jnp.float32)
               + b_ref[R_CONV3:R_CONV3 + 120, :])         # (120, N)
    h = _leaky(jnp.dot(w_ref[R_FC1:R_FC1 + 84, :120], h.astype(jnp.bfloat16),
                       preferred_element_type=jnp.float32)
               + b_ref[R_FC1:R_FC1 + 84, :])              # (84, N)
    o_ref[...] = (jnp.dot(w_ref[R_FC2:R_FC2 + 10, :84], h.astype(jnp.bfloat16),
                          preferred_element_type=jnp.float32)
                  + b_ref[R_FC2:R_FC2 + 10, :])           # (10, N), one store


def _stack_conv_w(w, cin_pad):
    """(Cout, Cin, k, k) -> (Cout, k*k*cin_pad); column index = tap*cin_pad+c."""
    co, ci, kh, kw = w.shape
    wt = jnp.transpose(w, (0, 2, 3, 1))                   # (co, kh, kw, ci)
    if cin_pad > ci:
        wt = jnp.pad(wt, ((0, 0), (0, 0), (0, 0), (0, cin_pad - ci)))
    return wt.reshape(co, kh * kw * cin_pad)


def _pack_params(params):
    """Fold the 11 tiny parameter arrays into one weight slab + one bias col."""
    wpack = jnp.zeros((R_TOTAL, C_TOTAL), jnp.float32)
    bpack = jnp.zeros((R_TOTAL, 1), jnp.float32)

    def putw(buf, row, mat):
        r, c = mat.shape
        return buf.at[row:row + r, :c].set(mat)

    def putb(buf, row, vec):
        return buf.at[row:row + vec.shape[0], 0].set(vec)

    wpack = putw(wpack, R_CONV3, _stack_conv_w(params["conv3_w"], 16))
    wpack = putw(wpack, R_FC1, params["fc1_w"])
    wpack = putw(wpack, R_FC2, params["fc2_w"])
    wpack = putw(wpack, R_CONV1, _stack_conv_w(params["conv1_w"], CIN1P))
    wpack = putw(wpack, R_CONV2, _stack_conv_w(params["conv2_w"], 6))

    bpack = putb(bpack, R_CONV3, params["conv3_b"])
    bpack = putb(bpack, R_FC1, params["fc1_b"])
    bpack = putb(bpack, R_FC2, params["fc2_b"])
    bpack = putb(bpack, R_CONV1, params["conv1_b"])
    bpack = putb(bpack, R_CONV2, params["conv2_b"])
    return wpack.astype(jnp.bfloat16), bpack


@jax.jit
def net_forward(x, params):
    """x: (N_BATCH, 3, 32, 32) float32 NCHW -> logits (N_BATCH, 10) float32."""
    assert x.shape == (N_BATCH, C_IN, H, W)
    wpack, bpack = _pack_params(params)

    # Wide anchored lane-dense layout: channels on sublanes, n*H*W + h*W + w on
    # lanes; Cin padded to 4 with a zero channel so per-tap RHS stores are
    # packed-pair aligned (the matching weight columns are zero).
    x2 = x.transpose(1, 0, 2, 3).reshape(C_IN, W0)
    x2 = jnp.concatenate([x2, jnp.zeros((CIN1P - C_IN, W0), x2.dtype)], axis=0)
    x2 = x2.astype(jnp.bfloat16)

    logits_t = pl.pallas_call(
        _net_kernel,
        out_shape=jax.ShapeDtypeStruct((10, N_BATCH), jnp.float32),
        scratch_shapes=[
            pltpu.VMEM((K1, W1), jnp.bfloat16),        # conv1 K-stacked RHS
            pltpu.VMEM((6, W2), jnp.bfloat16),         # pool1
            pltpu.VMEM((K2, W3), jnp.bfloat16),        # conv2 K-stacked RHS
            pltpu.VMEM((16, W4), jnp.bfloat16),        # pool2
            pltpu.VMEM((K3, N_BATCH), jnp.bfloat16),   # classifier tail RHS
        ],
    )(x2, wpack, bpack)
    return logits_t.T                                   # (N_BATCH, 10)


# ---------------------------------------------------------------------------
# Pure-JAX f32 reference of Net.forward (correctness check only).
# ---------------------------------------------------------------------------
def net_forward_reference(x, params):
    def conv(v, w, b):
        y = jax.lax.conv_general_dilated(
            v, w, window_strides=(1, 1), padding="VALID",
            dimension_numbers=("NCHW", "OIHW", "NCHW"))
        return y + b.reshape(1, -1, 1, 1)

    def avgpool2(v):
        n, c, h, w = v.shape
        return v.reshape(n, c, h // 2, 2, w // 2, 2).mean(axis=(3, 5))

    h = avgpool2(_leaky(conv(x, params["conv1_w"], params["conv1_b"])))
    h = avgpool2(_leaky(conv(h, params["conv2_w"], params["conv2_b"])))
    h = _leaky(conv(h, params["conv3_w"], params["conv3_b"]))
    h = h.reshape(x.shape[0], -1)                        # torch.flatten(x, 1)
    h = _leaky(h @ params["fc1_w"].T + params["fc1_b"])
    return h @ params["fc2_w"].T + params["fc2_b"]


def init_params(key):
    ks = jax.random.split(key, 10)

    def wgt(k, shape):
        fan_in = 1
        for d in shape[1:]:
            fan_in *= d
        return jax.random.normal(k, shape, jnp.float32) / jnp.sqrt(jnp.float32(fan_in))

    def bias(k, n):
        return 0.05 * jax.random.normal(k, (n,), jnp.float32)

    return {
        "conv1_w": wgt(ks[0], (6, 3, 5, 5)),     "conv1_b": bias(ks[1], 6),
        "conv2_w": wgt(ks[2], (16, 6, 5, 5)),    "conv2_b": bias(ks[3], 16),
        "conv3_w": wgt(ks[4], (120, 16, 5, 5)),  "conv3_b": bias(ks[5], 120),
        "fc1_w": wgt(ks[6], (84, 120)),          "fc1_b": bias(ks[7], 84),
        "fc2_w": wgt(ks[8], (10, 84)),           "fc2_b": bias(ks[9], 10),
    }


if __name__ == "__main__":
    key = jax.random.PRNGKey(0)
    kx, kp = jax.random.split(key)
    x = jax.random.normal(kx, (N_BATCH, C_IN, H, W), jnp.float32)
    params = init_params(kp)

    logits = net_forward(x, params)
    jax.block_until_ready(logits)
    assert logits.shape == (N_BATCH, 10)

    ref = net_forward_reference(x, params)
    # bf16 MXU operands -> allow bf16-level tolerance against the f32 reference.
    assert jnp.allclose(logits, ref, atol=5e-2, rtol=1e-1), (
        f"mismatch vs reference, max abs err = {float(jnp.max(jnp.abs(logits - ref)))}")
    print("KERNEL_OK")
</pallas_src>

<mosaic_0001>
module attributes {stable_mosaic.version = 11 : i64} {
  func.func @_net_kernel(%arg0: memref<4x2048xbf16, #tpu.memory_space<vmem>>, %arg1: memref<272x400xbf16, #tpu.memory_space<vmem>>, %arg2: memref<272x1xf32, #tpu.memory_space<vmem>>, %arg3: memref<10x2xf32, #tpu.memory_space<vmem>>, %arg4: memref<100x1916xbf16, #tpu.memory_space<vmem>>, %arg5: memref<6x1883xbf16, #tpu.memory_space<vmem>>, %arg6: memref<150x1619xbf16, #tpu.memory_space<vmem>>, %arg7: memref<16x1553xbf16, #tpu.memory_space<vmem>>, %arg8: memref<400x2xbf16, #tpu.memory_space<vmem>>) attributes {dimension_semantics = [], scalar_prefetch = 0 : i64, scratch_operands = 5 : i64, tpu.core_type = #tpu.core_type<tc>} {
    %c0 = arith.constant 0 : index
    %c0_0 = arith.constant 0 : index
    %0 = vector.load %arg0[%c0, %c0_0] : memref<4x2048xbf16, #tpu.memory_space<vmem>>, vector<4x2048xbf16>
    %1 = vector.extract_strided_slice %0 {offsets = [0, 0], sizes = [4, 1916], strides = [1, 1]} : vector<4x2048xbf16> to vector<4x1916xbf16>
    %c0_1 = arith.constant 0 : index
    %c0_2 = arith.constant 0 : index
    %2 = vector.load %arg4[%c0_1, %c0_2] : memref<100x1916xbf16, #tpu.memory_space<vmem>>, vector<4x1916xbf16>
    tpu.vector_store %arg4[%c0_1, %c0_2], %1 {strides = array<i32>} : memref<100x1916xbf16, #tpu.memory_space<vmem>>, vector<4x1916xbf16>,
    %3 = vector.extract_strided_slice %0 {offsets = [0, 1], sizes = [4, 1916], strides = [1, 1]} : vector<4x2048xbf16> to vector<4x1916xbf16>
    %c4 = arith.constant 4 : index
    %c0_3 = arith.constant 0 : index
    %4 = vector.load %arg4[%c4, %c0_3] : memref<100x1916xbf16, #tpu.memory_space<vmem>>, vector<4x1916xbf16>
    tpu.vector_store %arg4[%c4, %c0_3], %3 {strides = array<i32>} : memref<100x1916xbf16, #tpu.memory_space<vmem>>, vector<4x1916xbf16>,
    %5 = vector.extract_strided_slice %0 {offsets = [0, 2], sizes = [4, 1916], strides = [1, 1]} : vector<4x2048xbf16> to vector<4x1916xbf16>
    %c8 = arith.constant 8 : index
    %c0_4 = arith.constant 0 : index
    %6 = vector.load %arg4[%c8, %c0_4] : memref<100x1916xbf16, #tpu.memory_space<vmem>>, vector<4x1916xbf16>
    tpu.vector_store %arg4[%c8, %c0_4], %5 {strides = array<i32>} : memref<100x1916xbf16, #tpu.memory_space<vmem>>, vector<4x1916xbf16>,
    %7 = vector.extract_strided_slice %0 {offsets = [0, 3], sizes = [4, 1916], strides = [1, 1]} : vector<4x2048xbf16> to vector<4x1916xbf16>
    %c12 = arith.constant 12 : index
    %c0_5 = arith.constant 0 : index
    %8 = vector.load %arg4[%c12, %c0_5] : memref<100x1916xbf16, #tpu.memory_space<vmem>>, vector<4x1916xbf16>
    tpu.vector_store %arg4[%c12, %c0_5], %7 {strides = array<i32>} : memref<100x1916xbf16, #tpu.memory_space<vmem>>, vector<4x1916xbf16>,
    %9 = vector.extract_strided_slice %0 {offsets = [0, 4], sizes = [4, 1916], strides = [1, 1]} : vector<4x2048xbf16> to vector<4x1916xbf16>
    %c16 = arith.constant 16 : index
    %c0_6 = arith.constant 0 : index
    %10 = vector.load %arg4[%c16, %c0_6] : memref<100x1916xbf16, #tpu.memory_space<vmem>>, vector<4x1916xbf16>
    tpu.vector_store %arg4[%c16, %c0_6], %9 {strides = array<i32>} : memref<100x1916xbf16, #tpu.memory_space<vmem>>, vector<4x1916xbf16>,
    %11 = vector.extract_strided_slice %0 {offsets = [0, 32], sizes = [4, 1916], strides = [1, 1]} : vector<4x2048xbf16> to vector<4x1916xbf16>
    %c20 = arith.constant 20 : index
    %c0_7 = arith.constant 0 : index
    %12 = vector.load %arg4[%c20, %c0_7] : memref<100x1916xbf16, #tpu.memory_space<vmem>>, vector<4x1916xbf16>
    tpu.vector_store %arg4[%c20, %c0_7], %11 {strides = array<i32>} : memref<100x1916xbf16, #tpu.memory_space<vmem>>, vector<4x1916xbf16>,
    %13 = vector.extract_strided_slice %0 {offsets = [0, 33], sizes = [4, 1916], strides = [1, 1]} : vector<4x2048xbf16> to vector<4x1916xbf16>
    %c24 = arith.constant 24 : index
    %c0_8 = arith.constant 0 : index
    %14 = vector.load %arg4[%c24, %c0_8] : memref<100x1916xbf16, #tpu.memory_space<vmem>>, vector<4x1916xbf16>
    tpu.vector_store %arg4[%c24, %c0_8], %13 {strides = array<i32>} : memref<100x1916xbf16, #tpu.memory_space<vmem>>, vector<4x1916xbf16>,
    %15 = vector.extract_strided_slice %0 {offsets = [0, 34], sizes = [4, 1916], strides = [1, 1]} : vector<4x2048xbf16> to vector<4x1916xbf16>
    %c28 = arith.constant 28 : index
    %c0_9 = arith.constant 0 : index
    %16 = vector.load %arg4[%c28, %c0_9] : memref<100x1916xbf16, #tpu.memory_space<vmem>>, vector<4x1916xbf16>
    tpu.vector_store %arg4[%c28, %c0_9], %15 {strides = array<i32>} : memref<100x1916xbf16, #tpu.memory_space<vmem>>, vector<4x1916xbf16>,
    %17 = vector.extract_strided_slice %0 {offsets = [0, 35], sizes = [4, 1916], strides = [1, 1]} : vector<4x2048xbf16> to vector<4x1916xbf16>
    %c32 = arith.constant 32 : index
    %c0_10 = arith.constant 0 : index
    %18 = vector.load %arg4[%c32, %c0_10] : memref<100x1916xbf16, #tpu.memory_space<vmem>>, vector<4x1916xbf16>
    tpu.vector_store %arg4[%c32, %c0_10], %17 {strides = array<i32>} : memref<100x1916xbf16, #tpu.memory_space<vmem>>, vector<4x1916xbf16>,
    %19 = vector.extract_strided_slice %0 {offsets = [0, 36], sizes = [4, 1916], strides = [1, 1]} : vector<4x2048xbf16> to vector<4x1916xbf16>
    %c36 = arith.constant 36 : index
    %c0_11 = arith.constant 0 : index
    %20 = vector.load %arg4[%c36, %c0_11] : memref<100x1916xbf16, #tpu.memory_space<vmem>>, vector<4x1916xbf16>
    tpu.vector_store %arg4[%c36, %c0_11], %19 {strides = array<i32>} : memref<100x1916xbf16, #tpu.memory_space<vmem>>, vector<4x1916xbf16>,
    %21 = vector.extract_strided_slice %0 {offsets = [0, 64], sizes = [4, 1916], strides = [1, 1]} : vector<4x2048xbf16> to vector<4x1916xbf16>
    %c40 = arith.constant 40 : index
    %c0_12 = arith.constant 0 : index
    %22 = vector.load %arg4[%c40, %c0_12] : memref<100x1916xbf16, #tpu.memory_space<vmem>>, vector<4x1916xbf16>
    tpu.vector_store %arg4[%c40, %c0_12], %21 {strides = array<i32>} : memref<100x1916xbf16, #tpu.memory_space<vmem>>, vector<4x1916xbf16>,
    %23 = vector.extract_strided_slice %0 {offsets = [0, 65], sizes = [4, 1916], strides = [1, 1]} : vector<4x2048xbf16> to vector<4x1916xbf16>
    %c44 = arith.constant 44 : index
    %c0_13 = arith.constant 0 : index
    %24 = vector.load %arg4[%c44, %c0_13] : memref<100x1916xbf16, #tpu.memory_space<vmem>>, vector<4x1916xbf16>
    tpu.vector_store %arg4[%c44, %c0_13], %23 {strides = array<i32>} : memref<100x1916xbf16, #tpu.memory_space<vmem>>, vector<4x1916xbf16>,
    %25 = vector.extract_strided_slice %0 {offsets = [0, 66], sizes = [4, 1916], strides = [1, 1]} : vector<4x2048xbf16> to vector<4x1916xbf16>
    %c48 = arith.constant 48 : index
    %c0_14 = arith.constant 0 : index
    %26 = vector.load %arg4[%c48, %c0_14] : memref<100x1916xbf16, #tpu.memory_space<vmem>>, vector<4x1916xbf16>
    tpu.vector_store %arg4[%c48, %c0_14], %25 {strides = array<i32>} : memref<100x1916xbf16, #tpu.memory_space<vmem>>, vector<4x1916xbf16>,
    %27 = vector.extract_strided_slice %0 {offsets = [0, 67], sizes = [4, 1916], strides = [1, 1]} : vector<4x2048xbf16> to vector<4x1916xbf16>
    %c52 = arith.constant 52 : index
    %c0_15 = arith.constant 0 : index
    %28 = vector.load %arg4[%c52, %c0_15] : memref<100x1916xbf16, #tpu.memory_space<vmem>>, vector<4x1916xbf16>
    tpu.vector_store %arg4[%c52, %c0_15], %27 {strides = array<i32>} : memref<100x1916xbf16, #tpu.memory_space<vmem>>, vector<4x1916xbf16>,
    %29 = vector.extract_strided_slice %0 {offsets = [0, 68], sizes = [4, 1916], strides = [1, 1]} : vector<4x2048xbf16> to vector<4x1916xbf16>
    %c56 = arith.constant 56 : index
    %c0_16 = arith.constant 0 : index
    %30 = vector.load %arg4[%c56, %c0_16] : memref<100x1916xbf16, #tpu.memory_space<vmem>>, vector<4x1916xbf16>
    tpu.vector_store %arg4[%c56, %c0_16], %29 {strides = array<i32>} : memref<100x1916xbf16, #tpu.memory_space<vmem>>, vector<4x1916xbf16>,
    %31 = vector.extract_strided_slice %0 {offsets = [0, 96], sizes = [4, 1916], strides = [1, 1]} : vector<4x2048xbf16> to vector<4x1916xbf16>
    %c60 = arith.constant 60 : index
    %c0_17 = arith.constant 0 : index
    %32 = vector.load %arg4[%c60, %c0_17] : memref<100x1916xbf16, #tpu.memory_space<vmem>>, vector<4x1916xbf16>
    tpu.vector_store %arg4[%c60, %c0_17], %31 {strides = array<i32>} : memref<100x1916xbf16, #tpu.memory_space<vmem>>, vector<4x1916xbf16>,
    %33 = vector.extract_strided_slice %0 {offsets = [0, 97], sizes = [4, 1916], strides = [1, 1]} : vector<4x2048xbf16> to vector<4x1916xbf16>
    %c64 = arith.constant 64 : index
    %c0_18 = arith.constant 0 : index
    %34 = vector.load %arg4[%c64, %c0_18] : memref<100x1916xbf16, #tpu.memory_space<vmem>>, vector<4x1916xbf16>
    tpu.vector_store %arg4[%c64, %c0_18], %33 {strides = array<i32>} : memref<100x1916xbf16, #tpu.memory_space<vmem>>, vector<4x1916xbf16>,
    %35 = vector.extract_strided_slice %0 {offsets = [0, 98], sizes = [4, 1916], strides = [1, 1]} : vector<4x2048xbf16> to vector<4x1916xbf16>
    %c68 = arith.constant 68 : index
    %c0_19 = arith.constant 0 : index
    %36 = vector.load %arg4[%c68, %c0_19] : memref<100x1916xbf16, #tpu.memory_space<vmem>>, vector<4x1916xbf16>
    tpu.vector_store %arg4[%c68, %c0_19], %35 {strides = array<i32>} : memref<100x1916xbf16, #tpu.memory_space<vmem>>, vector<4x1916xbf16>,
    %37 = vector.extract_strided_slice %0 {offsets = [0, 99], sizes = [4, 1916], strides = [1, 1]} : vector<4x2048xbf16> to vector<4x1916xbf16>
    %c72 = arith.constant 72 : index
    %c0_20 = arith.constant 0 : index
    %38 = vector.load %arg4[%c72, %c0_20] : memref<100x1916xbf16, #tpu.memory_space<vmem>>, vector<4x1916xbf16>
    tpu.vector_store %arg4[%c72, %c0_20], %37 {strides = array<i32>} : memref<100x1916xbf16, #tpu.memory_space<vmem>>, vector<4x1916xbf16>,
    %39 = vector.extract_strided_slice %0 {offsets = [0, 100], sizes = [4, 1916], strides = [1, 1]} : vector<4x2048xbf16> to vector<4x1916xbf16>
    %c76 = arith.constant 76 : index
    %c0_21 = arith.constant 0 : index
    %40 = vector.load %arg4[%c76, %c0_21] : memref<100x1916xbf16, #tpu.memory_space<vmem>>, vector<4x1916xbf16>
    tpu.vector_store %arg4[%c76, %c0_21], %39 {strides = array<i32>} : memref<100x1916xbf16, #tpu.memory_space<vmem>>, vector<4x1916xbf16>,
    %41 = vector.extract_strided_slice %0 {offsets = [0, 128], sizes = [4, 1916], strides = [1, 1]} : vector<4x2048xbf16> to vector<4x1916xbf16>
    %c80 = arith.constant 80 : index
    %c0_22 = arith.constant 0 : index
    %42 = vector.load %arg4[%c80, %c0_22] : memref<100x1916xbf16, #tpu.memory_space<vmem>>, vector<4x1916xbf16>
    tpu.vector_store %arg4[%c80, %c0_22], %41 {strides = array<i32>} : memref<100x1916xbf16, #tpu.memory_space<vmem>>, vector<4x1916xbf16>,
    %43 = vector.extract_strided_slice %0 {offsets = [0, 129], sizes = [4, 1916], strides = [1, 1]} : vector<4x2048xbf16> to vector<4x1916xbf16>
    %c84 = arith.constant 84 : index
    %c0_23 = arith.constant 0 : index
    %44 = vector.load %arg4[%c84, %c0_23] : memref<100x1916xbf16, #tpu.memory_space<vmem>>, vector<4x1916xbf16>
    tpu.vector_store %arg4[%c84, %c0_23], %43 {strides = array<i32>} : memref<100x1916xbf16, #tpu.memory_space<vmem>>, vector<4x1916xbf16>,
    %45 = vector.extract_strided_slice %0 {offsets = [0, 130], sizes = [4, 1916], strides = [1, 1]} : vector<4x2048xbf16> to vector<4x1916xbf16>
    %c88 = arith.constant 88 : index
    %c0_24 = arith.constant 0 : index
    %46 = vector.load %arg4[%c88, %c0_24] : memref<100x1916xbf16, #tpu.memory_space<vmem>>, vector<4x1916xbf16>
    tpu.vector_store %arg4[%c88, %c0_24], %45 {strides = array<i32>} : memref<100x1916xbf16, #tpu.memory_space<vmem>>, vector<4x1916xbf16>,
    %47 = vector.extract_strided_slice %0 {offsets = [0, 131], sizes = [4, 1916], strides = [1, 1]} : vector<4x2048xbf16> to vector<4x1916xbf16>
    %c92 = arith.constant 92 : index
    %c0_25 = arith.constant 0 : index
    %48 = vector.load %arg4[%c92, %c0_25] : memref<100x1916xbf16, #tpu.memory_space<vmem>>, vector<4x1916xbf16>
    tpu.vector_store %arg4[%c92, %c0_25], %47 {strides = array<i32>} : memref<100x1916xbf16, #tpu.memory_space<vmem>>, vector<4x1916xbf16>,
    %49 = vector.extract_strided_slice %0 {offsets = [0, 132], sizes = [4, 1916], strides = [1, 1]} : vector<4x2048xbf16> to vector<4x1916xbf16>
    %c96 = arith.constant 96 : index
    %c0_26 = arith.constant 0 : index
    %50 = vector.load %arg4[%c96, %c0_26] : memref<100x1916xbf16, #tpu.memory_space<vmem>>, vector<4x1916xbf16>
    tpu.vector_store %arg4[%c96, %c0_26], %49 {strides = array<i32>} : memref<100x1916xbf16, #tpu.memory_space<vmem>>, vector<4x1916xbf16>,
    %c240 = arith.constant 240 : index
    %c0_27 = arith.constant 0 : index
    %51 = vector.load %arg1[%c240, %c0_27] : memref<272x400xbf16, #tpu.memory_space<vmem>>, vector<6x100xbf16>
    %c0_28 = arith.constant 0 : index
    %c0_29 = arith.constant 0 : index
    %52 = vector.load %arg4[%c0_28, %c0_29] : memref<100x1916xbf16, #tpu.memory_space<vmem>>, vector<100x1916xbf16>
    %cst = arith.constant dense<0.000000e+00> : vector<6x1916xf32>
    %53 = tpu.matmul %51, %52, %cst {dimension_numbers = #tpu.dot_dimension_numbers<[1], [0], [0], [1], [0, 0, 1, 1], [], []>} : vector<6x100xbf16>, vector<100x1916xbf16>, vector<6x1916xf32> -> vector<6x1916xf32>
    %c240_30 = arith.constant 240 : index
    %c0_31 = arith.constant 0 : index
    %54 = vector.load %arg2[%c240_30, %c0_31] : memref<272x1xf32, #tpu.memory_space<vmem>>, vector<6x1xf32>
    %55 = vector.broadcast %54 : vector<6x1xf32> to vector<6x1916xf32>
    %56 = arith.addf %53, %55 : vector<6x1916xf32>
    %cst_32 = arith.constant 0.00999999977 : f32
    %57 = vector.broadcast %cst_32 : f32 to vector<6x1916xf32>
    %58 = arith.mulf %57, %56 : vector<6x1916xf32>
    %59 = arith.maximumf %56, %58 : vector<6x1916xf32>
    %60 = vector.extract_strided_slice %59 {offsets = [0, 0], sizes = [6, 1883], strides = [1, 1]} : vector<6x1916xf32> to vector<6x1883xf32>
    %61 = vector.extract_strided_slice %59 {offsets = [0, 1], sizes = [6, 1883], strides = [1, 1]} : vector<6x1916xf32> to vector<6x1883xf32>
    %62 = arith.addf %60, %61 : vector<6x1883xf32>
    %63 = vector.extract_strided_slice %59 {offsets = [0, 32], sizes = [6, 1883], strides = [1, 1]} : vector<6x1916xf32> to vector<6x1883xf32>
    %64 = arith.addf %62, %63 : vector<6x1883xf32>
    %65 = vector.extract_strided_slice %59 {offsets = [0, 33], sizes = [6, 1883], strides = [1, 1]} : vector<6x1916xf32> to vector<6x1883xf32>
    %66 = arith.addf %64, %65 : vector<6x1883xf32>
    %cst_33 = arith.constant 2.500000e-01 : f32
    %67 = vector.broadcast %cst_33 : f32 to vector<6x1883xf32>
    %68 = arith.mulf %67, %66 : vector<6x1883xf32>
    %69 = arith.truncf %68 : vector<6x1883xf32> to vector<6x1883xbf16>
    %c0_34 = arith.constant 0 : index
    %c0_35 = arith.constant 0 : index
    %70 = vector.load %arg5[%c0_34, %c0_35] : memref<6x1883xbf16, #tpu.memory_space<vmem>>, vector<6x1883xbf16>
    tpu.vector_store %arg5[%c0_34, %c0_35], %69 {strides = array<i32>} : memref<6x1883xbf16, #tpu.memory_space<vmem>>, vector<6x1883xbf16>,
    %c0_36 = arith.constant 0 : index
    %c0_37 = arith.constant 0 : index
    %71 = vector.load %arg5[%c0_36, %c0_37] : memref<6x1883xbf16, #tpu.memory_space<vmem>>, vector<6x1619xbf16>
    %c0_38 = arith.constant 0 : index
    %c0_39 = arith.constant 0 : index
    %72 = vector.load %arg6[%c0_38, %c0_39] : memref<150x1619xbf16, #tpu.memory_space<vmem>>, vector<6x1619xbf16>
    tpu.vector_store %arg6[%c0_38, %c0_39], %71 {strides = array<i32>} : memref<150x1619xbf16, #tpu.memory_space<vmem>>, vector<6x1619xbf16>,
    %c0_40 = arith.constant 0 : index
    %c2 = arith.constant 2 : index
    %73 = vector.load %arg5[%c0_40, %c2] : memref<6x1883xbf16, #tpu.memory_space<vmem>>, vector<6x1619xbf16>
    %c6 = arith.constant 6 : index
    %c0_41 = arith.constant 0 : index
    %74 = vector.load %arg6[%c6, %c0_41] : memref<150x1619xbf16, #tpu.memory_space<vmem>>, vector<6x1619xbf16>
    tpu.vector_store %arg6[%c6, %c0_41], %73 {strides = array<i32>} : memref<150x1619xbf16, #tpu.memory_space<vmem>>, vector<6x1619xbf16>,
    %c0_42 = arith.constant 0 : index
    %c4_43 = arith.constant 4 : index
    %75 = vector.load %arg5[%c0_42, %c4_43] : memref<6x1883xbf16, #tpu.memory_space<vmem>>, vector<6x1619xbf16>
    %c12_44 = arith.constant 12 : index
    %c0_45 = arith.constant 0 : index
    %76 = vector.load %arg6[%c12_44, %c0_45] : memref<150x1619xbf16, #tpu.memory_space<vmem>>, vector<6x1619xbf16>
    tpu.vector_store %arg6[%c12_44, %c0_45], %75 {strides = array<i32>} : memref<150x1619xbf16, #tpu.memory_space<vmem>>, vector<6x1619xbf16>,
    %c0_46 = arith.constant 0 : index
    %c6_47 = arith.constant 6 : index
    %77 = vector.load %arg5[%c0_46, %c6_47] : memref<6x1883xbf16, #tpu.memory_space<vmem>>, vector<6x1619xbf16>
    %c18 = arith.constant 18 : index
    %c0_48 = arith.constant 0 : index
    %78 = vector.load %arg6[%c18, %c0_48] : memref<150x1619xbf16, #tpu.memory_space<vmem>>, vector<6x1619xbf16>
    tpu.vector_store %arg6[%c18, %c0_48], %77 {strides = array<i32>} : memref<150x1619xbf16, #tpu.memory_space<vmem>>, vector<6x1619xbf16>,
    %c0_49 = arith.constant 0 : index
    %c8_50 = arith.constant 8 : index
    %79 = vector.load %arg5[%c0_49, %c8_50] : memref<6x1883xbf16, #tpu.memory_space<vmem>>, vector<6x1619xbf16>
    %c24_51 = arith.constant 24 : index
    %c0_52 = arith.constant 0 : index
    %80 = vector.load %arg6[%c24_51, %c0_52] : memref<150x1619xbf16, #tpu.memory_space<vmem>>, vector<6x1619xbf16>
    tpu.vector_store %arg6[%c24_51, %c0_52], %79 {strides = array<i32>} : memref<150x1619xbf16, #tpu.memory_space<vmem>>, vector<6x1619xbf16>,
    %c0_53 = arith.constant 0 : index
    %c64_54 = arith.constant 64 : index
    %81 = vector.load %arg5[%c0_53, %c64_54] : memref<6x1883xbf16, #tpu.memory_space<vmem>>, vector<6x1619xbf16>
    %c30 = arith.constant 30 : index
    %c0_55 = arith.constant 0 : index
    %82 = vector.load %arg6[%c30, %c0_55] : memref<150x1619xbf16, #tpu.memory_space<vmem>>, vector<6x1619xbf16>
    tpu.vector_store %arg6[%c30, %c0_55], %81 {strides = array<i32>} : memref<150x1619xbf16, #tpu.memory_space<vmem>>, vector<6x1619xbf16>,
    %c0_56 = arith.constant 0 : index
    %c66 = arith.constant 66 : index
    %83 = vector.load %arg5[%c0_56, %c66] : memref<6x1883xbf16, #tpu.memory_space<vmem>>, vector<6x1619xbf16>
    %c36_57 = arith.constant 36 : index
    %c0_58 = arith.constant 0 : index
    %84 = vector.load %arg6[%c36_57, %c0_58] : memref<150x1619xbf16, #tpu.memory_space<vmem>>, vector<6x1619xbf16>
    tpu.vector_store %arg6[%c36_57, %c0_58], %83 {strides = array<i32>} : memref<150x1619xbf16, #tpu.memory_space<vmem>>, vector<6x1619xbf16>,
    %c0_59 = arith.constant 0 : index
    %c68_60 = arith.constant 68 : index
    %85 = vector.load %arg5[%c0_59, %c68_60] : memref<6x1883xbf16, #tpu.memory_space<vmem>>, vector<6x1619xbf16>
    %c42 = arith.constant 42 : index
    %c0_61 = arith.constant 0 : index
    %86 = vector.load %arg6[%c42, %c0_61] : memref<150x1619xbf16, #tpu.memory_space<vmem>>, vector<6x1619xbf16>
    tpu.vector_store %arg6[%c42, %c0_61], %85 {strides = array<i32>} : memref<150x1619xbf16, #tpu.memory_space<vmem>>, vector<6x1619xbf16>,
    %c0_62 = arith.constant 0 : index
    %c70 = arith.constant 70 : index
    %87 = vector.load %arg5[%c0_62, %c70] : memref<6x1883xbf16, #tpu.memory_space<vmem>>, vector<6x1619xbf16>
    %c48_63 = arith.constant 48 : index
    %c0_64 = arith.constant 0 : index
    %88 = vector.load %arg6[%c48_63, %c0_64] : memref<150x1619xbf16, #tpu.memory_space<vmem>>, vector<6x1619xbf16>
    tpu.vector_store %arg6[%c48_63, %c0_64], %87 {strides = array<i32>} : memref<150x1619xbf16, #tpu.memory_space<vmem>>, vector<6x1619xbf16>,
    %c0_65 = arith.constant 0 : index
    %c72_66 = arith.constant 72 : index
    %89 = vector.load %arg5[%c0_65, %c72_66] : memref<6x1883xbf16, #tpu.memory_space<vmem>>, vector<6x1619xbf16>
    %c54 = arith.constant 54 : index
    %c0_67 = arith.constant 0 : index
    %90 = vector.load %arg6[%c54, %c0_67] : memref<150x1619xbf16, #tpu.memory_space<vmem>>, vector<6x1619xbf16>
    tpu.vector_store %arg6[%c54, %c0_67], %89 {strides = array<i32>} : memref<150x1619xbf16, #tpu.memory_space<vmem>>, vector<6x1619xbf16>,
    %c0_68 = arith.constant 0 : index
    %c128 = arith.constant 128 : index
    %91 = vector.load %arg5[%c0_68, %c128] : memref<6x1883xbf16, #tpu.memory_space<vmem>>, vector<6x1619xbf16>
    %c60_69 = arith.constant 60 : index
    %c0_70 = arith.constant 0 : index
    %92 = vector.load %arg6[%c60_69, %c0_70] : memref<150x1619xbf16, #tpu.memory_space<vmem>>, vector<6x1619xbf16>
    tpu.vector_store %arg6[%c60_69, %c0_70], %91 {strides = array<i32>} : memref<150x1619xbf16, #tpu.memory_space<vmem>>, vector<6x1619xbf16>,
    %c0_71 = arith.constant 0 : index
    %c130 = arith.constant 130 : index
    %93 = vector.load %arg5[%c0_71, %c130] : memref<6x1883xbf16, #tpu.memory_space<vmem>>, vector<6x1619xbf16>
    %c66_72 = arith.constant 66 : index
    %c0_73 = arith.constant 0 : index
    %94 = vector.load %arg6[%c66_72, %c0_73] : memref<150x1619xbf16, #tpu.memory_space<vmem>>, vector<6x1619xbf16>
    tpu.vector_store %arg6[%c66_72, %c0_73], %93 {strides = array<i32>} : memref<150x1619xbf16, #tpu.memory_space<vmem>>, vector<6x1619xbf16>,
    %c0_74 = arith.constant 0 : index
    %c132 = arith.constant 132 : index
    %95 = vector.load %arg5[%c0_74, %c132] : memref<6x1883xbf16, #tpu.memory_space<vmem>>, vector<6x1619xbf16>
    %c72_75 = arith.constant 72 : index
    %c0_76 = arith.constant 0 : index
    %96 = vector.load %arg6[%c72_75, %c0_76] : memref<150x1619xbf16, #tpu.memory_space<vmem>>, vector<6x1619xbf16>
    tpu.vector_store %arg6[%c72_75, %c0_76], %95 {strides = array<i32>} : memref<150x1619xbf16, #tpu.memory_space<vmem>>, vector<6x1619xbf16>,
    %c0_77 = arith.constant 0 : index
    %c134 = arith.constant 134 : index
    %97 = vector.load %arg5[%c0_77, %c134] : memref<6x1883xbf16, #tpu.memory_space<vmem>>, vector<6x1619xbf16>
    %c78 = arith.constant 78 : index
    %c0_78 = arith.constant 0 : index
    %98 = vector.load %arg6[%c78, %c0_78] : memref<150x1619xbf16, #tpu.memory_space<vmem>>, vector<6x1619xbf16>
    tpu.vector_store %arg6[%c78, %c0_78], %97 {strides = array<i32>} : memref<150x1619xbf16, #tpu.memory_space<vmem>>, vector<6x1619xbf16>,
    %c0_79 = arith.constant 0 : index
    %c136 = arith.constant 136 : index
    %99 = vector.load %arg5[%c0_79, %c136] : memref<6x1883xbf16, #tpu.memory_space<vmem>>, vector<6x1619xbf16>
    %c84_80 = arith.constant 84 : index
    %c0_81 = arith.constant 0 : index
    %100 = vector.load %arg6[%c84_80, %c0_81] : memref<150x1619xbf16, #tpu.memory_space<vmem>>, vector<6x1619xbf16>
    tpu.vector_store %arg6[%c84_80, %c0_81], %99 {strides = array<i32>} : memref<150x1619xbf16, #tpu.memory_space<vmem>>, vector<6x1619xbf16>,
    %c0_82 = arith.constant 0 : index
    %c192 = arith.constant 192 : index
    %101 = vector.load %arg5[%c0_82, %c192] : memref<6x1883xbf16, #tpu.memory_space<vmem>>, vector<6x1619xbf16>
    %c90 = arith.constant 90 : index
    %c0_83 = arith.constant 0 : index
    %102 = vector.load %arg6[%c90, %c0_83] : memref<150x1619xbf16, #tpu.memory_space<vmem>>, vector<6x1619xbf16>
    tpu.vector_store %arg6[%c90, %c0_83], %101 {strides = array<i32>} : memref<150x1619xbf16, #tpu.memory_space<vmem>>, vector<6x1619xbf16>,
    %c0_84 = arith.constant 0 : index
    %c194 = arith.constant 194 : index
    %103 = vector.load %arg5[%c0_84, %c194] : memref<6x1883xbf16, #tpu.memory_space<vmem>>, vector<6x1619xbf16>
    %c96_85 = arith.constant 96 : index
    %c0_86 = arith.constant 0 : index
    %104 = vector.load %arg6[%c96_85, %c0_86] : memref<150x1619xbf16, #tpu.memory_space<vmem>>, vector<6x1619xbf16>
    tpu.vector_store %arg6[%c96_85, %c0_86], %103 {strides = array<i32>} : memref<150x1619xbf16, #tpu.memory_space<vmem>>, vector<6x1619xbf16>,
    %c0_87 = arith.constant 0 : index
    %c196 = arith.constant 196 : index
    %105 = vector.load %arg5[%c0_87, %c196] : memref<6x1883xbf16, #tpu.memory_space<vmem>>, vector<6x1619xbf16>
    %c102 = arith.constant 102 : index
    %c0_88 = arith.constant 0 : index
    %106 = vector.load %arg6[%c102, %c0_88] : memref<150x1619xbf16, #tpu.memory_space<vmem>>, vector<6x1619xbf16>
    tpu.vector_store %arg6[%c102, %c0_88], %105 {strides = array<i32>} : memref<150x1619xbf16, #tpu.memory_space<vmem>>, vector<6x1619xbf16>,
    %c0_89 = arith.constant 0 : index
    %c198 = arith.constant 198 : index
    %107 = vector.load %arg5[%c0_89, %c198] : memref<6x1883xbf16, #tpu.memory_space<vmem>>, vector<6x1619xbf16>
    %c108 = arith.constant 108 : index
    %c0_90 = arith.constant 0 : index
    %108 = vector.load %arg6[%c108, %c0_90] : memref<150x1619xbf16, #tpu.memory_space<vmem>>, vector<6x1619xbf16>
    tpu.vector_store %arg6[%c108, %c0_90], %107 {strides = array<i32>} : memref<150x1619xbf16, #tpu.memory_space<vmem>>, vector<6x1619xbf16>,
    %c0_91 = arith.constant 0 : index
    %c200 = arith.constant 200 : index
    %109 = vector.load %arg5[%c0_91, %c200] : memref<6x1883xbf16, #tpu.memory_space<vmem>>, vector<6x1619xbf16>
    %c114 = arith.constant 114 : index
    %c0_92 = arith.constant 0 : index
    %110 = vector.load %arg6[%c114, %c0_92] : memref<150x1619xbf16, #tpu.memory_space<vmem>>, vector<6x1619xbf16>
    tpu.vector_store %arg6[%c114, %c0_92], %109 {strides = array<i32>} : memref<150x1619xbf16, #tpu.memory_space<vmem>>, vector<6x1619xbf16>,
    %c0_93 = arith.constant 0 : index
    %c256 = arith.constant 256 : index
    %111 = vector.load %arg5[%c0_93, %c256] : memref<6x1883xbf16, #tpu.memory_space<vmem>>, vector<6x1619xbf16>
    %c120 = arith.constant 120 : index
    %c0_94 = arith.constant 0 : index
    %112 = vector.load %arg6[%c120, %c0_94] : memref<150x1619xbf16, #tpu.memory_space<vmem>>, vector<6x1619xbf16>
    tpu.vector_store %arg6[%c120, %c0_94], %111 {strides = array<i32>} : memref<150x1619xbf16, #tpu.memory_space<vmem>>, vector<6x1619xbf16>,
    %c0_95 = arith.constant 0 : index
    %c258 = arith.constant 258 : index
    %113 = vector.load %arg5[%c0_95, %c258] : memref<6x1883xbf16, #tpu.memory_space<vmem>>, vector<6x1619xbf16>
    %c126 = arith.constant 126 : index
    %c0_96 = arith.constant 0 : index
    %114 = vector.load %arg6[%c126, %c0_96] : memref<150x1619xbf16, #tpu.memory_space<vmem>>, vector<6x1619xbf16>
    tpu.vector_store %arg6[%c126, %c0_96], %113 {strides = array<i32>} : memref<150x1619xbf16, #tpu.memory_space<vmem>>, vector<6x1619xbf16>,
    %c0_97 = arith.constant 0 : index
    %c260 = arith.constant 260 : index
    %115 = vector.load %arg5[%c0_97, %c260] : memref<6x1883xbf16, #tpu.memory_space<vmem>>, vector<6x1619xbf16>
    %c132_98 = arith.constant 132 : index
    %c0_99 = arith.constant 0 : index
    %116 = vector.load %arg6[%c132_98, %c0_99] : memref<150x1619xbf16, #tpu.memory_space<vmem>>, vector<6x1619xbf16>
    tpu.vector_store %arg6[%c132_98, %c0_99], %115 {strides = array<i32>} : memref<150x1619xbf16, #tpu.memory_space<vmem>>, vector<6x1619xbf16>,
    %c0_100 = arith.constant 0 : index
    %c262 = arith.constant 262 : index
    %117 = vector.load %arg5[%c0_100, %c262] : memref<6x1883xbf16, #tpu.memory_space<vmem>>, vector<6x1619xbf16>
    %c138 = arith.constant 138 : index
    %c0_101 = arith.constant 0 : index
    %118 = vector.load %arg6[%c138, %c0_101] : memref<150x1619xbf16, #tpu.memory_space<vmem>>, vector<6x1619xbf16>
    tpu.vector_store %arg6[%c138, %c0_101], %117 {strides = array<i32>} : memref<150x1619xbf16, #tpu.memory_space<vmem>>, vector<6x1619xbf16>,
    %c0_102 = arith.constant 0 : index
    %c264 = arith.constant 264 : index
    %119 = vector.load %arg5[%c0_102, %c264] : memref<6x1883xbf16, #tpu.memory_space<vmem>>, vector<6x1619xbf16>
    %c144 = arith.constant 144 : index
    %c0_103 = arith.constant 0 : index
    %120 = vector.load %arg6[%c144, %c0_103] : memref<150x1619xbf16, #tpu.memory_space<vmem>>, vector<6x1619xbf16>
    tpu.vector_store %arg6[%c144, %c0_103], %119 {strides = array<i32>} : memref<150x1619xbf16, #tpu.memory_space<vmem>>, vector<6x1619xbf16>,
    %c256_104 = arith.constant 256 : index
    %c0_105 = arith.constant 0 : index
    %121 = vector.load %arg1[%c256_104, %c0_105] : memref<272x400xbf16, #tpu.memory_space<vmem>>, vector<16x150xbf16>
    %c0_106 = arith.constant 0 : index
    %c0_107 = arith.constant 0 : index
    %122 = vector.load %arg6[%c0_106, %c0_107] : memref<150x1619xbf16, #tpu.memory_space<vmem>>, vector<150x1619xbf16>
    %cst_108 = arith.constant dense<0.000000e+00> : vector<16x1619xf32>
    %123 = tpu.matmul %121, %122, %cst_108 {dimension_numbers = #tpu.dot_dimension_numbers<[1], [0], [0], [1], [0, 0, 1, 1], [], []>} : vector<16x150xbf16>, vector<150x1619xbf16>, vector<16x1619xf32> -> vector<16x1619xf32>
    %c256_109 = arith.constant 256 : index
    %c0_110 = arith.constant 0 : index
    %124 = vector.load %arg2[%c256_109, %c0_110] : memref<272x1xf32, #tpu.memory_space<vmem>>, vector<16x1xf32>
    %125 = vector.broadcast %124 : vector<16x1xf32> to vector<16x1619xf32>
    %126 = arith.addf %123, %125 : vector<16x1619xf32>
    %cst_111 = arith.constant 0.00999999977 : f32
    %127 = vector.broadcast %cst_111 : f32 to vector<16x1619xf32>
    %128 = arith.mulf %127, %126 : vector<16x1619xf32>
    %129 = arith.maximumf %126, %128 : vector<16x1619xf32>
    %130 = vector.extract_strided_slice %129 {offsets = [0, 0], sizes = [16, 1553], strides = [1, 1]} : vector<16x1619xf32> to vector<16x1553xf32>
    %131 = vector.extract_strided_slice %129 {offsets = [0, 2], sizes = [16, 1553], strides = [1, 1]} : vector<16x1619xf32> to vector<16x1553xf32>
    %132 = arith.addf %130, %131 : vector<16x1553xf32>
    %133 = vector.extract_strided_slice %129 {offsets = [0, 64], sizes = [16, 1553], strides = [1, 1]} : vector<16x1619xf32> to vector<16x1553xf32>
    %134 = arith.addf %132, %133 : vector<16x1553xf32>
    %135 = vector.extract_strided_slice %129 {offsets = [0, 66], sizes = [16, 1553], strides = [1, 1]} : vector<16x1619xf32> to vector<16x1553xf32>
    %136 = arith.addf %134, %135 : vector<16x1553xf32>
    %cst_112 = arith.constant 2.500000e-01 : f32
    %137 = vector.broadcast %cst_112 : f32 to vector<16x1553xf32>
    %138 = arith.mulf %137, %136 : vector<16x1553xf32>
    %139 = arith.truncf %138 : vector<16x1553xf32> to vector<16x1553xbf16>
    %c0_113 = arith.constant 0 : index
    %c0_114 = arith.constant 0 : index
    %140 = vector.load %arg7[%c0_113, %c0_114] : memref<16x1553xbf16, #tpu.memory_space<vmem>>, vector<16x1553xbf16>
    tpu.vector_store %arg7[%c0_113, %c0_114], %139 {strides = array<i32>} : memref<16x1553xbf16, #tpu.memory_space<vmem>>, vector<16x1553xbf16>,
    %c0_115 = arith.constant 0 : index
    %c0_116 = arith.constant 0 : index
    %141 = vector.load %arg7[%c0_115, %c0_116] : memref<16x1553xbf16, #tpu.memory_space<vmem>>, vector<16x1xbf16>
    %c0_117 = arith.constant 0 : index
    %c0_118 = arith.constant 0 : index
    %142 = vector.load %arg8[%c0_117, %c0_118] : memref<400x2xbf16, #tpu.memory_space<vmem>>, vector<16x1xbf16>
    tpu.vector_store %arg8[%c0_117, %c0_118], %141 {strides = array<i32>} : memref<400x2xbf16, #tpu.memory_space<vmem>>, vector<16x1xbf16>,
    %c0_119 = arith.constant 0 : index
    %c1024 = arith.constant 1024 : index
    %143 = vector.load %arg7[%c0_119, %c1024] : memref<16x1553xbf16, #tpu.memory_space<vmem>>, vector<16x1xbf16>
    %c0_120 = arith.constant 0 : index
    %c1 = arith.constant 1 : index
    %144 = vector.load %arg8[%c0_120, %c1] : memref<400x2xbf16, #tpu.memory_space<vmem>>, vector<16x1xbf16>
    tpu.vector_store %arg8[%c0_120, %c1], %143 {strides = array<i32>} : memref<400x2xbf16, #tpu.memory_space<vmem>>, vector<16x1xbf16>,
    %c0_121 = arith.constant 0 : index
    %c4_122 = arith.constant 4 : index
    %145 = vector.load %arg7[%c0_121, %c4_122] : memref<16x1553xbf16, #tpu.memory_space<vmem>>, vector<16x1xbf16>
    %c16_123 = arith.constant 16 : index
    %c0_124 = arith.constant 0 : index
    %146 = vector.load %arg8[%c16_123, %c0_124] : memref<400x2xbf16, #tpu.memory_space<vmem>>, vector<16x1xbf16>
    tpu.vector_store %arg8[%c16_123, %c0_124], %145 {strides = array<i32>} : memref<400x2xbf16, #tpu.memory_space<vmem>>, vector<16x1xbf16>,
    %c0_125 = arith.constant 0 : index
    %c1028 = arith.constant 1028 : index
    %147 = vector.load %arg7[%c0_125, %c1028] : memref<16x1553xbf16, #tpu.memory_space<vmem>>, vector<16x1xbf16>
    %c16_126 = arith.constant 16 : index
    %c1_127 = arith.constant 1 : index
    %148 = vector.load %arg8[%c16_126, %c1_127] : memref<400x2xbf16, #tpu.memory_space<vmem>>, vector<16x1xbf16>
    tpu.vector_store %arg8[%c16_126, %c1_127], %147 {strides = array<i32>} : memref<400x2xbf16, #tpu.memory_space<vmem>>, vector<16x1xbf16>,
    %c0_128 = arith.constant 0 : index
    %c8_129 = arith.constant 8 : index
    %149 = vector.load %arg7[%c0_128, %c8_129] : memref<16x1553xbf16, #tpu.memory_space<vmem>>, vector<16x1xbf16>
    %c32_130 = arith.constant 32 : index
    %c0_131 = arith.constant 0 : index
    %150 = vector.load %arg8[%c32_130, %c0_131] : memref<400x2xbf16, #tpu.memory_space<vmem>>, vector<16x1xbf16>
    tpu.vector_store %arg8[%c32_130, %c0_131], %149 {strides = array<i32>} : memref<400x2xbf16, #tpu.memory_space<vmem>>, vector<16x1xbf16>,
    %c0_132 = arith.constant 0 : index
    %c1032 = arith.constant 1032 : index
    %151 = vector.load %arg7[%c0_132, %c1032] : memref<16x1553xbf16, #tpu.memory_space<vmem>>, vector<16x1xbf16>
    %c32_133 = arith.constant 32 : index
    %c1_134 = arith.constant 1 : index
    %152 = vector.load %arg8[%c32_133, %c1_134] : memref<400x2xbf16, #tpu.memory_space<vmem>>, vector<16x1xbf16>
    tpu.vector_store %arg8[%c32_133, %c1_134], %151 {strides = array<i32>} : memref<400x2xbf16, #tpu.memory_space<vmem>>, vector<16x1xbf16>,
    %c0_135 = arith.constant 0 : index
    %c12_136 = arith.constant 12 : index
    %153 = vector.load %arg7[%c0_135, %c12_136] : memref<16x1553xbf16, #tpu.memory_space<vmem>>, vector<16x1xbf16>
    %c48_137 = arith.constant 48 : index
    %c0_138 = arith.constant 0 : index
    %154 = vector.load %arg8[%c48_137, %c0_138] : memref<400x2xbf16, #tpu.memory_space<vmem>>, vector<16x1xbf16>
    tpu.vector_store %arg8[%c48_137, %c0_138], %153 {strides = array<i32>} : memref<400x2xbf16, #tpu.memory_space<vmem>>, vector<16x1xbf16>,
    %c0_139 = arith.constant 0 : index
    %c1036 = arith.constant 1036 : index
    %155 = vector.load %arg7[%c0_139, %c1036] : memref<16x1553xbf16, #tpu.memory_space<vmem>>, vector<16x1xbf16>
    %c48_140 = arith.constant 48 : index
    %c1_141 = arith.constant 1 : index
    %156 = vector.load %arg8[%c48_140, %c1_141] : memref<400x2xbf16, #tpu.memory_space<vmem>>, vector<16x1xbf16>
    tpu.vector_store %arg8[%c48_140, %c1_141], %155 {strides = array<i32>} : memref<400x2xbf16, #tpu.memory_space<vmem>>, vector<16x1xbf16>,
    %c0_142 = arith.constant 0 : index
    %c16_143 = arith.constant 16 : index
    %157 = vector.load %arg7[%c0_142, %c16_143] : memref<16x1553xbf16, #tpu.memory_space<vmem>>, vector<16x1xbf16>
    %c64_144 = arith.constant 64 : index
    %c0_145 = arith.constant 0 : index
    %158 = vector.load %arg8[%c64_144, %c0_145] : memref<400x2xbf16, #tpu.memory_space<vmem>>, vector<16x1xbf16>
    tpu.vector_store %arg8[%c64_144, %c0_145], %157 {strides = array<i32>} : memref<400x2xbf16, #tpu.memory_space<vmem>>, vector<16x1xbf16>,
    %c0_146 = arith.constant 0 : index
    %c1040 = arith.constant 1040 : index
    %159 = vector.load %arg7[%c0_146, %c1040] : memref<16x1553xbf16, #tpu.memory_space<vmem>>, vector<16x1xbf16>
    %c64_147 = arith.constant 64 : index
    %c1_148 = arith.constant 1 : index
    %160 = vector.load %arg8[%c64_147, %c1_148] : memref<400x2xbf16, #tpu.memory_space<vmem>>, vector<16x1xbf16>
    tpu.vector_store %arg8[%c64_147, %c1_148], %159 {strides = array<i32>} : memref<400x2xbf16, #tpu.memory_space<vmem>>, vector<16x1xbf16>,
    %c0_149 = arith.constant 0 : index
    %c128_150 = arith.constant 128 : index
    %161 = vector.load %arg7[%c0_149, %c128_150] : memref<16x1553xbf16, #tpu.memory_space<vmem>>, vector<16x1xbf16>
    %c80_151 = arith.constant 80 : index
    %c0_152 = arith.constant 0 : index
    %162 = vector.load %arg8[%c80_151, %c0_152] : memref<400x2xbf16, #tpu.memory_space<vmem>>, vector<16x1xbf16>
    tpu.vector_store %arg8[%c80_151, %c0_152], %161 {strides = array<i32>} : memref<400x2xbf16, #tpu.memory_space<vmem>>, vector<16x1xbf16>,
    %c0_153 = arith.constant 0 : index
    %c1152 = arith.constant 1152 : index
    %163 = vector.load %arg7[%c0_153, %c1152] : memref<16x1553xbf16, #tpu.memory_space<vmem>>, vector<16x1xbf16>
    %c80_154 = arith.constant 80 : index
    %c1_155 = arith.constant 1 : index
    %164 = vector.load %arg8[%c80_154, %c1_155] : memref<400x2xbf16, #tpu.memory_space<vmem>>, vector<16x1xbf16>
    tpu.vector_store %arg8[%c80_154, %c1_155], %163 {strides = array<i32>} : memref<400x2xbf16, #tpu.memory_space<vmem>>, vector<16x1xbf16>,
    %c0_156 = arith.constant 0 : index
    %c132_157 = arith.constant 132 : index
    %165 = vector.load %arg7[%c0_156, %c132_157] : memref<16x1553xbf16, #tpu.memory_space<vmem>>, vector<16x1xbf16>
    %c96_158 = arith.constant 96 : index
    %c0_159 = arith.constant 0 : index
    %166 = vector.load %arg8[%c96_158, %c0_159] : memref<400x2xbf16, #tpu.memory_space<vmem>>, vector<16x1xbf16>
    tpu.vector_store %arg8[%c96_158, %c0_159], %165 {strides = array<i32>} : memref<400x2xbf16, #tpu.memory_space<vmem>>, vector<16x1xbf16>,
    %c0_160 = arith.constant 0 : index
    %c1156 = arith.constant 1156 : index
    %167 = vector.load %arg7[%c0_160, %c1156] : memref<16x1553xbf16, #tpu.memory_space<vmem>>, vector<16x1xbf16>
    %c96_161 = arith.constant 96 : index
    %c1_162 = arith.constant 1 : index
    %168 = vector.load %arg8[%c96_161, %c1_162] : memref<400x2xbf16, #tpu.memory_space<vmem>>, vector<16x1xbf16>
    tpu.vector_store %arg8[%c96_161, %c1_162], %167 {strides = array<i32>} : memref<400x2xbf16, #tpu.memory_space<vmem>>, vector<16x1xbf16>,
    %c0_163 = arith.constant 0 : index
    %c136_164 = arith.constant 136 : index
    %169 = vector.load %arg7[%c0_163, %c136_164] : memref<16x1553xbf16, #tpu.memory_space<vmem>>, vector<16x1xbf16>
    %c112 = arith.constant 112 : index
    %c0_165 = arith.constant 0 : index
    %170 = vector.load %arg8[%c112, %c0_165] : memref<400x2xbf16, #tpu.memory_space<vmem>>, vector<16x1xbf16>
    tpu.vector_store %arg8[%c112, %c0_165], %169 {strides = array<i32>} : memref<400x2xbf16, #tpu.memory_space<vmem>>, vector<16x1xbf16>,
    %c0_166 = arith.constant 0 : index
    %c1160 = arith.constant 1160 : index
    %171 = vector.load %arg7[%c0_166, %c1160] : memref<16x1553xbf16, #tpu.memory_space<vmem>>, vector<16x1xbf16>
    %c112_167 = arith.constant 112 : index
    %c1_168 = arith.constant 1 : index
    %172 = vector.load %arg8[%c112_167, %c1_168] : memref<400x2xbf16, #tpu.memory_space<vmem>>, vector<16x1xbf16>
    tpu.vector_store %arg8[%c112_167, %c1_168], %171 {strides = array<i32>} : memref<400x2xbf16, #tpu.memory_space<vmem>>, vector<16x1xbf16>,
    %c0_169 = arith.constant 0 : index
    %c140 = arith.constant 140 : index
    %173 = vector.load %arg7[%c0_169, %c140] : memref<16x1553xbf16, #tpu.memory_space<vmem>>, vector<16x1xbf16>
    %c128_170 = arith.constant 128 : index
    %c0_171 = arith.constant 0 : index
    %174 = vector.load %arg8[%c128_170, %c0_171] : memref<400x2xbf16, #tpu.memory_space<vmem>>, vector<16x1xbf16>
    tpu.vector_store %arg8[%c128_170, %c0_171], %173 {strides = array<i32>} : memref<400x2xbf16, #tpu.memory_space<vmem>>, vector<16x1xbf16>,
    %c0_172 = arith.constant 0 : index
    %c1164 = arith.constant 1164 : index
    %175 = vector.load %arg7[%c0_172, %c1164] : memref<16x1553xbf16, #tpu.memory_space<vmem>>, vector<16x1xbf16>
    %c128_173 = arith.constant 128 : index
    %c1_174 = arith.constant 1 : index
    %176 = vector.load %arg8[%c128_173, %c1_174] : memref<400x2xbf16, #tpu.memory_space<vmem>>, vector<16x1xbf16>
    tpu.vector_store %arg8[%c128_173, %c1_174], %175 {strides = array<i32>} : memref<400x2xbf16, #tpu.memory_space<vmem>>, vector<16x1xbf16>,
    %c0_175 = arith.constant 0 : index
    %c144_176 = arith.constant 144 : index
    %177 = vector.load %arg7[%c0_175, %c144_176] : memref<16x1553xbf16, #tpu.memory_space<vmem>>, vector<16x1xbf16>
    %c144_177 = arith.constant 144 : index
    %c0_178 = arith.constant 0 : index
    %178 = vector.load %arg8[%c144_177, %c0_178] : memref<400x2xbf16, #tpu.memory_space<vmem>>, vector<16x1xbf16>
    tpu.vector_store %arg8[%c144_177, %c0_178], %177 {strides = array<i32>} : memref<400x2xbf16, #tpu.memory_space<vmem>>, vector<16x1xbf16>,
    %c0_179 = arith.constant 0 : index
    %c1168 = arith.constant 1168 : index
    %179 = vector.load %arg7[%c0_179, %c1168] : memref<16x1553xbf16, #tpu.memory_space<vmem>>, vector<16x1xbf16>
    %c144_180 = arith.constant 144 : index
    %c1_181 = arith.constant 1 : index
    %180 = vector.load %arg8[%c144_180, %c1_181] : memref<400x2xbf16, #tpu.memory_space<vmem>>, vector<16x1xbf16>
    tpu.vector_store %arg8[%c144_180, %c1_181], %179 {strides = array<i32>} : memref<400x2xbf16, #tpu.memory_space<vmem>>, vector<16x1xbf16>,
    %c0_182 = arith.constant 0 : index
    %c256_183 = arith.constant 256 : index
    %181 = vector.load %arg7[%c0_182, %c256_183] : memref<16x1553xbf16, #tpu.memory_space<vmem>>, vector<16x1xbf16>
    %c160 = arith.constant 160 : index
    %c0_184 = arith.constant 0 : index
    %182 = vector.load %arg8[%c160, %c0_184] : memref<400x2xbf16, #tpu.memory_space<vmem>>, vector<16x1xbf16>
    tpu.vector_store %arg8[%c160, %c0_184], %181 {strides = array<i32>} : memref<400x2xbf16, #tpu.memory_space<vmem>>, vector<16x1xbf16>,
    %c0_185 = arith.constant 0 : index
    %c1280 = arith.constant 1280 : index
    %183 = vector.load %arg7[%c0_185, %c1280] : memref<16x1553xbf16, #tpu.memory_space<vmem>>, vector<16x1xbf16>
    %c160_186 = arith.constant 160 : index
    %c1_187 = arith.constant 1 : index
    %184 = vector.load %arg8[%c160_186, %c1_187] : memref<400x2xbf16, #tpu.memory_space<vmem>>, vector<16x1xbf16>
    tpu.vector_store %arg8[%c160_186, %c1_187], %183 {strides = array<i32>} : memref<400x2xbf16, #tpu.memory_space<vmem>>, vector<16x1xbf16>,
    %c0_188 = arith.constant 0 : index
    %c260_189 = arith.constant 260 : index
    %185 = vector.load %arg7[%c0_188, %c260_189] : memref<16x1553xbf16, #tpu.memory_space<vmem>>, vector<16x1xbf16>
    %c176 = arith.constant 176 : index
    %c0_190 = arith.constant 0 : index
    %186 = vector.load %arg8[%c176, %c0_190] : memref<400x2xbf16, #tpu.memory_space<vmem>>, vector<16x1xbf16>
    tpu.vector_store %arg8[%c176, %c0_190], %185 {strides = array<i32>} : memref<400x2xbf16, #tpu.memory_space<vmem>>, vector<16x1xbf16>,
    %c0_191 = arith.constant 0 : index
    %c1284 = arith.constant 1284 : index
    %187 = vector.load %arg7[%c0_191, %c1284] : memref<16x1553xbf16, #tpu.memory_space<vmem>>, vector<16x1xbf16>
    %c176_192 = arith.constant 176 : index
    %c1_193 = arith.constant 1 : index
    %188 = vector.load %arg8[%c176_192, %c1_193] : memref<400x2xbf16, #tpu.memory_space<vmem>>, vector<16x1xbf16>
    tpu.vector_store %arg8[%c176_192, %c1_193], %187 {strides = array<i32>} : memref<400x2xbf16, #tpu.memory_space<vmem>>, vector<16x1xbf16>,
    %c0_194 = arith.constant 0 : index
    %c264_195 = arith.constant 264 : index
    %189 = vector.load %arg7[%c0_194, %c264_195] : memref<16x1553xbf16, #tpu.memory_space<vmem>>, vector<16x1xbf16>
    %c192_196 = arith.constant 192 : index
    %c0_197 = arith.constant 0 : index
    %190 = vector.load %arg8[%c192_196, %c0_197] : memref<400x2xbf16, #tpu.memory_space<vmem>>, vector<16x1xbf16>
    tpu.vector_store %arg8[%c192_196, %c0_197], %189 {strides = array<i32>} : memref<400x2xbf16, #tpu.memory_space<vmem>>, vector<16x1xbf16>,
    %c0_198 = arith.constant 0 : index
    %c1288 = arith.constant 1288 : index
    %191 = vector.load %arg7[%c0_198, %c1288] : memref<16x1553xbf16, #tpu.memory_space<vmem>>, vector<16x1xbf16>
    %c192_199 = arith.constant 192 : index
    %c1_200 = arith.constant 1 : index
    %192 = vector.load %arg8[%c192_199, %c1_200] : memref<400x2xbf16, #tpu.memory_space<vmem>>, vector<16x1xbf16>
    tpu.vector_store %arg8[%c192_199, %c1_200], %191 {strides = array<i32>} : memref<400x2xbf16, #tpu.memory_space<vmem>>, vector<16x1xbf16>,
    %c0_201 = arith.constant 0 : index
    %c268 = arith.constant 268 : index
    %193 = vector.load %arg7[%c0_201, %c268] : memref<16x1553xbf16, #tpu.memory_space<vmem>>, vector<16x1xbf16>
    %c208 = arith.constant 208 : index
    %c0_202 = arith.constant 0 : index
    %194 = vector.load %arg8[%c208, %c0_202] : memref<400x2xbf16, #tpu.memory_space<vmem>>, vector<16x1xbf16>
    tpu.vector_store %arg8[%c208, %c0_202], %193 {strides = array<i32>} : memref<400x2xbf16, #tpu.memory_space<vmem>>, vector<16x1xbf16>,
    %c0_203 = arith.constant 0 : index
    %c1292 = arith.constant 1292 : index
    %195 = vector.load %arg7[%c0_203, %c1292] : memref<16x1553xbf16, #tpu.memory_space<vmem>>, vector<16x1xbf16>
    %c208_204 = arith.constant 208 : index
    %c1_205 = arith.constant 1 : index
    %196 = vector.load %arg8[%c208_204, %c1_205] : memref<400x2xbf16, #tpu.memory_space<vmem>>, vector<16x1xbf16>
    tpu.vector_store %arg8[%c208_204, %c1_205], %195 {strides = array<i32>} : memref<400x2xbf16, #tpu.memory_space<vmem>>, vector<16x1xbf16>,
    %c0_206 = arith.constant 0 : index
    %c272 = arith.constant 272 : index
    %197 = vector.load %arg7[%c0_206, %c272] : memref<16x1553xbf16, #tpu.memory_space<vmem>>, vector<16x1xbf16>
    %c224 = arith.constant 224 : index
    %c0_207 = arith.constant 0 : index
    %198 = vector.load %arg8[%c224, %c0_207] : memref<400x2xbf16, #tpu.memory_space<vmem>>, vector<16x1xbf16>
    tpu.vector_store %arg8[%c224, %c0_207], %197 {strides = array<i32>} : memref<400x2xbf16, #tpu.memory_space<vmem>>, vector<16x1xbf16>,
    %c0_208 = arith.constant 0 : index
    %c1296 = arith.constant 1296 : index
    %199 = vector.load %arg7[%c0_208, %c1296] : memref<16x1553xbf16, #tpu.memory_space<vmem>>, vector<16x1xbf16>
    %c224_209 = arith.constant 224 : index
    %c1_210 = arith.constant 1 : index
    %200 = vector.load %arg8[%c224_209, %c1_210] : memref<400x2xbf16, #tpu.memory_space<vmem>>, vector<16x1xbf16>
    tpu.vector_store %arg8[%c224_209, %c1_210], %199 {strides = array<i32>} : memref<400x2xbf16, #tpu.memory_space<vmem>>, vector<16x1xbf16>,
    %c0_211 = arith.constant 0 : index
    %c384 = arith.constant 384 : index
    %201 = vector.load %arg7[%c0_211, %c384] : memref<16x1553xbf16, #tpu.memory_space<vmem>>, vector<16x1xbf16>
    %c240_212 = arith.constant 240 : index
    %c0_213 = arith.constant 0 : index
    %202 = vector.load %arg8[%c240_212, %c0_213] : memref<400x2xbf16, #tpu.memory_space<vmem>>, vector<16x1xbf16>
    tpu.vector_store %arg8[%c240_212, %c0_213], %201 {strides = array<i32>} : memref<400x2xbf16, #tpu.memory_space<vmem>>, vector<16x1xbf16>,
    %c0_214 = arith.constant 0 : index
    %c1408 = arith.constant 1408 : index
    %203 = vector.load %arg7[%c0_214, %c1408] : memref<16x1553xbf16, #tpu.memory_space<vmem>>, vector<16x1xbf16>
    %c240_215 = arith.constant 240 : index
    %c1_216 = arith.constant 1 : index
    %204 = vector.load %arg8[%c240_215, %c1_216] : memref<400x2xbf16, #tpu.memory_space<vmem>>, vector<16x1xbf16>
    tpu.vector_store %arg8[%c240_215, %c1_216], %203 {strides = array<i32>} : memref<400x2xbf16, #tpu.memory_space<vmem>>, vector<16x1xbf16>,
    %c0_217 = arith.constant 0 : index
    %c388 = arith.constant 388 : index
    %205 = vector.load %arg7[%c0_217, %c388] : memref<16x1553xbf16, #tpu.memory_space<vmem>>, vector<16x1xbf16>
    %c256_218 = arith.constant 256 : index
    %c0_219 = arith.constant 0 : index
    %206 = vector.load %arg8[%c256_218, %c0_219] : memref<400x2xbf16, #tpu.memory_space<vmem>>, vector<16x1xbf16>
    tpu.vector_store %arg8[%c256_218, %c0_219], %205 {strides = array<i32>} : memref<400x2xbf16, #tpu.memory_space<vmem>>, vector<16x1xbf16>,
    %c0_220 = arith.constant 0 : index
    %c1412 = arith.constant 1412 : index
    %207 = vector.load %arg7[%c0_220, %c1412] : memref<16x1553xbf16, #tpu.memory_space<vmem>>, vector<16x1xbf16>
    %c256_221 = arith.constant 256 : index
    %c1_222 = arith.constant 1 : index
    %208 = vector.load %arg8[%c256_221, %c1_222] : memref<400x2xbf16, #tpu.memory_space<vmem>>, vector<16x1xbf16>
    tpu.vector_store %arg8[%c256_221, %c1_222], %207 {strides = array<i32>} : memref<400x2xbf16, #tpu.memory_space<vmem>>, vector<16x1xbf16>,
    %c0_223 = arith.constant 0 : index
    %c392 = arith.constant 392 : index
    %209 = vector.load %arg7[%c0_223, %c392] : memref<16x1553xbf16, #tpu.memory_space<vmem>>, vector<16x1xbf16>
    %c272_224 = arith.constant 272 : index
    %c0_225 = arith.constant 0 : index
    %210 = vector.load %arg8[%c272_224, %c0_225] : memref<400x2xbf16, #tpu.memory_space<vmem>>, vector<16x1xbf16>
    tpu.vector_store %arg8[%c272_224, %c0_225], %209 {strides = array<i32>} : memref<400x2xbf16, #tpu.memory_space<vmem>>, vector<16x1xbf16>,
    %c0_226 = arith.constant 0 : index
    %c1416 = arith.constant 1416 : index
    %211 = vector.load %arg7[%c0_226, %c1416] : memref<16x1553xbf16, #tpu.memory_space<vmem>>, vector<16x1xbf16>
    %c272_227 = arith.constant 272 : index
    %c1_228 = arith.constant 1 : index
    %212 = vector.load %arg8[%c272_227, %c1_228] : memref<400x2xbf16, #tpu.memory_space<vmem>>, vector<16x1xbf16>
    tpu.vector_store %arg8[%c272_227, %c1_228], %211 {strides = array<i32>} : memref<400x2xbf16, #tpu.memory_space<vmem>>, vector<16x1xbf16>,
    %c0_229 = arith.constant 0 : index
    %c396 = arith.constant 396 : index
    %213 = vector.load %arg7[%c0_229, %c396] : memref<16x1553xbf16, #tpu.memory_space<vmem>>, vector<16x1xbf16>
    %c288 = arith.constant 288 : index
    %c0_230 = arith.constant 0 : index
    %214 = vector.load %arg8[%c288, %c0_230] : memref<400x2xbf16, #tpu.memory_space<vmem>>, vector<16x1xbf16>
    tpu.vector_store %arg8[%c288, %c0_230], %213 {strides = array<i32>} : memref<400x2xbf16, #tpu.memory_space<vmem>>, vector<16x1xbf16>,
    %c0_231 = arith.constant 0 : index
    %c1420 = arith.constant 1420 : index
    %215 = vector.load %arg7[%c0_231, %c1420] : memref<16x1553xbf16, #tpu.memory_space<vmem>>, vector<16x1xbf16>
    %c288_232 = arith.constant 288 : index
    %c1_233 = arith.constant 1 : index
    %216 = vector.load %arg8[%c288_232, %c1_233] : memref<400x2xbf16, #tpu.memory_space<vmem>>, vector<16x1xbf16>
    tpu.vector_store %arg8[%c288_232, %c1_233], %215 {strides = array<i32>} : memref<400x2xbf16, #tpu.memory_space<vmem>>, vector<16x1xbf16>,
    %c0_234 = arith.constant 0 : index
    %c400 = arith.constant 400 : index
    %217 = vector.load %arg7[%c0_234, %c400] : memref<16x1553xbf16, #tpu.memory_space<vmem>>, vector<16x1xbf16>
    %c304 = arith.constant 304 : index
    %c0_235 = arith.constant 0 : index
    %218 = vector.load %arg8[%c304, %c0_235] : memref<400x2xbf16, #tpu.memory_space<vmem>>, vector<16x1xbf16>
    tpu.vector_store %arg8[%c304, %c0_235], %217 {strides = array<i32>} : memref<400x2xbf16, #tpu.memory_space<vmem>>, vector<16x1xbf16>,
    %c0_236 = arith.constant 0 : index
    %c1424 = arith.constant 1424 : index
    %219 = vector.load %arg7[%c0_236, %c1424] : memref<16x1553xbf16, #tpu.memory_space<vmem>>, vector<16x1xbf16>
    %c304_237 = arith.constant 304 : index
    %c1_238 = arith.constant 1 : index
    %220 = vector.load %arg8[%c304_237, %c1_238] : memref<400x2xbf16, #tpu.memory_space<vmem>>, vector<16x1xbf16>
    tpu.vector_store %arg8[%c304_237, %c1_238], %219 {strides = array<i32>} : memref<400x2xbf16, #tpu.memory_space<vmem>>, vector<16x1xbf16>,
    %c0_239 = arith.constant 0 : index
    %c512 = arith.constant 512 : index
    %221 = vector.load %arg7[%c0_239, %c512] : memref<16x1553xbf16, #tpu.memory_space<vmem>>, vector<16x1xbf16>
    %c320 = arith.constant 320 : index
    %c0_240 = arith.constant 0 : index
    %222 = vector.load %arg8[%c320, %c0_240] : memref<400x2xbf16, #tpu.memory_space<vmem>>, vector<16x1xbf16>
    tpu.vector_store %arg8[%c320, %c0_240], %221 {strides = array<i32>} : memref<400x2xbf16, #tpu.memory_space<vmem>>, vector<16x1xbf16>,
    %c0_241 = arith.constant 0 : index
    %c1536 = arith.constant 1536 : index
    %223 = vector.load %arg7[%c0_241, %c1536] : memref<16x1553xbf16, #tpu.memory_space<vmem>>, vector<16x1xbf16>
    %c320_242 = arith.constant 320 : index
    %c1_243 = arith.constant 1 : index
    %224 = vector.load %arg8[%c320_242, %c1_243] : memref<400x2xbf16, #tpu.memory_space<vmem>>, vector<16x1xbf16>
    tpu.vector_store %arg8[%c320_242, %c1_243], %223 {strides = array<i32>} : memref<400x2xbf16, #tpu.memory_space<vmem>>, vector<16x1xbf16>,
    %c0_244 = arith.constant 0 : index
    %c516 = arith.constant 516 : index
    %225 = vector.load %arg7[%c0_244, %c516] : memref<16x1553xbf16, #tpu.memory_space<vmem>>, vector<16x1xbf16>
    %c336 = arith.constant 336 : index
    %c0_245 = arith.constant 0 : index
    %226 = vector.load %arg8[%c336, %c0_245] : memref<400x2xbf16, #tpu.memory_space<vmem>>, vector<16x1xbf16>
    tpu.vector_store %arg8[%c336, %c0_245], %225 {strides = array<i32>} : memref<400x2xbf16, #tpu.memory_space<vmem>>, vector<16x1xbf16>,
    %c0_246 = arith.constant 0 : index
    %c1540 = arith.constant 1540 : index
    %227 = vector.load %arg7[%c0_246, %c1540] : memref<16x1553xbf16, #tpu.memory_space<vmem>>, vector<16x1xbf16>
    %c336_247 = arith.constant 336 : index
    %c1_248 = arith.constant 1 : index
    %228 = vector.load %arg8[%c336_247, %c1_248] : memref<400x2xbf16, #tpu.memory_space<vmem>>, vector<16x1xbf16>
    tpu.vector_store %arg8[%c336_247, %c1_248], %227 {strides = array<i32>} : memref<400x2xbf16, #tpu.memory_space<vmem>>, vector<16x1xbf16>,
    %c0_249 = arith.constant 0 : index
    %c520 = arith.constant 520 : index
    %229 = vector.load %arg7[%c0_249, %c520] : memref<16x1553xbf16, #tpu.memory_space<vmem>>, vector<16x1xbf16>
    %c352 = arith.constant 352 : index
    %c0_250 = arith.constant 0 : index
    %230 = vector.load %arg8[%c352, %c0_250] : memref<400x2xbf16, #tpu.memory_space<vmem>>, vector<16x1xbf16>
    tpu.vector_store %arg8[%c352, %c0_250], %229 {strides = array<i32>} : memref<400x2xbf16, #tpu.memory_space<vmem>>, vector<16x1xbf16>,
    %c0_251 = arith.constant 0 : index
    %c1544 = arith.constant 1544 : index
    %231 = vector.load %arg7[%c0_251, %c1544] : memref<16x1553xbf16, #tpu.memory_space<vmem>>, vector<16x1xbf16>
    %c352_252 = arith.constant 352 : index
    %c1_253 = arith.constant 1 : index
    %232 = vector.load %arg8[%c352_252, %c1_253] : memref<400x2xbf16, #tpu.memory_space<vmem>>, vector<16x1xbf16>
    tpu.vector_store %arg8[%c352_252, %c1_253], %231 {strides = array<i32>} : memref<400x2xbf16, #tpu.memory_space<vmem>>, vector<16x1xbf16>,
    %c0_254 = arith.constant 0 : index
    %c524 = arith.constant 524 : index
    %233 = vector.load %arg7[%c0_254, %c524] : memref<16x1553xbf16, #tpu.memory_space<vmem>>, vector<16x1xbf16>
    %c368 = arith.constant 368 : index
    %c0_255 = arith.constant 0 : index
    %234 = vector.load %arg8[%c368, %c0_255] : memref<400x2xbf16, #tpu.memory_space<vmem>>, vector<16x1xbf16>
    tpu.vector_store %arg8[%c368, %c0_255], %233 {strides = array<i32>} : memref<400x2xbf16, #tpu.memory_space<vmem>>, vector<16x1xbf16>,
    %c0_256 = arith.constant 0 : index
    %c1548 = arith.constant 1548 : index
    %235 = vector.load %arg7[%c0_256, %c1548] : memref<16x1553xbf16, #tpu.memory_space<vmem>>, vector<16x1xbf16>
    %c368_257 = arith.constant 368 : index
    %c1_258 = arith.constant 1 : index
    %236 = vector.load %arg8[%c368_257, %c1_258] : memref<400x2xbf16, #tpu.memory_space<vmem>>, vector<16x1xbf16>
    tpu.vector_store %arg8[%c368_257, %c1_258], %235 {strides = array<i32>} : memref<400x2xbf16, #tpu.memory_space<vmem>>, vector<16x1xbf16>,
    %c0_259 = arith.constant 0 : index
    %c528 = arith.constant 528 : index
    %237 = vector.load %arg7[%c0_259, %c528] : memref<16x1553xbf16, #tpu.memory_space<vmem>>, vector<16x1xbf16>
    %c384_260 = arith.constant 384 : index
    %c0_261 = arith.constant 0 : index
    %238 = vector.load %arg8[%c384_260, %c0_261] : memref<400x2xbf16, #tpu.memory_space<vmem>>, vector<16x1xbf16>
    tpu.vector_store %arg8[%c384_260, %c0_261], %237 {strides = array<i32>} : memref<400x2xbf16, #tpu.memory_space<vmem>>, vector<16x1xbf16>,
    %c0_262 = arith.constant 0 : index
    %c1552 = arith.constant 1552 : index
    %239 = vector.load %arg7[%c0_262, %c1552] : memref<16x1553xbf16, #tpu.memory_space<vmem>>, vector<16x1xbf16>
    %c384_263 = arith.constant 384 : index
    %c1_264 = arith.constant 1 : index
    %240 = vector.load %arg8[%c384_263, %c1_264] : memref<400x2xbf16, #tpu.memory_space<vmem>>, vector<16x1xbf16>
    tpu.vector_store %arg8[%c384_263, %c1_264], %239 {strides = array<i32>} : memref<400x2xbf16, #tpu.memory_space<vmem>>, vector<16x1xbf16>,
    %c0_265 = arith.constant 0 : index
    %c0_266 = arith.constant 0 : index
    %241 = vector.load %arg1[%c0_265, %c0_266] : memref<272x400xbf16, #tpu.memory_space<vmem>>, vector<120x400xbf16>
    %c0_267 = arith.constant 0 : index
    %c0_268 = arith.constant 0 : index
    %242 = vector.load %arg8[%c0_267, %c0_268] : memref<400x2xbf16, #tpu.memory_space<vmem>>, vector<400x2xbf16>
    %cst_269 = arith.constant dense<0.000000e+00> : vector<120x2xf32>
    %243 = tpu.matmul %241, %242, %cst_269 {dimension_numbers = #tpu.dot_dimension_numbers<[1], [0], [0], [1], [0, 0, 1, 1], [], []>} : vector<120x400xbf16>, vector<400x2xbf16>, vector<120x2xf32> -> vector<120x2xf32>
    %c0_270 = arith.constant 0 : index
    %c0_271 = arith.constant 0 : index
    %244 = vector.load %arg2[%c0_270, %c0_271] : memref<272x1xf32, #tpu.memory_space<vmem>>, vector<120x1xf32>
    %245 = vector.broadcast %244 : vector<120x1xf32> to vector<120x2xf32>
    %246 = arith.addf %243, %245 : vector<120x2xf32>
    %cst_272 = arith.constant 0.00999999977 : f32
    %247 = vector.broadcast %cst_272 : f32 to vector<120x2xf32>
    %248 = arith.mulf %247, %246 : vector<120x2xf32>
    %249 = arith.maximumf %246, %248 : vector<120x2xf32>
    %c128_273 = arith.constant 128 : index
    %c0_274 = arith.constant 0 : index
    %250 = vector.load %arg1[%c128_273, %c0_274] : memref<272x400xbf16, #tpu.memory_space<vmem>>, vector<84x120xbf16>
    %251 = arith.truncf %249 : vector<120x2xf32> to vector<120x2xbf16>
    %cst_275 = arith.constant dense<0.000000e+00> : vector<84x2xf32>
    %252 = tpu.matmul %250, %251, %cst_275 {dimension_numbers = #tpu.dot_dimension_numbers<[1], [0], [0], [1], [0, 0, 1, 1], [], []>} : vector<84x120xbf16>, vector<120x2xbf16>, vector<84x2xf32> -> vector<84x2xf32>
    %c128_276 = arith.constant 128 : index
    %c0_277 = arith.constant 0 : index
    %253 = vector.load %arg2[%c128_276, %c0_277] : memref<272x1xf32, #tpu.memory_space<vmem>>, vector<84x1xf32>
    %254 = vector.broadcast %253 : vector<84x1xf32> to vector<84x2xf32>
    %255 = arith.addf %252, %254 : vector<84x2xf32>
    %cst_278 = arith.constant 0.00999999977 : f32
    %256 = vector.broadcast %cst_278 : f32 to vector<84x2xf32>
    %257 = arith.mulf %256, %255 : vector<84x2xf32>
    %258 = arith.maximumf %255, %257 : vector<84x2xf32>
    %c224_279 = arith.constant 224 : index
    %c0_280 = arith.constant 0 : index
    %259 = vector.load %arg1[%c224_279, %c0_280] : memref<272x400xbf16, #tpu.memory_space<vmem>>, vector<10x84xbf16>
    %260 = arith.truncf %258 : vector<84x2xf32> to vector<84x2xbf16>
    %cst_281 = arith.constant dense<0.000000e+00> : vector<10x2xf32>
    %261 = tpu.matmul %259, %260, %cst_281 {dimension_numbers = #tpu.dot_dimension_numbers<[1], [0], [0], [1], [0, 0, 1, 1], [], []>} : vector<10x84xbf16>, vector<84x2xbf16>, vector<10x2xf32> -> vector<10x2xf32>
    %c224_282 = arith.constant 224 : index
    %c0_283 = arith.constant 0 : index
    %262 = vector.load %arg2[%c224_282, %c0_283] : memref<272x1xf32, #tpu.memory_space<vmem>>, vector<10x1xf32>
    %263 = vector.broadcast %262 : vector<10x1xf32> to vector<10x2xf32>
    %264 = arith.addf %261, %263 : vector<10x2xf32>
    %c0_284 = arith.constant 0 : index
    %c0_285 = arith.constant 0 : index
    %265 = vector.load %arg3[%c0_284, %c0_285] : memref<10x2xf32, #tpu.memory_space<vmem>>, vector<10x2xf32>
    tpu.vector_store %arg3[%c0_284, %c0_285], %264 {strides = array<i32>} : memref<10x2xf32, #tpu.memory_space<vmem>>, vector<10x2xf32>,
    return
  }
}

</mosaic_0001>

<bundles_post_ra>
// kernel: net_forward.1
= control target key start
LH: loop header
LB: loop body
LE: loop exit
PB: predicated region body
PF: predicated region fallthrough
CT: control target
= control target key end

     0   :  { %v27_v0 = vlaneseq  ;;  %v9126_v2 = vmov 1983009808   ;;  %s9127_s18 = smov 124   ;;  %vm156_vm0 = vcmask 1043456   ;;  %s9128_s19 = smov 127   ;;  %v13690_v29 = vmov 0   ;;  %s13672_s0 = inlined_call_operand.vmem [shape: bf16[4,2048], index: 0, kind: input, shape index: {}]   ;;  %s13673_s1 = inlined_call_operand.vmem [shape: bf16[272,400], index: 1, kind: input, shape index: {}]   ;;  %s13674_s2 = inlined_call_operand.vmem [shape: f32[272,1], index: 2, kind: input, shape index: {}]   ;;  %s13675_s3 = inlined_call_operand.vmem [shape: f32[10,2], index: 3, kind: output, shape index: {}]  }
   0x1   :  { %v16_v1 = vld [vmem:[%s13672_s0 + $0x8] sm:$0xff]  ;;  %v25_v3 = vunpack.c.l.s4 %v9126_v2  ;;  %v15_v4 = vld [vmem:[%s13672_s0] sm:$0xff]  ;;  %v9188_v5 = vld [vmem:[%s13672_s0 + $0x10] sm:$0xff]  ;;  %s9129_s20 = smov 126   ;;  %s9130_s21 = smov 125   ;;  %2004 = vmatprep.mubr.bf16.mxu0 %v13690_v29  ;;  %2045 = vmatprep.mubr.bf16.mxu1 %v13690_v29  ;;  %vm13681_vm1 = vcmask 1014784  }
   0x2   :  { %v28_v6 = vshrl.u32 %v27_v0, 7  ;;  %8126 = vst.sshfl [vmem:[#allocation2 + $0x10] sm:$0xf pattern:$0x76325410] %v16_v1  ;;  %v23_v7 = vcombine.high %v15_v4, %v15_v4  ;;  %v9191_v9 = vcombine.high %v16_v1, %v16_v1  ;;  %v100_v11 = vcombine.low %v15_v4, %v15_v4  ;;  %s9131_s22 = smov 31   ;;  %8708 = vset.pattern.permute.xlu0 %v13690_v29 }
   0x3   :  { %8124 = vst.sshfl [vmem:[#allocation2] sm:$0xf pattern:$0x76325410] %v15_v4  ;;  %v26_v8 = vunpack.c.0.s8 %v25_v3  ;;  %v108_v20 = vcombine.low %v16_v1, %v16_v1  ;;  %s9132_s23 = smov 30   ;;  %s9133_s24 = smov 29   ;;  %v9280_v23 = vcombine.high %v9188_v5, %v9188_v5  ;;  %8709 = vset.pattern.permute.xlu1 %v13690_v29  ;;  %v116_v33 = vcombine.low %v9188_v5, %v9188_v5 }
   0x4   :  { %8128 = vst.sshfl [vmem:[#allocation2 + $0x20] sm:$0xf pattern:$0x76325410] %v9188_v5  ;;  %s9134_s25 = smov 28   ;;  %s9135_s26 = smov 62  }
   0x5   :  { %8125 = vst.sshfl [vmem:[#allocation2 + $0x8] sm:$0xf pattern:$0x76325410] %v23_v7  ;;  %v9193_v10 = vsub.s32 %v26_v8, %v28_v6  ;;  %s9136_s27 = smov 61   ;;  %s9137_s28 = smov 60  }
   0x6   :  { %8127 = vst.sshfl [vmem:[#allocation2 + $0x18] sm:$0xf pattern:$0x76325410] %v9191_v9  ;;  %s9138_s29 = smov 32   ;;  %v9290_v24 = vld [vmem:[%s13672_s0 + $0x18] sm:$0xff] }
   0x7   :  { %v9197_v12 = vrot.slane %v16_v1, %v9193_v10  ;;  %v9200_v13 = vrot.slane %v15_v4, %v9193_v10  ;;  %v9203_v14 = vrot.slane %v23_v7, %v9193_v10  ;;  %v9210_v15 = vrot.slane %v100_v11, %v9193_v10  ;;  %8129 = vst.sshfl [vmem:[#allocation2 + $0x28] sm:$0xf pattern:$0x76325410] %v9280_v23  ;;  %s9139_s5 = smov 93   ;;  %s9140_s0 = smov 92  }
   0x8   :  { %v9232_v22 = vrot.slane %v108_v20, %v9193_v10  ;;  %8130 = vst.sshfl [vmem:[#allocation2 + $0x30] sm:$0xf pattern:$0x76325410] %v9290_v24  ;;  %s9141_s6 = smov 64   ;;  %s9142_s7 = smov 63   ;;  %v9339_v25 = vrot.slane %v9191_v9, %v9193_v10  ;;  %v9355_v28 = vrot.slane %v9188_v5, %v9193_v10  ;;  %v9379_v40 = vrot.slane %v116_v33, %v9193_v10 }
   0x9   :  { %303 = vrot.lane.b32.xlu1 %v9197_v12, %s9127_s18  ;;  %299 = vrot.lane.b32.xlu0 %v9200_v13, %s9127_s18  ;;  %v1194_v16 = vrot.slane %v9200_v13, 4  ;;  %v1195_v17 = vrot.slane %v9203_v14, 4  ;;  %v1196_v19 = vrot.slane %v9197_v12, 4  ;;  %s9143_s8 = smov 96   ;;  %s9144_s9 = smov 95   ;;  %vm158_vm2 = vcmask 1039360  }
   0xa   :  { %s9145_s10 = smov 94   ;;  %v1197_v26 = vrot.slane %v9339_v25, 4  ;;  %v1198_v32 = vrot.slane %v9355_v28, 4  ;;  %vm13682_vm3 = vcmask 1031168   ;;  %vm13759_vm4 = vcmask 1041408   ;;  %s9149_s17 = smov 58  }
   0xb   :  { %v1202_v18 = vsel %vm156_vm0, %v1194_v16, %v1195_v17  ;;  %v1203_v21 = vsel %vm156_vm0, %v1195_v17, %v1196_v19  ;;  %vm269_vm5 = vcmask 1022976   ;;  %vm995_vm6 = vcmask 252928   ;;  %s9153_s14 = smov 112   ;;  %s9154_s15 = smov 116  }
   0xc   :  { %1217 = vst [vmem:[#allocation2 + $0x258] sm:$0x33] %v1202_v18  ;;  %1218 = vst [vmem:[#allocation2 + $0x260] sm:$0x33] %v1203_v21  ;;  %v1204_v27 = vsel %vm156_vm0, %v1196_v19, %v1197_v26  ;;  %v1205_v34 = vsel %vm156_vm0, %v1197_v26, %v1198_v32  ;;  %vm1051_vm7 = vcmask 244736   ;;  %vm1107_vm8 = vcmask 236544  }
   0xd   :  { %132 = vrot.lane.b32.xlu1 %v9210_v15, %s9128_s19  ;;  %301 = vrot.lane.b32.xlu0 %v9203_v14, %s9127_s18  ;;  %1219 = vst [vmem:[#allocation2 + $0x268] sm:$0x33] %v1204_v27  ;;  %1220 = vst [vmem:[#allocation2 + $0x270] sm:$0x33] %v1205_v34  ;;  %vm1163_vm9 = vcmask 228352   ;;  %vm771_vm10 = vcmask 506880  }
   0xe   :  { %vm13677_vm11 = vcmask 498688   ;;  %vm13684_vm12 = vcmask 490496   ;;  %vm13676_vm13 = vcmask 261120   ;;  %vm13687_vm14 = vcmask 760832   ;;  %s9155_s16 = smov 121  }
   0xf   :  { %vm13678_vm15 = vcmask 752640  }
  0x11   :  { %189 = vrot.lane.b32.xlu1 %v9200_v13, %s9129_s20  ;;  %134 = vrot.lane.b32.xlu0 %v9200_v13, %s9128_s19 }
  0x15   :  { %244 = vrot.lane.b32.xlu1 %v9210_v15, %s9130_s21  ;;  %191 = vrot.lane.b32.xlu0 %v9203_v14, %s9129_s20 }
  0x19   :  { %136 = vrot.lane.b32.xlu1 %v9232_v22, %s9128_s19  ;;  %246 = vrot.lane.b32.xlu0 %v9200_v13, %s9130_s21 }
  0x1d   :  { %248 = vrot.lane.b32.xlu1 %v9232_v22, %s9130_s21  ;;  %193 = vrot.lane.b32.xlu0 %v9197_v12, %s9129_s20 }
  0x21   :  { %972 = vrot.lane.b32.xlu1 %v9203_v14, %s9131_s22  ;;  %970 = vrot.lane.b32.xlu0 %v9200_v13, %s9131_s22 }
  0x25   :  { %1028 = vrot.lane.b32.xlu1 %v9200_v13, %s9132_s23  ;;  %1026 = vrot.lane.b32.xlu0 %v9210_v15, %s9132_s23 }
  0x29   :  { %1084 = vrot.lane.b32.xlu1 %v9203_v14, %s9133_s24  ;;  %1082 = vrot.lane.b32.xlu0 %v9200_v13, %s9133_s24 }
  0x2d   :  { %1140 = vrot.lane.b32.xlu1 %v9200_v13, %s9134_s25  ;;  %1138 = vrot.lane.b32.xlu0 %v9210_v15, %s9134_s25 }
  0x31   :  { %1030 = vrot.lane.b32.xlu1 %v9232_v22, %s9132_s23  ;;  %974 = vrot.lane.b32.xlu0 %v9197_v12, %s9131_s22 }
  0x35   :  { %1142 = vrot.lane.b32.xlu1 %v9232_v22, %s9134_s25  ;;  %1086 = vrot.lane.b32.xlu0 %v9197_v12, %s9133_s24 }
  0x39   :  { %748 = vrot.lane.b32.xlu1 %v9203_v14, %s9135_s26  ;;  %746 = vrot.lane.b32.xlu0 %v9200_v13, %s9135_s26 }
  0x3d   :  { %804 = vrot.lane.b32.xlu1 %v9200_v13, %s9136_s27  ;;  %802 = vrot.lane.b32.xlu0 %v9210_v15, %s9136_s27 }
  0x41   :  { %860 = vrot.lane.b32.xlu1 %v9203_v14, %s9137_s28  ;;  %858 = vrot.lane.b32.xlu0 %v9200_v13, %s9137_s28 }
  0x45   :  { %916 = vrot.lane.b32.xlu1 %v9200_v13, %s9138_s29  ;;  %914 = vrot.lane.b32.xlu0 %v9210_v15, %s9138_s29 }
  0x49   :  { %806 = vrot.lane.b32.xlu1 %v9232_v22, %s9136_s27  ;;  %750 = vrot.lane.b32.xlu0 %v9197_v12, %s9135_s26 }
  0x4d   :  { %918 = vrot.lane.b32.xlu1 %v9232_v22, %s9138_s29  ;;  %862 = vrot.lane.b32.xlu0 %v9197_v12, %s9137_s28 }
  0x51   :  { %524 = vrot.lane.b32.xlu1 %v9203_v14, %s9139_s5  ;;  %522 = vrot.lane.b32.xlu0 %v9200_v13, %s9139_s5 }
  0x55   :  { %580 = vrot.lane.b32.xlu1 %v9200_v13, %s9140_s0  ;;  %578 = vrot.lane.b32.xlu0 %v9210_v15, %s9140_s0 }
  0x59   :  { %636 = vrot.lane.b32.xlu1 %v9203_v14, %s9141_s6  ;;  %634 = vrot.lane.b32.xlu0 %v9200_v13, %s9141_s6 }
  0x5d   :  { %692 = vrot.lane.b32.xlu1 %v9200_v13, %s9142_s7  ;;  %690 = vrot.lane.b32.xlu0 %v9210_v15, %s9142_s7 }
  0x61   :  { %582 = vrot.lane.b32.xlu1 %v9232_v22, %s9140_s0  ;;  %526 = vrot.lane.b32.xlu0 %v9197_v12, %s9139_s5 }
  0x65   :  { %694 = vrot.lane.b32.xlu1 %v9232_v22, %s9142_s7  ;;  %638 = vrot.lane.b32.xlu0 %v9197_v12, %s9141_s6 }
  0x69   :  { %356 = vrot.lane.b32.xlu1 %v9200_v13, %s9143_s8  ;;  %354 = vrot.lane.b32.xlu0 %v9210_v15, %s9143_s8 }
  0x6d   :  { %412 = vrot.lane.b32.xlu1 %v9203_v14, %s9144_s9  ;;  %410 = vrot.lane.b32.xlu0 %v9200_v13, %s9144_s9 }
  0x71   :  { %468 = vrot.lane.b32.xlu1 %v9200_v13, %s9145_s10  ;;  %466 = vrot.lane.b32.xlu0 %v9210_v15, %s9145_s10 }
  0x75   :  { %414 = vrot.lane.b32.xlu1 %v9197_v12, %s9144_s9  ;;  %358 = vrot.lane.b32.xlu0 %v9232_v22, %s9143_s8 }
  0x79   :  { %305 = vrot.lane.b32.xlu1 %v9339_v25, %s9127_s18  ;;  %470 = vrot.lane.b32.xlu0 %v9232_v22, %s9145_s10 }
  0x7b   :  { %v9359_v30 = vpop.permute.xlu1 %303  ;;  %v300_v31 = vpop.permute.xlu0 %299 }
  0x7c   :  { %v317_v37 = vrot.slane %v9359_v30, 4  ;;  %v315_v38 = vrot.slane %v300_v31, 4 }
  0x7d   :  { %138 = vrot.lane.b32.xlu1 %v9197_v12, %s9128_s19  ;;  %307 = vrot.lane.b32.xlu0 %v9355_v28, %s9127_s18 }
  0x7f   :  { %v133_v35 = vpop.permute.xlu1 %132  ;;  %v302_v36 = vpop.permute.xlu0 %301 }
  0x80   :  { %v316_v39 = vrot.slane %v302_v36, 4  ;;  %v148_v49 = vrot.slane %v133_v35, 4 }
  0x81   :  { %250 = vrot.lane.b32.xlu1 %v9197_v12, %s9130_s21  ;;  %195 = vrot.lane.b32.xlu0 %v9339_v25, %s9129_s20 }
  0x82   :  { %v323_v41 = vsel %vm156_vm0, %v315_v38, %v316_v39  ;;  %v326_v42 = vsel %vm156_vm0, %v316_v39, %v317_v37 }
  0x83   :  { %v325_v43 = vsel %vm13681_vm1, %v300_v31, %v323_v41  ;;  %v327_v44 = vsel %vm13681_vm1, %v302_v36, %v326_v42  ;;  %v1294_v45 = vsel %vm13681_vm1, %v323_v41, %v302_v36  ;;  %v1295_v46 = vsel %vm13681_vm1, %v326_v42, %v9359_v30  ;;  %v190_v47 = vpop.permute.xlu1 %189  ;;  %v135_v48 = vpop.permute.xlu0 %134 }
  0x84   :  { %346 = vst [vmem:[#allocation2 + $0x78] sm:$0x33] %v325_v43  ;;  %347 = vst [vmem:[#allocation2 + $0x80] sm:$0x33] %v327_v44  ;;  %v149_v50 = vrot.slane %v135_v48, 4  ;;  %v205_v56 = vrot.slane %v190_v47, 4 }
  0x85   :  { %1309 = vst [vmem:[#allocation2 + $0x2d0] sm:$0x33] %v1294_v45  ;;  %1310 = vst [vmem:[#allocation2 + $0x2d8] sm:$0x33] %v1295_v46  ;;  %197 = vrot.lane.b32.xlu1 %v9355_v28, %s9129_s20  ;;  %140 = vrot.lane.b32.xlu0 %v9379_v40, %s9128_s19 }
  0x86   :  { %v157_v51 = vsel %vm156_vm0, %v148_v49, %v149_v50 }
  0x87   :  { %v159_v52 = vsel %vm158_vm2, %v133_v35, %v157_v51  ;;  %v1225_v53 = vsel %vm158_vm2, %v157_v51, %v135_v48  ;;  %v245_v54 = vpop.permute.xlu1 %244  ;;  %v192_v55 = vpop.permute.xlu0 %191 }
  0x88   :  { %180 = vst [vmem:[#allocation2] sm:$0xcc] %v159_v52  ;;  %1240 = vst [vmem:[#allocation2 + $0x258] sm:$0xcc] %v1225_v53  ;;  %v206_v57 = vrot.slane %v192_v55, 4  ;;  %v260_v59 = vrot.slane %v245_v54, 4 }
  0x89   :  { %976 = vrot.lane.b32.xlu1 %v9339_v25, %s9131_s22  ;;  %252 = vrot.lane.b32.xlu0 %v9379_v40, %s9130_s21 }
  0x8a   :  { %v213_v58 = vsel %vm156_vm0, %v205_v56, %v206_v57 }
  0x8b   :  { %v215_v60 = vsel %vm13682_vm3, %v190_v47, %v213_v58  ;;  %v1248_v61 = vsel %vm13682_vm3, %v213_v58, %v192_v55  ;;  %v9404_v62 = vpop.permute.xlu1 %136  ;;  %v247_v63 = vpop.permute.xlu0 %246 }
  0x8c   :  { %v1414_v0 = vld [vmem:[#allocation2 + $0x2d0] sm:$0x33]  ;;  %v1415_v1 = vld [vmem:[#allocation2 + $0x2d8] sm:$0x33]  ;;  %236 = vst [vmem:[#allocation2 + $0x3c] sm:$0x33] %v215_v60 }
  0x8d   :  { %1263 = vst [vmem:[#allocation2 + $0x294] sm:$0x33] %v1248_v61  ;;  %v150_v2 = vrot.slane %v9404_v62, 4  ;;  %v261_v3 = vrot.slane %v247_v63, 4  ;;  %v8222_v4 = vcombine.high %v1414_v0, %v1414_v0  ;;  %v8224_v5 = vcombine.high %v1415_v1, %v1415_v1  ;;  %1088 = vrot.lane.b32.xlu1 %v9339_v25, %s9133_s24  ;;  %1032 = vrot.lane.b32.xlu0 %v9197_v12, %s9132_s23 }
  0x8e   :  { %v8221_v6 = vcombine.low %v1414_v0, %v1414_v0  ;;  %v8223_v7 = vcombine.low %v1415_v1, %v1415_v1 }
  0x8f   :  { %v160_v8 = vsel %vm156_vm0, %v149_v50, %v150_v2  ;;  %v268_v9 = vsel %vm156_vm0, %v260_v59, %v261_v3  ;;  %8236 = vmatprep.subr.msk.bf16.mxu0 %vm13759_vm4, %v8222_v4  ;;  %8238 = vmatprep.subr.msk.bf16.mxu1 %vm13759_vm4, %v8224_v5  ;;  %v9422_v16 = vpop.permute.xlu1 %248  ;;  %v9424_v17 = vpop.permute.xlu0 %193 }
  0x90   :  { %v161_v11 = vsel %vm158_vm2, %v135_v48, %v160_v8  ;;  %v1226_v13 = vsel %vm158_vm2, %v160_v8, %v9404_v62  ;;  %v270_v14 = vsel %vm269_vm5, %v245_v54, %v268_v9  ;;  %v1271_v15 = vsel %vm269_vm5, %v268_v9, %v247_v63 }
  0x91   :  { %181 = vst [vmem:[#allocation2 + $0x8] sm:$0xcc] %v161_v11  ;;  %1241 = vst [vmem:[#allocation2 + $0x260] sm:$0xcc] %v1226_v13  ;;  %v262_v18 = vrot.slane %v9422_v16, 4  ;;  %v1928_v19 = vsel %vm13759_vm4, %v8221_v6, 0  ;;  %978 = vrot.lane.b32.xlu1 %v9355_v28, %s9131_s22  ;;  %1144 = vrot.lane.b32.xlu0 %v9197_v12, %s9134_s25 }
  0x92   :  { %291 = vst [vmem:[#allocation2 + $0x3c] sm:$0xcc] %v270_v14  ;;  %1286 = vst [vmem:[#allocation2 + $0x294] sm:$0xcc] %v1271_v15  ;;  %v1934_v20 = vsel %vm13759_vm4, %v8223_v7, 0  ;;  %v207_v21 = vrot.slane %v9424_v17, 4  ;;  %1975 = vmatpush1.bf16.msra.mxu0 %v1928_v19 }
  0x93   :  { %2016 = vmatpush1.bf16.msra.mxu1 %v1934_v20  ;;  %v271_v22 = vsel %vm156_vm0, %v261_v3, %v262_v18  ;;  %v973_v35 = vpop.permute.xlu1 %972  ;;  %v971_v36 = vpop.permute.xlu0 %970 }
  0x94   :  { %v216_v26 = vsel %vm156_vm0, %v206_v57, %v207_v21  ;;  %v272_v27 = vsel %vm269_vm5, %v247_v63, %v271_v22  ;;  %v1272_v31 = vsel %vm269_vm5, %v271_v22, %v9422_v16  ;;  %v987_v38 = vrot.slane %v973_v35, 4 }
  0x95   :  { %v217_v33 = vsel %vm13682_vm3, %v192_v55, %v216_v26  ;;  %v1249_v34 = vsel %vm13682_vm3, %v216_v26, %v9424_v17  ;;  %292 = vst [vmem:[#allocation2 + $0x44] sm:$0xcc] %v272_v27  ;;  %1287 = vst [vmem:[#allocation2 + $0x29c] sm:$0xcc] %v1272_v31  ;;  %v986_v39 = vrot.slane %v971_v36, 4  ;;  %1090 = vrot.lane.b32.xlu1 %v9355_v28, %s9133_s24  ;;  %1034 = vrot.lane.b32.xlu0 %v9379_v40, %s9132_s23 }
  0x96   :  { %237 = vst [vmem:[#allocation2 + $0x44] sm:$0x33] %v217_v33  ;;  %1264 = vst [vmem:[#allocation2 + $0x29c] sm:$0x33] %v1249_v34 }
  0x97   :  { %v994_v41 = vsel %vm156_vm0, %v986_v39, %v987_v38  ;;  %v1029_v43 = vpop.permute.xlu1 %1028  ;;  %v1027_v44 = vpop.permute.xlu0 %1026 }
  0x98   :  { %v996_v42 = vsel %vm995_vm6, %v971_v36, %v994_v41  ;;  %v1043_v47 = vrot.slane %v1029_v43, 4  ;;  %v1042_v48 = vrot.slane %v1027_v44, 4 }
  0x99   :  { %v8714_v45 = vld [vmem:[#allocation2 + $0x25c] ss:$60 sps:$4 sm:$0xff]   ;;  %1018 = vst [vmem:[#allocation2 + $0x1e0] sm:$0x33] %v996_v42  ;;  %752 = vrot.lane.b32.xlu1 %v9339_v25, %s9135_s26  ;;  %1146 = vrot.lane.b32.xlu0 %v9379_v40, %s9134_s25 }
  0x9a   :  { %v8716_v46 = vld [vmem:[#allocation2 + $0x258] ss:$60 sps:$4 sm:$0xff]   ;;  %1976 = vmatprep.subr.bf16.mxu0 %v8714_v45  ;;  %v1050_v49 = vsel %vm156_vm0, %v1042_v48, %v1043_v47 }
  0x9b   :  { %v1052_v50 = vsel %vm1051_vm7, %v1027_v44, %v1050_v49  ;;  %v1085_v51 = vpop.permute.xlu1 %1084  ;;  %v1083_v52 = vpop.permute.xlu0 %1082  ;;  %1977 = vmatpush1.bf16.msra.mxu0 %v8716_v46 }
  0x9c   :  { %1074 = vst [vmem:[#allocation2 + $0x1e0] sm:$0xcc] %v1052_v50  ;;  %v1099_v55 = vrot.slane %v1085_v51, 4  ;;  %v1098_v56 = vrot.slane %v1083_v52, 4 }
  0x9d   :  { %v8717_v53 = vld [vmem:[#allocation2 + $0x264] ss:$60 sps:$4 sm:$0xff]   ;;  %864 = vrot.lane.b32.xlu1 %v9339_v25, %s9137_s28  ;;  %808 = vrot.lane.b32.xlu0 %v9197_v12, %s9136_s27 }
  0x9e   :  { %v8719_v54 = vld [vmem:[#allocation2 + $0x260] ss:$60 sps:$4 sm:$0xff]   ;;  %2017 = vmatprep.subr.bf16.mxu1 %v8717_v53  ;;  %v1106_v57 = vsel %vm156_vm0, %v1098_v56, %v1099_v55 }
  0x9f   :  { %v1108_v58 = vsel %vm1107_vm8, %v1083_v52, %v1106_v57  ;;  %v1141_v59 = vpop.permute.xlu1 %1140  ;;  %v1139_v60 = vpop.permute.xlu0 %1138  ;;  %2018 = vmatpush1.bf16.msra.mxu1 %v8719_v54 }
  0xa0   :  { %1130 = vst [vmem:[#allocation2 + $0x21c] sm:$0x33] %v1108_v58  ;;  %v1155_v61 = vrot.slane %v1141_v59, 4  ;;  %v1154_v63 = vrot.slane %v1139_v60, 4 }
  0xa1   :  { %754 = vrot.lane.b32.xlu1 %v9355_v28, %s9135_s26  ;;  %920 = vrot.lane.b32.xlu0 %v9197_v12, %s9138_s29 }
  0xa2   :  { %v1162_v0 = vsel %vm156_vm0, %v1154_v63, %v1155_v61 }
  0xa3   :  { %v1164_v1 = vsel %vm1163_vm9, %v1139_v60, %v1162_v0  ;;  %v9470_v3 = vpop.permute.xlu1 %1030  ;;  %v9472_v4 = vpop.permute.xlu0 %974 }
  0xa4   :  { %1186 = vst [vmem:[#allocation2 + $0x21c] sm:$0xcc] %v1164_v1  ;;  %v1044_v5 = vrot.slane %v9470_v3, 4  ;;  %v988_v6 = vrot.slane %v9472_v4, 4 }
  0xa5   :  { %866 = vrot.lane.b32.xlu1 %v9355_v28, %s9137_s28  ;;  %810 = vrot.lane.b32.xlu0 %v9379_v40, %s9136_s27 }
  0xa6   :  { %v1053_v7 = vsel %vm156_vm0, %v1043_v47, %v1044_v5  ;;  %v997_v8 = vsel %vm156_vm0, %v987_v38, %v988_v6 }
  0xa7   :  { %v1054_v9 = vsel %vm1051_vm7, %v1029_v43, %v1053_v7  ;;  %v998_v11 = vsel %vm995_vm6, %v973_v35, %v997_v8  ;;  %v9488_v13 = vpop.permute.xlu1 %1142  ;;  %v9490_v14 = vpop.permute.xlu0 %1086 }
  0xa8   :  { %1075 = vst [vmem:[#allocation2 + $0x1e8] sm:$0xcc] %v1054_v9  ;;  %1019 = vst [vmem:[#allocation2 + $0x1e8] sm:$0x33] %v998_v11  ;;  %v1156_v15 = vrot.slane %v9488_v13, 4  ;;  %v1100_v19 = vrot.slane %v9490_v14, 4  ;;  %v9548_v11 = vrot.slane %v9280_v23, %v9193_v10 }
  0xa9   :  { %528 = vrot.lane.b32.xlu1 %v9339_v25, %s9139_s5  ;;  %922 = vrot.lane.b32.xlu0 %v9379_v40, %s9138_s29 }
  0xaa   :  { %v1165_v20 = vsel %vm156_vm0, %v1155_v61, %v1156_v15  ;;  %v1109_v22 = vsel %vm156_vm0, %v1099_v55, %v1100_v19 }
  0xab   :  { %v1166_v26 = vsel %vm1163_vm9, %v1141_v59, %v1165_v20  ;;  %v1110_v27 = vsel %vm1107_vm8, %v1085_v51, %v1109_v22  ;;  %v749_v31 = vpop.permute.xlu1 %748  ;;  %v747_v33 = vpop.permute.xlu0 %746  ;;  %v8720_v34 = vld [vmem:[#allocation2 + $0x1e4] ss:$60 sps:$4 sm:$0xff]  }
  0xac   :  { %v8722_v35 = vld [vmem:[#allocation2 + $0x1e0] ss:$60 sps:$4 sm:$0xff]   ;;  %1187 = vst [vmem:[#allocation2 + $0x224] sm:$0xcc] %v1166_v26  ;;  %1131 = vst [vmem:[#allocation2 + $0x224] sm:$0x33] %v1110_v27  ;;  %1978 = vmatprep.subr.bf16.mxu0 %v8720_v34 }
  0xad   :  { %v763_v36 = vrot.slane %v749_v31, 4  ;;  %v762_v38 = vrot.slane %v747_v33, 4  ;;  %640 = vrot.lane.b32.xlu1 %v9339_v25, %s9141_s6  ;;  %584 = vrot.lane.b32.xlu0 %v9197_v12, %s9140_s0 }
  0xae   :  { %1979 = vmatpush1.bf16.msra.mxu0 %v8722_v35 }
  0xaf   :  { %v770_v39 = vsel %vm156_vm0, %v762_v38, %v763_v36  ;;  %v805_v42 = vpop.permute.xlu1 %804  ;;  %v803_v43 = vpop.permute.xlu0 %802 }
  0xb0   :  { %v772_v41 = vsel %vm771_vm10, %v747_v33, %v770_v39  ;;  %v819_v44 = vrot.slane %v805_v42, 4  ;;  %v818_v45 = vrot.slane %v803_v43, 4 }
  0xb1   :  { %794 = vst [vmem:[#allocation2 + $0x168] sm:$0x33] %v772_v41  ;;  %530 = vrot.lane.b32.xlu1 %v9355_v28, %s9139_s5  ;;  %696 = vrot.lane.b32.xlu0 %v9197_v12, %s9142_s7 }
  0xb2   :  { %v826_v46 = vsel %vm156_vm0, %v818_v45, %v819_v44 }
  0xb3   :  { %v828_v47 = vsel %vm13677_vm11, %v803_v43, %v826_v46  ;;  %v861_v48 = vpop.permute.xlu1 %860  ;;  %v859_v49 = vpop.permute.xlu0 %858  ;;  %v8723_v50 = vld [vmem:[#allocation2 + $0x1ec] ss:$60 sps:$4 sm:$0xff]  }
  0xb4   :  { %v8725_v51 = vld [vmem:[#allocation2 + $0x1e8] ss:$60 sps:$4 sm:$0xff]   ;;  %850 = vst [vmem:[#allocation2 + $0x168] sm:$0xcc] %v828_v47  ;;  %v875_v52 = vrot.slane %v861_v48, 4  ;;  %v874_v53 = vrot.slane %v859_v49, 4  ;;  %2019 = vmatprep.subr.bf16.mxu1 %v8723_v50 }
  0xb5   :  { %642 = vrot.lane.b32.xlu1 %v9355_v28, %s9141_s6  ;;  %586 = vrot.lane.b32.xlu0 %v9379_v40, %s9140_s0 }
  0xb6   :  { %v882_v54 = vsel %vm156_vm0, %v874_v53, %v875_v52  ;;  %2020 = vmatpush1.bf16.msra.mxu1 %v8725_v51 }
  0xb7   :  { %v884_v55 = vsel %vm13684_vm12, %v859_v49, %v882_v54  ;;  %v917_v56 = vpop.permute.xlu1 %916  ;;  %v915_v57 = vpop.permute.xlu0 %914 }
  0xb8   :  { %906 = vst [vmem:[#allocation2 + $0x1a4] sm:$0x33] %v884_v55  ;;  %v931_v58 = vrot.slane %v917_v56, 4  ;;  %v930_v59 = vrot.slane %v915_v57, 4 }
  0xb9   :  { %360 = vrot.lane.b32.xlu1 %v9197_v12, %s9143_s8  ;;  %698 = vrot.lane.b32.xlu0 %v9379_v40, %s9142_s7 }
  0xba   :  { %v938_v60 = vsel %vm156_vm0, %v930_v59, %v931_v58 }
  0xbb   :  { %v940_v61 = vsel %vm13676_vm13, %v915_v57, %v938_v60  ;;  %v9530_v63 = vpop.permute.xlu1 %806  ;;  %v9532_v0 = vpop.permute.xlu0 %750 }
  0xbc   :  { %962 = vst [vmem:[#allocation2 + $0x1a4] sm:$0xcc] %v940_v61  ;;  %v820_v1 = vrot.slane %v9530_v63, 4  ;;  %v764_v7 = vrot.slane %v9532_v0, 4 }
  0xbd   :  { %472 = vrot.lane.b32.xlu1 %v9197_v12, %s9145_s10  ;;  %416 = vrot.lane.b32.xlu0 %v9339_v25, %s9144_s9  ;;  %v1199_v25 = vrot.slane %v9548_v11, 4 }
  0xbe   :  { %v829_v8 = vsel %vm156_vm0, %v819_v44, %v820_v1  ;;  %v773_v9 = vsel %vm156_vm0, %v763_v36, %v764_v7 }
  0xbf   :  { %v830_v20 = vsel %vm13677_vm11, %v805_v42, %v829_v8  ;;  %v774_v22 = vsel %vm771_vm10, %v749_v31, %v773_v9  ;;  %v9552_v26 = vpop.permute.xlu1 %918  ;;  %v9554_v27 = vpop.permute.xlu0 %862  ;;  %v1206_v34 = vsel %vm156_vm0, %v1198_v32, %v1199_v25  ;;  %v9584_v32 = vrot.slane %v9290_v24, %v9193_v10 }
  0xc0   :  { %851 = vst [vmem:[#allocation2 + $0x170] sm:$0xcc] %v830_v20  ;;  %795 = vst [vmem:[#allocation2 + $0x170] sm:$0x33] %v774_v22  ;;  %v932_v33 = vrot.slane %v9552_v26, 4  ;;  %v876_v12 = vrot.slane %v9554_v27, 4 }
  0xc1   :  { %418 = vrot.lane.b32.xlu1 %v9355_v28, %s9144_s9  ;;  %362 = vrot.lane.b32.xlu0 %v9379_v40, %s9143_s8  ;;  %1221 = vst [vmem:[#allocation2 + $0x278] sm:$0x33] %v1206_v34  ;;  %v1200_v51 = vrot.slane %v9584_v32, 4  ;;  %vm13679_vm11 = vcmask 515072  }
  0xc2   :  { %v941_v23 = vsel %vm156_vm0, %v931_v58, %v932_v33  ;;  %v885_v31 = vsel %vm156_vm0, %v875_v52, %v876_v12 }
  0xc3   :  { %v942_v35 = vsel %vm13676_vm13, %v917_v56, %v941_v23  ;;  %v886_v36 = vsel %vm13684_vm12, %v861_v48, %v885_v31  ;;  %v9574_v38 = vpop.permute.xlu1 %524  ;;  %v523_v39 = vpop.permute.xlu0 %522  ;;  %v8726_v41 = vld [vmem:[#allocation2 + $0x16c] ss:$60 sps:$4 sm:$0xff]   ;;  %v1207_v53 = vsel %vm156_vm0, %v1199_v25, %v1200_v51  ;;  %vm13680_vm13 = vcmask 523264  }
  0xc4   :  { %v8728_v42 = vld [vmem:[#allocation2 + $0x168] ss:$60 sps:$4 sm:$0xff]   ;;  %963 = vst [vmem:[#allocation2 + $0x1ac] sm:$0xcc] %v942_v35  ;;  %907 = vst [vmem:[#allocation2 + $0x1ac] sm:$0x33] %v886_v36  ;;  %1980 = vmatprep.subr.bf16.mxu0 %v8726_v41 }
  0xc5   :  { %v539_v43 = vrot.slane %v9574_v38, 4  ;;  %v538_v44 = vrot.slane %v523_v39, 4  ;;  %309 = vrot.lane.b32.xlu1 %v9548_v11, %s9127_s18  ;;  %474 = vrot.lane.b32.xlu0 %v9379_v40, %s9145_s10  ;;  %v124_v40 = vcombine.low %v9290_v24, %v9290_v24  ;;  %1222 = vst [vmem:[#allocation2 + $0x280] sm:$0x33] %v1207_v53 }
  0xc6   :  { %1981 = vmatpush1.bf16.msra.mxu0 %v8728_v42 }
  0xc7   :  { %v546_v45 = vsel %vm156_vm0, %v538_v44, %v539_v43  ;;  %v581_v47 = vpop.permute.xlu1 %580  ;;  %v579_v48 = vpop.permute.xlu0 %578  ;;  %v9605_v8 = vrot.slane %v124_v40, %v9193_v10 }
  0xc8   :  { %v548_v46 = vsel %vm13687_vm14, %v523_v39, %v546_v45  ;;  %v595_v49 = vrot.slane %v581_v47, 4  ;;  %v594_v50 = vrot.slane %v579_v48, 4 }
  0xc9   :  { %570 = vst [vmem:[#allocation2 + $0xf0] sm:$0x33] %v548_v46  ;;  %142 = vrot.lane.b32.xlu1 %v9355_v28, %s9128_s19  ;;  %311 = vrot.lane.b32.xlu0 %v9584_v32, %s9127_s18 }
  0xca   :  { %v602_v52 = vsel %vm156_vm0, %v594_v50, %v595_v49 }
  0xcb   :  { %v604_v54 = vsel %vm13678_vm15, %v579_v48, %v602_v52  ;;  %v637_v55 = vpop.permute.xlu1 %636  ;;  %v635_v56 = vpop.permute.xlu0 %634  ;;  %v8729_v57 = vld [vmem:[#allocation2 + $0x174] ss:$60 sps:$4 sm:$0xff]  }
  0xcc   :  { %v8731_v58 = vld [vmem:[#allocation2 + $0x170] ss:$60 sps:$4 sm:$0xff]   ;;  %626 = vst [vmem:[#allocation2 + $0xf0] sm:$0xcc] %v604_v54  ;;  %v651_v59 = vrot.slane %v637_v55, 4  ;;  %v650_v60 = vrot.slane %v635_v56, 4  ;;  %2021 = vmatprep.subr.bf16.mxu1 %v8729_v57 }
  0xcd   :  { %254 = vrot.lane.b32.xlu1 %v9355_v28, %s9130_s21  ;;  %199 = vrot.lane.b32.xlu0 %v9548_v11, %s9129_s20 }
  0xce   :  { %v658_v61 = vsel %vm156_vm0, %v650_v60, %v651_v59  ;;  %2022 = vmatpush1.bf16.msra.mxu1 %v8731_v58 }
  0xcf   :  { %v660_v9 = vsel %vm13680_vm13, %v635_v56, %v658_v61  ;;  %v693_v20 = vpop.permute.xlu1 %692  ;;  %v691_v22 = vpop.permute.xlu0 %690 }
  0xd0   :  { %682 = vst [vmem:[#allocation2 + $0x12c] sm:$0x33] %v660_v9  ;;  %v707_v25 = vrot.slane %v693_v20, 4  ;;  %v706_v23 = vrot.slane %v691_v22, 4 }
  0xd1   :  { %201 = vrot.lane.b32.xlu1 %v9584_v32, %s9129_s20  ;;  %144 = vrot.lane.b32.xlu0 %v9605_v8, %s9128_s19 }
  0xd2   :  { %v714_v31 = vsel %vm156_vm0, %v706_v23, %v707_v25 }
  0xd3   :  { %v716_v34 = vsel %vm13679_vm11, %v691_v22, %v714_v31  ;;  %v9614_v35 = vpop.permute.xlu1 %582  ;;  %v9616_v36 = vpop.permute.xlu0 %526 }
  0xd4   :  { %738 = vst [vmem:[#allocation2 + $0x12c] sm:$0xcc] %v716_v34  ;;  %v596_v39 = vrot.slane %v9614_v35, 4  ;;  %v540_v41 = vrot.slane %v9616_v36, 4 }
  0xd5   :  { %980 = vrot.lane.b32.xlu1 %v9548_v11, %s9131_s22  ;;  %256 = vrot.lane.b32.xlu0 %v9605_v8, %s9130_s21 }
  0xd6   :  { %v605_v42 = vsel %vm156_vm0, %v595_v49, %v596_v39  ;;  %v549_v44 = vsel %vm156_vm0, %v539_v43, %v540_v41 }
  0xd7   :  { %v606_v45 = vsel %vm13678_vm15, %v581_v47, %v605_v42  ;;  %v550_v46 = vsel %vm13687_vm14, %v9574_v38, %v549_v44  ;;  %v9633_v48 = vpop.permute.xlu1 %694  ;;  %v9635_v50 = vpop.permute.xlu0 %638  ;;  %vm13686_vm15 = vcmask 785408  }
  0xd8   :  { %627 = vst [vmem:[#allocation2 + $0xf8] sm:$0xcc] %v606_v45  ;;  %571 = vst [vmem:[#allocation2 + $0xf8] sm:$0x33] %v550_v46  ;;  %v708_v49 = vrot.slane %v9633_v48, 4  ;;  %v652_v43 = vrot.slane %v9635_v50, 4 }
  0xd9   :  { %1092 = vrot.lane.b32.xlu1 %v9548_v11, %s9133_s24  ;;  %1036 = vrot.lane.b32.xlu0 %v9355_v28, %s9132_s23 }
  0xda   :  { %v717_v52 = vsel %vm156_vm0, %v707_v25, %v708_v49  ;;  %v661_v47 = vsel %vm156_vm0, %v651_v59, %v652_v43 }
  0xdb   :  { %v718_v38 = vsel %vm13679_vm11, %v693_v20, %v717_v52  ;;  %v662_v40 = vsel %vm13680_vm13, %v637_v55, %v661_v47  ;;  %v357_v53 = vpop.permute.xlu1 %356  ;;  %v355_v54 = vpop.permute.xlu0 %354  ;;  %v8732_v56 = vld [vmem:[#allocation2 + $0xf4] ss:$60 sps:$4 sm:$0xff]   ;;  %vm13685_vm11 = vcmask 777216   ;;  %vm491_vm13 = vcmask 769024  }
  0xdc   :  { %v8734_v57 = vld [vmem:[#allocation2 + $0xf0] ss:$60 sps:$4 sm:$0xff]   ;;  %739 = vst [vmem:[#allocation2 + $0x134] sm:$0xcc] %v718_v38  ;;  %683 = vst [vmem:[#allocation2 + $0x134] sm:$0x33] %v662_v40  ;;  %1982 = vmatprep.subr.bf16.mxu0 %v8732_v56 }
  0xdd   :  { %v371_v58 = vrot.slane %v357_v53, 4  ;;  %v370_v60 = vrot.slane %v355_v54, 4  ;;  %982 = vrot.lane.b32.xlu1 %v9584_v32, %s9131_s22  ;;  %1148 = vrot.lane.b32.xlu0 %v9355_v28, %s9134_s25 }
  0xde   :  { %1983 = vmatpush1.bf16.msra.mxu0 %v8734_v57 }
  0xdf   :  { %v378_v59 = vsel %vm156_vm0, %v370_v60, %v371_v58  ;;  %v413_v61 = vpop.permute.xlu1 %412  ;;  %v411_v9 = vpop.permute.xlu0 %410 }
  0xe0   :  { %v380_v55 = vsel %vm13686_vm15, %v355_v54, %v378_v59  ;;  %v427_v20 = vrot.slane %v413_v61, 4  ;;  %v426_v22 = vrot.slane %v411_v9, 4 }
  0xe1   :  { %402 = vst [vmem:[#allocation2 + $0x78] sm:$0xcc] %v380_v55  ;;  %1094 = vrot.lane.b32.xlu1 %v9584_v32, %s9133_s24  ;;  %1038 = vrot.lane.b32.xlu0 %v9605_v8, %s9132_s23 }
  0xe2   :  { %v434_v25 = vsel %vm156_vm0, %v426_v22, %v427_v20 }
  0xe3   :  { %v436_v23 = vsel %vm13685_vm11, %v411_v9, %v434_v25  ;;  %v469_v31 = vpop.permute.xlu1 %468  ;;  %v467_v34 = vpop.permute.xlu0 %466  ;;  %v8735_v42 = vld [vmem:[#allocation2 + $0xfc] ss:$60 sps:$4 sm:$0xff]  }
  0xe4   :  { %v8737_v44 = vld [vmem:[#allocation2 + $0xf8] ss:$60 sps:$4 sm:$0xff]   ;;  %458 = vst [vmem:[#allocation2 + $0xb4] sm:$0x33] %v436_v23  ;;  %v483_v45 = vrot.slane %v469_v31, 4  ;;  %v482_v46 = vrot.slane %v467_v34, 4  ;;  %2023 = vmatprep.subr.bf16.mxu1 %v8735_v42 }
  0xe5   :  { %756 = vrot.lane.b32.xlu1 %v9548_v11, %s9135_s26  ;;  %1150 = vrot.lane.b32.xlu0 %v9605_v8, %s9134_s25 }
  0xe6   :  { %v490_v52 = vsel %vm156_vm0, %v482_v46, %v483_v45  ;;  %2024 = vmatpush1.bf16.msra.mxu1 %v8737_v44 }
  0xe7   :  { %v492_v47 = vsel %vm491_vm13, %v467_v34, %v490_v52  ;;  %v9669_v38 = vpop.permute.xlu1 %414  ;;  %v9671_v40 = vpop.permute.xlu0 %358 }
  0xe8   :  { %514 = vst [vmem:[#allocation2 + $0xb4] sm:$0xcc] %v492_v47  ;;  %v428_v54 = vrot.slane %v9669_v38, 4  ;;  %v372_v56 = vrot.slane %v9671_v40, 4  ;;  %v8741_v47 = vld [vmem:[#allocation2 + $0x4] ss:$60 sps:$4 sm:$0xff]  }
  0xe9   :  { %868 = vrot.lane.b32.xlu1 %v9548_v11, %s9137_s28  ;;  %812 = vrot.lane.b32.xlu0 %v9355_v28, %s9136_s27 }
  0xea   :  { %v437_v57 = vsel %vm156_vm0, %v427_v20, %v428_v54  ;;  %v381_v60 = vsel %vm156_vm0, %v371_v58, %v372_v56 }
  0xeb   :  { %v438_v59 = vsel %vm13685_vm11, %v413_v61, %v437_v57  ;;  %v382_v55 = vsel %vm13686_vm15, %v357_v53, %v381_v60  ;;  %v306_v9 = vpop.permute.xlu1 %305  ;;  %v9687_v22 = vpop.permute.xlu0 %470 }
  0xec   :  { %459 = vst [vmem:[#allocation2 + $0xbc] sm:$0x33] %v438_v59  ;;  %403 = vst [vmem:[#allocation2 + $0x80] sm:$0xcc] %v382_v55  ;;  %v318_v20 = vrot.slane %v306_v9, 4  ;;  %v484_v25 = vrot.slane %v9687_v22, 4 }
  0xed   :  { %758 = vrot.lane.b32.xlu1 %v9584_v32, %s9135_s26  ;;  %924 = vrot.lane.b32.xlu0 %v9355_v28, %s9138_s29 }
  0xee   :  { %v328_v58 = vsel %vm156_vm0, %v317_v37, %v318_v20  ;;  %v493_v23 = vsel %vm156_vm0, %v483_v45, %v484_v25 }
  0xef   :  { %v329_v53 = vsel %vm13681_vm1, %v9359_v30, %v328_v58  ;;  %v1296_v61 = vsel %vm13681_vm1, %v328_v58, %v306_v9  ;;  %v494_v34 = vsel %vm491_vm13, %v469_v31, %v493_v23  ;;  %v9704_v42 = vpop.permute.xlu1 %138  ;;  %v9706_v37 = vpop.permute.xlu0 %307  ;;  %v8738_v44 = vld [vmem:[#allocation2 + $0x7c] ss:$60 sps:$4 sm:$0xff]  }
  0xf0   :  { %v8740_v46 = vld [vmem:[#allocation2 + $0x78] ss:$60 sps:$4 sm:$0xff]   ;;  %348 = vst [vmem:[#allocation2 + $0x88] sm:$0x33] %v329_v53  ;;  %1311 = vst [vmem:[#allocation2 + $0x2e0] sm:$0x33] %v1296_v61  ;;  %1984 = vmatprep.subr.bf16.mxu0 %v8738_v44 }
  0xf1   :  { %515 = vst [vmem:[#allocation2 + $0xbc] sm:$0xcc] %v494_v34  ;;  %v151_v45 = vrot.slane %v9704_v42, 4  ;;  %v319_v52 = vrot.slane %v9706_v37, 4  ;;  %870 = vrot.lane.b32.xlu1 %v9584_v32, %s9137_s28  ;;  %814 = vrot.lane.b32.xlu0 %v9605_v8, %s9136_s27 }
  0xf2   :  { %1985 = vmatpush1.bf16.msra.mxu0 %v8740_v46 }
  0xf3   :  { %v162_v30 = vsel %vm156_vm0, %v150_v2, %v151_v45  ;;  %v330_v31 = vsel %vm156_vm0, %v318_v20, %v319_v52  ;;  %v9727_v55 = vpop.permute.xlu1 %250  ;;  %v196_v20 = vpop.permute.xlu0 %195  ;;  %1986 = vmatprep.subr.bf16.mxu0 %v8741_v47 }
  0xf4   :  { %v163_v57 = vsel %vm158_vm2, %v9404_v62, %v162_v30  ;;  %v1227_v60 = vsel %vm158_vm2, %v162_v30, %v9704_v42  ;;  %v331_v59 = vsel %vm13681_vm1, %v306_v9, %v330_v31  ;;  %v1297_v2 = vsel %vm13681_vm1, %v330_v31, %v9706_v37  ;;  %v8743_v62 = vld [vmem:[#allocation2] ss:$60 sps:$4 sm:$0xff]  }
  0xf5   :  { %182 = vst [vmem:[#allocation2 + $0x10] sm:$0xcc] %v163_v57  ;;  %1242 = vst [vmem:[#allocation2 + $0x268] sm:$0xcc] %v1227_v60  ;;  %v263_v58 = vrot.slane %v9727_v55, 4  ;;  %v208_v23 = vrot.slane %v196_v20, 4  ;;  %532 = vrot.lane.b32.xlu1 %v9548_v11, %s9139_s5  ;;  %926 = vrot.lane.b32.xlu0 %v9605_v8, %s9138_s29 }
  0xf6   :  { %349 = vst [vmem:[#allocation2 + $0x90] sm:$0x33] %v331_v59  ;;  %1312 = vst [vmem:[#allocation2 + $0x2e8] sm:$0x33] %v1297_v2  ;;  %vm1922_vm1 = vcmask 818176   ;;  %1987 = vmatpush1.bf16.msra.mxu0 %v8743_v62 }
  0xf7   :  { %v273_v9 = vsel %vm156_vm0, %v262_v18, %v263_v58  ;;  %v218_v53 = vsel %vm156_vm0, %v207_v21, %v208_v23  ;;  %v9747_v46 = vpop.permute.xlu1 %197  ;;  %v9749_v21 = vpop.permute.xlu0 %140  ;;  %v1416_v31 = vld [vmem:[#allocation2 + $0x2e0] sm:$0x33] }
  0xf8   :  { %v274_v61 = vsel %vm269_vm5, %v9422_v16, %v273_v9  ;;  %v1273_v34 = vsel %vm269_vm5, %v273_v9, %v9727_v55  ;;  %v219_v18 = vsel %vm13682_vm3, %v9424_v17, %v218_v53  ;;  %v1250_v44 = vsel %vm13682_vm3, %v218_v53, %v196_v20  ;;  %v8744_v30 = vld [vmem:[#allocation2 + $0x84] ss:$60 sps:$4 sm:$0xff]   ;;  %v8749_v53 = vld [vmem:[#allocation2 + $0xc] ss:$60 sps:$4 sm:$0xff]  }
  0xf9   :  { %293 = vst [vmem:[#allocation2 + $0x4c] sm:$0xcc] %v274_v61  ;;  %1288 = vst [vmem:[#allocation2 + $0x2a4] sm:$0xcc] %v1273_v34  ;;  %v209_v16 = vrot.slane %v9747_v46, 4  ;;  %v152_v47 = vrot.slane %v9749_v21, 4  ;;  %v8226_v57 = vcombine.high %v1416_v31, %v1416_v31  ;;  %v8225_v59 = vcombine.low %v1416_v31, %v1416_v31  ;;  %2025 = vmatprep.subr.bf16.mxu1 %v8744_v30 }
  0xfa   :  { %238 = vst [vmem:[#allocation2 + $0x4c] sm:$0x33] %v219_v18  ;;  %1265 = vst [vmem:[#allocation2 + $0x2a4] sm:$0x33] %v1250_v44  ;;  %v9756_v17 = vld [vmem:[%s13673_s1 + $0x1e0] sm:$0x7]  ;;  %644 = vrot.lane.b32.xlu1 %v9548_v11, %s9141_s6  ;;  %588 = vrot.lane.b32.xlu0 %v9355_v28, %s9140_s0 }
  0xfb   :  { %v8747_v60 = vld [vmem:[#allocation2 + $0x80] ss:$60 sps:$4 sm:$0xff]   ;;  %v220_v2 = vsel %vm156_vm0, %v208_v23, %v209_v16  ;;  %v164_v62 = vsel %vm156_vm0, %v151_v45, %v152_v47  ;;  %v1940_v9 = vsel %vm13759_vm4, %v8225_v59, 0  ;;  %8237 = vmatmul.mubr.msk.bf16.vlgmr.msra.gmra.mxu0 %vm1922_vm1, %v9756_v17  ;;  %v9778_v18 = vpop.permute.xlu1 %976  ;;  %v9780_v44 = vpop.permute.xlu0 %252  ;;  %8240 = vmatprep.subr.msk.bf16.mxu0 %vm13759_vm4, %v8226_v57  ;;  %v8751_v57 = vld [vmem:[#allocation2 + $0x8] ss:$60 sps:$4 sm:$0xff]  }
  0xfc   :  { %v221_v61 = vsel %vm13682_vm3, %v196_v20, %v220_v2  ;;  %v1251_v34 = vsel %vm13682_vm3, %v220_v2, %v9747_v46  ;;  %v165_v23 = vsel %vm158_vm2, %v9704_v42, %v164_v62  ;;  %v1228_v45 = vsel %vm158_vm2, %v164_v62, %v9749_v21  ;;  %2026 = vmatpush1.bf16.msra.mxu1 %v8747_v60 }
  0xfd   :  { %v1417_v30 = vld [vmem:[#allocation2 + $0x2e8] sm:$0x33]  ;;  %239 = vst [vmem:[#allocation2 + $0x54] sm:$0x33] %v221_v61  ;;  %1266 = vst [vmem:[#allocation2 + $0x2ac] sm:$0x33] %v1251_v34  ;;  %2057 = vmatpush1.bf16.msra.mxu0 %v1940_v9  ;;  %2027 = vmatprep.subr.bf16.mxu1 %v8749_v53 }
  0xfe   :  { %183 = vst [vmem:[#allocation2 + $0x18] sm:$0xcc] %v165_v23  ;;  %1243 = vst [vmem:[#allocation2 + $0x270] sm:$0xcc] %v1228_v45  ;;  %v989_v20 = vrot.slane %v9778_v18, 4  ;;  %v264_v42 = vrot.slane %v9780_v44, 4  ;;  %v8228_v31 = vcombine.high %v1417_v30, %v1417_v30  ;;  %534 = vrot.lane.b32.xlu1 %v9584_v32, %s9139_s5  ;;  %700 = vrot.lane.b32.xlu0 %v9355_v28, %s9142_s7 }
  0xff   :  { %v1089_v9 = vpop.permute.xlu1 %1088  ;;  %v1033_v53 = vpop.permute.xlu0 %1032  ;;  %v8227_v34 = vcombine.low %v1417_v30, %v1417_v30  ;;  %2086 = vmatprep.mubr.bf16.mxu0 %v13690_v29  ;;  %vm13683_vm3 = vcmask 1008640  }
 0x100   :  { %v999_v59 = vsel %vm156_vm0, %v988_v6, %v989_v20  ;;  %v275_v2 = vsel %vm156_vm0, %v263_v58, %v264_v42  ;;  %v1101_v23 = vrot.slane %v1089_v9, 4  ;;  %v1045_v45 = vrot.slane %v1033_v53, 4  ;;  %2028 = vmatpush1.bf16.msra.mxu1 %v8751_v57 }
 0x101   :  { %v1000_v60 = vsel %vm995_vm6, %v9472_v4, %v999_v59  ;;  %v276_v62 = vsel %vm269_vm5, %v9727_v55, %v275_v2  ;;  %v1274_v6 = vsel %vm269_vm5, %v275_v2, %v9780_v44  ;;  %v8753_v61 = vld [vmem:[#allocation2 + $0x268] ss:$60 sps:$4 sm:$0xff]   ;;  %v68_v4 = vcombine.high %v9290_v24, %v9290_v24  ;;  %8242 = vmatprep.subr.msk.bf16.mxu1 %vm13759_vm4, %v8228_v31 }
 0x102   :  { %v8755_v58 = vld [vmem:[#allocation2 + $0x26c] ss:$60 sps:$4 sm:$0xff]   ;;  %1020 = vst [vmem:[#allocation2 + $0x1f0] sm:$0x33] %v1000_v60  ;;  %294 = vst [vmem:[#allocation2 + $0x54] sm:$0xcc] %v276_v62  ;;  %v1111_v55 = vsel %vm156_vm0, %v1100_v19, %v1101_v23  ;;  %v1055_v30 = vsel %vm156_vm0, %v1044_v5, %v1045_v45  ;;  %646 = vrot.lane.b32.xlu1 %v9584_v32, %s9141_s6  ;;  %590 = vrot.lane.b32.xlu0 %v9605_v8, %s9140_s0 }
 0x103   :  { %1289 = vst [vmem:[#allocation2 + $0x2ac] sm:$0xcc] %v1274_v6  ;;  %2058 = vmatprep.subr.bf16.mxu0 %v8755_v58  ;;  %v1112_v24 = vsel %vm1107_vm8, %v9490_v14, %v1111_v55  ;;  %v1056_v31 = vsel %vm1051_vm7, %v9470_v3, %v1055_v30  ;;  %8239 = vmatmul.mubr.msk.bf16.vlgmr.msra.gmra.mxu1 %vm1922_vm1, %v9756_v17  ;;  %v1946_v19 = vsel %vm13759_vm4, %v8227_v34, 0  ;;  %v9822_v5 = vpop.permute.xlu1 %978  ;;  %v1145_v59 = vpop.permute.xlu0 %1144 }
 0x104   :  { %2059 = vmatpush1.bf16.msra.mxu0 %v8753_v61  ;;  %1132 = vst [vmem:[#allocation2 + $0x22c] sm:$0x33] %v1112_v24  ;;  %1076 = vst [vmem:[#allocation2 + $0x1f0] sm:$0xcc] %v1056_v31  ;;  %2098 = vmatpush1.bf16.msra.mxu1 %v1946_v19  ;;  %v9825_v2 = vrot.slane %v68_v4, %v9193_v10  ;;  %v990_v14 = vrot.slane %v9822_v5, 4  ;;  %v1157_v3 = vrot.slane %v1145_v59, 4 }
 0x105   :  { %2127 = vmatprep.mubr.bf16.mxu1 %v13690_v29 }
 0x106   :  { %364 = vrot.lane.b32.xlu1 %v9355_v28, %s9143_s8  ;;  %702 = vrot.lane.b32.xlu0 %v9605_v8, %s9142_s7  ;;  %99 = vst.msk [vmem:[#allocation2 + $0x38] sm:$0x3] %vm13683_vm3, %v9825_v2  ;;  %v1001_v10 = vsel %vm156_vm0, %v989_v20, %v990_v14  ;;  %v1167_v57 = vsel %vm156_vm0, %v1156_v15, %v1157_v3 }
 0x107   :  { %v1002_v6 = vsel %vm995_vm6, %v9778_v18, %v1001_v10  ;;  %v1168_v61 = vsel %vm1163_vm9, %v9488_v13, %v1167_v57  ;;  %v9845_v58 = vpop.permute.xlu1 %1090  ;;  %v9847_v34 = vpop.permute.xlu0 %1034  ;;  %v1201_v18 = vrot.slane %v9825_v2, 4 }
 0x108   :  { %1021 = vst [vmem:[#allocation2 + $0x1f8] sm:$0x33] %v1002_v6  ;;  %1188 = vst [vmem:[#allocation2 + $0x22c] sm:$0xcc] %v1168_v61  ;;  %v1102_v20 = vrot.slane %v9845_v58, 4  ;;  %v1046_v4 = vrot.slane %v9847_v34, 4 }
 0x109   :  { %1224 = vst.msk [vmem:[#allocation2 + $0x290] sm:$0x3] %vm13683_vm3, %v1201_v18  ;;  %vm13762_vm3 = vcmask 498688  }
 0x10a   :  { %v8757_v60 = vld [vmem:[#allocation2 + $0x270] ss:$60 sps:$4 sm:$0xff]   ;;  %476 = vrot.lane.b32.xlu1 %v9355_v28, %s9145_s10  ;;  %420 = vrot.lane.b32.xlu0 %v9548_v11, %s9144_s9  ;;  %v1113_v13 = vsel %vm156_vm0, %v1101_v23, %v1102_v20  ;;  %v1057_v15 = vsel %vm156_vm0, %v1045_v45, %v1046_v4 }
 0x10b   :  { %v8759_v62 = vld [vmem:[#allocation2 + $0x274] ss:$60 sps:$4 sm:$0xff]   ;;  %v1114_v55 = vsel %vm1107_vm8, %v1089_v9, %v1113_v13  ;;  %v1058_v30 = vsel %vm1051_vm7, %v1033_v53, %v1057_v15  ;;  %v753_v24 = vpop.permute.xlu1 %752  ;;  %v9864_v28 = vpop.permute.xlu0 %1146  ;;  %v1208_v9 = vsel %vm156_vm0, %v1200_v51, %v1201_v18 }
 0x10c   :  { %2099 = vmatprep.subr.bf16.mxu1 %v8759_v62  ;;  %1133 = vst [vmem:[#allocation2 + $0x234] sm:$0x33] %v1114_v55  ;;  %1077 = vst [vmem:[#allocation2 + $0x1f8] sm:$0xcc] %v1058_v30  ;;  %v765_v11 = vrot.slane %v753_v24, 4  ;;  %v1158_v31 = vrot.slane %v9864_v28, 4 }
 0x10d   :  { %2100 = vmatpush1.bf16.msra.mxu1 %v8757_v60  ;;  %1223 = vst [vmem:[#allocation2 + $0x288] sm:$0x33] %v1208_v9 }
 0x10e   :  { %422 = vrot.lane.b32.xlu1 %v9584_v32, %s9144_s9  ;;  %366 = vrot.lane.b32.xlu0 %v9605_v8, %s9143_s8  ;;  %v775_v53 = vsel %vm156_vm0, %v764_v7, %v765_v11  ;;  %v1169_v23 = vsel %vm156_vm0, %v1157_v3, %v1158_v31 }
 0x10f   :  { %v776_v45 = vsel %vm771_vm10, %v9532_v0, %v775_v53  ;;  %v1170_v19 = vsel %vm1163_vm9, %v1145_v59, %v1169_v23  ;;  %v865_v10 = vpop.permute.xlu1 %864  ;;  %v809_v57 = vpop.permute.xlu0 %808  ;;  %v8760_v60 = vld [vmem:[#allocation2 + $0x1f0] ss:$60 sps:$4 sm:$0xff]  }
 0x110   :  { %v8762_v62 = vld [vmem:[#allocation2 + $0x1f4] ss:$60 sps:$4 sm:$0xff]   ;;  %796 = vst [vmem:[#allocation2 + $0x178] sm:$0x33] %v776_v45  ;;  %1189 = vst [vmem:[#allocation2 + $0x234] sm:$0xcc] %v1170_v19 }
 0x111   :  { %v877_v51 = vrot.slane %v865_v10, 4  ;;  %v821_v6 = vrot.slane %v809_v57, 4  ;;  %2060 = vmatprep.subr.bf16.mxu0 %v8762_v62 }
 0x112   :  { %313 = vrot.lane.b32.xlu1 %v9825_v2, %s9127_s18  ;;  %478 = vrot.lane.b32.xlu0 %v9605_v8, %s9145_s10 }
 0x113   :  { %v887_v0 = vsel %vm156_vm0, %v876_v12, %v877_v51  ;;  %v831_v7 = vsel %vm156_vm0, %v820_v1, %v821_v6  ;;  %v9898_v61 = vpop.permute.xlu1 %754  ;;  %v921_v13 = vpop.permute.xlu0 %920  ;;  %2061 = vmatpush1.bf16.msra.mxu0 %v8760_v60 }
 0x114   :  { %v888_v59 = vsel %vm13684_vm12, %v9554_v27, %v887_v0  ;;  %v832_v3 = vsel %vm13762_vm3, %v9530_v63, %v831_v7  ;;  %v766_v8 = vrot.slane %v9898_v61, 4  ;;  %v933_v12 = vrot.slane %v921_v13, 4 }
 0x115   :  { %908 = vst [vmem:[#allocation2 + $0x1b4] sm:$0x33] %v888_v59  ;;  %852 = vst [vmem:[#allocation2 + $0x178] sm:$0xcc] %v832_v3  ;;  %vm13763_vm3 = vcmask 261120  }
 0x116   :  { %203 = vrot.lane.b32.xlu1 %v9825_v2, %s9129_s20  ;;  %146 = vrot.lane.b32.xlu0 %v9584_v32, %s9128_s19  ;;  %v777_v1 = vsel %vm156_vm0, %v765_v11, %v766_v8  ;;  %v943_v63 = vsel %vm156_vm0, %v932_v33, %v933_v12 }
 0x117   :  { %v778_v27 = vsel %vm771_vm10, %v753_v24, %v777_v1  ;;  %v944_v15 = vsel %vm13763_vm3, %v9552_v26, %v943_v63  ;;  %v9914_v18 = vpop.permute.xlu1 %866  ;;  %v9916_v55 = vpop.permute.xlu0 %810  ;;  %v8763_v30 = vld [vmem:[#allocation2 + $0x1f8] ss:$60 sps:$4 sm:$0xff]   ;;  %vm13764_vm3 = vcmask 498688  }
 0x118   :  { %v8765_v9 = vld [vmem:[#allocation2 + $0x1fc] ss:$60 sps:$4 sm:$0xff]   ;;  %797 = vst [vmem:[#allocation2 + $0x180] sm:$0x33] %v778_v27  ;;  %964 = vst [vmem:[#allocation2 + $0x1b4] sm:$0xcc] %v944_v15 }
 0x119   :  { %v878_v53 = vrot.slane %v9914_v18, 4  ;;  %v822_v11 = vrot.slane %v9916_v55, 4  ;;  %2101 = vmatprep.subr.bf16.mxu1 %v8765_v9 }
 0x11a   :  { %984 = vrot.lane.b32.xlu1 %v9825_v2, %s9131_s22  ;;  %258 = vrot.lane.b32.xlu0 %v9584_v32, %s9130_s21  ;;  %s9151_s22 = smov 56  }
 0x11b   :  { %v889_v26 = vsel %vm156_vm0, %v877_v51, %v878_v53  ;;  %v833_v33 = vsel %vm156_vm0, %v821_v6, %v822_v11  ;;  %v529_v45 = vpop.permute.xlu1 %528  ;;  %v9932_v19 = vpop.permute.xlu0 %922  ;;  %2102 = vmatpush1.bf16.msra.mxu1 %v8763_v30 }
 0x11c   :  { %v890_v24 = vsel %vm13684_vm12, %v865_v10, %v889_v26  ;;  %v834_v23 = vsel %vm13764_vm3, %v809_v57, %v833_v33  ;;  %v541_v60 = vrot.slane %v529_v45, 4  ;;  %v934_v62 = vrot.slane %v9932_v19, 4 }
 0x11d   :  { %909 = vst [vmem:[#allocation2 + $0x1bc] sm:$0x33] %v890_v24  ;;  %853 = vst [vmem:[#allocation2 + $0x180] sm:$0xcc] %v834_v23  ;;  %vm13765_vm3 = vcmask 261120   ;;  %vm13767_vm12 = vcmask 752640  }
 0x11e   :  { %1096 = vrot.lane.b32.xlu1 %v9825_v2, %s9133_s24  ;;  %1040 = vrot.lane.b32.xlu0 %v9584_v32, %s9132_s23  ;;  %v551_v10 = vsel %vm156_vm0, %v540_v41, %v541_v60  ;;  %v945_v57 = vsel %vm156_vm0, %v933_v12, %v934_v62  ;;  %s9152_s23 = smov 122  }
 0x11f   :  { %v552_v51 = vsel %vm13687_vm14, %v9616_v36, %v551_v10  ;;  %v946_v6 = vsel %vm13765_vm3, %v921_v13, %v945_v57  ;;  %v641_v0 = vpop.permute.xlu1 %640  ;;  %v585_v7 = vpop.permute.xlu0 %584  ;;  %v8766_v59 = vld [vmem:[#allocation2 + $0x178] ss:$60 sps:$4 sm:$0xff]   ;;  %vm13766_vm3 = vcmask 523264  }
 0x120   :  { %v8768_v3 = vld [vmem:[#allocation2 + $0x17c] ss:$60 sps:$4 sm:$0xff]   ;;  %572 = vst [vmem:[#allocation2 + $0x100] sm:$0x33] %v552_v51  ;;  %965 = vst [vmem:[#allocation2 + $0x1bc] sm:$0xcc] %v946_v6 }
 0x121   :  { %v653_v1 = vrot.slane %v641_v0, 4  ;;  %v597_v63 = vrot.slane %v585_v7, 4  ;;  %2062 = vmatprep.subr.bf16.mxu0 %v8768_v3 }
 0x122   :  { %760 = vrot.lane.b32.xlu1 %v9825_v2, %s9135_s26  ;;  %1152 = vrot.lane.b32.xlu0 %v9584_v32, %s9134_s25 }
 0x123   :  { %v663_v36 = vsel %vm156_vm0, %v652_v43, %v653_v1  ;;  %v607_v41 = vsel %vm156_vm0, %v596_v39, %v597_v63  ;;  %v9962_v27 = vpop.permute.xlu1 %530  ;;  %v697_v15 = vpop.permute.xlu0 %696  ;;  %2063 = vmatpush1.bf16.msra.mxu0 %v8766_v59 }
 0x124   :  { %v664_v13 = vsel %vm13766_vm3, %v9635_v50, %v663_v36  ;;  %v608_v12 = vsel %vm13767_vm12, %v9614_v35, %v607_v41  ;;  %v542_v30 = vrot.slane %v9962_v27, 4  ;;  %v709_v43 = vrot.slane %v697_v15, 4 }
 0x125   :  { %684 = vst [vmem:[#allocation2 + $0x13c] sm:$0x33] %v664_v13  ;;  %628 = vst [vmem:[#allocation2 + $0x100] sm:$0xcc] %v608_v12  ;;  %vm13768_vm12 = vcmask 515072  }
 0x126   :  { %872 = vrot.lane.b32.xlu1 %v9825_v2, %s9137_s28  ;;  %816 = vrot.lane.b32.xlu0 %v9584_v32, %s9136_s27  ;;  %v553_v39 = vsel %vm156_vm0, %v541_v60, %v542_v30  ;;  %v719_v35 = vsel %vm156_vm0, %v708_v49, %v709_v43 }
 0x127   :  { %v554_v50 = vsel %vm13687_vm14, %v529_v45, %v553_v39  ;;  %v720_v9 = vsel %vm13768_vm12, %v9633_v48, %v719_v35  ;;  %v9978_v26 = vpop.permute.xlu1 %642  ;;  %v9980_v33 = vpop.permute.xlu0 %586  ;;  %v8769_v24 = vld [vmem:[#allocation2 + $0x180] ss:$60 sps:$4 sm:$0xff]   ;;  %vm13769_vm12 = vcmask 752640  }
 0x128   :  { %v8771_v23 = vld [vmem:[#allocation2 + $0x184] ss:$60 sps:$4 sm:$0xff]   ;;  %573 = vst [vmem:[#allocation2 + $0x108] sm:$0x33] %v554_v50  ;;  %740 = vst [vmem:[#allocation2 + $0x13c] sm:$0xcc] %v720_v9 }
 0x129   :  { %v654_v10 = vrot.slane %v9978_v26, 4  ;;  %v598_v60 = vrot.slane %v9980_v33, 4  ;;  %2103 = vmatprep.subr.bf16.mxu1 %v8771_v23 }
 0x12a   :  { %536 = vrot.lane.b32.xlu1 %v9825_v2, %s9139_s5  ;;  %928 = vrot.lane.b32.xlu0 %v9584_v32, %s9138_s29 }
 0x12b   :  { %v665_v48 = vsel %vm156_vm0, %v653_v1, %v654_v10  ;;  %v609_v49 = vsel %vm156_vm0, %v597_v63, %v598_v60  ;;  %v361_v51 = vpop.permute.xlu1 %360  ;;  %v9996_v6 = vpop.permute.xlu0 %698  ;;  %2104 = vmatpush1.bf16.msra.mxu1 %v8769_v24 }
 0x12c   :  { %v666_v45 = vsel %vm13766_vm3, %v641_v0, %v665_v48  ;;  %v610_v57 = vsel %vm13769_vm12, %v585_v7, %v609_v49  ;;  %v373_v59 = vrot.slane %v361_v51, 4  ;;  %v710_v3 = vrot.slane %v9996_v6, 4 }
 0x12d   :  { %685 = vst [vmem:[#allocation2 + $0x144] sm:$0x33] %v666_v45  ;;  %629 = vst [vmem:[#allocation2 + $0x108] sm:$0xcc] %v610_v57  ;;  %vm13770_vm3 = vcmask 515072   ;;  %vm13771_vm12 = vcmask 1014784  }
 0x12e   :  { %648 = vrot.lane.b32.xlu1 %v9825_v2, %s9141_s6  ;;  %592 = vrot.lane.b32.xlu0 %v9584_v32, %s9140_s0  ;;  %v383_v0 = vsel %vm156_vm0, %v372_v56, %v373_v59  ;;  %v721_v7 = vsel %vm156_vm0, %v709_v43, %v710_v3 }
 0x12f   :  { %v384_v1 = vsel %vm13686_vm15, %v9671_v40, %v383_v0  ;;  %v722_v63 = vsel %vm13770_vm3, %v697_v15, %v721_v7  ;;  %v473_v36 = vpop.permute.xlu1 %472  ;;  %v417_v41 = vpop.permute.xlu0 %416  ;;  %v8772_v13 = vld [vmem:[#allocation2 + $0x100] ss:$60 sps:$4 sm:$0xff]   ;;  %vm13772_vm3 = vmmov %vm13771_vm12 }
 0x130   :  { %v8774_v12 = vld [vmem:[#allocation2 + $0x104] ss:$60 sps:$4 sm:$0xff]   ;;  %404 = vst [vmem:[#allocation2 + $0x88] sm:$0xcc] %v384_v1  ;;  %741 = vst [vmem:[#allocation2 + $0x144] sm:$0xcc] %v722_v63 }
 0x131   :  { %v485_v39 = vrot.slane %v473_v36, 4  ;;  %v429_v35 = vrot.slane %v417_v41, 4  ;;  %2064 = vmatprep.subr.bf16.mxu0 %v8774_v12 }
 0x132   :  { %368 = vrot.lane.b32.xlu1 %v9584_v32, %s9143_s8  ;;  %704 = vrot.lane.b32.xlu0 %v9584_v32, %s9142_s7 }
 0x133   :  { %v495_v40 = vsel %vm156_vm0, %v484_v25, %v485_v39  ;;  %v439_v56 = vsel %vm156_vm0, %v428_v54, %v429_v35  ;;  %v10026_v50 = vpop.permute.xlu1 %418  ;;  %v10028_v9 = vpop.permute.xlu0 %362  ;;  %2065 = vmatpush1.bf16.msra.mxu0 %v8772_v13 }
 0x134   :  { %v496_v15 = vsel %vm491_vm13, %v9687_v22, %v495_v40  ;;  %v440_v43 = vsel %vm13685_vm11, %v9669_v38, %v439_v56  ;;  %v430_v25 = vrot.slane %v10026_v50, 4  ;;  %v374_v24 = vrot.slane %v10028_v9, 4  ;;  %v1422_v22 = vld [vmem:[%s13674_s2 + $0xf0] sm:$0x3f] }
 0x135   :  { %516 = vst [vmem:[#allocation2 + $0xc4] sm:$0xcc] %v496_v15  ;;  %460 = vst [vmem:[#allocation2 + $0xc4] sm:$0x33] %v440_v43 }
 0x136   :  { %480 = vrot.lane.b32.xlu1 %v9584_v32, %s9145_s10  ;;  %424 = vrot.lane.b32.xlu0 %v9825_v2, %s9144_s9  ;;  %v441_v38 = vsel %vm156_vm0, %v429_v35, %v430_v25  ;;  %v385_v54 = vsel %vm156_vm0, %v373_v59, %v374_v24 }
 0x137   :  { %v442_v23 = vsel %vm13685_vm11, %v417_v41, %v441_v38  ;;  %v386_v48 = vsel %vm13686_vm15, %v361_v51, %v385_v54  ;;  %v310_v32 = vpop.permute.xlu1 %309  ;;  %v10047_v49 = vpop.permute.xlu0 %474  ;;  %v8775_v2 = vld [vmem:[#allocation2 + $0x108] ss:$60 sps:$4 sm:$0xff]  }
 0x138   :  { %v8777_v45 = vld [vmem:[#allocation2 + $0x10c] ss:$60 sps:$4 sm:$0xff]   ;;  %461 = vst [vmem:[#allocation2 + $0xcc] sm:$0x33] %v442_v23  ;;  %405 = vst [vmem:[#allocation2 + $0x90] sm:$0xcc] %v386_v48 }
 0x139   :  { %v320_v57 = vrot.slane %v310_v32, 4  ;;  %v486_v0 = vrot.slane %v10047_v49, 4  ;;  %2105 = vmatprep.subr.bf16.mxu1 %v8777_v45  ;;  %v8781_v48 = vld [vmem:[#allocation2 + $0x10] ss:$60 sps:$4 sm:$0xff]  }
 0x13a   :  { %1425 = vperm.xlu0 %8708, %v1422_v22   ;;  %2106 = vmatpush1.bf16.msra.mxu1 %v8775_v2 }
 0x13b   :  { %v332_v59 = vsel %vm156_vm0, %v319_v52, %v320_v57  ;;  %v497_v51 = vsel %vm156_vm0, %v485_v39, %v486_v0  ;;  %v143_v41 = vpop.permute.xlu1 %142  ;;  %v10060_v13 = vpop.permute.xlu0 %311  ;;  %v8783_v39 = vld [vmem:[#allocation2 + $0x14] ss:$60 sps:$4 sm:$0xff]  }
 0x13c   :  { %v333_v7 = vsel %vm13771_vm12, %v9706_v37, %v332_v59  ;;  %v1298_v1 = vsel %vm13772_vm3, %v332_v59, %v310_v32  ;;  %v498_v63 = vsel %vm491_vm13, %v473_v36, %v497_v51  ;;  %v8778_v12 = vld [vmem:[#allocation2 + $0x88] ss:$60 sps:$4 sm:$0xff]   ;;  %v153_v52 = vrot.slane %v143_v41, 4  ;;  %vm13773_vm12 = vmmov %vm13772_vm3 }
 0x13d   :  { %v8780_v35 = vld [vmem:[#allocation2 + $0x8c] ss:$60 sps:$4 sm:$0xff]   ;;  %350 = vst [vmem:[#allocation2 + $0x98] sm:$0x33] %v333_v7  ;;  %1313 = vst [vmem:[#allocation2 + $0x2f0] sm:$0x33] %v1298_v1 }
 0x13e   :  { %517 = vst [vmem:[#allocation2 + $0xcc] sm:$0xcc] %v498_v63  ;;  %v321_v40 = vrot.slane %v10060_v13, 4  ;;  %2066 = vmatprep.subr.bf16.mxu0 %v8780_v35  ;;  %v166_v37 = vsel %vm156_vm0, %v152_v47, %v153_v52 }
 0x13f   :  { %2067 = vmatpush1.bf16.msra.mxu0 %v8778_v12  ;;  %v167_v56 = vsel %vm158_vm2, %v9749_v21, %v166_v37  ;;  %v1229_v15 = vsel %vm158_vm2, %v166_v37, %v143_v41  ;;  %v255_v54 = vpop.permute.xlu1 %254  ;;  %v200_v22 = vpop.permute.xlu0 %199  ;;  %v8791_v37 = vld [vmem:[#allocation2 + $0x1c] ss:$60 sps:$4 sm:$0xff]  }
 0x140   :  { %v334_v36 = vsel %vm156_vm0, %v320_v57, %v321_v40  ;;  %2068 = vmatprep.subr.bf16.mxu0 %v8783_v39  ;;  %184 = vst [vmem:[#allocation2 + $0x20] sm:$0xcc] %v167_v56  ;;  %1244 = vst [vmem:[#allocation2 + $0x278] sm:$0xcc] %v1229_v15  ;;  %v265_v47 = vrot.slane %v255_v54, 4  ;;  %v210_v23 = vrot.slane %v200_v22, 4 }
 0x141   :  { %v335_v43 = vsel %vm13773_vm12, %v310_v32, %v334_v36  ;;  %v1299_v38 = vsel %vm13772_vm3, %v334_v36, %v10060_v13  ;;  %vm13774_vm12 = vcmask 1031168  }
 0x142   :  { %351 = vst [vmem:[#allocation2 + $0xa0] sm:$0x33] %v335_v43  ;;  %1314 = vst [vmem:[#allocation2 + $0x2f8] sm:$0x33] %v1299_v38  ;;  %v277_v21 = vsel %vm156_vm0, %v264_v42, %v265_v47  ;;  %v222_v32 = vsel %vm156_vm0, %v209_v16, %v210_v23 }
 0x143   :  { %2069 = vmatpush1.bf16.msra.mxu0 %v8781_v48  ;;  %v278_v2 = vsel %vm269_vm5, %v9780_v44, %v277_v21  ;;  %v1275_v45 = vsel %vm269_vm5, %v277_v21, %v255_v54  ;;  %v223_v57 = vsel %vm13774_vm12, %v9747_v46, %v222_v32  ;;  %vm13775_vm3 = vmmov %vm13774_vm12  ;;  %v10087_v51 = vpop.permute.xlu1 %201  ;;  %v10089_v7 = vpop.permute.xlu0 %144 }
 0x144   :  { %v1252_v59 = vsel %vm13775_vm3, %v222_v32, %v200_v22  ;;  %295 = vst [vmem:[#allocation2 + $0x5c] sm:$0xcc] %v278_v2  ;;  %1290 = vst [vmem:[#allocation2 + $0x2b4] sm:$0xcc] %v1275_v45  ;;  %v211_v16 = vrot.slane %v10087_v51, 4  ;;  %v154_v44 = vrot.slane %v10089_v7, 4 }
 0x145   :  { %v8784_v42 = vld [vmem:[#allocation2 + $0x90] ss:$60 sps:$4 sm:$0xff]   ;;  %240 = vst [vmem:[#allocation2 + $0x5c] sm:$0x33] %v223_v57  ;;  %1267 = vst [vmem:[#allocation2 + $0x2b4] sm:$0x33] %v1252_v59 }
 0x146   :  { %v8786_v1 = vld [vmem:[#allocation2 + $0x94] ss:$60 sps:$4 sm:$0xff]   ;;  %8241 = vmatmul.mubr.msk.bf16.vlgmr.msra.gmra.mxu0 %vm1922_vm1, %v9756_v17  ;;  %v224_v35 = vsel %vm156_vm0, %v210_v23, %v211_v16  ;;  %v168_v39 = vsel %vm156_vm0, %v153_v52, %v154_v44  ;;  %vm13776_vm12 = vmmov %vm13775_vm3 }
 0x147   :  { %v1418_v63 = vld [vmem:[#allocation2 + $0x2f0] sm:$0x33]  ;;  %2107 = vmatprep.subr.bf16.mxu1 %v8786_v1  ;;  %2168 = vmatprep.mubr.bf16.mxu0 %v13690_v29  ;;  %v225_v36 = vsel %vm13776_vm12, %v200_v22, %v224_v35  ;;  %v1253_v56 = vsel %vm13775_vm3, %v224_v35, %v10087_v51  ;;  %v169_v15 = vsel %vm158_vm2, %v143_v41, %v168_v39  ;;  %v981_v38 = vpop.permute.xlu1 %980  ;;  %v10109_v23 = vpop.permute.xlu0 %256  ;;  %vm13777_vm12 = vcmask 490496  }
 0x148   :  { %v8230_v46 = vcombine.high %v1418_v63, %v1418_v63  ;;  %v8229_v12 = vcombine.low %v1418_v63, %v1418_v63  ;;  %2108 = vmatpush1.bf16.msra.mxu1 %v8784_v42  ;;  %v1230_v43 = vsel %vm158_vm2, %v168_v39, %v10089_v7  ;;  %241 = vst [vmem:[#allocation2 + $0x64] sm:$0x33] %v225_v36  ;;  %1268 = vst [vmem:[#allocation2 + $0x2bc] sm:$0x33] %v1253_v56  ;;  %v8789_v32 = vld [vmem:[#allocation2 + $0x18] ss:$60 sps:$4 sm:$0xff]  }
 0x149   :  { %v1419_v52 = vld [vmem:[#allocation2 + $0x2f8] sm:$0x33]  ;;  %185 = vst [vmem:[#allocation2 + $0x28] sm:$0xcc] %v169_v15  ;;  %1245 = vst [vmem:[#allocation2 + $0x280] sm:$0xcc] %v1230_v43  ;;  %2109 = vmatprep.subr.bf16.mxu1 %v8791_v37 }
 0x14a   :  { %8244 = vmatprep.subr.msk.bf16.mxu0 %vm13759_vm4, %v8230_v46  ;;  %v991_v48 = vrot.slane %v981_v38, 4  ;;  %v266_v22 = vrot.slane %v10109_v23, 4  ;;  %v1952_v21 = vsel %vm13759_vm4, %v8229_v12, 0  ;;  %v8232_v41 = vcombine.high %v1419_v52, %v1419_v52 }
 0x14b   :  { %2139 = vmatpush1.bf16.msra.mxu0 %v1952_v21  ;;  %v8231_v2 = vcombine.low %v1419_v52, %v1419_v52  ;;  %v1093_v63 = vpop.permute.xlu1 %1092  ;;  %v1037_v46 = vpop.permute.xlu0 %1036  ;;  %vm13778_vm3 = vcmask 498688  }
 0x14c   :  { %v1003_v45 = vsel %vm156_vm0, %v990_v14, %v991_v48  ;;  %v279_v57 = vsel %vm156_vm0, %v265_v47, %v266_v22  ;;  %2110 = vmatpush1.bf16.msra.mxu1 %v8789_v32  ;;  %v8793_v12 = vld [vmem:[#allocation2 + $0x278] ss:$60 sps:$4 sm:$0xff]   ;;  %v1103_v14 = vrot.slane %v1093_v63, 4  ;;  %v1047_v47 = vrot.slane %v1037_v46, 4 }
 0x14d   :  { %v1004_v59 = vsel %vm995_vm6, %v9822_v5, %v1003_v45  ;;  %v280_v42 = vsel %vm269_vm5, %v255_v54, %v279_v57  ;;  %v1276_v1 = vsel %vm269_vm5, %v279_v57, %v10109_v23  ;;  %8246 = vmatprep.subr.msk.bf16.mxu1 %vm13759_vm4, %v8232_v41  ;;  %v8795_v35 = vld [vmem:[#allocation2 + $0x27c] ss:$60 sps:$4 sm:$0xff]   ;;  %v1958_v5 = vsel %vm13759_vm4, %v8231_v2, 0 }
 0x14e   :  { %1022 = vst [vmem:[#allocation2 + $0x200] sm:$0x33] %v1004_v59  ;;  %296 = vst [vmem:[#allocation2 + $0x64] sm:$0xcc] %v280_v42  ;;  %2140 = vmatprep.subr.bf16.mxu0 %v8795_v35  ;;  %v1115_v54 = vsel %vm156_vm0, %v1102_v20, %v1103_v14  ;;  %v1059_v39 = vsel %vm156_vm0, %v1046_v4, %v1047_v47 }
 0x14f   :  { %1291 = vst [vmem:[#allocation2 + $0x2bc] sm:$0xcc] %v1276_v1  ;;  %8243 = vmatmul.mubr.msk.bf16.vlgmr.msra.gmra.mxu1 %vm1922_vm1, %v9756_v17  ;;  %2141 = vmatpush1.bf16.msra.mxu0 %v8793_v12  ;;  %v1116_v37 = vsel %vm1107_vm8, %v9845_v58, %v1115_v54  ;;  %v1060_v36 = vsel %vm1051_vm7, %v9847_v34, %v1059_v39  ;;  %v10138_v17 = vpop.permute.xlu1 %982  ;;  %v1149_v56 = vpop.permute.xlu0 %1148 }
 0x150   :  { %2180 = vmatpush1.bf16.msra.mxu1 %v1958_v5  ;;  %2209 = vmatprep.mubr.bf16.mxu1 %v13690_v29  ;;  %1134 = vst [vmem:[#allocation2 + $0x23c] sm:$0x33] %v1116_v37  ;;  %1078 = vst [vmem:[#allocation2 + $0x200] sm:$0xcc] %v1060_v36  ;;  %v992_v20 = vrot.slane %v10138_v17, 4  ;;  %v1159_v15 = vrot.slane %v1149_v56, 4 }
 0x152   :  { %v1005_v4 = vsel %vm156_vm0, %v991_v48, %v992_v20  ;;  %v1171_v58 = vsel %vm156_vm0, %v1158_v31, %v1159_v15 }
 0x153   :  { %v1006_v34 = vsel %vm995_vm6, %v981_v38, %v1005_v4  ;;  %v1172_v43 = vsel %vm1163_vm9, %v9864_v28, %v1171_v58  ;;  %v10151_v52 = vpop.permute.xlu1 %1094  ;;  %v10153_v21 = vpop.permute.xlu0 %1038 }
 0x154   :  { %1023 = vst [vmem:[#allocation2 + $0x208] sm:$0x33] %v1006_v34  ;;  %1190 = vst [vmem:[#allocation2 + $0x23c] sm:$0xcc] %v1172_v43  ;;  %v1104_v2 = vrot.slane %v10151_v52, 4  ;;  %v1048_v48 = vrot.slane %v10153_v21, 4 }
 0x156   :  { %v8797_v32 = vld [vmem:[#allocation2 + $0x280] ss:$60 sps:$4 sm:$0xff]   ;;  %v1117_v31 = vsel %vm156_vm0, %v1103_v14, %v1104_v2  ;;  %v1061_v28 = vsel %vm156_vm0, %v1047_v47, %v1048_v48 }
 0x157   :  { %v8799_v41 = vld [vmem:[#allocation2 + $0x284] ss:$60 sps:$4 sm:$0xff]   ;;  %v1118_v38 = vsel %vm1107_vm8, %v1093_v63, %v1117_v31  ;;  %v1062_v45 = vsel %vm1051_vm7, %v1037_v46, %v1061_v28  ;;  %v757_v57 = vpop.permute.xlu1 %756  ;;  %v10165_v59 = vpop.permute.xlu0 %1150 }
 0x158   :  { %2181 = vmatprep.subr.bf16.mxu1 %v8799_v41  ;;  %1135 = vst [vmem:[#allocation2 + $0x244] sm:$0x33] %v1118_v38  ;;  %1079 = vst [vmem:[#allocation2 + $0x208] sm:$0xcc] %v1062_v45  ;;  %v767_v42 = vrot.slane %v757_v57, 4  ;;  %v1160_v1 = vrot.slane %v10165_v59, 4 }
 0x159   :  { %2182 = vmatpush1.bf16.msra.mxu1 %v8797_v32 }
 0x15a   :  { %v779_v12 = vsel %vm156_vm0, %v766_v8, %v767_v42  ;;  %v1173_v35 = vsel %vm156_vm0, %v1159_v15, %v1160_v1 }
 0x15b   :  { %v780_v63 = vsel %vm771_vm10, %v9898_v61, %v779_v12  ;;  %v1174_v46 = vsel %vm1163_vm9, %v1149_v56, %v1173_v35  ;;  %v869_v14 = vpop.permute.xlu1 %868  ;;  %v813_v47 = vpop.permute.xlu0 %812  ;;  %v8800_v5 = vld [vmem:[#allocation2 + $0x200] ss:$60 sps:$4 sm:$0xff]  }
 0x15c   :  { %v8802_v54 = vld [vmem:[#allocation2 + $0x204] ss:$60 sps:$4 sm:$0xff]   ;;  %798 = vst [vmem:[#allocation2 + $0x188] sm:$0x33] %v780_v63  ;;  %1191 = vst [vmem:[#allocation2 + $0x244] sm:$0xcc] %v1174_v46 }
 0x15d   :  { %v879_v39 = vrot.slane %v869_v14, 4  ;;  %v823_v37 = vrot.slane %v813_v47, 4  ;;  %2142 = vmatprep.subr.bf16.mxu0 %v8802_v54 }
 0x15e   :  { %2143 = vmatpush1.bf16.msra.mxu0 %v8800_v5 }
 0x15f   :  { %v891_v8 = vsel %vm156_vm0, %v878_v53, %v879_v39  ;;  %v835_v36 = vsel %vm156_vm0, %v822_v11, %v823_v37  ;;  %v10187_v15 = vpop.permute.xlu1 %758  ;;  %v925_v4 = vpop.permute.xlu0 %924 }
 0x160   :  { %v892_v61 = vsel %vm13777_vm12, %v9914_v18, %v891_v8  ;;  %v836_v56 = vsel %vm13778_vm3, %v9916_v55, %v835_v36  ;;  %v768_v58 = vrot.slane %v10187_v15, 4  ;;  %v935_v34 = vrot.slane %v925_v4, 4 }
 0x161   :  { %910 = vst [vmem:[#allocation2 + $0x1c4] sm:$0x33] %v892_v61  ;;  %854 = vst [vmem:[#allocation2 + $0x188] sm:$0xcc] %v836_v56  ;;  %vm13779_vm12 = vcmask 261120   ;;  %vm13780_vm3 = vcmask 490496  }
 0x162   :  { %v781_v53 = vsel %vm156_vm0, %v767_v42, %v768_v58  ;;  %v947_v11 = vsel %vm156_vm0, %v934_v62, %v935_v34 }
 0x163   :  { %v782_v18 = vsel %vm771_vm10, %v757_v57, %v781_v53  ;;  %v948_v55 = vsel %vm13779_vm12, %v9932_v19, %v947_v11  ;;  %v10199_v43 = vpop.permute.xlu1 %870  ;;  %v10201_v32 = vpop.permute.xlu0 %814  ;;  %v8803_v41 = vld [vmem:[#allocation2 + $0x208] ss:$60 sps:$4 sm:$0xff]   ;;  %vm13781_vm12 = vcmask 498688  }
 0x164   :  { %v8805_v31 = vld [vmem:[#allocation2 + $0x20c] ss:$60 sps:$4 sm:$0xff]   ;;  %799 = vst [vmem:[#allocation2 + $0x190] sm:$0x33] %v782_v18  ;;  %966 = vst [vmem:[#allocation2 + $0x1c4] sm:$0xcc] %v948_v55 }
 0x165   :  { %v880_v28 = vrot.slane %v10199_v43, 4  ;;  %v824_v38 = vrot.slane %v10201_v32, 4  ;;  %2183 = vmatprep.subr.bf16.mxu1 %v8805_v31 }
 0x166   :  { %2184 = vmatpush1.bf16.msra.mxu1 %v8803_v41 }
 0x167   :  { %v893_v62 = vsel %vm156_vm0, %v879_v39, %v880_v28  ;;  %v837_v19 = vsel %vm156_vm0, %v823_v37, %v824_v38  ;;  %v533_v42 = vpop.permute.xlu1 %532  ;;  %v10213_v12 = vpop.permute.xlu0 %926 }
 0x168   :  { %v894_v45 = vsel %vm13780_vm3, %v869_v14, %v893_v62  ;;  %v838_v57 = vsel %vm13781_vm12, %v813_v47, %v837_v19  ;;  %v543_v35 = vrot.slane %v533_v42, 4  ;;  %v936_v63 = vrot.slane %v10213_v12, 4 }
 0x169   :  { %911 = vst [vmem:[#allocation2 + $0x1cc] sm:$0x33] %v894_v45  ;;  %855 = vst [vmem:[#allocation2 + $0x190] sm:$0xcc] %v838_v57  ;;  %vm13782_vm3 = vcmask 261120   ;;  %vm13783_vm12 = vcmask 523264  }
 0x16a   :  { %v555_v46 = vsel %vm156_vm0, %v542_v30, %v543_v35  ;;  %v949_v5 = vsel %vm156_vm0, %v935_v34, %v936_v63 }
 0x16b   :  { %v556_v14 = vsel %vm13687_vm14, %v9962_v27, %v555_v46  ;;  %v950_v47 = vsel %vm13782_vm3, %v925_v4, %v949_v5  ;;  %v8806_v37 = vld [vmem:[#allocation2 + $0x188] ss:$60 sps:$4 sm:$0xff]   ;;  %vm13784_vm3 = vcmask 752640  }
 0x16c   :  { %v645_v54 = vpop.permute.xlu1 %644  ;;  %v589_v39 = vpop.permute.xlu0 %588  ;;  %v8808_v8 = vld [vmem:[#allocation2 + $0x18c] ss:$60 sps:$4 sm:$0xff]   ;;  %574 = vst [vmem:[#allocation2 + $0x110] sm:$0x33] %v556_v14  ;;  %967 = vst [vmem:[#allocation2 + $0x1cc] sm:$0xcc] %v950_v47 }
 0x16d   :  { %v655_v36 = vrot.slane %v645_v54, 4  ;;  %v599_v61 = vrot.slane %v589_v39, 4  ;;  %2144 = vmatprep.subr.bf16.mxu0 %v8808_v8 }
 0x16e   :  { %2145 = vmatpush1.bf16.msra.mxu0 %v8806_v37 }
 0x16f   :  { %v667_v30 = vsel %vm156_vm0, %v654_v10, %v655_v36  ;;  %v611_v56 = vsel %vm156_vm0, %v598_v60, %v599_v61 }
 0x170   :  { %v668_v27 = vsel %vm13783_vm12, %v9978_v26, %v667_v30  ;;  %v612_v4 = vsel %vm13784_vm3, %v9980_v33, %v611_v56  ;;  %v10235_v34 = vpop.permute.xlu1 %534  ;;  %v701_v53 = vpop.permute.xlu0 %700  ;;  %vm13785_vm12 = vcmask 515072   ;;  %vm13786_vm3 = vcmask 523264  }
 0x171   :  { %686 = vst [vmem:[#allocation2 + $0x14c] sm:$0x33] %v668_v27  ;;  %630 = vst [vmem:[#allocation2 + $0x110] sm:$0xcc] %v612_v4  ;;  %v544_v11 = vrot.slane %v10235_v34, 4  ;;  %v711_v18 = vrot.slane %v701_v53, 4 }
 0x173   :  { %v557_v10 = vsel %vm156_vm0, %v543_v35, %v544_v11  ;;  %v723_v60 = vsel %vm156_vm0, %v710_v3, %v711_v18  ;;  %v8809_v31 = vld [vmem:[#allocation2 + $0x190] ss:$60 sps:$4 sm:$0xff]  }
 0x174   :  { %v558_v26 = vsel %vm13687_vm14, %v533_v42, %v557_v10  ;;  %v724_v33 = vsel %vm13785_vm12, %v9996_v6, %v723_v60  ;;  %v10247_v55 = vpop.permute.xlu1 %646  ;;  %v10249_v41 = vpop.permute.xlu0 %590  ;;  %v8811_v62 = vld [vmem:[#allocation2 + $0x194] ss:$60 sps:$4 sm:$0xff]   ;;  %vm13787_vm12 = vcmask 752640  }
 0x175   :  { %575 = vst [vmem:[#allocation2 + $0x118] sm:$0x33] %v558_v26  ;;  %742 = vst [vmem:[#allocation2 + $0x14c] sm:$0xcc] %v724_v33  ;;  %v656_v19 = vrot.slane %v10247_v55, 4  ;;  %v600_v45 = vrot.slane %v10249_v41, 4  ;;  %2185 = vmatprep.subr.bf16.mxu1 %v8811_v62 }
 0x176   :  { %2186 = vmatpush1.bf16.msra.mxu1 %v8809_v31 }
 0x177   :  { %v669_v3 = vsel %vm156_vm0, %v655_v36, %v656_v19  ;;  %v613_v6 = vsel %vm156_vm0, %v599_v61, %v600_v45 }
 0x178   :  { %v670_v57 = vsel %vm13786_vm3, %v645_v54, %v669_v3  ;;  %v614_v42 = vsel %vm13787_vm12, %v589_v39, %v613_v6  ;;  %v365_v35 = vpop.permute.xlu1 %364  ;;  %v10261_v46 = vpop.permute.xlu0 %702  ;;  %vm13788_vm3 = vcmask 515072   ;;  %vm13789_vm12 = vcmask 1008640  }
 0x179   :  { %687 = vst [vmem:[#allocation2 + $0x154] sm:$0x33] %v670_v57  ;;  %631 = vst [vmem:[#allocation2 + $0x118] sm:$0xcc] %v614_v42  ;;  %v375_v5 = vrot.slane %v365_v35, 4  ;;  %v712_v14 = vrot.slane %v10261_v46, 4 }
 0x17b   :  { %v387_v47 = vsel %vm156_vm0, %v374_v24, %v375_v5  ;;  %v725_v37 = vsel %vm156_vm0, %v711_v18, %v712_v14 }
 0x17c   :  { %v388_v54 = vsel %vm13686_vm15, %v10028_v9, %v387_v47  ;;  %v726_v39 = vsel %vm13788_vm3, %v701_v53, %v725_v37  ;;  %v477_v8 = vpop.permute.xlu1 %476  ;;  %v421_v36 = vpop.permute.xlu0 %420  ;;  %v8812_v61 = vld [vmem:[#allocation2 + $0x110] ss:$60 sps:$4 sm:$0xff]   ;;  %vm187_vm3 = vcmask 1010690  }
 0x17d   :  { %v8814_v30 = vld [vmem:[#allocation2 + $0x114] ss:$60 sps:$4 sm:$0xff]   ;;  %406 = vst [vmem:[#allocation2 + $0x98] sm:$0xcc] %v388_v54  ;;  %743 = vst [vmem:[#allocation2 + $0x154] sm:$0xcc] %v726_v39 }
 0x17e   :  { %v487_v56 = vrot.slane %v477_v8, 4  ;;  %v431_v27 = vrot.slane %v421_v36, 4  ;;  %2146 = vmatprep.subr.bf16.mxu0 %v8814_v30 }
 0x17f   :  { %2147 = vmatpush1.bf16.msra.mxu0 %v8812_v61 }
 0x180   :  { %v499_v24 = vsel %vm156_vm0, %v486_v0, %v487_v56  ;;  %v443_v4 = vsel %vm156_vm0, %v430_v25, %v431_v27  ;;  %v10283_v18 = vpop.permute.xlu1 %422  ;;  %v10285_v10 = vpop.permute.xlu0 %366 }
 0x181   :  { %v500_v9 = vsel %vm491_vm13, %v10047_v49, %v499_v24  ;;  %v444_v53 = vsel %vm13685_vm11, %v10026_v50, %v443_v4  ;;  %v432_v60 = vrot.slane %v10283_v18, 4  ;;  %v376_v0 = vrot.slane %v10285_v10, 4 }
 0x182   :  { %518 = vst [vmem:[#allocation2 + $0xd4] sm:$0xcc] %v500_v9  ;;  %462 = vst [vmem:[#allocation2 + $0xd4] sm:$0x33] %v444_v53 }
 0x183   :  { %v445_v25 = vsel %vm156_vm0, %v431_v27, %v432_v60  ;;  %v389_v49 = vsel %vm156_vm0, %v375_v5, %v376_v0 }
 0x184   :  { %v446_v50 = vsel %vm13685_vm11, %v421_v36, %v445_v25  ;;  %v390_v26 = vsel %vm13686_vm15, %v365_v35, %v389_v49  ;;  %v314_v33 = vpop.permute.xlu1 %313  ;;  %v10297_v31 = vpop.permute.xlu0 %478  ;;  %v8815_v62 = vld [vmem:[#allocation2 + $0x118] ss:$60 sps:$4 sm:$0xff]   ;;  %vm13790_vm11 = vmmov %vm13789_vm12  ;;  %vm13791_vm15 = vcmask 1014784   ;;  %v8821_v49 = vld [vmem:[#allocation2 + $0x20] ss:$60 sps:$4 sm:$0xff]  }
 0x185   :  { %v8817_v3 = vld [vmem:[#allocation2 + $0x11c] ss:$60 sps:$4 sm:$0xff]   ;;  %463 = vst [vmem:[#allocation2 + $0xdc] sm:$0x33] %v446_v50  ;;  %407 = vst [vmem:[#allocation2 + $0xa0] sm:$0xcc] %v390_v26 }
 0x186   :  { %v322_v6 = vrot.slane %v314_v33, 4  ;;  %353 = vst.msk [vmem:[#allocation2 + $0xb0] sm:$0x3] %vm13789_vm12, %v314_v33  ;;  %v488_v57 = vrot.slane %v10297_v31, 4  ;;  %2187 = vmatprep.subr.bf16.mxu1 %v8817_v3  ;;  %vm13792_vm14 = vmmov %vm13791_vm15 }
 0x187   :  { %2188 = vmatpush1.bf16.msra.mxu1 %v8815_v62 }
 0x188   :  { %v336_v42 = vsel %vm156_vm0, %v321_v40, %v322_v6  ;;  %1316 = vst.msk [vmem:[#allocation2 + $0x308] sm:$0x3] %vm13790_vm11, %v322_v6  ;;  %v501_v35 = vsel %vm156_vm0, %v487_v56, %v488_v57  ;;  %v204_v54 = vpop.permute.xlu1 %203  ;;  %v147_v39 = vpop.permute.xlu0 %146  ;;  %v8823_v56 = vld [vmem:[#allocation2 + $0x24] ss:$60 sps:$4 sm:$0xff]  }
 0x189   :  { %v337_v5 = vsel %vm13791_vm15, %v10060_v13, %v336_v42  ;;  %v1300_v47 = vsel %vm13792_vm14, %v336_v42, %v314_v33  ;;  %v502_v37 = vsel %vm491_vm13, %v477_v8, %v501_v35  ;;  %v8818_v36 = vld [vmem:[#allocation2 + $0x98] ss:$60 sps:$4 sm:$0xff]   ;;  %v212_v40 = vrot.slane %v204_v54, 4  ;;  %243 = vst.msk [vmem:[#allocation2 + $0x74] sm:$0x3] %vm13790_vm11, %v204_v54  ;;  %vm13793_vm14 = vmmov %vm13790_vm11 }
 0x18a   :  { %v8820_v61 = vld [vmem:[#allocation2 + $0x9c] ss:$60 sps:$4 sm:$0xff]   ;;  %352 = vst [vmem:[#allocation2 + $0xa8] sm:$0x33] %v337_v5  ;;  %1315 = vst [vmem:[#allocation2 + $0x300] sm:$0x33] %v1300_v47 }
 0x18b   :  { %519 = vst [vmem:[#allocation2 + $0xdc] sm:$0xcc] %v502_v37  ;;  %v155_v30 = vrot.slane %v147_v39, 4  ;;  %188 = vst.msk [vmem:[#allocation2 + $0x38] sm:$0xc] %vm187_vm3, %v147_v39  ;;  %2148 = vmatprep.subr.bf16.mxu0 %v8820_v61  ;;  %v226_v13 = vsel %vm156_vm0, %v211_v16, %v212_v40  ;;  %vm13794_vm15 = vcmask 1031168  }
 0x18c   :  { %1270 = vst.msk [vmem:[#allocation2 + $0x2cc] sm:$0x3] %vm13793_vm14, %v212_v40  ;;  %2149 = vmatpush1.bf16.msra.mxu0 %v8818_v36  ;;  %v227_v27 = vsel %vm13794_vm15, %v10087_v51, %v226_v13  ;;  %vm13795_vm12 = vmmov %vm13794_vm15  ;;  %v985_v16 = vpop.permute.xlu1 %984  ;;  %v259_v53 = vpop.permute.xlu0 %258  ;;  %v8830_v37 = vld [vmem:[#allocation2 + $0x2c] ss:$60 sps:$4 sm:$0xff]  }
 0x18d   :  { %v170_v8 = vsel %vm156_vm0, %v154_v44, %v155_v30  ;;  %1247 = vst.msk [vmem:[#allocation2 + $0x290] sm:$0xc] %vm187_vm3, %v155_v30  ;;  %v1254_v24 = vsel %vm13795_vm12, %v226_v13, %v204_v54  ;;  %2150 = vmatprep.subr.bf16.mxu0 %v8823_v56  ;;  %242 = vst [vmem:[#allocation2 + $0x6c] sm:$0x33] %v227_v27  ;;  %v993_v44 = vrot.slane %v985_v16, 4  ;;  %v267_v25 = vrot.slane %v259_v53, 4 }
 0x18e   :  { %v171_v4 = vsel %vm158_vm2, %v10089_v7, %v170_v8  ;;  %v1231_v9 = vsel %vm158_vm2, %v170_v8, %v147_v39  ;;  %1269 = vst [vmem:[#allocation2 + $0x2c4] sm:$0x33] %v1254_v24  ;;  %298 = vst.msk [vmem:[#allocation2 + $0x74] sm:$0xc] %vm187_vm3, %v259_v53  ;;  %vm13760_vm12 = vmmov 0  }
 0x18f   :  { %186 = vst [vmem:[#allocation2 + $0x30] sm:$0xcc] %v171_v4  ;;  %1246 = vst [vmem:[#allocation2 + $0x288] sm:$0xcc] %v1231_v9  ;;  %v1007_v51 = vsel %vm156_vm0, %v992_v20, %v993_v44  ;;  %v1009_v7 = vsel %vm995_vm6, %v985_v16, %v993_v44  ;;  %v281_v50 = vsel %vm156_vm0, %v266_v22, %v267_v25 }
 0x190   :  { %1293 = vst.msk [vmem:[#allocation2 + $0x2cc] sm:$0xc] %vm187_vm3, %v267_v25  ;;  %2151 = vmatpush1.bf16.msra.mxu0 %v8821_v49  ;;  %v1008_v26 = vsel %vm995_vm6, %v10138_v17, %v1007_v51  ;;  %v282_v33 = vsel %vm269_vm5, %v10109_v23, %v281_v50  ;;  %v1277_v62 = vsel %vm269_vm5, %v281_v50, %v259_v53  ;;  %v1097_v20 = vpop.permute.xlu1 %1096  ;;  %v1041_v3 = vpop.permute.xlu0 %1040  ;;  %v10346_v17 = vld [vmem:[%s13673_s1 + $0x1e0] sm:$0x7]  ;;  %vm13796_vm5 = vmmov %vm13790_vm11  ;;  %v13688_v51 = vmov 0.0  }
 0x191   :  { %1025 = vst.msk [vmem:[#allocation2 + $0x218] sm:$0x3] %vm13790_vm11, %v1009_v7  ;;  %1024 = vst [vmem:[#allocation2 + $0x210] sm:$0x33] %v1008_v26  ;;  %v1105_v22 = vrot.slane %v1097_v20, 4  ;;  %v1049_v35 = vrot.slane %v1041_v3, 4 }
 0x192   :  { %v8824_v6 = vld [vmem:[#allocation2 + $0xa0] ss:$60 sps:$4 sm:$0xff]   ;;  %297 = vst [vmem:[#allocation2 + $0x6c] sm:$0xcc] %v282_v33  ;;  %1292 = vst [vmem:[#allocation2 + $0x2c4] sm:$0xcc] %v1277_v62 }
 0x193   :  { %v8826_v42 = vld [vmem:[#allocation2 + $0xa4] ss:$60 sps:$4 sm:$0xff]   ;;  %8245 = vmatmul.mubr.msk.bf16.vlgmr.msra.gmra.mxu0 %vm1922_vm1, %v10346_v17  ;;  %v1119_v54 = vsel %vm156_vm0, %v1104_v2, %v1105_v22  ;;  %v1121_v39 = vsel %vm1107_vm8, %v1097_v20, %v1105_v22  ;;  %v1063_v36 = vsel %vm156_vm0, %v1048_v48, %v1049_v35  ;;  %v1065_v61 = vsel %vm1051_vm7, %v1041_v3, %v1049_v35  ;;  %v8834_v27 = vld [vmem:[#allocation2 + $0x308] ss:$0 sps:$4 sm:$0x33]   ;;  %vm13797_vm6 = vmmov %vm13796_vm5 }
 0x194   :  { %v1420_v5 = vld [vmem:[#allocation2 + $0x300] sm:$0x33]  ;;  %2189 = vmatprep.subr.bf16.mxu1 %v8826_v42  ;;  %v1120_v40 = vsel %vm1107_vm8, %v10151_v52, %v1119_v54  ;;  %1137 = vst.msk [vmem:[#allocation2 + $0x254] sm:$0x3] %vm13796_vm5, %v1121_v39  ;;  %v1064_v30 = vsel %vm1051_vm7, %v10153_v21, %v1063_v36  ;;  %v761_v2 = vpop.permute.xlu1 %760  ;;  %v1153_v56 = vpop.permute.xlu0 %1152  ;;  %2250 = vmatprep.mubr.bf16.mxu0 %v13690_v29  ;;  %vm13798_vm7 = vcmask 490496   ;;  %vm13799_vm8 = vcmask 498688   ;;  %vm13801_vm14 = vmmov %vm13796_vm5 }
 0x195   :  { %v8234_v23 = vcombine.high %v1420_v5, %v1420_v5  ;;  %v8233_v47 = vcombine.low %v1420_v5, %v1420_v5  ;;  %2190 = vmatpush1.bf16.msra.mxu1 %v8824_v6  ;;  %1081 = vst.msk [vmem:[#allocation2 + $0x218] sm:$0xc] %vm187_vm3, %v1065_v61  ;;  %1136 = vst [vmem:[#allocation2 + $0x24c] sm:$0x33] %v1120_v40  ;;  %v769_v48 = vrot.slane %v761_v2, 4  ;;  %v1161_v8 = vrot.slane %v1153_v56, 4 }
 0x196   :  { %2191 = vmatprep.subr.bf16.mxu1 %v8830_v37  ;;  %1080 = vst [vmem:[#allocation2 + $0x210] sm:$0xcc] %v1064_v30  ;;  %v8828_v52 = vld [vmem:[#allocation2 + $0x28] ss:$60 sps:$4 sm:$0xff]   ;;  %vm13802_vm15 = vmmov %vm13799_vm8  ;;  %vm13803_vm11 = vcmask 760832   ;;  %vm13804_vm5 = vcmask 261120  }
 0x197   :  { %8248 = vmatprep.subr.msk.bf16.mxu0 %vm13759_vm4, %v8234_v23  ;;  %v1964_v13 = vsel %vm13759_vm4, %v8233_v47, 0  ;;  %v783_v21 = vsel %vm156_vm0, %v768_v58, %v769_v48  ;;  %v785_v24 = vsel %vm771_vm10, %v761_v2, %v769_v48  ;;  %v1175_v4 = vsel %vm156_vm0, %v1160_v1, %v1161_v8 }
 0x198   :  { %2221 = vmatpush1.bf16.msra.mxu0 %v1964_v13  ;;  %v1177_v9 = vsel %vm1163_vm9, %v1153_v56, %v1161_v8  ;;  %v784_v16 = vsel %vm771_vm10, %v10187_v15, %v783_v21  ;;  %801 = vst.msk [vmem:[#allocation2 + $0x1a0] sm:$0x3] %vm13797_vm6, %v785_v24  ;;  %v1176_v53 = vsel %vm1163_vm9, %v10165_v59, %v1175_v4  ;;  %v873_v58 = vpop.permute.xlu1 %872  ;;  %v817_v44 = vpop.permute.xlu0 %816  ;;  %v1970_v15 = vsel %vm13759_vm4, %v8834_v27, 0  ;;  %vm13800_vm9 = vmmov %vm13798_vm7 }
 0x199   :  { %2192 = vmatpush1.bf16.msra.mxu1 %v8828_v52  ;;  %1193 = vst.msk [vmem:[#allocation2 + $0x254] sm:$0xc] %vm187_vm3, %v1177_v9  ;;  %v8831_v25 = vld [vmem:[#allocation2 + $0x288] ss:$60 sps:$4 sm:$0xff]   ;;  %800 = vst [vmem:[#allocation2 + $0x198] sm:$0x33] %v784_v16 }
 0x19a   :  { %v8833_v49 = vld [vmem:[#allocation2 + $0x28c] ss:$60 sps:$4 sm:$0xff]   ;;  %8612 = vmatprep.subr.bf16.mxu1 %v13688_v51  ;;  %1192 = vst [vmem:[#allocation2 + $0x24c] sm:$0xcc] %v1176_v53  ;;  %v881_v1 = vrot.slane %v873_v58, 4  ;;  %v825_v7 = vrot.slane %v817_v44, 4  ;;  %vm13805_vm6 = vmmov %vm13803_vm11 }
 0x19b   :  { %2222 = vmatprep.subr.bf16.mxu0 %v8833_v49 }
 0x19c   :  { %8247 = vmatmul.mubr.msk.bf16.vlgmr.msra.gmra.mxu1 %vm1922_vm1, %v10346_v17  ;;  %v895_v59 = vsel %vm156_vm0, %v880_v28, %v881_v1  ;;  %v897_v50 = vsel %vm13798_vm7, %v873_v58, %v881_v1  ;;  %v839_v26 = vsel %vm156_vm0, %v824_v38, %v825_v7  ;;  %v841_v33 = vsel %vm13799_vm8, %v817_v44, %v825_v7  ;;  %v537_v28 = vpop.permute.xlu1 %536  ;;  %v929_v3 = vpop.permute.xlu0 %928  ;;  %vm13806_vm7 = vmmov %vm13801_vm14 }
 0x19d   :  { %2223 = vmatpush1.bf16.msra.mxu0 %v8831_v25  ;;  %v896_v62 = vsel %vm13800_vm9, %v10199_v43, %v895_v59  ;;  %913 = vst.msk [vmem:[#allocation2 + $0x1dc] sm:$0x3] %vm13801_vm14, %v897_v50  ;;  %v840_v20 = vsel %vm13802_vm15, %v10201_v32, %v839_v26  ;;  %8613 = vmatpush3.bf16.msra.mxu1 %v1970_v15  ;;  %v545_v38 = vrot.slane %v537_v28, 4  ;;  %v937_v6 = vrot.slane %v929_v3, 4  ;;  %v8835_v43 = vld [vmem:[#allocation2 + $0x290] ss:$60 sps:$4 sm:$0xff]   ;;  %vm13807_vm8 = vmmov %vm13804_vm5 }
 0x19e   :  { %857 = vst.msk [vmem:[#allocation2 + $0x1a0] sm:$0xc] %vm187_vm3, %v841_v33  ;;  %8626 = vmatprep.mubr.msk.bf16.mxu1 %vm13760_vm12, %v13688_v51  ;;  %912 = vst [vmem:[#allocation2 + $0x1d4] sm:$0x33] %v896_v62  ;;  %8614 = vmatprep.subr.bf16.mxu1 %v13688_v51  ;;  %vm13808_vm9 = vcmask 523264   ;;  %vm13809_vm14 = vcmask 752640  }
 0x19f   :  { %856 = vst [vmem:[#allocation2 + $0x198] sm:$0xcc] %v840_v20  ;;  %v559_v32 = vsel %vm156_vm0, %v544_v11, %v545_v38  ;;  %v561_v42 = vsel %vm13803_vm11, %v537_v28, %v545_v38  ;;  %v951_v22 = vsel %vm156_vm0, %v936_v63, %v937_v6  ;;  %v953_v35 = vsel %vm13804_vm5, %v929_v3, %v937_v6  ;;  %vm13810_vm15 = vmmov %vm13808_vm9  ;;  %v8854_v15 = vld [vmem:[#allocation2 + $0x34] ss:$60 sps:$4 sm:$0xff]  }
 0x1a0   :  { %v560_v5 = vsel %vm13805_vm6, %v10235_v34, %v559_v32  ;;  %577 = vst.msk [vmem:[#allocation2 + $0x128] sm:$0x3] %vm13806_vm7, %v561_v42  ;;  %v952_v23 = vsel %vm13807_vm8, %v10213_v12, %v951_v22  ;;  %v649_v47 = vpop.permute.xlu1 %648  ;;  %v593_v11 = vpop.permute.xlu0 %592  ;;  %v8839_v34 = vld [vmem:[#allocation2 + $0x218] ss:$60 sps:$4 sm:$0xff]   ;;  %vm13811_vm11 = vmmov %vm13806_vm7  ;;  %vm13813_vm6 = vcmask 785408   ;;  %vm13814_vm7 = vcmask 515072  }
 0x1a1   :  { %969 = vst.msk [vmem:[#allocation2 + $0x1dc] sm:$0xc] %vm187_vm3, %v953_v35  ;;  %8615 = vmatpush3.bf16.msra.mxu1 %v8835_v43  ;;  %v8836_v37 = vld [vmem:[#allocation2 + $0x210] ss:$60 sps:$4 sm:$0xff]   ;;  %576 = vst [vmem:[#allocation2 + $0x120] sm:$0x33] %v560_v5 }
 0x1a2   :  { %v8838_v54 = vld [vmem:[#allocation2 + $0x214] ss:$60 sps:$4 sm:$0xff]   ;;  %968 = vst [vmem:[#allocation2 + $0x1d4] sm:$0xcc] %v952_v23  ;;  %v657_v63 = vrot.slane %v649_v47, 4  ;;  %v601_v39 = vrot.slane %v593_v11, 4  ;;  %8616 = vmatprep.subr.bf16.mxu1 %v13688_v51  ;;  %vm13812_vm5 = vmmov %vm13809_vm14 }
 0x1a3   :  { %2224 = vmatprep.subr.bf16.mxu0 %v8838_v54  ;;  %vm13815_vm8 = vmmov %vm13813_vm6  ;;  %v8852_v59 = vld [vmem:[#allocation2 + $0x30] ss:$60 sps:$4 sm:$0xff]  }
 0x1a4   :  { %v671_v36 = vsel %vm156_vm0, %v656_v19, %v657_v63  ;;  %v673_v12 = vsel %vm13808_vm9, %v649_v47, %v657_v63  ;;  %v615_v61 = vsel %vm156_vm0, %v600_v45, %v601_v39  ;;  %v617_v40 = vsel %vm13809_vm14, %v593_v11, %v601_v39  ;;  %2225 = vmatpush1.bf16.msra.mxu0 %v8836_v37  ;;  %v369_v19 = vpop.permute.xlu1 %368  ;;  %v705_v56 = vpop.permute.xlu0 %704  ;;  %vm13816_vm9 = vmmov %vm13814_vm7 }
 0x1a5   :  { %v672_v30 = vsel %vm13810_vm15, %v10247_v55, %v671_v36  ;;  %689 = vst.msk [vmem:[#allocation2 + $0x164] sm:$0x3] %vm13811_vm11, %v673_v12  ;;  %v616_v2 = vsel %vm13812_vm5, %v10249_v41, %v615_v61  ;;  %8617 = vmatpush3.bf16.msra.mxu1 %v8839_v34  ;;  %v377_v13 = vrot.slane %v369_v19, 4  ;;  %v713_v45 = vrot.slane %v705_v56, 4 }
 0x1a6   :  { %633 = vst.msk [vmem:[#allocation2 + $0x128] sm:$0xc] %vm187_vm3, %v617_v40  ;;  %688 = vst [vmem:[#allocation2 + $0x15c] sm:$0x33] %v672_v30  ;;  %8618 = vmatprep.subr.bf16.mxu1 %v13688_v51  ;;  %vm13817_vm14 = vcmask 777216  }
 0x1a7   :  { %632 = vst [vmem:[#allocation2 + $0x120] sm:$0xcc] %v616_v2  ;;  %v391_v55 = vsel %vm156_vm0, %v376_v0, %v377_v13  ;;  %v393_v48 = vsel %vm13813_vm6, %v369_v19, %v377_v13  ;;  %v727_v41 = vsel %vm156_vm0, %v712_v14, %v713_v45  ;;  %v729_v8 = vsel %vm13814_vm7, %v705_v56, %v713_v45  ;;  %vm13818_vm15 = vmmov %vm13817_vm14 }
 0x1a8   :  { %v8840_v52 = vld [vmem:[#allocation2 + $0x1a0] ss:$60 sps:$4 sm:$0xff]   ;;  %v392_v27 = vsel %vm13815_vm8, %v10285_v10, %v391_v55  ;;  %409 = vst.msk [vmem:[#allocation2 + $0xb0] sm:$0xc] %vm187_vm3, %v393_v48  ;;  %v728_v21 = vsel %vm13816_vm9, %v10261_v46, %v727_v41  ;;  %745 = vst.msk [vmem:[#allocation2 + $0x164] sm:$0xc] %vm187_vm3, %v729_v8  ;;  %v481_v0 = vpop.permute.xlu1 %480  ;;  %v425_v24 = vpop.permute.xlu0 %424 }
 0x1a9   :  { %v8841_v4 = vld [vmem:[#allocation2 + $0x198] ss:$60 sps:$4 sm:$0xff]   ;;  %408 = vst [vmem:[#allocation2 + $0xa8] sm:$0xcc] %v392_v27  ;;  %744 = vst [vmem:[#allocation2 + $0x15c] sm:$0xcc] %v728_v21  ;;  %8619 = vmatpush3.bf16.msra.mxu1 %v8840_v52 }
 0x1aa   :  { %v8843_v9 = vld [vmem:[#allocation2 + $0x19c] ss:$60 sps:$4 sm:$0xff]   ;;  %v489_v14 = vrot.slane %v481_v0, 4  ;;  %v433_v16 = vrot.slane %v425_v24, 4  ;;  %8620 = vmatprep.subr.bf16.mxu1 %v13688_v51 }
 0x1ab   :  { %2226 = vmatprep.subr.bf16.mxu0 %v8843_v9 }
 0x1ac   :  { %v503_v10 = vsel %vm156_vm0, %v488_v57, %v489_v14  ;;  %v505_v46 = vsel %vm491_vm13, %v481_v0, %v489_v14  ;;  %v447_v53 = vsel %vm156_vm0, %v432_v60, %v433_v16  ;;  %v449_v58 = vsel %vm13817_vm14, %v425_v24, %v433_v16  ;;  %2227 = vmatpush1.bf16.msra.mxu0 %v8841_v4 }
 0x1ad   :  { %v504_v44 = vsel %vm491_vm13, %v10297_v31, %v503_v10  ;;  %521 = vst.msk [vmem:[#allocation2 + $0xec] sm:$0xc] %vm187_vm3, %v505_v46  ;;  %v448_v25 = vsel %vm13818_vm15, %v10283_v18, %v447_v53  ;;  %v8855_v18 = vld [vmem:[#allocation2 + $0x38] ss:$60 sps:$4 sm:$0xff]   ;;  %vm13821_vm3 = vmmov %vm13817_vm14 }
 0x1ae   :  { %465 = vst.msk [vmem:[#allocation2 + $0xec] sm:$0x3] %vm13811_vm11, %v449_v58  ;;  %520 = vst [vmem:[#allocation2 + $0xe4] sm:$0xcc] %v504_v44 }
 0x1af   :  { %464 = vst [vmem:[#allocation2 + $0xe4] sm:$0x33] %v448_v25  ;;  %v8844_v57 = vld [vmem:[#allocation2 + $0x128] ss:$60 sps:$4 sm:$0xff]   ;;  %vm13822_vm5 = vmmov %vm13821_vm3 }
 0x1b0   :  { %v8845_v49 = vld [vmem:[#allocation2 + $0x120] ss:$60 sps:$4 sm:$0xff]   ;;  %8621 = vmatpush3.bf16.msra.mxu1 %v8844_v57  ;;  %vm13824_vm7 = vmmov %vm13821_vm3 }
 0x1b1   :  { %v8847_v1 = vld [vmem:[#allocation2 + $0x124] ss:$60 sps:$4 sm:$0xff]   ;;  %8622 = vmatprep.subr.bf16.mxu1 %v13688_v51  ;;  %vm13826_vm9 = vmmov %vm13821_vm3 }
 0x1b2   :  { %2228 = vmatprep.subr.bf16.mxu0 %v8847_v1  ;;  %vm13829_vm11 = vmmov %vm13821_vm3 }
 0x1b3   :  { %2229 = vmatpush1.bf16.msra.mxu0 %v8845_v49 }
 0x1b5   :  { %v8848_v60 = vld [vmem:[#allocation2 + $0xb0] ss:$60 sps:$4 sm:$0xff]   ;;  %v10463_v50 = vpop.permute.xlu0 %1425 }
 0x1b6   :  { %v8849_v7 = vld [vmem:[#allocation2 + $0xa8] ss:$60 sps:$4 sm:$0xff]   ;;  %8623 = vmatpush3.bf16.msra.mxu1 %v8848_v60 }
 0x1b7   :  { %v8851_v31 = vld [vmem:[#allocation2 + $0xac] ss:$60 sps:$4 sm:$0xff]   ;;  %8624 = vmatprep.subr.bf16.mxu1 %v13688_v51 }
 0x1b8   :  { %2230 = vmatprep.subr.bf16.mxu0 %v8851_v31 }
 0x1b9   :  { %2231 = vmatpush1.bf16.msra.mxu0 %v8849_v7 }
 0x1ba   :  { %2232 = vmatprep.subr.bf16.mxu0 %v8854_v15  ;;  %8625 = vmatpush3.bf16.msra.mxu1 %v8855_v18 }
 0x1bb   :  { %v2006_v26 = vpop.f32.mrf.mxu0 }
 0x1bc   :  { %v2007_v33 = vadd.f32 %v2006_v26, %v10463_v50 }
 0x1bd   :  { %2233 = vmatpush1.bf16.msra.mxu0 %v8852_v59  ;;  %8627 = vmatmul.mubr.msk.bf16.vlgmr.msra.gmra.mxu1 %vm1922_vm1, %v10346_v17  ;;  %v2008_v62 = vpop.f32.mrf.mxu0 }
 0x1be   :  { %v2299_v20 = vmul.f32 0.01, %v2007_v33  ;;  %v2009_v6 = vadd.f32 %v2008_v62, %v10463_v50 }
 0x1bf   :  { %v2010_v28 = vpop.f32.mrf.mxu0 }
 0x1c0   :  { %8249 = vmatmul.mubr.msk.bf16.vlgmr.msra.gmra.mxu0 %vm1922_vm1, %v10346_v17  ;;  %v10470_v3 = vmax.f32 %v2007_v33, %v2299_v20  ;;  %v2300_v35 = vmul.f32 0.01, %v2009_v6  ;;  %vm13819_vm1 = vmmov %vm13813_vm6 }
 0x1c1   :  { %v2011_v38 = vpop.f32.mrf.mxu0  ;;  %vm13820_vm13 = vmmov %vm13819_vm1 }
 0x1c2   :  { %2344 = vrot.lane.b32.xlu1 %v10470_v3, %s9128_s19  ;;  %v2315_v11 = vmax.f32 %v2009_v6, %v2300_v35  ;;  %vm13823_vm6 = vmmov %vm13819_vm1 }
 0x1c3   :  { %v2047_v43 = vpop.f32.mrf.mxu1  ;;  %vm13825_vm8 = vmmov %vm13819_vm1 }
 0x1c4   :  { %v2048_v32 = vadd.f32 %v2047_v43, %v10463_v50  ;;  %vm13827_vm14 = vmmov %vm13819_vm1 }
 0x1c5   :  { %v2049_v42 = vpop.f32.mrf.mxu1  ;;  %vm13828_vm15 = vmmov %vm13819_vm1 }
 0x1c6   :  { %v2301_v22 = vmul.f32 0.01, %v2048_v32  ;;  %2419 = vrot.lane.b32.xlu1 %v10470_v3, %s9143_s8  ;;  %v2050_v17 = vadd.f32 %v2049_v42, %v10463_v50 }
 0x1c7   :  { %v2051_v5 = vpop.f32.mrf.mxu1 }
 0x1c8   :  { %v10479_v23 = vmax.f32 %v2048_v32, %v2301_v22  ;;  %v2302_v37 = vmul.f32 0.01, %v2050_v17 }
 0x1c9   :  { %v2052_v47 = vpop.f32.mrf.mxu1 }
 0x1ca   :  { %2348 = vrot.lane.b32.xlu0 %v10479_v23, %s9128_s19  ;;  %2423 = vrot.lane.b32.xlu1 %v10479_v23, %s9143_s8  ;;  %v10485_v54 = vmax.f32 %v2050_v17, %v2302_v37 }
 0x1ce   :  { %2494 = vrot.lane.b32.xlu0 %v10470_v3, %s9144_s9  ;;  %2346 = vrot.lane.b32.xlu1 %v2315_v11, %s9128_s19 }
 0x1d2   :  { %2498 = vrot.lane.b32.xlu0 %v10479_v23, %s9144_s9  ;;  %2350 = vrot.lane.b32.xlu1 %v10485_v54, %s9128_s19 }
 0x1d6   :  { %2421 = vrot.lane.b32.xlu0 %v2315_v11, %s9143_s8  ;;  %2496 = vrot.lane.b32.xlu1 %v2315_v11, %s9144_s9 }
 0x1da   :  { %2425 = vrot.lane.b32.xlu0 %v10485_v54, %s9143_s8  ;;  %2500 = vrot.lane.b32.xlu1 %v10485_v54, %s9144_s9 }
 0x206   :  { %v2088_v63 = vpop.f32.mrf.mxu0 }
 0x207   :  { %v2089_v39 = vadd.f32 %v2088_v63, %v10463_v50 }
 0x208   :  { %v2090_v34 = vpop.f32.mrf.mxu0 }
 0x209   :  { %v2303_v36 = vmul.f32 0.01, %v2089_v39  ;;  %v2091_v2 = vadd.f32 %v2090_v34, %v10463_v50 }
 0x20a   :  { %v2092_v12 = vpop.f32.mrf.mxu0 }
 0x20b   :  { %v10501_v61 = vmax.f32 %v2089_v39, %v2303_v36  ;;  %v2304_v55 = vmul.f32 0.01, %v2091_v2 }
 0x20c   :  { %v2093_v40 = vpop.f32.mrf.mxu0 }
 0x20d   :  { %2352 = vrot.lane.b32.xlu0 %v10501_v61, %s9128_s19  ;;  %2427 = vrot.lane.b32.xlu1 %v10501_v61, %s9143_s8  ;;  %v10515_v8 = vmax.f32 %v2091_v2, %v2304_v55 }
 0x20f   :  { %v2129_v30 = vpop.f32.mrf.mxu1 }
 0x210   :  { %v2130_v19 = vadd.f32 %v2129_v30, %v10463_v50 }
 0x211   :  { %v2131_v56 = vpop.f32.mrf.mxu1 }
 0x212   :  { %v2305_v13 = vmul.f32 0.01, %v2130_v19  ;;  %v2132_v52 = vadd.f32 %v2131_v56, %v10463_v50 }
 0x213   :  { %v2133_v45 = vpop.f32.mrf.mxu1 }
 0x214   :  { %v10509_v48 = vmax.f32 %v2130_v19, %v2305_v13  ;;  %v2306_v27 = vmul.f32 0.01, %v2132_v52 }
 0x215   :  { %v2134_v41 = vpop.f32.mrf.mxu1 }
 0x216   :  { %2356 = vrot.lane.b32.xlu0 %v10509_v48, %s9128_s19  ;;  %2431 = vrot.lane.b32.xlu1 %v10509_v48, %s9143_s8  ;;  %v10526_v21 = vmax.f32 %v2132_v52, %v2306_v27 }
 0x21a   :  { %2502 = vrot.lane.b32.xlu0 %v10501_v61, %s9144_s9  ;;  %2354 = vrot.lane.b32.xlu1 %v10515_v8, %s9128_s19 }
 0x21e   :  { %2506 = vrot.lane.b32.xlu0 %v10509_v48, %s9144_s9  ;;  %2504 = vrot.lane.b32.xlu1 %v10515_v8, %s9144_s9 }
 0x222   :  { %2429 = vrot.lane.b32.xlu0 %v10515_v8, %s9143_s8  ;;  %2358 = vrot.lane.b32.xlu1 %v10526_v21, %s9128_s19 }
 0x226   :  { %2433 = vrot.lane.b32.xlu1 %v10526_v21, %s9143_s8 }
 0x22a   :  { %2508 = vrot.lane.b32.xlu1 %v10526_v21, %s9144_s9 }
 0x234   :  { %v2345_v0 = vpop.permute.xlu1 %2344 }
 0x238   :  { %v2420_v24 = vpop.permute.xlu1 %2419 }
 0x23c   :  { %v10536_v4 = vpop.permute.xlu0 %2348  ;;  %v10538_v9 = vpop.permute.xlu1 %2423 }
 0x240   :  { %v2495_v14 = vpop.permute.xlu0 %2494  ;;  %v2347_v16 = vpop.permute.xlu1 %2346 }
 0x241   :  { %v2375_v53 = vsel %vm158_vm2, %v2345_v0, %v2347_v16  ;;  %v2376_v58 = vsel %vm158_vm2, %v2347_v16, %v10536_v4 }
 0x242   :  { %v2404_v44 = vadd.f32 %v2375_v53, %v10470_v3  ;;  %v2405_v25 = vadd.f32 %v2376_v58, %v2315_v11 }
 0x244   :  { %v10540_v10 = vpop.permute.xlu0 %2498  ;;  %v10542_v46 = vpop.permute.xlu1 %2350 }
 0x245   :  { %v2377_v16 = vsel %vm158_vm2, %v10536_v4, %v10542_v46 }
 0x248   :  { %v2422_v57 = vpop.permute.xlu0 %2421  ;;  %v2497_v49 = vpop.permute.xlu1 %2496 }
 0x249   :  { %v2450_v1 = vsel %vm13819_vm1, %v2420_v24, %v2422_v57  ;;  %v2451_v60 = vsel %vm13820_vm13, %v2422_v57, %v10538_v9  ;;  %v2525_v7 = vsel %vm13821_vm3, %v2495_v14, %v2497_v49  ;;  %v2526_v31 = vsel %vm13822_vm5, %v2497_v49, %v10540_v10  ;;  %vm13830_vm1 = vmmov %vm13821_vm3 }
 0x24a   :  { %v2479_v15 = vadd.f32 %v2450_v1, %v2404_v44  ;;  %v2480_v18 = vadd.f32 %v2451_v60, %v2405_v25  ;;  %vm13831_vm13 = vmmov %vm13823_vm6 }
 0x24b   :  { %vm13832_vm3 = vmmov %vm13830_vm1 }
 0x24c   :  { %v2554_v59 = vadd.f32 %v2525_v7, %v2479_v15  ;;  %v2555_v26 = vadd.f32 %v2526_v31, %v2480_v18  ;;  %v2426_v19 = vpop.permute.xlu0 %2425  ;;  %v2501_v45 = vpop.permute.xlu1 %2500  ;;  %vm13833_vm5 = vmmov %vm13823_vm6 }
 0x24d   :  { %v2452_v1 = vsel %vm13823_vm6, %v10538_v9, %v2426_v19  ;;  %vm13834_vm6 = vmmov %vm13833_vm5 }
 0x24e   :  { %v2569_v33 = vmul.f32 0.25, %v2554_v59  ;;  %v2570_v62 = vmul.f32 0.25, %v2555_v26 }
 0x250   :  { %v8497_v20 = vpack.c.bf16 %v2570_v62, %v2569_v33 }
 0x252   :  { %2645 = vst [vmem:[#allocation3] sm:$0x77] %v8497_v20 }
 0x253   :  { %v2170_v28 = vpop.f32.mrf.mxu0 }
 0x254   :  { %v2171_v3 = vadd.f32 %v2170_v28, %v10463_v50 }
 0x255   :  { %v2172_v38 = vpop.f32.mrf.mxu0 }
 0x256   :  { %v2307_v6 = vmul.f32 0.01, %v2171_v3  ;;  %v2173_v43 = vadd.f32 %v2172_v38, %v10463_v50 }
 0x257   :  { %v2174_v32 = vpop.f32.mrf.mxu0 }
 0x258   :  { %v10556_v42 = vmax.f32 %v2171_v3, %v2307_v6  ;;  %v2308_v22 = vmul.f32 0.01, %v2173_v43 }
 0x259   :  { %v2175_v35 = vpop.f32.mrf.mxu0  ;;  %v2654_v39 = vld [vmem:[#allocation3] sm:$0x77] }
 0x25a   :  { %v10558_v17 = vmax.f32 %v2173_v43, %v2308_v22  ;;  %2360 = vrot.lane.b32.xlu0 %v10556_v42, %s9128_s19  ;;  %2661 = vst [vmem:[#allocation4] sm:$0x77] %v2654_v39  ;;  %v3366_v22 = vld [vmem:[#allocation3] sm:$0x77] }
 0x25c   :  { %v2211_v5 = vpop.f32.mrf.mxu1  ;;  %2362 = vrot.lane.b32.xlu1 %v10558_v17, %s9128_s19 }
 0x25d   :  { %v2212_v47 = vadd.f32 %v2211_v5, %v10463_v50 }
 0x25e   :  { %v2213_v11 = vpop.f32.mrf.mxu1 }
 0x25f   :  { %v2309_v37 = vmul.f32 0.01, %v2212_v47  ;;  %v2214_v63 = vadd.f32 %v2213_v11, %v10463_v50 }
 0x260   :  { %v2215_v34 = vpop.f32.mrf.mxu1  ;;  %2437 = vrot.lane.b32.xlu1 %v10558_v17, %s9143_s8 }
 0x261   :  { %v10566_v36 = vmax.f32 %v2212_v47, %v2309_v37  ;;  %v2310_v40 = vmul.f32 0.01, %v2214_v63 }
 0x262   :  { %v2216_v12 = vpop.f32.mrf.mxu1 }
 0x263   :  { %2364 = vrot.lane.b32.xlu0 %v10566_v36, %s9128_s19  ;;  %v10574_v30 = vmax.f32 %v2214_v63, %v2310_v40  ;;  %v3429_v40 = vld [vmem:[#allocation3] sm:$0x77] }
 0x264   :  { %2512 = vrot.lane.b32.xlu1 %v10558_v17, %s9144_s9 }
 0x267   :  { %2435 = vrot.lane.b32.xlu0 %v10556_v42, %s9143_s8 }
 0x268   :  { %2366 = vrot.lane.b32.xlu1 %v10574_v30, %s9128_s19 }
 0x26b   :  { %2439 = vrot.lane.b32.xlu0 %v10566_v36, %s9143_s8 }
 0x26c   :  { %2441 = vrot.lane.b32.xlu1 %v10574_v30, %s9143_s8 }
 0x26f   :  { %2510 = vrot.lane.b32.xlu0 %v10556_v42, %s9144_s9 }
 0x270   :  { %2516 = vrot.lane.b32.xlu1 %v10574_v30, %s9144_s9 }
 0x273   :  { %2514 = vrot.lane.b32.xlu0 %v10566_v36, %s9144_s9 }
 0x27d   :  { %v2293_v2 = vpop.f32.mrf.mxu1 }
 0x27e   :  { %v2294_v55 = vadd.f32 %v2293_v2, %v10463_v50 }
 0x27f   :  { %v8628_v13 = vpop.f32.mrf.mxu1  ;;  %v2353_v24 = vpop.permute.xlu0 %2352 }
 0x280   :  { %v2252_v56 = vpop.f32.mrf.mxu0  ;;  %v2313_v44 = vmul.f32 0.01, %v2294_v55  ;;  %v2428_v57 = vpop.permute.xlu1 %2427  ;;  %v2378_v60 = vsel %vm158_vm2, %v10542_v46, %v2353_v24 }
 0x281   :  { %v2253_v41 = vadd.f32 %v2252_v56, %v10463_v50  ;;  %v2296_v27 = vpop.f32.mrf.mxu1  ;;  %v2407_v18 = vadd.f32 %v2378_v60, %v10485_v54  ;;  %v2453_v46 = vsel %vm13825_vm8, %v2426_v19, %v2428_v57  ;;  %vm13836_vm8 = vmmov %vm13830_vm1 }
 0x282   :  { %v2254_v52 = vpop.f32.mrf.mxu0  ;;  %v10607_v15 = vmax.f32 %v2294_v55, %v2313_v44 }
 0x283   :  { %v2311_v0 = vmul.f32 0.01, %v2253_v41  ;;  %v2255_v14 = vadd.f32 %v2254_v52, %v10463_v50  ;;  %v8629_v58 = vpop.f32.mrf.mxu1  ;;  %v2406_v50 = vadd.f32 %v2377_v16, %v10479_v23  ;;  %v2527_v23 = vsel %vm13824_vm7, %v10540_v10, %v2501_v45  ;;  %vm13835_vm7 = vmmov %vm13833_vm5 }
 0x284   :  { %v2256_v53 = vpop.f32.mrf.mxu0  ;;  %v2482_v33 = vadd.f32 %v2453_v46, %v2407_v18  ;;  %v2917_v58 = vld [vmem:[#allocation3] sm:$0x77] }
 0x285   :  { %v10596_v25 = vmax.f32 %v2253_v41, %v2311_v0  ;;  %v2312_v49 = vmul.f32 0.01, %v2255_v14  ;;  %v2481_v4 = vadd.f32 %v2452_v1, %v2406_v50  ;;  %v10649_v41 = vld [vmem:[#allocation3] sm:$0x77] }
 0x286   :  { %v2257_v7 = vpop.f32.mrf.mxu0  ;;  %v3187_v0 = vrot.slane %v10649_v41, 6  ;;  %v2669_v50 = vld [vmem:[#allocation3] sm:$0x77] }
 0x287   :  { %v10603_v31 = vmax.f32 %v2255_v14, %v2312_v49  ;;  %2368 = vrot.lane.b32.xlu0 %v10596_v25, %s9128_s19  ;;  %v2556_v26 = vadd.f32 %v2527_v23, %v2481_v4  ;;  %v3297_v14 = vld [vmem:[#allocation3] sm:$0x77]  ;;  %v2683_v23 = vrot.slane %v2669_v50, 5 }
 0x288   :  { %v10610_v59 = vpop.permute.xlu0 %2356  ;;  %v10614_v9 = vpop.permute.xlu1 %2431  ;;  %v3311_v53 = vrot.slane %v3297_v14, 7  ;;  %v3049_v49 = vld [vmem:[#allocation3] sm:$0x77] }
 0x289   :  { %2370 = vrot.lane.b32.xlu1 %v10603_v31, %s9128_s19  ;;  %v2571_v3 = vmul.f32 0.25, %v2556_v26  ;;  %v3063_v7 = vrot.slane %v3049_v49, 5  ;;  %v2793_v46 = vld [vmem:[#allocation3] sm:$0x77] }
 0x28b   :  { %2372 = vrot.lane.b32.xlu0 %v10607_v15, %s9128_s19  ;;  %s9150_s19 = smov 120  }
 0x28c   :  { %v2503_v62 = vpop.permute.xlu0 %2502  ;;  %v2355_v28 = vpop.permute.xlu1 %2354 }
 0x28d   :  { %2445 = vrot.lane.b32.xlu1 %v10603_v31, %s9143_s8  ;;  %v2528_v54 = vsel %vm13826_vm9, %v2501_v45, %v2503_v62  ;;  %v2379_v6 = vsel %vm158_vm2, %v2353_v24, %v2355_v28  ;;  %v2380_v43 = vsel %vm158_vm2, %v2355_v28, %v10610_v59  ;;  %v3443_v45 = vrot.slane %v3429_v40, 5  ;;  %vm13837_vm9 = vmmov %vm13830_vm1 }
 0x28e   :  { %v2557_v20 = vadd.f32 %v2528_v54, %v2482_v33  ;;  %v2408_v35 = vadd.f32 %v2379_v6, %v10501_v61  ;;  %v2409_v5 = vadd.f32 %v2380_v43, %v10515_v8  ;;  %v2987_v8 = vld [vmem:[#allocation3] sm:$0x77]  ;;  %v2807_v54 = vrot.slane %v2793_v46, 6 }
 0x28f   :  { %2443 = vrot.lane.b32.xlu0 %v10596_v25, %s9143_s8 }
 0x290   :  { %v2572_v10 = vmul.f32 0.25, %v2557_v20  ;;  %v10626_v38 = vpop.permute.xlu0 %2506  ;;  %v2505_v47 = vpop.permute.xlu1 %2504 }
 0x291   :  { %2520 = vrot.lane.b32.xlu1 %v10603_v31, %s9144_s9  ;;  %v2529_v12 = vsel %vm13829_vm11, %v2503_v62, %v2505_v47  ;;  %v2530_v61 = vsel %vm13830_vm1, %v2505_v47, %v10626_v38  ;;  %vm13840_vm11 = vmmov %vm13830_vm1 }
 0x292   :  { %v8498_v32 = vpack.c.bf16 %v2572_v10, %v2571_v3 }
 0x293   :  { %2447 = vrot.lane.b32.xlu0 %v10607_v15, %s9143_s8 }
 0x294   :  { %2646 = vst [vmem:[#allocation3 + $0x8] sm:$0x77] %v8498_v32  ;;  %v2430_v11 = vpop.permute.xlu0 %2429  ;;  %v3450_v32 = vrot.slane %v3443_v45, 4  ;;  %v2359_v40 = vpop.permute.xlu1 %2358 }
 0x295   :  { %3380 = vrot.lane.b32.xlu1 %v3366_v22, %s9149_s17  ;;  %v2454_v37 = vsel %vm13827_vm14, %v2428_v57, %v2430_v11  ;;  %v2455_v63 = vsel %vm13828_vm15, %v2430_v11, %v10614_v9  ;;  %v2931_v57 = vrot.slane %v2917_v58, 7  ;;  %vm13838_vm14 = vmmov %vm13830_vm1 }
 0x296   :  { %v2483_v39 = vadd.f32 %v2454_v37, %v2408_v35  ;;  %v2484_v34 = vadd.f32 %v2455_v63, %v2409_v5  ;;  %v3070_v37 = vrot.slane %v3063_v7, 4  ;;  %vm13839_vm15 = vmmov %vm13833_vm5 }
 0x297   :  { %2518 = vrot.lane.b32.xlu0 %v10596_v25, %s9144_s9  ;;  %vm13841_vm1 = vmmov %vm13833_vm5 }
 0x298   :  { %v2558_v2 = vadd.f32 %v2529_v12, %v2483_v39  ;;  %v2559_v19 = vadd.f32 %v2530_v61, %v2484_v34  ;;  %v3194_v34 = vrot.slane %v3187_v0, 4 }
 0x299   :  { %3001 = vrot.lane.b32.xlu1 %v2987_v8, %s9150_s19  ;;  %v2814_v8 = vrot.slane %v2807_v54, 4 }
 0x29a   :  { %v2573_v56 = vmul.f32 0.25, %v2558_v2  ;;  %v2574_v13 = vmul.f32 0.25, %v2559_v19  ;;  %v2690_v19 = vrot.slane %v2683_v23, 4 }
 0x29b   :  { %2522 = vrot.lane.b32.xlu0 %v10607_v15, %s9144_s9  ;;  %v3554_v55 = vld [vmem:[#allocation3 + $0x4] sm:$0x77] }
 0x29c   :  { %v8499_v52 = vpack.c.bf16 %v2574_v13, %v2573_v56  ;;  %v3367_v27 = vld [vmem:[#allocation3 + $0x8] sm:$0x77]  ;;  %v3568_v24 = vrot.slane %v3554_v55, 6 }
 0x29d   :  { %3457 = vrot.lane.b32.xlu1 %v3443_v45, %s9151_s22  ;;  %v2988_v16 = vld [vmem:[#allocation3 + $0x8] sm:$0x77]  ;;  %v2434_v45 = vpop.permute.xlu1 %2433 }
 0x29e   :  { %2647 = vst [vmem:[#allocation3 + $0x10] sm:$0x77] %v8499_v52  ;;  %3596 = vst [vmem:[#allocation4 + $0x16c] sm:$0xcc] %v3568_v24  ;;  %v10659_v60 = vld [vmem:[#allocation3 + $0x8] sm:$0x77] }
 0x29f   :  { %3382 = vrot.lane.b32.xlu0 %v3367_v27, %s9149_s17  ;;  %v3444_v4 = vrot.slane %v10659_v60, 5  ;;  %v10664_v18 = vld [vmem:[#allocation3 + $0x8] sm:$0x77]  ;;  %v3575_v33 = vrot.slane %v3568_v24, 4 }
 0x2a0   :  { %v3188_v26 = vrot.slane %v10664_v18, 6  ;;  %v3298_v62 = vld [vmem:[#allocation3 + $0x8] sm:$0x77] }
 0x2a1   :  { %3201 = vrot.lane.b32.xlu1 %v3187_v0, %s9135_s26  ;;  %3603 = vst [vmem:[#allocation4 + $0x1a0] sm:$0x11] %v3575_v33  ;;  %v3312_v20 = vrot.slane %v3298_v62, 7  ;;  %v2918_v28 = vld [vmem:[#allocation3 + $0x8] sm:$0x77]  ;;  %v2509_v0 = vpop.permute.xlu1 %2508 }
 0x2a2   :  { %v4431_v3 = vld [vmem:[#allocation3 + $0x8] sm:$0x77]  ;;  %v2932_v5 = vrot.slane %v2918_v28, 7  ;;  %v3195_v60 = vrot.slane %v3188_v26, 4 }
 0x2a3   :  { %3003 = vrot.lane.b32.xlu0 %v2988_v16, %s9150_s19  ;;  %4438 = vst [vmem:[#allocation4 + $0x30c] sm:$0x77] %v4431_v3  ;;  %v2655_v43 = vld [vmem:[#allocation3 + $0x8] sm:$0x77] }
 0x2a4   :  { %2662 = vst [vmem:[#allocation4 + $0x8] sm:$0x77] %v2655_v43  ;;  %v10677_v11 = vld [vmem:[#allocation3 + $0x8] sm:$0x77] }
 0x2a5   :  { %3318 = vrot.lane.b32.xlu1 %v3311_v53, %s9137_s28  ;;  %v4053_v44 = vld [vmem:[#allocation3 + $0xc] sm:$0x77]  ;;  %v3064_v63 = vrot.slane %v10677_v11, 5  ;;  %v4052_v55 = vld [vmem:[#allocation3 + $0x4] sm:$0x77] }
 0x2a6   :  { %v3679_v1 = vld [vmem:[#allocation3 + $0xc] sm:$0x77]  ;;  %v3678_v27 = vld [vmem:[#allocation3 + $0x4] sm:$0x77] }
 0x2a7   :  { %4068 = vrot.lane.b32.xlu0 %v4053_v44, %s9135_s26  ;;  %v4432_v10 = vld [vmem:[#allocation3 + $0x10] sm:$0x77]  ;;  %v10682_v39 = vld [vmem:[#allocation3 + $0x8] sm:$0x77] }
 0x2a8   :  { %v3555_v6 = vld [vmem:[#allocation3 + $0xc] sm:$0x77]  ;;  %4439 = vst [vmem:[#allocation4 + $0x314] sm:$0x77] %v4432_v10  ;;  %v2684_v12 = vrot.slane %v10682_v39, 5 }
 0x2a9   :  { %2938 = vrot.lane.b32.xlu1 %v2931_v57, %s9152_s23  ;;  %v3569_v22 = vrot.slane %v3555_v6, 6  ;;  %v2656_v35 = vld [vmem:[#allocation3 + $0x10] sm:$0x77]  ;;  %v10689_v61 = vld [vmem:[#allocation3 + $0x8] sm:$0x77]  ;;  %v2531_v6 = vsel %vm13832_vm3, %v10626_v38, %v2509_v0  ;;  %vm13843_vm3 = vmmov %vm13841_vm1 }
 0x2aa   :  { %2663 = vst [vmem:[#allocation4 + $0x10] sm:$0x77] %v2656_v35  ;;  %v2808_v2 = vrot.slane %v10689_v61, 6  ;;  %v4758_v56 = vld [vmem:[#allocation3 + $0x10] sm:$0x77] }
 0x2ab   :  { %3694 = vrot.lane.b32.xlu0 %v3679_v1, %s9127_s18  ;;  %v3576_v47 = vrot.slane %v3569_v22, 4  ;;  %3597 = vst [vmem:[#allocation4 + $0x174] sm:$0xcc] %v3569_v22  ;;  %v4363_v13 = vld [vmem:[#allocation3 + $0xc] sm:$0x77] }
 0x2ac   :  { %v4377_v41 = vrot.slane %v4363_v13, 7  ;;  %v10702_v52 = vld [vmem:[#allocation3 + $0x10] sm:$0x77]  ;;  %v4757_v53 = vld [vmem:[#allocation3 + $0x8] sm:$0x77]  ;;  %v2815_v11 = vrot.slane %v2808_v2, 4 }
 0x2ad   :  { %3077 = vrot.lane.b32.xlu1 %v3063_v7, %s9141_s6  ;;  %3604 = vst [vmem:[#allocation4 + $0x1a8] sm:$0x11] %v3576_v47  ;;  %v4460_v14 = vrot.slane %v10702_v52, 5  ;;  %v10707_v16 = vld [vmem:[#allocation3 + $0xc] sm:$0x77] }
 0x2ae   :  { %v4362_v58 = vld [vmem:[#allocation3 + $0x4] sm:$0x77]  ;;  %v4129_v49 = vrot.slane %v10707_v16, 5  ;;  %v10716_v1 = vld [vmem:[#allocation3 + $0xc] sm:$0x77] }
 0x2af   :  { %3459 = vrot.lane.b32.xlu0 %v3444_v4, %s9151_s22  ;;  %v4376_v7 = vrot.slane %v4362_v58, 7  ;;  %v10721_v50 = vld [vmem:[#allocation3 + $0x8] sm:$0x77]  ;;  %v4253_v33 = vrot.slane %v10716_v1, 6 }
 0x2b0   :  { %v10727_v62 = vld [vmem:[#allocation3 + $0xc] sm:$0x77]  ;;  %v4459_v28 = vrot.slane %v10721_v50, 5  ;;  %v10737_v10 = vld [vmem:[#allocation3 + $0x4] sm:$0x77] }
 0x2b1   :  { %2697 = vrot.lane.b32.xlu1 %v2683_v23, %s9129_s20  ;;  %v2381_v23 = vsel %vm158_vm2, %v10610_v59, %v2359_v40  ;;  %v3984_v35 = vld [vmem:[#allocation3 + $0xc] sm:$0x77]  ;;  %v4128_v38 = vrot.slane %v10737_v10, 5 }
 0x2b2   :  { %v2410_v3 = vadd.f32 %v2381_v23, %v10509_v48  ;;  %v4466_v16 = vrot.slane %v4459_v28, 4 }
 0x2b3   :  { %3203 = vrot.lane.b32.xlu0 %v3188_v26, %s9135_s26  ;;  %v2691_v26 = vrot.slane %v2684_v12, 4 }
 0x2b5   :  { %2821 = vrot.lane.b32.xlu1 %v2807_v54, %s9127_s18  ;;  %v2456_v54 = vsel %vm13831_vm13, %v10614_v9, %v2434_v45  ;;  %v3876_v9 = vrot.slane %v10727_v62, 6  ;;  %vm13842_vm13 = vmmov %vm13841_vm1  ;;  %v4467_v62 = vrot.slane %v4460_v14, 4 }
 0x2b7   :  { %3320 = vrot.lane.b32.xlu0 %v3312_v20, %s9137_s28 }
 0x2b9   :  { %3471 = vrot.lane.b32.xlu1 %v3450_v32, %s9151_s22  ;;  %v2485_v32 = vadd.f32 %v2456_v54, %v2410_v3  ;;  %v10777_v3 = vld [vmem:[#allocation3 + $0xc] sm:$0x77] }
 0x2bb   :  { %2940 = vrot.lane.b32.xlu0 %v2932_v5, %s9152_s23  ;;  %v2560_v47 = vadd.f32 %v2531_v6, %v2485_v32 }
 0x2bd   :  { %3091 = vrot.lane.b32.xlu1 %v3070_v37, %s9141_s6 }
 0x2bf   :  { %3079 = vrot.lane.b32.xlu0 %v3064_v63, %s9141_s6 }
 0x2c1   :  { %3215 = vrot.lane.b32.xlu1 %v3194_v34, %s9135_s26 }
 0x2c3   :  { %2699 = vrot.lane.b32.xlu0 %v2684_v12, %s9129_s20 }
 0x2c5   :  { %2835 = vrot.lane.b32.xlu1 %v2814_v8, %s9127_s18  ;;  %v10757_v8 = vld [vmem:[#allocation3 + $0x4] sm:$0x77] }
 0x2c6   :  { %v4252_v58 = vrot.slane %v10757_v8, 6  ;;  %v3610_v8 = vld [vmem:[#allocation3 + $0x4] sm:$0x77] }
 0x2c7   :  { %2823 = vrot.lane.b32.xlu0 %v2808_v2, %s9127_s18 }
 0x2c9   :  { %2711 = vrot.lane.b32.xlu1 %v2690_v19, %s9129_s20 }
 0x2cb   :  { %4773 = vrot.lane.b32.xlu0 %v4758_v56, %s9150_s19 }
 0x2cc   :  { %v2361_v24 = vpop.permute.xlu0 %2360 }
 0x2cd   :  { %4066 = vrot.lane.b32.xlu1 %v4052_v55, %s9135_s26  ;;  %v2382_v59 = vsel %vm158_vm2, %v2359_v40, %v2361_v24 }
 0x2ce   :  { %v2363_v44 = vpop.permute.xlu1 %2362  ;;  %v2411_v5 = vadd.f32 %v2382_v59, %v10526_v21  ;;  %v3998_v21 = vrot.slane %v3984_v35, 7 }
 0x2cf   :  { %4385 = vrot.lane.b32.xlu0 %v4377_v41, %s9151_s22  ;;  %v2383_v22 = vsel %vm158_vm2, %v2361_v24, %v2363_v44 }
 0x2d0   :  { %v2412_v40 = vadd.f32 %v2383_v22, %v10556_v42  ;;  %v3983_v22 = vld [vmem:[#allocation3 + $0x4] sm:$0x77] }
 0x2d1   :  { %3692 = vrot.lane.b32.xlu1 %v3678_v27, %s9127_s18  ;;  %v3611_v27 = vld [vmem:[#allocation3 + $0xc] sm:$0x77] }
 0x2d2   :  { %v2438_v20 = vpop.permute.xlu1 %2437 }
 0x2d3   :  { %4475 = vrot.lane.b32.xlu0 %v4460_v14, %s9129_s20 }
 0x2d5   :  { %v10712_v57 = vpop.permute.xlu0 %2364  ;;  %4771 = vrot.lane.b32.xlu1 %v4757_v53, %s9150_s19 }
 0x2d6   :  { %v2384_v37 = vsel %vm158_vm2, %v2363_v44, %v10712_v57  ;;  %v2513_v19 = vpop.permute.xlu1 %2512  ;;  %v2575_v44 = vmul.f32 0.25, %v2560_v47 }
 0x2d7   :  { %4144 = vrot.lane.b32.xlu0 %v4129_v49, %s9137_s28  ;;  %v2413_v24 = vadd.f32 %v2384_v37, %v10558_v17 }
 0x2d9   :  { %v2436_v46 = vpop.permute.xlu0 %2435  ;;  %4383 = vrot.lane.b32.xlu1 %v4376_v7, %s9151_s22  ;;  %v10770_v7 = vld [vmem:[#allocation3 + $0x4] sm:$0x77] }
 0x2da   :  { %v2457_v48 = vsel %vm13833_vm5, %v2434_v45, %v2436_v46  ;;  %v2458_v34 = vsel %vm13834_vm6, %v2436_v46, %v2438_v20  ;;  %v3875_v32 = vrot.slane %v10770_v7, 6  ;;  %v2367_v47 = vpop.permute.xlu1 %2366 }
 0x2db   :  { %4268 = vrot.lane.b32.xlu0 %v4253_v33, %s9149_s17  ;;  %v2486_v56 = vadd.f32 %v2457_v48, %v2411_v5  ;;  %v2487_v53 = vadd.f32 %v2458_v34, %v2412_v40  ;;  %v3754_v5 = vrot.slane %v10777_v3, 5  ;;  %v3997_v34 = vrot.slane %v3983_v22, 7 }
 0x2dc   :  { %v3451_v40 = vrot.slane %v3444_v4, 4  ;;  %v2385_v61 = vsel %vm158_vm2, %v10712_v57, %v2367_v47 }
 0x2dd   :  { %v10741_v43 = vpop.permute.xlu0 %2439  ;;  %4473 = vrot.lane.b32.xlu1 %v4459_v28, %s9129_s20 }
 0x2de   :  { %v2459_v45 = vsel %vm13835_vm7, %v2438_v20, %v10741_v43  ;;  %vm2652_vm7 = vcmask 739328  }
 0x2df   :  { %3891 = vrot.lane.b32.xlu0 %v3876_v9, %s9150_s19  ;;  %v2488_v23 = vadd.f32 %v2459_v45, %v2413_v24 }
 0x2e1   :  { %v2511_v13 = vpop.permute.xlu0 %2510  ;;  %4142 = vrot.lane.b32.xlu1 %v4128_v38, %s9137_s28 }
 0x2e2   :  { %v2532_v55 = vsel %vm13836_vm8, %v2509_v0, %v2511_v13  ;;  %v2533_v41 = vsel %vm13837_vm9, %v2511_v13, %v2513_v19  ;;  %v3625_v0 = vrot.slane %v3611_v27, 7  ;;  %v2442_v13 = vpop.permute.xlu1 %2441  ;;  %v4689_v27 = vld [vmem:[#allocation3 + $0x8] sm:$0x77]  ;;  %vm3023_vm9 = vcmask 982016  }
 0x2e3   :  { %v2561_v42 = vadd.f32 %v2532_v55, %v2486_v56  ;;  %4006 = vrot.lane.b32.xlu0 %v3998_v21, %s9141_s6  ;;  %v2562_v46 = vadd.f32 %v2533_v41, %v2487_v53  ;;  %v3739_v56 = vld [vmem:[#allocation3 + $0x4] sm:$0x77]  ;;  %v3071_v21 = vrot.slane %v3064_v63, 4  ;;  %v4703_v53 = vrot.slane %v4689_v27, 7 }
 0x2e4   :  { %v3753_v45 = vrot.slane %v3739_v56, 5  ;;  %v10796_v55 = vld [vmem:[#allocation3 + $0x8] sm:$0x77]  ;;  %v2460_v39 = vsel %vm13839_vm15, %v10741_v43, %v2442_v13  ;;  %vm13847_vm15 = vcmask 490496  }
 0x2e5   :  { %v2576_v54 = vmul.f32 0.25, %v2561_v42  ;;  %v10772_v20 = vpop.permute.xlu0 %2514  ;;  %4266 = vrot.lane.b32.xlu1 %v4252_v58, %s9149_s17  ;;  %v2577_v48 = vmul.f32 0.25, %v2562_v46  ;;  %v4581_v41 = vrot.slane %v10796_v55, 6  ;;  %v10812_v42 = vld [vmem:[#allocation3 + $0x10] sm:$0x77] }
 0x2e6   :  { %v2534_v17 = vsel %vm13838_vm14, %v2513_v19, %v10772_v20  ;;  %v3624_v19 = vrot.slane %v3610_v8, 7  ;;  %v2517_v4 = vpop.permute.xlu1 %2516  ;;  %v4582_v46 = vrot.slane %v10812_v42, 6  ;;  %vm3500_vm14 = vcmask 457728  }
 0x2e7   :  { %v8500_v59 = vpack.c.bf16 %v2576_v54, %v2575_v44  ;;  %v2563_v6 = vadd.f32 %v2534_v17, %v2488_v23  ;;  %3633 = vrot.lane.b32.xlu0 %v3625_v0, %s9129_s20  ;;  %v4259_v23 = vrot.slane %v4252_v58, 4  ;;  %v4690_v54 = vld [vmem:[#allocation3 + $0x10] sm:$0x77]  ;;  %v4135_v58 = vrot.slane %v4128_v38, 4 }
 0x2e8   :  { %v2414_v17 = vadd.f32 %v2385_v61, %v10566_v36  ;;  %v2535_v22 = vsel %vm13840_vm11, %v10772_v20, %v2517_v4  ;;  %v4704_v43 = vrot.slane %v4690_v54, 7  ;;  %vm2960_vm11 = vcmask 998400  }
 0x2e9   :  { %2648 = vst [vmem:[#allocation3 + $0x18] sm:$0x77] %v8500_v59  ;;  %v2578_v35 = vmul.f32 0.25, %v2563_v6  ;;  %3889 = vrot.lane.b32.xlu1 %v3875_v32, %s9150_s19 }
 0x2eb   :  { %v8501_v37 = vpack.c.bf16 %v2578_v35, %v2577_v48  ;;  %3769 = vrot.lane.b32.xlu0 %v3754_v5, %s9152_s23  ;;  %v2489_v35 = vadd.f32 %v2460_v39, %v2414_v17 }
 0x2ed   :  { %2649 = vst [vmem:[#allocation3 + $0x20] sm:$0x77] %v8501_v37  ;;  %4004 = vrot.lane.b32.xlu1 %v3997_v34, %s9141_s6  ;;  %v2564_v8 = vadd.f32 %v2535_v22, %v2489_v35  ;;  %v4588_v35 = vrot.slane %v4581_v41, 4 }
 0x2ef   :  { %3473 = vrot.lane.b32.xlu0 %v3451_v40, %s9151_s22 }
 0x2f0   :  { %v4433_v0 = vld [vmem:[#allocation3 + $0x18] sm:$0x77] }
 0x2f1   :  { %3631 = vrot.lane.b32.xlu1 %v3624_v19, %s9129_s20  ;;  %4440 = vst [vmem:[#allocation4 + $0x31c] sm:$0x77] %v4433_v0  ;;  %v3556_v57 = vld [vmem:[#allocation3 + $0x14] sm:$0x77] }
 0x2f2   :  { %v3570_v6 = vrot.slane %v3556_v57, 6  ;;  %v3176_v29 = vld [vmem:[#allocation3 + $0x18] sm:$0x77] }
 0x2f3   :  { %3093 = vrot.lane.b32.xlu0 %v3071_v21, %s9141_s6 }
 0x2f4   :  { %v3577_v38 = vrot.slane %v3570_v6, 4  ;;  %3598 = vst [vmem:[#allocation4 + $0x17c] sm:$0xcc] %v3570_v6 }
 0x2f5   :  { %3767 = vrot.lane.b32.xlu1 %v3753_v45, %s9152_s23 }
 0x2f6   :  { %3605 = vst [vmem:[#allocation4 + $0x1b0] sm:$0x11] %v3577_v38 }
 0x2f7   :  { %3217 = vrot.lane.b32.xlu0 %v3195_v60, %s9135_s26  ;;  %v4434_v60 = vld [vmem:[#allocation3 + $0x20] sm:$0x77] }
 0x2f8   :  { %4441 = vst [vmem:[#allocation4 + $0x324] sm:$0x77] %v4434_v60 }
 0x2f9   :  { %v2369_v24 = vpop.permute.xlu0 %2368  ;;  %4595 = vrot.lane.b32.xlu1 %v4581_v41, %s9127_s18 }
 0x2fa   :  { %v2386_v59 = vsel %vm158_vm2, %v2367_v47, %v2369_v24  ;;  %v3760_v47 = vrot.slane %v3753_v45, 4 }
 0x2fb   :  { %2837 = vrot.lane.b32.xlu0 %v2815_v11, %s9127_s18  ;;  %v2371_v63 = vpop.permute.xlu1 %2370  ;;  %v2415_v34 = vadd.f32 %v2386_v59, %v10574_v30  ;;  %v4260_v30 = vrot.slane %v4253_v33, 4 }
 0x2fc   :  { %v2387_v37 = vsel %vm158_vm2, %v2369_v24, %v2371_v63 }
 0x2fd   :  { %v2373_v18 = vpop.permute.xlu0 %2372  ;;  %4710 = vrot.lane.b32.xlu1 %v4703_v53, %s9152_s23  ;;  %v2416_v19 = vadd.f32 %v2387_v37, %v10596_v25  ;;  %v3557_v25 = vld [vmem:[#allocation3 + $0x1c] sm:$0x77] }
 0x2fe   :  { %v2388_v20 = vsel %vm158_vm2, %v2371_v63, %v2373_v18  ;;  %v2418_v45 = vadd.f32 %v2373_v18, %v10607_v15  ;;  %vm13844_vm2 = vmmov %vm13836_vm8  ;;  %v2657_v63 = vld [vmem:[#allocation3 + $0x18] sm:$0x77]  ;;  %v3571_v7 = vrot.slane %v3557_v25, 6  ;;  %v2579_v15 = vmul.f32 0.25, %v2564_v8 }
 0x2ff   :  { %2713 = vrot.lane.b32.xlu0 %v2691_v26, %s9129_s20  ;;  %v2446_v44 = vpop.permute.xlu1 %2445  ;;  %vm13845_vm5 = vmmov %vm13844_vm2  ;;  %v2417_v53 = vadd.f32 %v2388_v20, %v10603_v31  ;;  %2664 = vst [vmem:[#allocation4 + $0x18] sm:$0x77] %v2657_v63  ;;  %vm3402_vm8 = vcmask 474112   ;;  %v4365_v63 = vld [vmem:[#allocation3 + $0x1c] sm:$0x77] }
 0x300   :  { %v3578_v31 = vrot.slane %v3571_v7, 4  ;;  %3599 = vst [vmem:[#allocation4 + $0x184] sm:$0xcc] %v3571_v7  ;;  %vm13846_vm6 = vmmov %vm13844_vm2 }
 0x301   :  { %v2444_v2 = vpop.permute.xlu0 %2443  ;;  %4280 = vrot.lane.b32.xlu1 %v4259_v23, %s9149_s17 }
 0x302   :  { %v2461_v10 = vsel %vm13841_vm1, %v2442_v13, %v2444_v2  ;;  %v2462_v40 = vsel %vm13842_vm13, %v2444_v2, %v2446_v44  ;;  %v3882_v13 = vrot.slane %v3875_v32, 4  ;;  %v2658_v32 = vld [vmem:[#allocation3 + $0x20] sm:$0x77]  ;;  %3606 = vst [vmem:[#allocation4 + $0x1b8] sm:$0x11] %v3578_v31  ;;  %vm13848_vm1 = vcmask 523264  }
 0x303   :  { %4597 = vrot.lane.b32.xlu0 %v4582_v46, %s9127_s18  ;;  %v2521_v12 = vpop.permute.xlu1 %2520  ;;  %v2490_v56 = vadd.f32 %v2461_v10, %v2415_v34  ;;  %v2491_v26 = vadd.f32 %v2462_v40, %v2416_v19  ;;  %2665 = vst [vmem:[#allocation4 + $0x20] sm:$0x77] %v2658_v32  ;;  %v3883_v10 = vrot.slane %v3876_v9, 4  ;;  %v4240_v19 = vld [vmem:[#allocation3 + $0x14] sm:$0x77]  ;;  %vm13849_vm13 = vcmask 1031168  }
 0x304   :  { %v4254_v14 = vrot.slane %v4240_v19, 6  ;;  %v3863_v31 = vld [vmem:[#allocation3 + $0x14] sm:$0x77] }
 0x305   :  { %v2448_v48 = vpop.permute.xlu0 %2447  ;;  %4156 = vrot.lane.b32.xlu1 %v4135_v58, %s9137_s28 }
 0x306   :  { %v2463_v27 = vsel %vm13843_vm3, %v2446_v44, %v2448_v48  ;;  %v2493_v18 = vadd.f32 %v2448_v48, %v2418_v45  ;;  %vm13850_vm3 = vcmask 1014784  }
 0x307   :  { %4712 = vrot.lane.b32.xlu0 %v4704_v43, %s9152_s23  ;;  %v10835_v36 = vpop.permute.xlu1 %3380  ;;  %v2492_v44 = vadd.f32 %v2463_v27, %v2417_v53 }
 0x308   :  { %v3394_v22 = vrot.slane %v10835_v36, 4 }
 0x309   :  { %v2519_v21 = vpop.permute.xlu0 %2518  ;;  %3781 = vrot.lane.b32.xlu1 %v3760_v47, %s9152_s23  ;;  %v10885_v47 = vld [vmem:[#allocation3 + $0x18] sm:$0x77] }
 0x30a   :  { %v2536_v24 = vsel %vm13844_vm2, %v2517_v4, %v2519_v21  ;;  %v2537_v11 = vsel %vm13845_vm5, %v2519_v21, %v2521_v12  ;;  %v4136_v4 = vrot.slane %v4129_v49, 4  ;;  %v4461_v40 = vrot.slane %v10885_v47, 5 }
 0x30b   :  { %v2565_v1 = vadd.f32 %v2536_v24, %v2490_v56  ;;  %4282 = vrot.lane.b32.xlu0 %v4260_v30, %s9149_s17  ;;  %v3002_v33 = vpop.permute.xlu1 %3001  ;;  %v2566_v23 = vadd.f32 %v2537_v11, %v2491_v26  ;;  %v4589_v21 = vrot.slane %v4582_v46, 4  ;;  %v4364_v30 = vld [vmem:[#allocation3 + $0x14] sm:$0x77]  ;;  %v4261_v46 = vrot.slane %v4254_v14, 4 }
 0x30c   :  { %v3015_v38 = vrot.slane %v3002_v33, 4  ;;  %v4378_v45 = vrot.slane %v4364_v30, 7  ;;  %v4116_v11 = vld [vmem:[#allocation3 + $0x14] sm:$0x77]  ;;  %vm2907_vm2 = vcmask 674818   ;;  %vm2667_vm5 = vcmask 673792  }
 0x30d   :  { %v2580_v61 = vmul.f32 0.25, %v2565_v1  ;;  %v2523_v2 = vpop.permute.xlu0 %2522  ;;  %3903 = vrot.lane.b32.xlu1 %v3882_v13, %s9150_s19  ;;  %v2581_v17 = vmul.f32 0.25, %v2566_v23  ;;  %v4055_v13 = vld [vmem:[#allocation3 + $0x1c] sm:$0x77]  ;;  %v4130_v1 = vrot.slane %v4116_v11, 5 }
 0x30e   :  { %v2538_v54 = vsel %vm13846_vm6, %v2521_v12, %v2523_v2  ;;  %v2568_v0 = vadd.f32 %v2523_v2, %v2493_v18  ;;  %v3761_v12 = vrot.slane %v3754_v5, 4  ;;  %vm2915_vm6 = vcmask 671744  }
 0x30f   :  { %v8502_v39 = vpack.c.bf16 %v2580_v61, %v2579_v15  ;;  %v2567_v58 = vadd.f32 %v2538_v54, %v2492_v44  ;;  %4158 = vrot.lane.b32.xlu0 %v4136_v4, %s9137_s28  ;;  %v10856_v57 = vpop.permute.xlu1 %3457  ;;  %v4379_v15 = vrot.slane %v4365_v63, 7  ;;  %v10928_v4 = vld [vmem:[#allocation3 + $0x14] sm:$0x77] }
 0x310   :  { %v2583_v49 = vmul.f32 0.25, %v2568_v0  ;;  %v3485_v27 = vrot.slane %v10856_v57, 4  ;;  %v4137_v0 = vrot.slane %v4130_v1, 4 }
 0x311   :  { %2650 = vst [vmem:[#allocation3 + $0x28] sm:$0x77] %v8502_v39  ;;  %v2582_v59 = vmul.f32 0.25, %v2567_v58  ;;  %4487 = vrot.lane.b32.xlu1 %v4466_v16, %s9129_s20  ;;  %v10861_v6 = vpop.permute.xlu0 %3382  ;;  %v3755_v39 = vrot.slane %v10928_v4, 5 }
 0x312   :  { %v8504_v48 = vpack.c.bf16 %v2583_v49, %v2583_v49  ;;  %v13705_v50 = vrot.slane %v10861_v6, 4  ;;  %v3877_v49 = vrot.slane %v3863_v31, 6 }
 0x313   :  { %v8503_v28 = vpack.c.bf16 %v2582_v59, %v2581_v17  ;;  %3783 = vrot.lane.b32.xlu0 %v3761_v12, %s9152_s23  ;;  %v3202_v43 = vpop.permute.xlu1 %3201  ;;  %v10947_v12 = vld [vmem:[#allocation3 + $0x20] sm:$0x77] }
 0x314   :  { %2653 = vst.msk [vmem:[#allocation3 + $0x38] sm:$0x7] %vm2652_vm7, %v8504_v48  ;;  %v3401_v37 = vsel %vm156_vm0, %v3394_v22, %v13705_v50  ;;  %v3762_v48 = vrot.slane %v3755_v39, 4  ;;  %vm5601_vm7 = vcmask 179200  }
 0x315   :  { %2651 = vst [vmem:[#allocation3 + $0x30] sm:$0x77] %v8503_v28  ;;  %v3403_v3 = vsel %vm3402_vm8, %v10835_v36, %v3401_v37  ;;  %4609 = vrot.lane.b32.xlu1 %v4588_v35, %s9127_s18  ;;  %v10876_v5 = vpop.permute.xlu0 %3003  ;;  %v4054_v36 = vld [vmem:[#allocation3 + $0x14] sm:$0x77] }
 0x316   :  { %3422 = vst [vmem:[#allocation4 + $0x138] sm:$0x77] %v3403_v3  ;;  %v13697_v55 = vrot.slane %v10876_v5, 4  ;;  %v4462_v3 = vrot.slane %v10947_v12, 5 }
 0x317   :  { %3905 = vrot.lane.b32.xlu0 %v3883_v10, %s9150_s19  ;;  %v3319_v41 = vpop.permute.xlu1 %3318 }
 0x318   :  { %v3022_v34 = vsel %vm156_vm0, %v3015_v38, %v13697_v55  ;;  %v3332_v61 = vrot.slane %v3319_v41, 4  ;;  %v4435_v10 = vld [vmem:[#allocation3 + $0x28] sm:$0x77] }
 0x319   :  { %v3024_v8 = vsel %vm3023_vm9, %v3002_v33, %v3022_v34  ;;  %v10888_v20 = vpop.permute.xlu0 %4068  ;;  %4070 = vrot.lane.b32.xlu1 %v4054_v36, %s9135_s26  ;;  %v3229_v33 = vrot.slane %v3202_v43, 4  ;;  %4442 = vst [vmem:[#allocation4 + $0x32c] sm:$0x77] %v4435_v10  ;;  %v3884_v36 = vrot.slane %v3877_v49, 4 }
 0x31a   :  { %3042 = vst [vmem:[#allocation4 + $0x9c] sm:$0x77] %v3024_v8 }
 0x31b   :  { %4489 = vrot.lane.b32.xlu0 %v4467_v62, %s9129_s20  ;;  %v2939_v9 = vpop.permute.xlu1 %2938 }
 0x31c   :  { %v2952_v17 = vrot.slane %v2939_v9, 4 }
 0x31d   :  { %v10895_v56 = vpop.permute.xlu0 %3694  ;;  %4477 = vrot.lane.b32.xlu1 %v4461_v40, %s9129_s20 }
 0x31f   :  { %4611 = vrot.lane.b32.xlu0 %v4589_v21, %s9127_s18  ;;  %v10903_v52 = vpop.permute.xlu1 %3077 }
 0x320   :  { %v3105_v38 = vrot.slane %v10903_v52, 4 }
 0x321   :  { %v10905_v60 = vpop.permute.xlu0 %3459  ;;  %4072 = vrot.lane.b32.xlu1 %v4055_v13, %s9135_s26  ;;  %v4241_v13 = vld [vmem:[#allocation3 + $0x1c] sm:$0x77] }
 0x322   :  { %v13702_v24 = vrot.slane %v10905_v60, 4 }
 0x323   :  { %4387 = vrot.lane.b32.xlu0 %v4378_v45, %s9151_s22  ;;  %v10911_v42 = vpop.permute.xlu1 %2697 }
 0x324   :  { %v3499_v25 = vsel %vm156_vm0, %v3485_v27, %v13702_v24  ;;  %v2725_v30 = vrot.slane %v10911_v42, 4  ;;  %v2919_v24 = vld [vmem:[#allocation3 + $0x10] sm:$0x77] }
 0x325   :  { %v3501_v53 = vsel %vm3500_vm14, %v10856_v57, %v3499_v25  ;;  %v10918_v26 = vpop.permute.xlu0 %3203  ;;  %4284 = vrot.lane.b32.xlu1 %v4261_v46, %s9149_s17  ;;  %v10988_v46 = vld [vmem:[#allocation3 + $0x1c] sm:$0x77] }
 0x326   :  { %3540 = vst [vmem:[#allocation4 + $0x138] sm:$0x88] %v3501_v53  ;;  %v13699_v7 = vrot.slane %v10918_v26, 4  ;;  %v4255_v53 = vrot.slane %v4241_v13, 6 }
 0x327   :  { %4146 = vrot.lane.b32.xlu0 %v4130_v1, %s9137_s28  ;;  %v10923_v32 = vpop.permute.xlu1 %2821 }
 0x328   :  { %v3243_v18 = vsel %vm156_vm0, %v3229_v33, %v13699_v7  ;;  %v2849_v1 = vrot.slane %v10923_v32, 4 }
 0x329   :  { %v3244_v44 = vsel %vm771_vm10, %v3202_v43, %v3243_v18  ;;  %v10931_v23 = vpop.permute.xlu0 %3320  ;;  %4389 = vrot.lane.b32.xlu1 %v4379_v15, %s9151_s22  ;;  %v4117_v43 = vld [vmem:[#allocation3 + $0x1c] sm:$0x77] }
 0x32a   :  { %3283 = vst [vmem:[#allocation4 + $0xd0] sm:$0xcc] %v3244_v44  ;;  %v13698_v2 = vrot.slane %v10931_v23, 4  ;;  %v4131_v8 = vrot.slane %v4117_v43, 5  ;;  %v3878_v44 = vrot.slane %v10988_v46, 6 }
 0x32b   :  { %4270 = vrot.lane.b32.xlu0 %v4254_v14, %s9149_s17  ;;  %v10936_v54 = vpop.permute.xlu1 %3471  ;;  %v2659_v46 = vld [vmem:[#allocation3 + $0x28] sm:$0x77] }
 0x32c   :  { %v3339_v58 = vsel %vm156_vm0, %v3332_v61, %v13698_v2  ;;  %v4138_v27 = vrot.slane %v4131_v8, 4  ;;  %2666 = vst [vmem:[#allocation4 + $0x28] sm:$0x77] %v2659_v46  ;;  %v3613_v46 = vld [vmem:[#allocation3 + $0x1c] sm:$0x77] }
 0x32d   :  { %v3340_v57 = vsel %vm13847_vm15, %v3319_v41, %v3339_v58  ;;  %v10943_v16 = vpop.permute.xlu0 %2940  ;;  %4160 = vrot.lane.b32.xlu1 %v4137_v0, %s9137_s28  ;;  %vm13851_vm15 = vmmov %vm13850_vm3 }
 0x32e   :  { %3359 = vst [vmem:[#allocation4 + $0x104] sm:$0xee] %v3340_v57  ;;  %v13696_v59 = vrot.slane %v10943_v16, 4  ;;  %v4262_v57 = vrot.slane %v4255_v53, 4 }
 0x32f   :  { %3893 = vrot.lane.b32.xlu0 %v3877_v49, %s9150_s19  ;;  %v10950_v22 = vpop.permute.xlu1 %3091  ;;  %v3985_v49 = vld [vmem:[#allocation3 + $0x14] sm:$0x77] }
 0x330   :  { %v2959_v28 = vsel %vm156_vm0, %v2952_v17, %v13696_v59  ;;  %v3612_v17 = vld [vmem:[#allocation3 + $0x14] sm:$0x77]  ;;  %v3999_v13 = vrot.slane %v3985_v49, 7 }
 0x331   :  { %v2961_v35 = vsel %vm2960_vm11, %v2939_v9, %v2959_v28  ;;  %v10958_v37 = vpop.permute.xlu0 %3079  ;;  %3785 = vrot.lane.b32.xlu1 %v3762_v48, %s9152_s23  ;;  %v10972_v9 = vld [vmem:[#allocation3 + $0x1c] sm:$0x77]  ;;  %v3560_v28 = vld [vmem:[#allocation3 + $0x34] sm:$0x7] }
 0x332   :  { %2979 = vst [vmem:[#allocation4 + $0x68] sm:$0xee] %v2961_v35  ;;  %v13695_v41 = vrot.slane %v10958_v37, 4  ;;  %v3756_v11 = vrot.slane %v10972_v9, 5  ;;  %v3885_v35 = vrot.slane %v3878_v44, 4  ;;  %v3574_v10 = vrot.slane %v3560_v28, 6 }
 0x333   :  { %4479 = vrot.lane.b32.xlu0 %v4462_v3, %s9129_s20  ;;  %v10967_v34 = vpop.permute.xlu1 %3215 }
 0x334   :  { %v3119_v62 = vsel %vm156_vm0, %v3105_v38, %v13695_v41  ;;  %v3763_v18 = vrot.slane %v3756_v11, 4  ;;  %v2660_v38 = vld [vmem:[#allocation3 + $0x30] sm:$0x7]  ;;  %3602 = vst.msk [vmem:[#allocation4 + $0x19c] sm:$0xc] %vm2907_vm2, %v3574_v10 }
 0x335   :  { %v3120_v19 = vsel %vm13848_vm1, %v10903_v52, %v3119_v62  ;;  %v10976_v21 = vpop.permute.xlu0 %2699  ;;  %3907 = vrot.lane.b32.xlu1 %v3884_v36, %s9150_s19  ;;  %v4081_v36 = vrot.slane %v10888_v20, 4  ;;  %2668 = vst.msk [vmem:[#allocation4 + $0x30] sm:$0x7] %vm2667_vm5, %v2660_v38  ;;  %v4436_v62 = vld [vmem:[#allocation3 + $0x30] sm:$0x77]  ;;  %vm13852_vm1 = vmmov %vm13849_vm13 }
 0x336   :  { %3159 = vst [vmem:[#allocation4 + $0x9c] sm:$0x88] %v3120_v19  ;;  %v13694_v14 = vrot.slane %v10976_v21, 4  ;;  %v3559_v19 = vld [vmem:[#allocation3 + $0x2c] sm:$0x77] }
 0x337   :  { %4148 = vrot.lane.b32.xlu0 %v4131_v8, %s9137_s28  ;;  %v10982_v45 = vpop.permute.xlu1 %2835  ;;  %4443 = vst [vmem:[#allocation4 + $0x334] sm:$0x77] %v4436_v62 }
 0x338   :  { %v2739_v52 = vsel %vm156_vm0, %v2725_v30, %v13694_v14  ;;  %v3190_v14 = vrot.slane %v3176_v29, 6 }
 0x339   :  { %v2740_v25 = vsel %vm13849_vm13, %v10911_v42, %v2739_v52  ;;  %v10992_v63 = vpop.permute.xlu0 %2823  ;;  %4162 = vrot.lane.b32.xlu1 %v4138_v27, %s9137_s28  ;;  %v3558_v42 = vld [vmem:[#allocation3 + $0x24] sm:$0x77]  ;;  %v3581_v27 = vrot.slane %v3574_v10, 4  ;;  %v3573_v52 = vrot.slane %v3559_v19, 6  ;;  %vm13853_vm13 = vcmask 490496  }
 0x33a   :  { %2777 = vst [vmem:[#allocation4] sm:$0x88] %v2740_v25  ;;  %v13693_v33 = vrot.slane %v10992_v63, 4  ;;  %v3572_v31 = vrot.slane %v3558_v42, 6  ;;  %v3626_v42 = vrot.slane %v3612_v17, 7 }
 0x33b   :  { %4272 = vrot.lane.b32.xlu0 %v4255_v53, %s9149_s17  ;;  %v10998_v15 = vpop.permute.xlu1 %2711  ;;  %v11025_v53 = vld [vmem:[%s13673_s1 + $0x204] ss:$16 sps:$4 sm:$0xff]   ;;  %3609 = vst.msk [vmem:[#allocation4 + $0x1d0] sm:$0x1] %vm2915_vm6, %v3581_v27  ;;  %3601 = vst [vmem:[#allocation4 + $0x194] sm:$0xcc] %v3573_v52 }
 0x33c   :  { %v2863_v61 = vsel %vm156_vm0, %v2849_v1, %v13693_v33  ;;  %v3579_v48 = vrot.slane %v3572_v31, 4  ;;  %3600 = vst [vmem:[#allocation4 + $0x18c] sm:$0xcc] %v3572_v31  ;;  %v13707_v31 = vrot.slane %v10895_v56, 4  ;;  %8392 = vmatprep.mubr.msk.bf16.mxu0 %vm5601_vm7, %v11025_v53  ;;  %8394 = vmatprep.mubr.msk.bf16.mxu1 %vm5601_vm7, %v11025_v53  ;;  %v3986_v17 = vld [vmem:[#allocation3 + $0x1c] sm:$0x77] }
 0x33d   :  { %v2864_v0 = vsel %vm13850_vm3, %v10923_v32, %v2863_v61  ;;  %v11008_v58 = vpop.permute.xlu0 %4773  ;;  %3787 = vrot.lane.b32.xlu1 %v3763_v18, %s9152_s23  ;;  %v4437_v32 = vld [vmem:[#allocation3 + $0x38] sm:$0x7]  ;;  %v3580_v61 = vrot.slane %v3573_v52, 4  ;;  %v3431_v27 = vld [vmem:[#allocation3 + $0x10] sm:$0x77]  ;;  %vm13854_vm3 = vcmask 523264  }
 0x33e   :  { %2901 = vst [vmem:[#allocation4 + $0x34] sm:$0xcc] %v2864_v0  ;;  %3607 = vst [vmem:[#allocation4 + $0x1c0] sm:$0x11] %v3579_v48 }
 0x33f   :  { %4286 = vrot.lane.b32.xlu0 %v4262_v57, %s9149_s17  ;;  %v4067_v43 = vpop.permute.xlu1 %4066  ;;  %4444 = vst.msk [vmem:[#allocation4 + $0x33c] sm:$0x7] %vm2667_vm5, %v4437_v32  ;;  %3608 = vst [vmem:[#allocation4 + $0x1c8] sm:$0x11] %v3580_v61  ;;  %v4000_v32 = vrot.slane %v3986_v17, 7  ;;  %v3627_v17 = vrot.slane %v3613_v46, 7 }
 0x340   :  { %v4080_v8 = vrot.slane %v4067_v43, 4 }
 0x341   :  { %v11015_v30 = vpop.permute.xlu0 %4385  ;;  %3909 = vrot.lane.b32.xlu1 %v3885_v35, %s9150_s19 }
 0x342   :  { %v4087_v25 = vsel %vm156_vm0, %v4080_v8, %v4081_v36  ;;  %v4398_v62 = vrot.slane %v11015_v30, 4 }
 0x343   :  { %v4088_v1 = vsel %vm771_vm10, %v4067_v43, %v4087_v25  ;;  %4008 = vrot.lane.b32.xlu0 %v3999_v13, %s9141_s6  ;;  %v3693_v18 = vpop.permute.xlu1 %3692  ;;  %v13692_v43 = vrot.slane %v11008_v58, 4  ;;  %v3681_v13 = vld [vmem:[#allocation3 + $0x1c] sm:$0x77] }
 0x344   :  { %4107 = vst [vmem:[#allocation4 + $0x270] sm:$0x77] %v4088_v1  ;;  %v3706_v0 = vrot.slane %v3693_v18, 4 }
 0x345   :  { %v11035_v57 = vpop.permute.xlu0 %4475  ;;  %3635 = vrot.lane.b32.xlu1 %v3626_v42, %s9129_s20 }
 0x346   :  { %v3713_v49 = vsel %vm156_vm0, %v3706_v0, %v13707_v31  ;;  %v4502_v42 = vrot.slane %v11035_v57, 4  ;;  %v3368_v0 = vld [vmem:[#allocation3 + $0x10] sm:$0x77] }
 0x347   :  { %v3714_v48 = vsel %vm13851_vm15, %v3693_v18, %v3713_v49  ;;  %3895 = vrot.lane.b32.xlu0 %v3878_v44, %s9150_s19  ;;  %v4772_v28 = vpop.permute.xlu1 %4771  ;;  %v3445_v18 = vrot.slane %v3431_v27, 5  ;;  %vm13855_vm15 = vmmov %vm13852_vm1 }
 0x348   :  { %3732 = vst [vmem:[#allocation4 + $0x1d4] sm:$0x77] %v3714_v48  ;;  %v4785_v35 = vrot.slane %v4772_v28, 4 }
 0x349   :  { %v11044_v10 = vpop.permute.xlu0 %4144  ;;  %3771 = vrot.lane.b32.xlu1 %v3755_v39, %s9152_s23  ;;  %v3680_v39 = vld [vmem:[#allocation3 + $0x14] sm:$0x77] }
 0x34a   :  { %v4792_v38 = vsel %vm156_vm0, %v4785_v35, %v13692_v43 }
 0x34b   :  { %v4793_v8 = vsel %vm3023_vm9, %v4772_v28, %v4792_v38  ;;  %4010 = vrot.lane.b32.xlu0 %v4000_v32, %s9141_s6  ;;  %v4384_v44 = vpop.permute.xlu1 %4383  ;;  %v3452_v32 = vrot.slane %v3445_v18, 4  ;;  %v4171_v38 = vrot.slane %v11044_v10, 4 }
 0x34c   :  { %4811 = vst [vmem:[#allocation4 + $0x3a8] sm:$0x77] %v4793_v8  ;;  %v4397_v19 = vrot.slane %v4384_v44, 4 }
 0x34d   :  { %v11055_v52 = vpop.permute.xlu0 %4268  ;;  %3698 = vrot.lane.b32.xlu1 %v3681_v13, %s9127_s18 }
 0x34e   :  { %v4404_v4 = vsel %vm156_vm0, %v4397_v19, %v4398_v62  ;;  %v11073_v19 = vld [vmem:[#allocation3 + $0x10] sm:$0x77] }
 0x34f   :  { %v4405_v25 = vsel %vm3500_vm14, %v4384_v44, %v4404_v4  ;;  %3696 = vrot.lane.b32.xlu0 %v3680_v39, %s9127_s18  ;;  %v4474_v1 = vpop.permute.xlu1 %4473  ;;  %v3432_v44 = vld [vmem:[#allocation3 + $0x18] sm:$0x77] }
 0x350   :  { %4424 = vst [vmem:[#allocation4 + $0x2d8] sm:$0xee] %v4405_v25  ;;  %v4501_v61 = vrot.slane %v4474_v1, 4  ;;  %v3446_v46 = vrot.slane %v3432_v44, 5  ;;  %v3065_v25 = vrot.slane %v11073_v19, 5 }
 0x351   :  { %v11064_v49 = vpop.permute.xlu0 %3891  ;;  %3384 = vrot.lane.b32.xlu1 %v3368_v0, %s9149_s17  ;;  %v3175_v0 = vld [vmem:[#allocation3 + $0x10] sm:$0x77]  ;;  %v11098_v44 = vld [vmem:[#allocation3 + $0x18] sm:$0x77] }
 0x352   :  { %v4515_v48 = vsel %vm156_vm0, %v4501_v61, %v4502_v42 }
 0x353   :  { %v4516_v28 = vsel %vm13852_vm1, %v4474_v1, %v4515_v48  ;;  %3637 = vrot.lane.b32.xlu0 %v3627_v17, %s9129_s20  ;;  %v4143_v35 = vpop.permute.xlu1 %4142  ;;  %v4295_v1 = vrot.slane %v11055_v52, 4  ;;  %vm13856_vm1 = vmmov %vm13854_vm3 }
 0x354   :  { %4553 = vst [vmem:[#allocation4 + $0x30c] sm:$0x88] %v4516_v28  ;;  %v4170_v8 = vrot.slane %v4143_v35, 4  ;;  %v3072_v28 = vrot.slane %v3065_v25, 4 }
 0x355   :  { %v11075_v13 = vpop.permute.xlu0 %4006  ;;  %3475 = vrot.lane.b32.xlu1 %v3452_v32, %s9151_s22  ;;  %v3918_v32 = vrot.slane %v11064_v49, 4 }
 0x356   :  { %v4184_v27 = vsel %vm156_vm0, %v4170_v8, %v4171_v38 }
 0x357   :  { %v4185_v4 = vsel %vm13853_vm13, %v4143_v35, %v4184_v27  ;;  %3773 = vrot.lane.b32.xlu0 %v3756_v11, %s9152_s23  ;;  %v4267_v39 = vpop.permute.xlu1 %4266  ;;  %v3189_v35 = vrot.slane %v3175_v0, 6  ;;  %vm13857_vm13 = vcmask 1014784  }
 0x358   :  { %4224 = vst [vmem:[#allocation4 + $0x270] sm:$0x88] %v4185_v4  ;;  %v4294_v61 = vrot.slane %v4267_v39, 4 }
 0x359   :  { %v11087_v17 = vpop.permute.xlu0 %3633  ;;  %3463 = vrot.lane.b32.xlu1 %v3446_v46, %s9151_s22  ;;  %v3196_v0 = vrot.slane %v3189_v35, 4 }
 0x35a   :  { %v4308_v48 = vsel %vm156_vm0, %v4294_v61, %v4295_v1 }
 0x35b   :  { %v4309_v9 = vsel %vm3402_vm8, %v4267_v39, %v4308_v48  ;;  %3461 = vrot.lane.b32.xlu0 %v3445_v18, %s9151_s22  ;;  %v3890_v11 = vpop.permute.xlu1 %3889  ;;  %v3369_v18 = vld [vmem:[#allocation3 + $0x18] sm:$0x77]  ;;  %v3066_v48 = vrot.slane %v11098_v44, 5 }
 0x35c   :  { %4348 = vst [vmem:[#allocation4 + $0x2a4] sm:$0xcc] %v4309_v9  ;;  %v3917_v8 = vrot.slane %v3890_v11, 4  ;;  %v13712_v9 = vrot.slane %v11075_v13, 4 }
 0x35d   :  { %v11100_v27 = vpop.permute.xlu0 %3769  ;;  %3095 = vrot.lane.b32.xlu1 %v3072_v28, %s9141_s6  ;;  %v3453_v28 = vrot.slane %v3446_v46, 4  ;;  %v3073_v33 = vrot.slane %v3066_v48, 4 }
 0x35e   :  { %v3931_v4 = vsel %vm156_vm0, %v3917_v8, %v3918_v32  ;;  %v3492_v8 = vrot.slane %v10936_v54, 4 }
 0x35f   :  { %v3932_v39 = vsel %vm3023_vm9, %v3890_v11, %v3931_v4  ;;  %3386 = vrot.lane.b32.xlu0 %v3369_v18, %s9149_s17  ;;  %v4005_v61 = vpop.permute.xlu1 %4004 }
 0x360   :  { %3969 = vst [vmem:[#allocation4 + $0x208] sm:$0xcc] %v3932_v39  ;;  %v4018_v51 = vrot.slane %v4005_v61, 4 }
 0x361   :  { %v11110_v43 = vpop.permute.xlu0 %3473  ;;  %3219 = vrot.lane.b32.xlu1 %v3196_v0, %s9135_s26  ;;  %v13711_v0 = vrot.slane %v11087_v17, 4 }
 0x362   :  { %v4025_v11 = vsel %vm156_vm0, %v4018_v51, %v13712_v9  ;;  %v13703_v4 = vrot.slane %v11110_v43, 4  ;;  %v11126_v51 = vld [vmem:[#allocation3 + $0x10] sm:$0x77] }
 0x363   :  { %v4026_v18 = vsel %vm13854_vm3, %v4005_v61, %v4025_v11  ;;  %3477 = vrot.lane.b32.xlu0 %v3453_v28, %s9151_s22  ;;  %v3632_v39 = vpop.permute.xlu1 %3631  ;;  %v3112_v28 = vrot.slane %v10950_v22, 4  ;;  %vm13858_vm3 = vmmov %vm13855_vm15 }
 0x364   :  { %4045 = vst [vmem:[#allocation4 + $0x23c] sm:$0xee] %v4026_v18  ;;  %v3513_v46 = vsel %vm156_vm0, %v3492_v8, %v13703_v4  ;;  %v3645_v41 = vrot.slane %v3632_v39, 4  ;;  %v3299_v8 = vld [vmem:[#allocation3 + $0x10] sm:$0x77] }
 0x365   :  { %v3514_v61 = vsel %vm3500_vm14, %v10936_v54, %v3513_v46  ;;  %v11130_v11 = vpop.permute.xlu0 %3093  ;;  %3097 = vrot.lane.b32.xlu1 %v3073_v33, %s9141_s6  ;;  %v3197_v54 = vrot.slane %v3190_v14, 4  ;;  %v2809_v46 = vrot.slane %v11126_v51, 6  ;;  %v13709_v33 = vrot.slane %v11100_v27, 4 }
 0x366   :  { %3547 = vst [vmem:[#allocation4 + $0x16c] sm:$0x33] %v3514_v61  ;;  %v3652_v29 = vsel %vm156_vm0, %v3645_v41, %v13711_v0  ;;  %v13700_v18 = vrot.slane %v11130_v11, 4 }
 0x367   :  { %v3653_v59 = vsel %vm13855_vm15, %v3632_v39, %v3652_v29  ;;  %3205 = vrot.lane.b32.xlu0 %v3189_v35, %s9135_s26  ;;  %v3768_v55 = vpop.permute.xlu1 %3767  ;;  %v3313_v35 = vrot.slane %v3299_v8, 7  ;;  %v3236_v39 = vrot.slane %v10967_v34, 4  ;;  %vm13859_vm15 = vmmov %vm13857_vm13 }
 0x368   :  { %3671 = vst [vmem:[#allocation4 + $0x1a0] sm:$0xee] %v3653_v59  ;;  %v3132_v61 = vsel %vm156_vm0, %v3112_v28, %v13700_v18  ;;  %v3795_v2 = vrot.slane %v3768_v55, 4 }
 0x369   :  { %v3133_v41 = vsel %vm13856_vm1, %v10950_v22, %v3132_v61  ;;  %v11147_v7 = vpop.permute.xlu0 %3217  ;;  %3221 = vrot.lane.b32.xlu1 %v3197_v54, %s9135_s26  ;;  %v2816_v22 = vrot.slane %v2809_v46, 4  ;;  %v11162_v54 = vld [vmem:[#allocation3 + $0x18] sm:$0x77]  ;;  %vm13860_vm1 = vcmask 490496  }
 0x36a   :  { %3166 = vst [vmem:[#allocation4 + $0xd0] sm:$0x33] %v3133_v41  ;;  %v3809_v59 = vsel %vm156_vm0, %v3795_v2, %v13709_v33  ;;  %v13701_v29 = vrot.slane %v11147_v7, 4 }
 0x36b   :  { %v3810_v28 = vsel %vm2960_vm11, %v3768_v55, %v3809_v59  ;;  %3322 = vrot.lane.b32.xlu0 %v3313_v35, %s9137_s28  ;;  %v4596_v18 = vpop.permute.xlu1 %4595  ;;  %v2856_v55 = vrot.slane %v10982_v45, 4  ;;  %v3300_v35 = vld [vmem:[#allocation3 + $0x18] sm:$0x77] }
 0x36c   :  { %3847 = vst [vmem:[#allocation4 + $0x1d4] sm:$0x88] %v3810_v28  ;;  %v3256_v8 = vsel %vm156_vm0, %v3236_v39, %v13701_v29  ;;  %v2810_v39 = vrot.slane %v11162_v54, 6  ;;  %v2732_v29 = vrot.slane %v10998_v15, 4 }
 0x36d   :  { %v3257_v2 = vsel %vm771_vm10, %v10967_v34, %v3256_v8  ;;  %v11166_v61 = vpop.permute.xlu0 %2837  ;;  %2839 = vrot.lane.b32.xlu1 %v2816_v22, %s9127_s18  ;;  %v2989_v34 = vld [vmem:[#allocation3 + $0x10] sm:$0x77] }
 0x36e   :  { %3290 = vst [vmem:[#allocation4 + $0x104] sm:$0x11] %v3257_v2  ;;  %v13704_v41 = vrot.slane %v11166_v61, 4  ;;  %v3314_v2 = vrot.slane %v3300_v35, 7 }
 0x36f   :  { %3207 = vrot.lane.b32.xlu0 %v3190_v14, %s9135_s26  ;;  %v4711_v59 = vpop.permute.xlu1 %4710 }
 0x370   :  { %v2875_v28 = vsel %vm156_vm0, %v2856_v55, %v13704_v41  ;;  %v2817_v55 = vrot.slane %v2810_v39, 4 }
 0x371   :  { %v2876_v8 = vsel %vm13857_vm13, %v10982_v45, %v2875_v28  ;;  %v11178_v22 = vpop.permute.xlu0 %2713  ;;  %3005 = vrot.lane.b32.xlu1 %v2989_v34, %s9150_s19  ;;  %v2933_v34 = vrot.slane %v2919_v24, 7  ;;  %v4724_v24 = vrot.slane %v4711_v59, 4  ;;  %vm13861_vm13 = vmmov %vm13858_vm3 }
 0x372   :  { %2909 = vst [vmem:[#allocation4 + $0x68] sm:$0x11] %v2876_v8  ;;  %v13706_v14 = vrot.slane %v11178_v22, 4  ;;  %v4623_v8 = vrot.slane %v4596_v18, 4 }
 0x373   :  { %3324 = vrot.lane.b32.xlu0 %v3314_v2, %s9137_s28  ;;  %v4281_v4 = vpop.permute.xlu1 %4280 }
 0x374   :  { %v2751_v45 = vsel %vm156_vm0, %v2732_v29, %v13706_v14  ;;  %v2990_v29 = vld [vmem:[#allocation3 + $0x18] sm:$0x77]  ;;  %v2671_v14 = vld [vmem:[#allocation3 + $0x10] sm:$0x77] }
 0x375   :  { %v2752_v28 = vsel %vm13858_vm3, %v10998_v15, %v2751_v45  ;;  %v11191_v35 = vpop.permute.xlu0 %4597  ;;  %2841 = vrot.lane.b32.xlu1 %v2817_v55, %s9127_s18  ;;  %v2685_v31 = vrot.slane %v2671_v14, 5 }
 0x376   :  { %2785 = vst [vmem:[#allocation4 + $0x34] sm:$0x33] %v2752_v28  ;;  %v13708_v2 = vrot.slane %v11191_v35, 4  ;;  %v2920_v28 = vld [vmem:[#allocation3 + $0x18] sm:$0x77] }
 0x377   :  { %2942 = vrot.lane.b32.xlu0 %v2933_v34, %s9152_s23  ;;  %v4157_v41 = vpop.permute.xlu1 %4156  ;;  %v2692_v51 = vrot.slane %v2685_v31, 4 }
 0x378   :  { %v4637_v50 = vsel %vm156_vm0, %v4623_v8, %v13708_v2 }
 0x379   :  { %v4638_v15 = vsel %vm13859_vm15, %v4596_v18, %v4637_v50  ;;  %v11200_v45 = vpop.permute.xlu0 %4712  ;;  %3007 = vrot.lane.b32.xlu1 %v2990_v29, %s9150_s19  ;;  %v2672_v50 = vld [vmem:[#allocation3 + $0x18] sm:$0x77]  ;;  %v2934_v29 = vrot.slane %v2920_v28, 7  ;;  %v4177_v28 = vrot.slane %v4157_v41, 4 }
 0x37a   :  { %4675 = vst [vmem:[#allocation4 + $0x340] sm:$0xcc] %v4638_v15  ;;  %v13710_v55 = vrot.slane %v11200_v45, 4  ;;  %v4301_v15 = vrot.slane %v4281_v4, 4 }
 0x37b   :  { %3081 = vrot.lane.b32.xlu0 %v3065_v25, %s9141_s6  ;;  %v3782_v34 = vpop.permute.xlu1 %3781  ;;  %v2686_v25 = vrot.slane %v2672_v50, 5 }
 0x37c   :  { %v4731_v8 = vsel %vm156_vm0, %v4724_v24, %v13710_v55 }
 0x37d   :  { %v4732_v18 = vsel %vm2960_vm11, %v4711_v59, %v4731_v8  ;;  %v11211_v2 = vpop.permute.xlu0 %4282  ;;  %2701 = vrot.lane.b32.xlu1 %v2685_v31, %s9129_s20 }
 0x37e   :  { %4750 = vst [vmem:[#allocation4 + $0x374] sm:$0xee] %v4732_v18  ;;  %v4302_v33 = vrot.slane %v11211_v2, 4  ;;  %v2693_v18 = vrot.slane %v2686_v25, 4 }
 0x37f   :  { %2944 = vrot.lane.b32.xlu0 %v2934_v29, %s9152_s23  ;;  %v3904_v19 = vpop.permute.xlu1 %3903 }
 0x380   :  { %v4321_v14 = vsel %vm156_vm0, %v4301_v15, %v4302_v33 }
 0x381   :  { %v4322_v24 = vsel %vm3402_vm8, %v4281_v4, %v4321_v14  ;;  %v11220_v59 = vpop.permute.xlu0 %4158  ;;  %2825 = vrot.lane.b32.xlu1 %v2809_v46, %s9127_s18  ;;  %v3802_v46 = vrot.slane %v3782_v34, 4 }
 0x382   :  { %4355 = vst [vmem:[#allocation4 + $0x2d8] sm:$0x11] %v4322_v24  ;;  %v4178_v8 = vrot.slane %v11220_v59, 4  ;;  %v4759_v24 = vld [vmem:[#allocation3 + $0x18] sm:$0x77] }
 0x383   :  { %3083 = vrot.lane.b32.xlu0 %v3066_v48, %s9141_s6  ;;  %v4488_v50 = vpop.permute.xlu1 %4487 }
 0x384   :  { %v4197_v4 = vsel %vm156_vm0, %v4177_v28, %v4178_v8  ;;  %v11241_v28 = vld [vmem:[#allocation3 + $0x18] sm:$0x77] }
 0x385   :  { %v4198_v29 = vsel %vm13860_vm1, %v4157_v41, %v4197_v4  ;;  %v11233_v15 = vpop.permute.xlu0 %3783  ;;  %2717 = vrot.lane.b32.xlu1 %v2693_v18, %s9129_s20  ;;  %v4583_v0 = vrot.slane %v11241_v28, 6 }
 0x386   :  { %4231 = vst [vmem:[#allocation4 + $0x2a4] sm:$0x33] %v4198_v29  ;;  %v3803_v14 = vrot.slane %v11233_v15, 4  ;;  %v3924_v29 = vrot.slane %v3904_v19, 4 }
 0x387   :  { %2715 = vrot.lane.b32.xlu0 %v2692_v51, %s9129_s20  ;;  %v4610_v44 = vpop.permute.xlu1 %4609 }
 0x388   :  { %v3821_v48 = vsel %vm156_vm0, %v3802_v46, %v3803_v14  ;;  %v4468_v46 = vrot.slane %v4461_v40, 4  ;;  %v4630_v54 = vrot.slane %v4610_v44, 4 }
 0x389   :  { %v3822_v41 = vsel %vm2960_vm11, %v3782_v34, %v3821_v48  ;;  %v11244_v4 = vpop.permute.xlu0 %3905  ;;  %4775 = vrot.lane.b32.xlu1 %v4759_v24, %s9150_s19  ;;  %v8856_v31 = vld [vmem:[#allocation4 + $0x2d8] ss:$52 sps:$4 sm:$0xff]   ;;  %v8858_v18 = vld [vmem:[#allocation4 + $0x2dc] ss:$52 sps:$4 sm:$0xff]  }
 0x38a   :  { %3854 = vst [vmem:[#allocation4 + $0x208] sm:$0x33] %v3822_v41  ;;  %v3925_v51 = vrot.slane %v11244_v4, 4  ;;  %5645 = vmatprep.subr.bf16.mxu0 %v8858_v18  ;;  %v4508_v18 = vrot.slane %v4488_v50, 4 }
 0x38b   :  { %2703 = vrot.lane.b32.xlu0 %v2686_v25, %s9129_s20  ;;  %v4071_v55 = vpop.permute.xlu1 %4070  ;;  %5646 = vmatpush1.bf16.msra.mxu0 %v8856_v31  ;;  %v4590_v31 = vrot.slane %v4583_v0, 4 }
 0x38c   :  { %v3943_v34 = vsel %vm156_vm0, %v3924_v29, %v3925_v51  ;;  %v4082_v48 = vrot.slane %v4071_v55, 4 }
 0x38d   :  { %v3944_v24 = vsel %vm3023_vm9, %v3904_v19, %v3943_v34  ;;  %v11256_v41 = vpop.permute.xlu0 %4489  ;;  %4491 = vrot.lane.b32.xlu1 %v4468_v46, %s9129_s20  ;;  %v8859_v25 = vld [vmem:[#allocation4 + $0x270] ss:$52 sps:$4 sm:$0xff]   ;;  %v8861_v9 = vld [vmem:[#allocation4 + $0x274] ss:$52 sps:$4 sm:$0xff]  }
 0x38e   :  { %3976 = vst [vmem:[#allocation4 + $0x23c] sm:$0x11] %v3944_v24  ;;  %v4089_v47 = vsel %vm156_vm0, %v4081_v36, %v4082_v48  ;;  %v13718_v40 = vrot.slane %v11256_v41, 4  ;;  %5647 = vmatprep.subr.bf16.mxu0 %v8861_v9  ;;  %v11274_v46 = vld [vmem:[#allocation3 + $0x20] sm:$0x77] }
 0x38f   :  { %v4090_v28 = vsel %vm771_vm10, %v10888_v20, %v4089_v47  ;;  %2827 = vrot.lane.b32.xlu0 %v2810_v39, %s9127_s18  ;;  %v11268_v19 = vpop.permute.xlu1 %4477  ;;  %5648 = vmatpush1.bf16.msra.mxu0 %v8859_v25  ;;  %v4760_v24 = vld [vmem:[#allocation3 + $0x20] sm:$0x77]  ;;  %v4584_v47 = vrot.slane %v11274_v46, 6  ;;  %v4691_v46 = vld [vmem:[#allocation3 + $0x18] sm:$0x77] }
 0x390   :  { %4108 = vst [vmem:[#allocation4 + $0x278] sm:$0x77] %v4090_v28  ;;  %v4527_v29 = vsel %vm156_vm0, %v4508_v18, %v13718_v40  ;;  %v4503_v36 = vrot.slane %v11268_v19, 4  ;;  %v4469_v18 = vrot.slane %v4462_v3, 4 }
 0x391   :  { %v4528_v20 = vsel %vm13861_vm13, %v4488_v50, %v4527_v29  ;;  %v11277_v34 = vpop.permute.xlu0 %4611  ;;  %4613 = vrot.lane.b32.xlu1 %v4590_v31, %s9127_s18  ;;  %v11298_v31 = vld [vmem:[#allocation3 + $0x24] sm:$0x77]  ;;  %vm13862_vm13 = vmmov %vm13860_vm1 }
 0x392   :  { %4560 = vst [vmem:[#allocation4 + $0x340] sm:$0x33] %v4528_v20  ;;  %v4517_v9 = vsel %vm156_vm0, %v4502_v42, %v4503_v36  ;;  %v13716_v39 = vrot.slane %v11277_v34, 4 }
 0x393   :  { %v4518_v25 = vsel %vm13858_vm3, %v11035_v57, %v4517_v9  ;;  %4777 = vrot.lane.b32.xlu0 %v4760_v24, %s9150_s19  ;;  %v11289_v50 = vpop.permute.xlu1 %4072 }
 0x394   :  { %4554 = vst [vmem:[#allocation4 + $0x314] sm:$0x88] %v4518_v25  ;;  %v4649_v42 = vsel %vm156_vm0, %v4630_v54, %v13716_v39  ;;  %v13713_v28 = vrot.slane %v11289_v50, 4  ;;  %v8867_v25 = vld [vmem:[#allocation4 + $0x1a4] ss:$52 sps:$4 sm:$0xff]  }
 0x395   :  { %v4650_v57 = vsel %vm13859_vm15, %v4610_v44, %v4649_v42  ;;  %v4388_v29 = vpop.permute.xlu0 %4387  ;;  %4493 = vrot.lane.b32.xlu1 %v4469_v18, %s9129_s20  ;;  %v8862_v20 = vld [vmem:[#allocation4 + $0x208] ss:$52 sps:$4 sm:$0xff]   ;;  %v8864_v9 = vld [vmem:[#allocation4 + $0x20c] ss:$52 sps:$4 sm:$0xff]   ;;  %v4591_v44 = vrot.slane %v4584_v47, 4  ;;  %v4256_v18 = vrot.slane %v11298_v31, 6 }
 0x396   :  { %4682 = vst [vmem:[#allocation4 + $0x374] sm:$0x11] %v4650_v57  ;;  %v4091_v12 = vsel %vm156_vm0, %v4082_v48, %v13713_v28  ;;  %v4399_v3 = vrot.slane %v4388_v29, 4  ;;  %5649 = vmatprep.subr.bf16.mxu0 %v8864_v9  ;;  %v11386_v39 = vld [vmem:[#allocation3 + $0x24] sm:$0x77]  ;;  %vm13761_vm15 = vcmask 1042432  }
 0x397   :  { %v4092_v54 = vsel %vm771_vm10, %v4071_v55, %v4091_v12  ;;  %4599 = vrot.lane.b32.xlu0 %v4583_v0, %s9127_s18  ;;  %v11307_v24 = vpop.permute.xlu1 %4284  ;;  %5650 = vmatpush1.bf16.msra.mxu0 %v8862_v20  ;;  %v4705_v0 = vrot.slane %v4691_v46, 7  ;;  %v8865_v12 = vld [vmem:[#allocation4 + $0x1a0] ss:$52 sps:$4 sm:$0xff]   ;;  %v4263_v46 = vrot.slane %v4256_v18, 4 }
 0x398   :  { %4109 = vst [vmem:[#allocation4 + $0x280] sm:$0x77] %v4092_v54  ;;  %v4406_v42 = vsel %vm156_vm0, %v4398_v62, %v4399_v3  ;;  %v4303_v48 = vrot.slane %v11307_v24, 4  ;;  %5651 = vmatprep.subr.bf16.mxu0 %v8867_v25  ;;  %v8870_v54 = vld [vmem:[#allocation4 + $0x13c] ss:$52 sps:$4 sm:$0xff]  }
 0x399   :  { %v4407_v55 = vsel %vm3500_vm14, %v11015_v30, %v4406_v42  ;;  %v11316_v57 = vpop.permute.xlu0 %4146  ;;  %4615 = vrot.lane.b32.xlu1 %v4591_v44, %s9127_s18  ;;  %v11338_v25 = vld [vmem:[#allocation3 + $0x28] sm:$0x77] }
 0x39a   :  { %4425 = vst [vmem:[#allocation4 + $0x2e0] sm:$0xee] %v4407_v55  ;;  %v4323_v9 = vsel %vm156_vm0, %v4302_v33, %v4303_v48  ;;  %v4172_v62 = vrot.slane %v11316_v57, 4 }
 0x39b   :  { %v4324_v20 = vsel %vm3402_vm8, %v11211_v2, %v4323_v9  ;;  %4714 = vrot.lane.b32.xlu0 %v4705_v0, %s9152_s23  ;;  %v11328_v30 = vpop.permute.xlu1 %4389  ;;  %5652 = vmatpush1.bf16.msra.mxu0 %v8865_v12  ;;  %v8868_v0 = vld [vmem:[#allocation4 + $0x138] ss:$52 sps:$4 sm:$0xff]   ;;  %v4692_v9 = vld [vmem:[#allocation3 + $0x20] sm:$0x77] }
 0x39c   :  { %4356 = vst [vmem:[#allocation4 + $0x2e0] sm:$0x11] %v4324_v20  ;;  %v4186_v33 = vsel %vm156_vm0, %v4171_v38, %v4172_v62  ;;  %v13714_v44 = vrot.slane %v11328_v30, 4  ;;  %5653 = vmatprep.subr.bf16.mxu0 %v8870_v54  ;;  %v4367_v54 = vld [vmem:[#allocation3 + $0x2c] sm:$0x77] }
 0x39d   :  { %v4187_v2 = vsel %vm13860_vm1, %v11044_v10, %v4186_v33  ;;  %v11342_v42 = vpop.permute.xlu0 %4270  ;;  %4288 = vrot.lane.b32.xlu1 %v4263_v46, %s9149_s17  ;;  %v13715_v10 = vrot.slane %v11338_v25, 5  ;;  %v8873_v33 = vld [vmem:[#allocation4 + $0xd4] ss:$52 sps:$4 sm:$0xff]  }
 0x39e   :  { %4225 = vst [vmem:[#allocation4 + $0x278] sm:$0x88] %v4187_v2  ;;  %v4408_v55 = vsel %vm156_vm0, %v4399_v3, %v13714_v44  ;;  %v4296_v38 = vrot.slane %v11342_v42, 4  ;;  %v4706_v2 = vrot.slane %v4692_v9, 7 }
 0x39f   :  { %v4409_v12 = vsel %vm3500_vm14, %v4388_v29, %v4408_v55  ;;  %4601 = vrot.lane.b32.xlu0 %v4584_v47, %s9127_s18  ;;  %v11351_v20 = vpop.permute.xlu1 %4160  ;;  %5654 = vmatpush1.bf16.msra.mxu0 %v8868_v0  ;;  %v4366_v55 = vld [vmem:[#allocation3 + $0x24] sm:$0x77]  ;;  %v8871_v0 = vld [vmem:[#allocation4 + $0xd0] ss:$52 sps:$4 sm:$0xff]  }
 0x3a0   :  { %4426 = vst [vmem:[#allocation4 + $0x2e8] sm:$0xee] %v4409_v12  ;;  %v4310_v3 = vsel %vm156_vm0, %v4295_v1, %v4296_v38  ;;  %v4179_v46 = vrot.slane %v11351_v20, 4  ;;  %5655 = vmatprep.subr.bf16.mxu0 %v8873_v33  ;;  %v11367_v12 = vld [vmem:[#allocation3 + $0x2c] sm:$0x77]  ;;  %v4381_v33 = vrot.slane %v4367_v54, 7 }
 0x3a1   :  { %v4311_v29 = vsel %vm3402_vm8, %v11055_v52, %v4310_v3  ;;  %v11362_v47 = vpop.permute.xlu0 %3893  ;;  %4481 = vrot.lane.b32.xlu1 %v13715_v10, %s9129_s20  ;;  %v8876_v3 = vld [vmem:[#allocation4 + $0x6c] ss:$52 sps:$4 sm:$0xff]   ;;  %v13719_v54 = vrot.slane %v11367_v12, 6 }
 0x3a2   :  { %4349 = vst [vmem:[#allocation4 + $0x2ac] sm:$0xcc] %v4311_v29  ;;  %v4199_v1 = vsel %vm156_vm0, %v4178_v8, %v4179_v46  ;;  %v3919_v52 = vrot.slane %v11362_v47, 4 }
 0x3a3   :  { %v4200_v28 = vsel %vm13862_vm13, %v11220_v59, %v4199_v1  ;;  %4716 = vrot.lane.b32.xlu0 %v4706_v2, %s9152_s23  ;;  %v11378_v9 = vpop.permute.xlu1 %3785  ;;  %v8877_v44 = vld [vmem:[#allocation4 + $0x2e0] ss:$52 sps:$4 sm:$0xff]   ;;  %v8879_v29 = vld [vmem:[#allocation4 + $0x2e4] ss:$52 sps:$4 sm:$0xff]   ;;  %5656 = vmatpush1.bf16.msra.mxu0 %v8871_v0  ;;  %v8874_v0 = vld [vmem:[#allocation4 + $0x68] ss:$52 sps:$4 sm:$0xff]  }
 0x3a4   :  { %4232 = vst [vmem:[#allocation4 + $0x2ac] sm:$0x33] %v4200_v28  ;;  %v3933_v8 = vsel %vm156_vm0, %v3918_v32, %v3919_v52  ;;  %v3804_v10 = vrot.slane %v11378_v9, 4  ;;  %5657 = vmatprep.subr.bf16.mxu0 %v8876_v3  ;;  %v4380_v28 = vrot.slane %v4366_v55, 7  ;;  %5688 = vmatprep.subr.bf16.mxu1 %v8879_v29  ;;  %v8882_v3 = vld [vmem:[#allocation4 + $0x4] ss:$52 sps:$4 sm:$0xff]   ;;  %vm13863_vm13 = vmmov %vm13860_vm1 }
 0x3a5   :  { %v3934_v59 = vsel %vm3023_vm9, %v11064_v49, %v3933_v8  ;;  %v11390_v2 = vpop.permute.xlu0 %4479  ;;  %4393 = vrot.lane.b32.xlu1 %v4381_v33, %s9151_s22  ;;  %5689 = vmatpush1.bf16.msra.mxu1 %v8877_v44  ;;  %v4132_v33 = vrot.slane %v11386_v39, 5  ;;  %v4056_v8 = vld [vmem:[#allocation3 + $0x24] sm:$0x77] }
 0x3a6   :  { %3970 = vst [vmem:[#allocation4 + $0x210] sm:$0xcc] %v3934_v59  ;;  %v3823_v32 = vsel %vm156_vm0, %v3803_v14, %v3804_v10  ;;  %v13717_v1 = vrot.slane %v11390_v2, 4 }
 0x3a7   :  { %v3824_v49 = vsel %vm2960_vm11, %v11233_v15, %v3823_v32  ;;  %4391 = vrot.lane.b32.xlu0 %v4380_v28, %s9151_s22  ;;  %v11403_v55 = vpop.permute.xlu1 %3907  ;;  %5658 = vmatpush1.bf16.msra.mxu0 %v8874_v0  ;;  %v4946_v15 = vld [vmem:[#allocation4 + $0x3a8] sm:$0x77]  ;;  %v4264_v28 = vrot.slane %v13719_v54, 4  ;;  %v8880_v0 = vld [vmem:[#allocation4] ss:$52 sps:$4 sm:$0xff]  }
 0x3a8   :  { %3855 = vst [vmem:[#allocation4 + $0x210] sm:$0x33] %v3824_v49  ;;  %v4519_v14 = vsel %vm156_vm0, %v4503_v36, %v13717_v1  ;;  %v3926_v29 = vrot.slane %v11403_v55, 4  ;;  %5659 = vmatprep.subr.bf16.mxu0 %v8882_v3  ;;  %v11425_v49 = vld [vmem:[#allocation3 + $0x30] sm:$0x77]  ;;  %v8378_v40 = vcombine.low %v4946_v15, %v4946_v15 }
 0x3a9   :  { %v4520_v44 = vsel %vm13858_vm3, %v11268_v19, %v4519_v14  ;;  %v11414_v59 = vpop.permute.xlu0 %4148  ;;  %4074 = vrot.lane.b32.xlu1 %v4056_v8, %s9135_s26  ;;  %v4139_v14 = vrot.slane %v4132_v33, 4  ;;  %v8379_v8 = vcombine.high %v4946_v15, %v4946_v15  ;;  %v4464_v15 = vrot.slane %v11425_v49, 5 }
 0x3aa   :  { %4555 = vst [vmem:[#allocation4 + $0x31c] sm:$0x88] %v4520_v44  ;;  %v3945_v36 = vsel %vm156_vm0, %v3925_v51, %v3926_v29  ;;  %v13724_v32 = vrot.slane %v11414_v59, 4  ;;  %vm13865_vm3 = vcmask 523264  }
 0x3ab   :  { %v3946_v19 = vsel %vm3023_vm9, %v11244_v4, %v3945_v36  ;;  %4290 = vrot.lane.b32.xlu0 %v4264_v28, %s9149_s17  ;;  %v11430_v3 = vpop.permute.xlu1 %4162  ;;  %v8884_v44 = vld [vmem:[#allocation4 + $0x278] ss:$52 sps:$4 sm:$0xff]   ;;  %v8886_v1 = vld [vmem:[#allocation4 + $0x27c] ss:$52 sps:$4 sm:$0xff]   ;;  %5660 = vmatpush1.bf16.msra.mxu0 %v8880_v0 }
 0x3ac   :  { %3977 = vst [vmem:[#allocation4 + $0x244] sm:$0x11] %v3946_v19  ;;  %v4188_v51 = vsel %vm156_vm0, %v4172_v62, %v13724_v32  ;;  %v13738_v4 = vrot.slane %v11430_v3, 4  ;;  %v11440_v28 = vld [vmem:[#allocation3 + $0x2c] sm:$0x77]  ;;  %8391 = vmatprep.subr.msk.bf16.mxu0 %vm13761_vm15, %v8379_v8  ;;  %5690 = vmatprep.subr.bf16.mxu1 %v8886_v1 }
 0x3ad   :  { %v4189_v36 = vsel %vm13860_vm1, %v11316_v57, %v4188_v51  ;;  %v11444_v54 = vpop.permute.xlu0 %4272  ;;  %4164 = vrot.lane.b32.xlu1 %v4139_v14, %s9137_s28  ;;  %5691 = vmatpush1.bf16.msra.mxu1 %v8884_v44  ;;  %v5607_v14 = vsel %vm13761_vm15, %v8378_v40, 0  ;;  %v8890_v8 = vld [vmem:[#allocation4 + $0x344] ss:$52 sps:$4 sm:$0xff]   ;;  %v4133_v51 = vrot.slane %v11440_v28, 5  ;;  %v4057_v1 = vld [vmem:[#allocation3 + $0x2c] sm:$0x77] }
 0x3ae   :  { %4226 = vst [vmem:[#allocation4 + $0x280] sm:$0x88] %v4189_v36  ;;  %v4201_v62 = vsel %vm156_vm0, %v4179_v46, %v13738_v4  ;;  %v13723_v0 = vrot.slane %v11444_v54, 4  ;;  %v11470_v36 = vld [vmem:[#allocation3 + $0x24] sm:$0x77]  ;;  %vm13867_vm1 = vcmask 1031168  }
 0x3af   :  { %v4202_v57 = vsel %vm13863_vm13, %v11351_v20, %v4201_v62  ;;  %4483 = vrot.lane.b32.xlu0 %v4464_v15, %s9129_s20  ;;  %v11460_v19 = vpop.permute.xlu1 %3787  ;;  %5674 = vmatpush2.bf16.msra.mxu0 %v5607_v14  ;;  %v8888_v62 = vld [vmem:[#allocation4 + $0x340] ss:$52 sps:$4 sm:$0xff]   ;;  %v4140_v14 = vrot.slane %v4133_v51, 4  ;;  %vm13870_vm13 = vmmov %vm13865_vm3 }
 0x3b0   :  { %4233 = vst [vmem:[#allocation4 + $0x2b4] sm:$0x33] %v4202_v57  ;;  %v4312_v46 = vsel %vm156_vm0, %v4296_v38, %v13723_v0  ;;  %v13722_v20 = vrot.slane %v11460_v19, 4  ;;  %5675 = vmatprep.subr.bf16.mxu0 %v8890_v8  ;;  %v3757_v8 = vrot.slane %v11470_v36, 5 }
 0x3b1   :  { %v4313_v44 = vsel %vm3402_vm8, %v11342_v42, %v4312_v46  ;;  %v11474_v40 = vpop.permute.xlu0 %4286  ;;  %4076 = vrot.lane.b32.xlu1 %v4057_v1, %s9135_s26  ;;  %v11494_v46 = vld [vmem:[%s13673_s1 + $0x200] ss:$16 sps:$4 sm:$0xff]  }
 0x3b2   :  { %4350 = vst [vmem:[#allocation4 + $0x2b4] sm:$0xcc] %v4313_v44  ;;  %v3825_v38 = vsel %vm156_vm0, %v3804_v10, %v13722_v20  ;;  %v4304_v28 = vrot.slane %v11474_v40, 4 }
 0x3b3   :  { %v3826_v57 = vsel %vm2960_vm11, %v11378_v9, %v3825_v38  ;;  %4150 = vrot.lane.b32.xlu0 %v4132_v33, %s9137_s28  ;;  %v11488_v42 = vpop.permute.xlu1 %3909  ;;  %5676 = vmatpush2.bf16.msra.mxu0 %v8888_v62  ;;  %v3865_v9 = vld [vmem:[#allocation3 + $0x24] sm:$0x77] }
 0x3b4   :  { %3856 = vst [vmem:[#allocation4 + $0x218] sm:$0x33] %v3826_v57  ;;  %v4325_v10 = vsel %vm156_vm0, %v4303_v48, %v4304_v28  ;;  %v13721_v39 = vrot.slane %v11488_v42, 4  ;;  %v3879_v57 = vrot.slane %v3865_v9, 6  ;;  %v13866_v9 = vrot.slane %v11087_v17, 4 }
 0x3b5   :  { %v4326_v33 = vsel %vm3402_vm8, %v11307_v24, %v4325_v10  ;;  %v4009_v1 = vpop.permute.xlu0 %4008  ;;  %4166 = vrot.lane.b32.xlu1 %v4140_v14, %s9137_s28  ;;  %v3764_v24 = vrot.slane %v3757_v8, 4  ;;  %v13864_v14 = vrot.slane %v11075_v13, 4 }
 0x3b6   :  { %4357 = vst [vmem:[#allocation4 + $0x2e8] sm:$0x11] %v4326_v33  ;;  %v3947_v44 = vsel %vm156_vm0, %v3926_v29, %v13721_v39  ;;  %v4020_v38 = vrot.slane %v4009_v1, 4  ;;  %5678 = vmatmul.mubr.bf16.vlgmr.msra.gmra.mxu0 %v11494_v46 }
 0x3b7   :  { %v3948_v48 = vsel %vm3023_vm9, %v11403_v55, %v3947_v44  ;;  %4274 = vrot.lane.b32.xlu0 %v4256_v18, %s9149_s17  ;;  %v11515_v62 = vpop.permute.xlu1 %3635  ;;  %v11524_v55 = vld [vmem:[#allocation3 + $0x2c] sm:$0x77]  ;;  %8396 = vmatprep.mubr.msk.bf16.mxu0 %vm5601_vm7, %v11025_v53 }
 0x3b8   :  { %3978 = vst [vmem:[#allocation4 + $0x24c] sm:$0x11] %v3948_v48  ;;  %v4027_v29 = vsel %vm156_vm0, %v13864_v14, %v4020_v38  ;;  %v3647_v10 = vrot.slane %v11515_v62, 4  ;;  %v3758_v14 = vrot.slane %v11524_v55, 5 }
 0x3b9   :  { %v4028_v31 = vsel %vm13865_vm3, %v11075_v13, %v4027_v29  ;;  %v11530_v18 = vpop.permute.xlu0 %3895  ;;  %3789 = vrot.lane.b32.xlu1 %v3764_v24, %s9152_s23  ;;  %v3886_v13 = vrot.slane %v3879_v57, 4  ;;  %v8897_v32 = vld [vmem:[#allocation4 + $0x280] ss:$52 sps:$4 sm:$0xff]   ;;  %vm13872_vm3 = vcmask 1014784  }
 0x3ba   :  { %4046 = vst [vmem:[#allocation4 + $0x244] sm:$0xee] %v4028_v31  ;;  %v3654_v33 = vsel %vm156_vm0, %v13866_v9, %v3647_v10  ;;  %v13720_v44 = vrot.slane %v11530_v18, 4  ;;  %v11551_v31 = vld [vmem:[#allocation3 + $0x2c] sm:$0x77] }
 0x3bb   :  { %v3655_v48 = vsel %vm13867_vm1, %v11087_v17, %v3654_v33  ;;  %4152 = vrot.lane.b32.xlu0 %v4133_v51, %s9137_s28  ;;  %v11542_v53 = vpop.permute.xlu1 %3771  ;;  %v3880_v20 = vrot.slane %v11551_v31, 6  ;;  %v3987_v31 = vld [vmem:[#allocation3 + $0x24] sm:$0x77]  ;;  %vm13873_vm1 = vmmov %vm13872_vm3 }
 0x3bc   :  { %3672 = vst [vmem:[#allocation4 + $0x1a8] sm:$0xee] %v3655_v48  ;;  %v3935_v24 = vsel %vm156_vm0, %v3919_v52, %v13720_v44  ;;  %v3797_v29 = vrot.slane %v11542_v53, 4  ;;  %v13868_v48 = vrot.slane %v11100_v27, 4 }
 0x3bd   :  { %v3936_v17 = vsel %vm3023_vm9, %v11362_v47, %v3935_v24  ;;  %v11555_v51 = vpop.permute.xlu0 %4010  ;;  %3911 = vrot.lane.b32.xlu1 %v3886_v13, %s9150_s19  ;;  %v8893_v9 = vld [vmem:[#allocation4 + $0x2e8] ss:$52 sps:$4 sm:$0xff]   ;;  %v8895_v33 = vld [vmem:[#allocation4 + $0x2ec] ss:$52 sps:$4 sm:$0xff]   ;;  %v13869_v47 = vrot.slane %v11367_v12, 6  ;;  %v3765_v13 = vrot.slane %v3758_v14, 4 }
 0x3be   :  { %3971 = vst [vmem:[#allocation4 + $0x218] sm:$0xcc] %v3936_v17  ;;  %v3811_v52 = vsel %vm156_vm0, %v13868_v48, %v3797_v29  ;;  %v13725_v44 = vrot.slane %v11555_v51, 4  ;;  %5731 = vmatprep.subr.bf16.mxu0 %v8895_v33  ;;  %v8899_v17 = vld [vmem:[#allocation4 + $0x284] ss:$52 sps:$4 sm:$0xff]  }
 0x3bf   :  { %v3812_v39 = vsel %vm2960_vm11, %v11100_v27, %v3811_v52  ;;  %4276 = vrot.lane.b32.xlu0 %v13869_v47, %s9149_s17  ;;  %v11569_v24 = vpop.permute.xlu1 %3698  ;;  %5732 = vmatpush1.bf16.msra.mxu0 %v8893_v9 }
 0x3c0   :  { %3848 = vst [vmem:[#allocation4 + $0x1dc] sm:$0x88] %v3812_v39  ;;  %v4029_v48 = vsel %vm156_vm0, %v4020_v38, %v13725_v44  ;;  %5733 = vmatprep.subr.bf16.mxu0 %v8899_v17  ;;  %v13731_v47 = vrot.slane %v11569_v24, 4  ;;  %v3887_v38 = vrot.slane %v3880_v20, 4  ;;  %v4001_v44 = vrot.slane %v3987_v31, 7 }
 0x3c1   :  { %v4030_v27 = vsel %vm13870_vm13, %v4009_v1, %v4029_v48  ;;  %v3697_v52 = vpop.permute.xlu0 %3696  ;;  %3791 = vrot.lane.b32.xlu1 %v3765_v13, %s9152_s23  ;;  %v8900_v12 = vld [vmem:[#allocation4 + $0x210] ss:$52 sps:$4 sm:$0xff]   ;;  %v8902_v33 = vld [vmem:[#allocation4 + $0x214] ss:$52 sps:$4 sm:$0xff]   ;;  %v13871_v1 = vrot.slane %v10895_v56, 4  ;;  %vm13875_vm13 = vcmask 1031168  }
 0x3c2   :  { %4047 = vst [vmem:[#allocation4 + $0x24c] sm:$0xee] %v4030_v27  ;;  %v3708_v0 = vrot.slane %v3697_v52, 4  ;;  %5692 = vmatprep.subr.bf16.mxu1 %v8902_v33  ;;  %v3614_v48 = vld [vmem:[#allocation3 + $0x24] sm:$0x77] }
 0x3c3   :  { %3897 = vrot.lane.b32.xlu0 %v3879_v57, %s9150_s19  ;;  %v11581_v39 = vpop.permute.xlu1 %3384  ;;  %5693 = vmatpush1.bf16.msra.mxu1 %v8900_v12 }
 0x3c4   :  { %v3715_v9 = vsel %vm156_vm0, %v13871_v1, %v3708_v0  ;;  %v3717_v13 = vsel %vm156_vm0, %v3708_v0, %v13731_v47  ;;  %v3396_v17 = vrot.slane %v11581_v39, 4  ;;  %5734 = vmatpush1.bf16.msra.mxu0 %v8897_v32  ;;  %v13874_v0 = vrot.slane %v10861_v6, 4 }
 0x3c5   :  { %v3716_v57 = vsel %vm13872_vm3, %v10895_v56, %v3715_v9  ;;  %v3718_v27 = vsel %vm13873_vm1, %v3697_v52, %v3717_v13  ;;  %v11593_v33 = vpop.permute.xlu0 %3637  ;;  %3913 = vrot.lane.b32.xlu1 %v3887_v38, %s9150_s19  ;;  %v3628_v1 = vrot.slane %v3614_v48, 7  ;;  %v13876_v48 = vrot.slane %v11110_v43, 4 }
 0x3c6   :  { %3733 = vst [vmem:[#allocation4 + $0x1dc] sm:$0x77] %v3716_v57  ;;  %3734 = vst [vmem:[#allocation4 + $0x1e4] sm:$0x77] %v3718_v27  ;;  %v3404_v12 = vsel %vm156_vm0, %v13874_v0, %v3396_v17  ;;  %v13737_v32 = vrot.slane %v11593_v33, 4  ;;  %vm13879_vm3 = vcmask 523264  }
 0x3c7   :  { %v3405_v56 = vsel %vm3402_vm8, %v10861_v6, %v3404_v12  ;;  %4012 = vrot.lane.b32.xlu0 %v4001_v44, %s9141_s6  ;;  %v11605_v52 = vpop.permute.xlu1 %3475  ;;  %v3988_v27 = vld [vmem:[#allocation3 + $0x2c] sm:$0x77]  ;;  %vm13881_vm1 = vmmov %vm13879_vm3 }
 0x3c8   :  { %3423 = vst [vmem:[#allocation4 + $0x140] sm:$0x77] %v3405_v56  ;;  %v3656_v31 = vsel %vm156_vm0, %v3647_v10, %v13737_v32  ;;  %v3494_v38 = vrot.slane %v11605_v52, 4 }
 0x3c9   :  { %v3657_v9 = vsel %vm13875_vm13, %v11515_v62, %v3656_v31  ;;  %v11615_v13 = vpop.permute.xlu0 %3773  ;;  %3639 = vrot.lane.b32.xlu1 %v3628_v1, %s9129_s20  ;;  %v8903_v6 = vld [vmem:[#allocation4 + $0x218] ss:$52 sps:$4 sm:$0xff]   ;;  %v8905_v44 = vld [vmem:[#allocation4 + $0x21c] ss:$52 sps:$4 sm:$0xff]   ;;  %vm13884_vm13 = vcmask 490496  }
 0x3ca   :  { %3673 = vst [vmem:[#allocation4 + $0x1b0] sm:$0xee] %v3657_v9  ;;  %v3515_v57 = vsel %vm156_vm0, %v13876_v48, %v3494_v38  ;;  %v13732_v10 = vrot.slane %v11615_v13, 4  ;;  %5735 = vmatprep.subr.bf16.mxu0 %v8905_v44 }
 0x3cb   :  { %v3516_v0 = vsel %vm3500_vm14, %v11110_v43, %v3515_v57  ;;  %3899 = vrot.lane.b32.xlu0 %v3880_v20, %s9150_s19  ;;  %v11627_v62 = vpop.permute.xlu1 %3463  ;;  %5736 = vmatpush1.bf16.msra.mxu0 %v8903_v6  ;;  %v4002_v43 = vrot.slane %v3988_v27, 7  ;;  %v3683_v6 = vld [vmem:[#allocation3 + $0x2c] sm:$0x77]  ;;  %v11647_v57 = vld [vmem:[#allocation3 + $0x20] sm:$0x77] }
 0x3cc   :  { %3548 = vst [vmem:[#allocation4 + $0x174] sm:$0x33] %v3516_v0  ;;  %v3813_v12 = vsel %vm156_vm0, %v3797_v29, %v13732_v10  ;;  %v13726_v9 = vrot.slane %v11627_v62, 4  ;;  %v13877_v29 = vrot.slane %v10905_v60, 4 }
 0x3cd   :  { %v3814_v56 = vsel %vm2960_vm11, %v11542_v53, %v3813_v12  ;;  %v3462_v1 = vpop.permute.xlu0 %3461  ;;  %3775 = vrot.lane.b32.xlu1 %v3757_v8, %s9152_s23  ;;  %v8906_v20 = vld [vmem:[#allocation4 + $0x1a8] ss:$52 sps:$4 sm:$0xff]   ;;  %v8908_v31 = vld [vmem:[#allocation4 + $0x1ac] ss:$52 sps:$4 sm:$0xff]  }
 0x3ce   :  { %3849 = vst [vmem:[#allocation4 + $0x1e4] sm:$0x88] %v3814_v56  ;;  %v3487_v44 = vrot.slane %v3462_v1, 4  ;;  %5694 = vmatprep.subr.bf16.mxu1 %v8908_v31  ;;  %v13878_v56 = vrot.slane %v11130_v11, 4 }
 0x3cf   :  { %4014 = vrot.lane.b32.xlu0 %v4002_v43, %s9141_s6  ;;  %v3096_v48 = vpop.permute.xlu1 %3095  ;;  %5695 = vmatpush1.bf16.msra.mxu1 %v8906_v20  ;;  %v3682_v20 = vld [vmem:[#allocation3 + $0x24] sm:$0x77] }
 0x3d0   :  { %v3502_v53 = vsel %vm156_vm0, %v13877_v29, %v3487_v44  ;;  %v3504_v36 = vsel %vm156_vm0, %v3487_v44, %v13726_v9  ;;  %v3114_v8 = vrot.slane %v3096_v48, 4  ;;  %v3615_v44 = vld [vmem:[#allocation3 + $0x2c] sm:$0x77] }
 0x3d1   :  { %v3503_v27 = vsel %vm3500_vm14, %v10905_v60, %v3502_v53  ;;  %v3505_v0 = vsel %vm3500_vm14, %v3462_v1, %v3504_v36  ;;  %v11652_v12 = vpop.permute.xlu0 %3386  ;;  %3702 = vrot.lane.b32.xlu1 %v3683_v6, %s9127_s18  ;;  %v3447_v1 = vrot.slane %v11647_v57, 5  ;;  %v3370_v6 = vld [vmem:[#allocation3 + $0x20] sm:$0x77]  ;;  %v13880_v57 = vrot.slane %v11147_v7, 4 }
 0x3d2   :  { %3541 = vst [vmem:[#allocation4 + $0x140] sm:$0x88] %v3503_v27  ;;  %3542 = vst [vmem:[#allocation4 + $0x148] sm:$0x88] %v3505_v0  ;;  %v3134_v43 = vsel %vm156_vm0, %v13878_v56, %v3114_v8  ;;  %v13730_v31 = vrot.slane %v11652_v12, 4 }
 0x3d3   :  { %v3135_v29 = vsel %vm13879_vm3, %v11130_v11, %v3134_v43  ;;  %3700 = vrot.lane.b32.xlu0 %v3682_v20, %s9127_s18  ;;  %v3220_v60 = vpop.permute.xlu1 %3219  ;;  %v3629_v11 = vrot.slane %v3615_v44, 7  ;;  %vm13886_vm3 = vcmask 1014784  }
 0x3d4   :  { %3167 = vst [vmem:[#allocation4 + $0xd8] sm:$0x33] %v3135_v29  ;;  %v3406_v53 = vsel %vm156_vm0, %v3396_v17, %v13730_v31  ;;  %v3238_v36 = vrot.slane %v3220_v60, 4 }
 0x3d5   :  { %v3407_v27 = vsel %vm3402_vm8, %v11581_v39, %v3406_v53  ;;  %v11670_v0 = vpop.permute.xlu0 %3477  ;;  %3388 = vrot.lane.b32.xlu1 %v3370_v6, %s9149_s17  ;;  %v8909_v56 = vld [vmem:[#allocation4 + $0x1b0] ss:$52 sps:$4 sm:$0xff]   ;;  %v8911_v43 = vld [vmem:[#allocation4 + $0x1b4] ss:$52 sps:$4 sm:$0xff]   ;;  %v3454_v53 = vrot.slane %v3447_v1, 4 }
 0x3d6   :  { %3424 = vst [vmem:[#allocation4 + $0x148] sm:$0x77] %v3407_v27  ;;  %v3258_v20 = vsel %vm156_vm0, %v13880_v57, %v3238_v36  ;;  %v13729_v29 = vrot.slane %v11670_v0, 4  ;;  %5737 = vmatprep.subr.bf16.mxu0 %v8911_v43  ;;  %v3434_v27 = vld [vmem:[#allocation3 + $0x28] sm:$0x77] }
 0x3d7   :  { %v3259_v17 = vsel %vm771_vm10, %v11147_v7, %v3258_v20  ;;  %3641 = vrot.lane.b32.xlu0 %v3629_v11, %s9129_s20  ;;  %v11680_v39 = vpop.permute.xlu1 %3097  ;;  %5738 = vmatpush1.bf16.msra.mxu0 %v8909_v56  ;;  %v11688_v57 = vld [vmem:[#allocation3 + $0x20] sm:$0x77] }
 0x3d8   :  { %3291 = vst [vmem:[#allocation4 + $0x10c] sm:$0x11] %v3259_v17  ;;  %v3517_v44 = vsel %vm156_vm0, %v3494_v38, %v13729_v29  ;;  %v13727_v6 = vrot.slane %v11680_v39, 4 }
 0x3d9   :  { %v3518_v7 = vsel %vm3500_vm14, %v11605_v52, %v3517_v44  ;;  %v3206_v11 = vpop.permute.xlu0 %3205  ;;  %3479 = vrot.lane.b32.xlu1 %v3454_v53, %s9151_s22  ;;  %v8912_v43 = vld [vmem:[#allocation4 + $0x140] ss:$52 sps:$4 sm:$0xff]   ;;  %v8914_v20 = vld [vmem:[#allocation4 + $0x144] ss:$52 sps:$4 sm:$0xff]   ;;  %v3448_v52 = vrot.slane %v3434_v27, 5  ;;  %v3067_v53 = vrot.slane %v11688_v57, 5 }
 0x3da   :  { %3549 = vst [vmem:[#allocation4 + $0x17c] sm:$0x33] %v3518_v7  ;;  %v3136_v17 = vsel %vm156_vm0, %v3114_v8, %v13727_v6  ;;  %v3231_v38 = vrot.slane %v3206_v11, 4  ;;  %5696 = vmatprep.subr.bf16.mxu1 %v8914_v20  ;;  %v13882_v44 = vrot.slane %v10918_v26, 4  ;;  %v11707_v6 = vld [vmem:[#allocation3 + $0x20] sm:$0x77] }
 0x3db   :  { %v3137_v9 = vsel %vm13881_vm1, %v3096_v48, %v3136_v17  ;;  %3777 = vrot.lane.b32.xlu0 %v3758_v14, %s9152_s23  ;;  %v11700_v56 = vpop.permute.xlu1 %3221  ;;  %5697 = vmatpush1.bf16.msra.mxu1 %v8912_v43  ;;  %v3074_v43 = vrot.slane %v3067_v53, 4  ;;  %v3191_v17 = vrot.slane %v11707_v6, 6  ;;  %v13885_v6 = vrot.slane %v11166_v61, 4  ;;  %vm13888_vm1 = vmmov %vm13884_vm13 }
 0x3dc   :  { %3168 = vst [vmem:[#allocation4 + $0xe0] sm:$0x33] %v3137_v9  ;;  %v3245_v7 = vsel %vm156_vm0, %v13882_v44, %v3231_v38  ;;  %v13728_v8 = vrot.slane %v11700_v56, 4 }
 0x3dd   :  { %v3246_v55 = vsel %vm771_vm10, %v10918_v26, %v3245_v7  ;;  %v3323_v14 = vpop.permute.xlu0 %3322  ;;  %3467 = vrot.lane.b32.xlu1 %v3448_v52, %s9151_s22  ;;  %v13883_v26 = vrot.slane %v10931_v23, 4 }
 0x3de   :  { %3284 = vst [vmem:[#allocation4 + $0xd8] sm:$0xcc] %v3246_v55  ;;  %v3260_v9 = vsel %vm156_vm0, %v3238_v36, %v13728_v8  ;;  %v3334_v48 = vrot.slane %v3323_v14, 4  ;;  %v11723_v55 = vld [vmem:[#allocation3 + $0x28] sm:$0x77] }
 0x3df   :  { %v3261_v27 = vsel %vm771_vm10, %v3220_v60, %v3260_v9  ;;  %3465 = vrot.lane.b32.xlu0 %v3447_v1, %s9151_s22  ;;  %v2840_v20 = vpop.permute.xlu1 %2839 }
 0x3e0   :  { %3292 = vst [vmem:[#allocation4 + $0x114] sm:$0x11] %v3261_v27  ;;  %v3341_v44 = vsel %vm156_vm0, %v13883_v26, %v3334_v48  ;;  %v2858_v7 = vrot.slane %v2840_v20, 4  ;;  %v3371_v26 = vld [vmem:[#allocation3 + $0x28] sm:$0x77] }
 0x3e1   :  { %v3342_v36 = vsel %vm13884_vm13, %v10931_v23, %v3341_v44  ;;  %v11727_v60 = vpop.permute.xlu0 %3207  ;;  %3099 = vrot.lane.b32.xlu1 %v3074_v43, %s9141_s6  ;;  %v8915_v1 = vld [vmem:[#allocation4 + $0x148] ss:$52 sps:$4 sm:$0xff]   ;;  %v8917_v9 = vld [vmem:[#allocation4 + $0x14c] ss:$52 sps:$4 sm:$0xff]   ;;  %v3198_v44 = vrot.slane %v3191_v17, 4  ;;  %v3068_v43 = vrot.slane %v11723_v55, 5  ;;  %vm13889_vm13 = vmmov %vm13886_vm3 }
 0x3e2   :  { %3360 = vst [vmem:[#allocation4 + $0x10c] sm:$0xee] %v3342_v36  ;;  %v2877_v27 = vsel %vm156_vm0, %v13885_v6, %v2858_v7  ;;  %v13734_v8 = vrot.slane %v11727_v60, 4  ;;  %5739 = vmatprep.subr.bf16.mxu0 %v8917_v9  ;;  %v3178_v6 = vld [vmem:[#allocation3 + $0x28] sm:$0x77]  ;;  %v13887_v9 = vrot.slane %v10876_v5, 4 }
 0x3e3   :  { %v2878_v29 = vsel %vm13886_vm3, %v11166_v61, %v2877_v27  ;;  %3390 = vrot.lane.b32.xlu0 %v3371_v26, %s9149_s17  ;;  %v3006_v23 = vpop.permute.xlu1 %3005  ;;  %5740 = vmatpush1.bf16.msra.mxu0 %v8915_v1  ;;  %v3455_v61 = vrot.slane %v3448_v52, 4  ;;  %v3192_v26 = vrot.slane %v3178_v6, 6  ;;  %vm13892_vm3 = vcmask 523264  }
 0x3e4   :  { %2910 = vst [vmem:[#allocation4 + $0x70] sm:$0x11] %v2878_v29  ;;  %v3247_v36 = vsel %vm156_vm0, %v3231_v38, %v13734_v8  ;;  %v3017_v31 = vrot.slane %v3006_v23, 4 }
 0x3e5   :  { %v3248_v47 = vsel %vm771_vm10, %v3206_v11, %v3247_v36  ;;  %v11742_v10 = vpop.permute.xlu0 %3324  ;;  %3223 = vrot.lane.b32.xlu1 %v3198_v44, %s9135_s26  ;;  %v3075_v11 = vrot.slane %v3068_v43, 4  ;;  %v11760_v44 = vld [vmem:[#allocation3 + $0x20] sm:$0x77] }
 0x3e6   :  { %3285 = vst [vmem:[#allocation4 + $0xe0] sm:$0xcc] %v3248_v47  ;;  %v3025_v27 = vsel %vm156_vm0, %v13887_v9, %v3017_v31  ;;  %v13733_v29 = vrot.slane %v11742_v10, 4 }
 0x3e7   :  { %v3026_v38 = vsel %vm3023_vm9, %v10876_v5, %v3025_v27  ;;  %3481 = vrot.lane.b32.xlu0 %v3455_v61, %s9151_s22  ;;  %v11752_v1 = vpop.permute.xlu1 %2841 }
 0x3e8   :  { %3043 = vst [vmem:[#allocation4 + $0xa4] sm:$0x77] %v3026_v38  ;;  %v3343_v47 = vsel %vm156_vm0, %v3334_v48, %v13733_v29  ;;  %v13736_v52 = vrot.slane %v11752_v1, 4  ;;  %v3301_v38 = vld [vmem:[#allocation3 + $0x20] sm:$0x77] }
 0x3e9   :  { %v3344_v36 = vsel %vm13888_vm1, %v3323_v14, %v3343_v47  ;;  %v2943_v5 = vpop.permute.xlu0 %2942  ;;  %3101 = vrot.lane.b32.xlu1 %v3075_v11, %s9141_s6  ;;  %v8918_v61 = vld [vmem:[#allocation4 + $0xd8] ss:$52 sps:$4 sm:$0xff]   ;;  %v8920_v9 = vld [vmem:[#allocation4 + $0xdc] ss:$52 sps:$4 sm:$0xff]   ;;  %v3199_v14 = vrot.slane %v3192_v26, 4  ;;  %v2811_v47 = vrot.slane %v11760_v44, 6 }
 0x3ea   :  { %3361 = vst [vmem:[#allocation4 + $0x114] sm:$0xee] %v3344_v36  ;;  %v2879_v6 = vsel %vm156_vm0, %v2858_v7, %v13736_v52  ;;  %v2954_v27 = vrot.slane %v2943_v5, 4  ;;  %5698 = vmatprep.subr.bf16.mxu1 %v8920_v9  ;;  %v13890_v11 = vrot.slane %v10943_v16, 4  ;;  %vm13894_vm1 = vcmask 1031168  }
 0x3eb   :  { %v2880_v48 = vsel %vm13889_vm13, %v2840_v20, %v2879_v6  ;;  %3209 = vrot.lane.b32.xlu0 %v3191_v17, %s9135_s26  ;;  %v11769_v29 = vpop.permute.xlu1 %3007  ;;  %5699 = vmatpush1.bf16.msra.mxu1 %v8918_v61  ;;  %v3315_v17 = vrot.slane %v3301_v38, 7  ;;  %v2818_v61 = vrot.slane %v2811_v47, 4 }
 0x3ec   :  { %2911 = vst [vmem:[#allocation4 + $0x78] sm:$0x11] %v2880_v48  ;;  %v2962_v36 = vsel %vm156_vm0, %v13890_v11, %v2954_v27  ;;  %v13735_v8 = vrot.slane %v11769_v29, 4 }
 0x3ed   :  { %v2963_v7 = vsel %vm2960_vm11, %v10943_v16, %v2962_v36  ;;  %v3082_v20 = vpop.permute.xlu0 %3081  ;;  %3225 = vrot.lane.b32.xlu1 %v3199_v14, %s9135_s26  ;;  %v13891_v16 = vrot.slane %v10958_v37, 4  ;;  %v11792_v36 = vld [vmem:[#allocation3 + $0x28] sm:$0x77] }
 0x3ee   :  { %2980 = vst [vmem:[#allocation4 + $0x70] sm:$0xee] %v2963_v7  ;;  %v3027_v9 = vsel %vm156_vm0, %v3017_v31, %v13735_v8  ;;  %v3107_v6 = vrot.slane %v3082_v20, 4  ;;  %v3302_v8 = vld [vmem:[#allocation3 + $0x28] sm:$0x77] }
 0x3ef   :  { %v3028_v48 = vsel %vm3023_vm9, %v3006_v23, %v3027_v9  ;;  %3326 = vrot.lane.b32.xlu0 %v3315_v17, %s9137_s28  ;;  %v11784_v11 = vpop.permute.xlu1 %2701  ;;  %v13893_v9 = vrot.slane %v10976_v21, 4 }
 0x3f0   :  { %3044 = vst [vmem:[#allocation4 + $0xac] sm:$0x77] %v3028_v48  ;;  %v3121_v38 = vsel %vm156_vm0, %v13891_v16, %v3107_v6  ;;  %v2727_v14 = vrot.slane %v11784_v11, 4 }
 0x3f1   :  { %v3122_v31 = vsel %vm13892_vm3, %v10958_v37, %v3121_v38  ;;  %v11796_v23 = vpop.permute.xlu0 %2944  ;;  %2843 = vrot.lane.b32.xlu1 %v2818_v61, %s9127_s18  ;;  %v8921_v7 = vld [vmem:[#allocation4 + $0xe0] ss:$52 sps:$4 sm:$0xff]   ;;  %v8923_v17 = vld [vmem:[#allocation4 + $0xe4] ss:$52 sps:$4 sm:$0xff]   ;;  %v2812_v61 = vrot.slane %v11792_v36, 6 }
 0x3f2   :  { %3160 = vst [vmem:[#allocation4 + $0xa4] sm:$0x88] %v3122_v31  ;;  %v2741_v48 = vsel %vm156_vm0, %v13893_v9, %v2727_v14  ;;  %v13739_v16 = vrot.slane %v11796_v23, 4  ;;  %5741 = vmatprep.subr.bf16.mxu0 %v8923_v17  ;;  %v2991_v9 = vld [vmem:[#allocation3 + $0x20] sm:$0x77] }
 0x3f3   :  { %v2742_v52 = vsel %vm13894_vm1, %v10976_v21, %v2741_v48  ;;  %3211 = vrot.lane.b32.xlu0 %v3192_v26, %s9135_s26  ;;  %v11808_v37 = vpop.permute.xlu1 %2825  ;;  %5742 = vmatpush1.bf16.msra.mxu0 %v8921_v7  ;;  %v3316_v21 = vrot.slane %v3302_v8, 7  ;;  %v13895_v26 = vrot.slane %v10992_v63, 4  ;;  %v2921_v17 = vld [vmem:[#allocation3 + $0x20] sm:$0x77]  ;;  %v2819_v8 = vrot.slane %v2812_v61, 4 }
 0x3f4   :  { %2778 = vst [vmem:[#allocation4 + $0x8] sm:$0x88] %v2742_v52  ;;  %v2964_v38 = vsel %vm156_vm0, %v2954_v27, %v13739_v16  ;;  %v2851_v31 = vrot.slane %v11808_v37, 4 }
 0x3f5   :  { %v2965_v32 = vsel %vm2960_vm11, %v2943_v5, %v2964_v38  ;;  %v11816_v4 = vpop.permute.xlu0 %3083  ;;  %3009 = vrot.lane.b32.xlu1 %v2991_v9, %s9150_s19  ;;  %v2935_v9 = vrot.slane %v2921_v17, 7 }
 0x3f6   :  { %2981 = vst [vmem:[#allocation4 + $0x78] sm:$0xee] %v2965_v32  ;;  %v2865_v52 = vsel %vm156_vm0, %v13895_v26, %v2851_v31  ;;  %v13740_v27 = vrot.slane %v11816_v4, 4 }
 0x3f7   :  { %v2866_v7 = vsel %vm13889_vm13, %v10992_v63, %v2865_v52  ;;  %3328 = vrot.lane.b32.xlu0 %v3316_v21, %s9137_s28  ;;  %v11828_v5 = vpop.permute.xlu1 %2717  ;;  %vm13897_vm13 = vmmov %vm13894_vm1 }
 0x3f8   :  { %2902 = vst [vmem:[#allocation4 + $0x3c] sm:$0xcc] %v2866_v7  ;;  %v3123_v32 = vsel %vm156_vm0, %v3107_v6, %v13740_v27  ;;  %v13741_v21 = vrot.slane %v11828_v5, 4  ;;  %v13896_v7 = vrot.slane %v11178_v22, 4 }
 0x3f9   :  { %v3124_v48 = vsel %vm13892_vm3, %v3082_v20, %v3123_v32  ;;  %v2716_v38 = vpop.permute.xlu0 %2715  ;;  %2845 = vrot.lane.b32.xlu1 %v2819_v8, %s9127_s18  ;;  %v8924_v26 = vld [vmem:[#allocation4 + $0x70] ss:$52 sps:$4 sm:$0xff]   ;;  %v8926_v63 = vld [vmem:[#allocation4 + $0x74] ss:$52 sps:$4 sm:$0xff]   ;;  %vm13899_vm3 = vmmov %vm13894_vm1 }
 0x3fa   :  { %3161 = vst [vmem:[#allocation4 + $0xac] sm:$0x88] %v3124_v48  ;;  %v2734_v52 = vrot.slane %v2716_v38, 4  ;;  %5700 = vmatprep.subr.bf16.mxu1 %v8926_v63  ;;  %v2992_v8 = vld [vmem:[#allocation3 + $0x28] sm:$0x77]  ;;  %v13898_v63 = vrot.slane %v11008_v58, 4 }
 0x3fb   :  { %2946 = vrot.lane.b32.xlu0 %v2935_v9, %s9152_s23  ;;  %v11839_v16 = vpop.permute.xlu1 %4775  ;;  %5701 = vmatpush1.bf16.msra.mxu1 %v8924_v26  ;;  %v2673_v32 = vld [vmem:[#allocation3 + $0x20] sm:$0x77] }
 0x3fc   :  { %v2753_v6 = vsel %vm156_vm0, %v13896_v7, %v2734_v52  ;;  %v2755_v20 = vsel %vm156_vm0, %v2734_v52, %v13741_v21  ;;  %v4787_v17 = vrot.slane %v11839_v16, 4  ;;  %v2922_v21 = vld [vmem:[#allocation3 + $0x28] sm:$0x77] }
 0x3fd   :  { %v2754_v48 = vsel %vm13894_vm1, %v11178_v22, %v2753_v6  ;;  %v2756_v9 = vsel %vm13897_vm13, %v2716_v38, %v2755_v20  ;;  %v11851_v27 = vpop.permute.xlu0 %2703  ;;  %3011 = vrot.lane.b32.xlu1 %v2992_v8, %s9150_s19  ;;  %v2687_v38 = vrot.slane %v2673_v32, 5  ;;  %v11868_v8 = vld [vmem:[#allocation3 + $0x28] sm:$0x77]  ;;  %v2936_v57 = vrot.slane %v2922_v21, 7 }
 0x3fe   :  { %2786 = vst [vmem:[#allocation4 + $0x3c] sm:$0x33] %v2754_v48  ;;  %2787 = vst [vmem:[#allocation4 + $0x44] sm:$0x33] %v2756_v9  ;;  %v4794_v52 = vsel %vm156_vm0, %v13898_v63, %v4787_v17  ;;  %v2728_v7 = vrot.slane %v11851_v27, 4  ;;  %v13900_v9 = vrot.slane %v11256_v41, 4 }
 0x3ff   :  { %v4795_v26 = vsel %vm3023_vm9, %v11008_v58, %v4794_v52  ;;  %3085 = vrot.lane.b32.xlu0 %v3067_v53, %s9141_s6  ;;  %v4492_v22 = vpop.permute.xlu1 %4491  ;;  %vm13901_vm13 = vcmask 1014784  }
 0x400   :  { %4812 = vst [vmem:[#allocation4 + $0x3b0] sm:$0x77] %v4795_v26  ;;  %v2743_v6 = vsel %vm156_vm0, %v2727_v14, %v2728_v7  ;;  %v4510_v20 = vrot.slane %v4492_v22, 4  ;;  %v2688_v26 = vrot.slane %v11868_v8, 5 }
 0x401   :  { %v2744_v48 = vsel %vm13899_vm3, %v11784_v11, %v2743_v6  ;;  %v11872_v58 = vpop.permute.xlu0 %2827  ;;  %2705 = vrot.lane.b32.xlu1 %v2687_v38, %s9129_s20  ;;  %v8927_v53 = vld [vmem:[#allocation4 + $0x78] ss:$52 sps:$4 sm:$0xff]   ;;  %v8929_v32 = vld [vmem:[#allocation4 + $0x7c] ss:$52 sps:$4 sm:$0xff]   ;;  %vm13903_vm3 = vmmov %vm13901_vm13 }
 0x402   :  { %2779 = vst [vmem:[#allocation4 + $0x10] sm:$0x88] %v2744_v48  ;;  %v4529_v63 = vsel %vm156_vm0, %v13900_v9, %v4510_v20  ;;  %v2852_v14 = vrot.slane %v11872_v58, 4  ;;  %5743 = vmatprep.subr.bf16.mxu0 %v8929_v32  ;;  %v2695_v44 = vrot.slane %v2688_v26, 4 }
 0x403   :  { %v4530_v52 = vsel %vm13894_vm1, %v11256_v41, %v4529_v63  ;;  %2948 = vrot.lane.b32.xlu0 %v2936_v57, %s9152_s23  ;;  %v4614_v11 = vpop.permute.xlu1 %4613  ;;  %5744 = vmatpush1.bf16.msra.mxu0 %v8927_v53  ;;  %v13902_v57 = vrot.slane %v11277_v34, 4 }
 0x404   :  { %4561 = vst [vmem:[#allocation4 + $0x348] sm:$0x33] %v4530_v52  ;;  %v2867_v21 = vsel %vm156_vm0, %v2851_v31, %v2852_v14  ;;  %v4632_v6 = vrot.slane %v4614_v11, 4 }
 0x405   :  { %v2868_v48 = vsel %vm13901_vm13, %v11808_v37, %v2867_v21  ;;  %v11890_v9 = vpop.permute.xlu0 %4777  ;;  %2829 = vrot.lane.b32.xlu1 %v2811_v47, %s9127_s18  ;;  %v8930_v41 = vld [vmem:[#allocation4 + $0x8] ss:$52 sps:$4 sm:$0xff]   ;;  %v8932_v8 = vld [vmem:[#allocation4 + $0xc] ss:$52 sps:$4 sm:$0xff]   ;;  %vm13905_vm13 = vmmov %vm13903_vm3 }
 0x406   :  { %2903 = vst [vmem:[#allocation4 + $0x44] sm:$0xcc] %v2868_v48  ;;  %v4651_v32 = vsel %vm156_vm0, %v13902_v57, %v4632_v6  ;;  %v4788_v31 = vrot.slane %v11890_v9, 4  ;;  %5702 = vmatprep.subr.bf16.mxu1 %v8932_v8 }
 0x407   :  { %v4652_v53 = vsel %vm13903_vm3, %v11277_v34, %v4651_v32  ;;  %3087 = vrot.lane.b32.xlu0 %v3068_v43, %s9141_s6  ;;  %v11904_v37 = vpop.permute.xlu1 %4493  ;;  %v4947_v47 = vld [vmem:[#allocation4 + $0x3b0] sm:$0x77]  ;;  %5703 = vmatpush1.bf16.msra.mxu1 %v8930_v41  ;;  %v2694_v43 = vrot.slane %v2687_v38, 4 }
 0x408   :  { %4683 = vst [vmem:[#allocation4 + $0x37c] sm:$0x11] %v4652_v53  ;;  %v4796_v63 = vsel %vm156_vm0, %v4787_v17, %v4788_v31  ;;  %v4511_v52 = vrot.slane %v11904_v37, 4  ;;  %v8381_v21 = vcombine.high %v4947_v47, %v4947_v47  ;;  %v8380_v48 = vcombine.low %v4947_v47, %v4947_v47 }
 0x409   :  { %v4797_v34 = vsel %vm3023_vm9, %v11839_v16, %v4796_v63  ;;  %v4600_v55 = vpop.permute.xlu0 %4599  ;;  %2721 = vrot.lane.b32.xlu1 %v2695_v44, %s9129_s20  ;;  %v13904_v16 = vrot.slane %v11191_v35, 4  ;;  %v4761_v44 = vld [vmem:[#allocation3 + $0x28] sm:$0x77] }
 0x40a   :  { %4813 = vst [vmem:[#allocation4 + $0x3b8] sm:$0x77] %v4797_v34  ;;  %v4531_v8 = vsel %vm156_vm0, %v4510_v20, %v4511_v52  ;;  %v4625_v57 = vrot.slane %v4600_v55, 4  ;;  %8393 = vmatprep.subr.msk.bf16.mxu1 %vm13761_vm15, %v8381_v21  ;;  %v5613_v17 = vsel %vm13761_vm15, %v8380_v48, 0  ;;  %v11926_v20 = vld [vmem:[#allocation3 + $0x28] sm:$0x77] }
 0x40b   :  { %v4532_v41 = vsel %vm13894_vm1, %v4492_v22, %v4531_v8  ;;  %2719 = vrot.lane.b32.xlu0 %v2694_v43, %s9129_s20  ;;  %v11920_v32 = vpop.permute.xlu1 %4615  ;;  %5717 = vmatpush2.bf16.msra.mxu1 %v5613_v17  ;;  %vm13908_vm1 = vmmov %vm13903_vm3 }
 0x40c   :  { %4562 = vst [vmem:[#allocation4 + $0x350] sm:$0x33] %v4532_v41  ;;  %v4639_v38 = vsel %vm156_vm0, %v13904_v16, %v4625_v57  ;;  %v4633_v53 = vrot.slane %v11920_v32, 4  ;;  %v4585_v41 = vrot.slane %v11926_v20, 6  ;;  %v13907_v16 = vrot.slane %v11200_v45, 4 }
 0x40d   :  { %v4640_v47 = vsel %vm13905_vm13, %v11191_v35, %v4639_v38  ;;  %v4715_v63 = vpop.permute.xlu0 %4714  ;;  %4779 = vrot.lane.b32.xlu1 %v4761_v44, %s9150_s19  ;;  %v8935_v22 = vld [vmem:[#allocation4 + $0x10] ss:$52 sps:$4 sm:$0xff]   ;;  %v8937_v21 = vld [vmem:[#allocation4 + $0x14] ss:$52 sps:$4 sm:$0xff]   ;;  %v13906_v35 = vrot.slane %v11338_v25, 5  ;;  %vm13910_vm13 = vcmask 1031168  }
 0x40e   :  { %4676 = vst [vmem:[#allocation4 + $0x348] sm:$0xcc] %v4640_v47  ;;  %v4653_v48 = vsel %vm156_vm0, %v4632_v6, %v4633_v53  ;;  %v4726_v34 = vrot.slane %v4715_v63, 4  ;;  %5745 = vmatprep.subr.bf16.mxu0 %v8937_v21 }
 0x40f   :  { %v4654_v43 = vsel %vm13903_vm3, %v4614_v11, %v4653_v48  ;;  %2707 = vrot.lane.b32.xlu0 %v2688_v26, %s9129_s20  ;;  %v11936_v8 = vpop.permute.xlu1 %4288  ;;  %v4470_v17 = vrot.slane %v13906_v35, 4  ;;  %5746 = vmatpush1.bf16.msra.mxu0 %v8935_v22  ;;  %v4592_v48 = vrot.slane %v4585_v41, 4  ;;  %vm13914_vm3 = vcmask 490496  }
 0x410   :  { %4684 = vst [vmem:[#allocation4 + $0x384] sm:$0x11] %v4654_v43  ;;  %v4733_v38 = vsel %vm156_vm0, %v13907_v16, %v4726_v34  ;;  %v4305_v6 = vrot.slane %v11936_v8, 4 }
 0x411   :  { %v4734_v11 = vsel %vm2960_vm11, %v11200_v45, %v4733_v38  ;;  %v11947_v26 = vpop.permute.xlu0 %4601  ;;  %4495 = vrot.lane.b32.xlu1 %v4470_v17, %s9129_s20  ;;  %v4948_v44 = vld [vmem:[#allocation4 + $0x3b8] sm:$0x77] }
 0x412   :  { %4751 = vst [vmem:[#allocation4 + $0x37c] sm:$0xee] %v4734_v11  ;;  %v4327_v25 = vsel %vm156_vm0, %v4304_v28, %v4305_v6  ;;  %v4626_v20 = vrot.slane %v11947_v26, 4  ;;  %v8383_v47 = vcombine.high %v4948_v44, %v4948_v44  ;;  %v8382_v21 = vcombine.low %v4948_v44, %v4948_v44  ;;  %v11969_v17 = vld [vmem:[#allocation3 + $0x30] sm:$0x77] }
 0x413   :  { %v4328_v22 = vsel %vm3402_vm8, %v11474_v40, %v4327_v25  ;;  %2831 = vrot.lane.b32.xlu0 %v2812_v61, %s9127_s18  ;;  %v11961_v45 = vpop.permute.xlu1 %4481  ;;  %v13909_v61 = vrot.slane %v11390_v2, 4  ;;  %v4762_v38 = vld [vmem:[#allocation3 + $0x30] sm:$0x77]  ;;  %v4471_v44 = vrot.slane %v4464_v15, 4  ;;  %v4586_v25 = vrot.slane %v11969_v17, 6 }
 0x414   :  { %4358 = vst [vmem:[#allocation4 + $0x2f0] sm:$0x11] %v4328_v22  ;;  %v4641_v43 = vsel %vm156_vm0, %v4625_v57, %v4626_v20  ;;  %v4505_v28 = vrot.slane %v11961_v45, 4  ;;  %8395 = vmatprep.subr.msk.bf16.mxu0 %vm13761_vm15, %v8383_v47  ;;  %v5619_v35 = vsel %vm13761_vm15, %v8382_v21, 0  ;;  %v11992_v21 = vld [vmem:[#allocation3 + $0x34] sm:$0x77] }
 0x415   :  { %v4642_v40 = vsel %vm13908_vm1, %v4600_v55, %v4641_v43  ;;  %v11972_v36 = vpop.permute.xlu0 %4716  ;;  %4617 = vrot.lane.b32.xlu1 %v4592_v48, %s9127_s18  ;;  %5760 = vmatpush2.bf16.msra.mxu0 %v5619_v35  ;;  %v4693_v35 = vld [vmem:[#allocation3 + $0x28] sm:$0x77]  ;;  %vm13915_vm1 = vmmov %vm13910_vm13 }
 0x416   :  { %4677 = vst [vmem:[#allocation4 + $0x350] sm:$0xcc] %v4642_v40  ;;  %v4521_v57 = vsel %vm156_vm0, %v13909_v61, %v4505_v28  ;;  %v4727_v16 = vrot.slane %v11972_v36, 4  ;;  %v4593_v40 = vrot.slane %v4586_v25, 4  ;;  %v13911_v61 = vrot.slane %v11328_v30, 4 }
 0x417   :  { %v4522_v11 = vsel %vm13910_vm13, %v11390_v2, %v4521_v57  ;;  %4781 = vrot.lane.b32.xlu0 %v4762_v38, %s9150_s19  ;;  %v11984_v55 = vpop.permute.xlu1 %4393  ;;  %vm13917_vm13 = vmmov %vm13914_vm3 }
 0x418   :  { %4556 = vst [vmem:[#allocation4 + $0x324] sm:$0x88] %v4522_v11  ;;  %v4735_v47 = vsel %vm156_vm0, %v4726_v34, %v4727_v16  ;;  %v13742_v49 = vrot.slane %v11984_v55, 4  ;;  %v4258_v34 = vrot.slane %v11992_v21, 6 }
 0x419   :  { %v4736_v22 = vsel %vm2960_vm11, %v4715_v63, %v4735_v47  ;;  %v4392_v48 = vpop.permute.xlu0 %4391  ;;  %4497 = vrot.lane.b32.xlu1 %v4471_v44, %s9129_s20  ;;  %v8940_v2 = vld [vmem:[#allocation4 + $0x348] ss:$52 sps:$4 sm:$0xff]   ;;  %v8942_v43 = vld [vmem:[#allocation4 + $0x34c] ss:$52 sps:$4 sm:$0xff]   ;;  %v4707_v47 = vrot.slane %v4693_v35, 7 }
 0x41a   :  { %4752 = vst [vmem:[#allocation4 + $0x384] sm:$0xee] %v4736_v22  ;;  %v4401_v15 = vrot.slane %v4392_v48, 4  ;;  %5718 = vmatprep.subr.bf16.mxu1 %v8942_v43  ;;  %v13912_v22 = vrot.slane %v11289_v50, 4 }
 0x41b   :  { %4603 = vrot.lane.b32.xlu0 %v4585_v41, %s9127_s18  ;;  %v4075_v17 = vpop.permute.xlu1 %4074  ;;  %5719 = vmatpush2.bf16.msra.mxu1 %v8940_v2 }
 0x41c   :  { %v4410_v63 = vsel %vm156_vm0, %v13911_v61, %v4401_v15  ;;  %v4412_v57 = vsel %vm156_vm0, %v4401_v15, %v13742_v49  ;;  %v4084_v38 = vrot.slane %v4075_v17, 4  ;;  %v12026_v61 = vld [vmem:[#allocation3 + $0x38] sm:$0x7] }
 0x41d   :  { %v4411_v11 = vsel %vm3500_vm14, %v11328_v30, %v4410_v63  ;;  %v4413_v41 = vsel %vm3500_vm14, %v4392_v48, %v4412_v57  ;;  %v12008_v44 = vpop.permute.xlu0 %4290  ;;  %4619 = vrot.lane.b32.xlu1 %v4593_v40, %s9127_s18  ;;  %v4265_v48 = vrot.slane %v4258_v34, 4  ;;  %v4368_v49 = vld [vmem:[#allocation3 + $0x34] sm:$0x77] }
 0x41e   :  { %4427 = vst [vmem:[#allocation4 + $0x2f0] sm:$0xee] %v4411_v11  ;;  %4428 = vst [vmem:[#allocation4 + $0x2f8] sm:$0xee] %v4413_v41  ;;  %v4093_v43 = vsel %vm156_vm0, %v13912_v22, %v4084_v38  ;;  %v4306_v15 = vrot.slane %v12008_v44, 4  ;;  %5721 = vmatmul.mubr.bf16.vlgmr.msra.gmra.mxu1 %v11494_v46 }
 0x41f   :  { %v4094_v2 = vsel %vm771_vm10, %v11289_v50, %v4093_v43  ;;  %4718 = vrot.lane.b32.xlu0 %v4707_v47, %s9152_s23  ;;  %v4165_v30 = vpop.permute.xlu1 %4164  ;;  %v9122_v50 = vld [vmem:[%s13673_s1 + $0x204] ss:$16 sps:$4 sm:$0xff]   ;;  %v4694_v22 = vld [vmem:[#allocation3 + $0x30] sm:$0x77] }
 0x420   :  { %4110 = vst [vmem:[#allocation4 + $0x288] sm:$0x77] %v4094_v2  ;;  %v4329_v35 = vsel %vm156_vm0, %v4305_v6, %v4306_v15  ;;  %v4181_v40 = vrot.slane %v4165_v30, 4  ;;  %8398 = vmatprep.mubr.msk.bf16.mxu1 %vm5601_vm7, %v9122_v50  ;;  %v13913_v6 = vrot.slane %v11430_v3, 4  ;;  %v4465_v2 = vrot.slane %v12026_v61, 5 }
 0x421   :  { %v4330_v63 = vsel %vm3402_vm8, %v11936_v8, %v4329_v35  ;;  %v12034_v46 = vpop.permute.xlu0 %4483  ;;  %4292 = vrot.lane.b32.xlu1 %v4265_v48, %s9149_s17  ;;  %v8943_v57 = vld [vmem:[#allocation4 + $0x350] ss:$52 sps:$4 sm:$0xff]   ;;  %v8945_v11 = vld [vmem:[#allocation4 + $0x354] ss:$52 sps:$4 sm:$0xff]  }
 0x422   :  { %4359 = vst [vmem:[#allocation4 + $0x2f8] sm:$0x11] %v4330_v63  ;;  %v4203_v41 = vsel %vm156_vm0, %v13913_v6, %v4181_v40  ;;  %v13743_v47 = vrot.slane %v12034_v46, 4  ;;  %5761 = vmatprep.subr.bf16.mxu0 %v8945_v11  ;;  %v4120_v63 = vld [vmem:[#allocation3 + $0x34] sm:$0x77]  ;;  %v4708_v11 = vrot.slane %v4694_v22, 7 }
 0x423   :  { %v4204_v43 = vsel %vm13914_vm3, %v11430_v3, %v4203_v41  ;;  %4605 = vrot.lane.b32.xlu0 %v4586_v25, %s9127_s18  ;;  %v12044_v8 = vpop.permute.xlu1 %4076  ;;  %5762 = vmatpush2.bf16.msra.mxu0 %v8943_v57  ;;  %v4134_v22 = vrot.slane %v4120_v63, 5 }
 0x424   :  { %4234 = vst [vmem:[#allocation4 + $0x2bc] sm:$0x33] %v4204_v43  ;;  %v4523_v48 = vsel %vm156_vm0, %v4505_v28, %v13743_v47  ;;  %v13745_v35 = vrot.slane %v12044_v8, 4 }
 0x425   :  { %v4524_v3 = vsel %vm13915_vm1, %v11961_v45, %v4523_v48  ;;  %v4151_v25 = vpop.permute.xlu0 %4150  ;;  %4485 = vrot.lane.b32.xlu1 %v4465_v2, %s9129_s20  ;;  %v8946_v6 = vld [vmem:[#allocation4 + $0x2f0] ss:$52 sps:$4 sm:$0xff]   ;;  %v8948_v41 = vld [vmem:[#allocation4 + $0x2f4] ss:$52 sps:$4 sm:$0xff]   ;;  %vm13920_vm1 = vmmov %vm13914_vm3 }
 0x426   :  { %4557 = vst [vmem:[#allocation4 + $0x32c] sm:$0x88] %v4524_v3  ;;  %v4095_v28 = vsel %vm156_vm0, %v4084_v38, %v13745_v35  ;;  %v4174_v43 = vrot.slane %v4151_v25, 4  ;;  %v9123_v48 = vld [vmem:[%s13673_s1 + $0x200] ss:$16 sps:$4 sm:$0xff]   ;;  %v13916_v3 = vrot.slane %v11414_v59, 4  ;;  %5774 = vmatprep.subr.bf16.mxu1 %v8948_v41 }
 0x427   :  { %v4096_v57 = vsel %vm771_vm10, %v4075_v17, %v4095_v28  ;;  %4720 = vrot.lane.b32.xlu0 %v4708_v11, %s9152_s23  ;;  %v12063_v45 = vpop.permute.xlu1 %4166  ;;  %5764 = vmatmul.mubr.bf16.vlgmr.msra.gmra.mxu0 %v9123_v48  ;;  %v4382_v28 = vrot.slane %v4368_v49, 7 }
 0x428   :  { %4111 = vst [vmem:[#allocation4 + $0x290] sm:$0x77] %v4096_v57  ;;  %v4190_v47 = vsel %vm156_vm0, %v13916_v3, %v4174_v43  ;;  %v13744_v38 = vrot.slane %v12063_v45, 4  ;;  %8400 = vmatprep.mubr.msk.bf16.mxu0 %vm5601_vm7, %v9122_v50  ;;  %5775 = vmatpush1.bf16.msra.mxu1 %v8946_v6  ;;  %v13918_v50 = vrot.slane %v11444_v54, 4  ;;  %v3867_v3 = vld [vmem:[#allocation3 + $0x34] sm:$0x7] }
 0x429   :  { %v4191_v17 = vsel %vm13917_vm13, %v11414_v59, %v4190_v47  ;;  %v4275_v11 = vpop.permute.xlu0 %4274  ;;  %4154 = vrot.lane.b32.xlu1 %v4134_v22, %s9137_s28  ;;  %v3881_v21 = vrot.slane %v3867_v3, 6  ;;  %v13921_v3 = vrot.slane %v11488_v42, 4  ;;  %vm13924_vm13 = vcmask 523264  }
 0x42a   :  { %4227 = vst [vmem:[#allocation4 + $0x288] sm:$0x88] %v4191_v17  ;;  %v4205_v63 = vsel %vm156_vm0, %v4181_v40, %v13744_v38  ;;  %v4298_v57 = vrot.slane %v4275_v11, 4  ;;  %v13919_v17 = vrot.slane %v11460_v19, 4 }
 0x42b   :  { %v4206_v48 = vsel %vm13914_vm3, %v4165_v30, %v4205_v63  ;;  %4395 = vrot.lane.b32.xlu0 %v4382_v28, %s9151_s22  ;;  %v3790_v41 = vpop.permute.xlu1 %3789  ;;  %vm13926_vm3 = vcmask 1031168  }
 0x42c   :  { %4235 = vst [vmem:[#allocation4 + $0x2c4] sm:$0x33] %v4206_v48  ;;  %v4314_v59 = vsel %vm156_vm0, %v13918_v50, %v4298_v57  ;;  %v3806_v47 = vrot.slane %v3790_v41, 4  ;;  %v4058_v48 = vld [vmem:[#allocation3 + $0x34] sm:$0x77] }
 0x42d   :  { %v4315_v49 = vsel %vm3402_vm8, %v11444_v54, %v4314_v59  ;;  %v12086_v6 = vpop.permute.xlu0 %4152  ;;  %4278 = vrot.lane.b32.xlu1 %v4258_v34, %s9149_s17  ;;  %v8949_v30 = vld [vmem:[#allocation4 + $0x2f8] ss:$52 sps:$4 sm:$0xff]   ;;  %v8951_v40 = vld [vmem:[#allocation4 + $0x2fc] ss:$52 sps:$4 sm:$0xff]  }
 0x42e   :  { %4351 = vst [vmem:[#allocation4 + $0x2bc] sm:$0xcc] %v4315_v49  ;;  %v3827_v28 = vsel %vm156_vm0, %v13919_v17, %v3806_v47  ;;  %v13749_v63 = vrot.slane %v12086_v6, 4  ;;  %v12095_v50 = vld [vmem:[#allocation3 + $0x34] sm:$0x7]  ;;  %5817 = vmatprep.subr.bf16.mxu0 %v8951_v40 }
 0x42f   :  { %v3828_v54 = vsel %vm2960_vm11, %v11460_v19, %v3827_v28  ;;  %4078 = vrot.lane.b32.xlu0 %v4058_v48, %s9135_s26  ;;  %v3912_v59 = vpop.permute.xlu1 %3911  ;;  %5818 = vmatpush1.bf16.msra.mxu0 %v8949_v30  ;;  %v3989_v17 = vld [vmem:[#allocation3 + $0x34] sm:$0x77]  ;;  %v4141_v19 = vrot.slane %v4134_v22, 4  ;;  %v3759_v28 = vrot.slane %v12095_v50, 5 }
 0x430   :  { %3857 = vst [vmem:[#allocation4 + $0x220] sm:$0x33] %v3828_v54  ;;  %v4192_v34 = vsel %vm156_vm0, %v4174_v43, %v13749_v63  ;;  %v3928_v49 = vrot.slane %v3912_v59, 4  ;;  %v4003_v30 = vrot.slane %v3989_v17, 7 }
 0x431   :  { %v4193_v38 = vsel %vm13920_vm1, %v4151_v25, %v4192_v34  ;;  %v12104_v35 = vpop.permute.xlu0 %4276  ;;  %3901 = vrot.lane.b32.xlu1 %v3881_v21, %s9150_s19  ;;  %vm13928_vm1 = vmmov %vm13924_vm13 }
 0x432   :  { %4228 = vst [vmem:[#allocation4 + $0x290] sm:$0x88] %v4193_v38  ;;  %v3949_v40 = vsel %vm156_vm0, %v13921_v3, %v3928_v49  ;;  %v13746_v48 = vrot.slane %v12104_v35, 4 }
 0x433   :  { %v3950_v43 = vsel %vm3023_vm9, %v11488_v42, %v3949_v40  ;;  %4168 = vrot.lane.b32.xlu0 %v4141_v19, %s9137_s28  ;;  %v12115_v25 = vpop.permute.xlu1 %3791  ;;  %v3766_v42 = vrot.slane %v3759_v28, 4 }
 0x434   :  { %3979 = vst [vmem:[#allocation4 + $0x254] sm:$0x11] %v3950_v43  ;;  %v4316_v22 = vsel %vm156_vm0, %v4298_v57, %v13746_v48  ;;  %v13747_v38 = vrot.slane %v12115_v25, 4  ;;  %v3435_v48 = vld [vmem:[#allocation3 + $0x30] sm:$0x77] }
 0x435   :  { %v4317_v54 = vsel %vm3402_vm8, %v4275_v11, %v4316_v22  ;;  %v3898_v34 = vpop.permute.xlu0 %3897  ;;  %4016 = vrot.lane.b32.xlu1 %v4003_v30, %s9141_s6  ;;  %v8952_v3 = vld [vmem:[#allocation4 + $0x288] ss:$52 sps:$4 sm:$0xff]   ;;  %v8954_v19 = vld [vmem:[#allocation4 + $0x28c] ss:$52 sps:$4 sm:$0xff]   ;;  %v13922_v11 = vrot.slane %v11530_v18, 4 }
 0x436   :  { %4352 = vst [vmem:[#allocation4 + $0x2c4] sm:$0xcc] %v4317_v54  ;;  %v3829_v17 = vsel %vm156_vm0, %v3806_v47, %v13747_v38  ;;  %v3921_v40 = vrot.slane %v3898_v34, 4  ;;  %5776 = vmatprep.subr.bf16.mxu1 %v8954_v19  ;;  %v3684_v54 = vld [vmem:[#allocation3 + $0x34] sm:$0x7] }
 0x437   :  { %v3830_v57 = vsel %vm2960_vm11, %v3790_v41, %v3829_v17  ;;  %3793 = vrot.lane.b32.xlu0 %v3766_v42, %s9152_s23  ;;  %v12130_v43 = vpop.permute.xlu1 %3913  ;;  %5777 = vmatpush1.bf16.msra.mxu1 %v8952_v3  ;;  %v3888_v41 = vrot.slane %v3881_v21, 4  ;;  %v3616_v17 = vld [vmem:[#allocation3 + $0x34] sm:$0x7] }
 0x438   :  { %3858 = vst [vmem:[#allocation4 + $0x228] sm:$0x33] %v3830_v57  ;;  %v3937_v30 = vsel %vm156_vm0, %v13922_v11, %v3921_v40  ;;  %v13748_v22 = vrot.slane %v12130_v43, 4  ;;  %v3449_v11 = vrot.slane %v3435_v48, 5  ;;  %v13925_v48 = vrot.slane %v11593_v33, 4 }
 0x439   :  { %v3938_v47 = vsel %vm3023_vm9, %v11530_v18, %v3937_v30  ;;  %v4013_v38 = vpop.permute.xlu0 %4012  ;;  %3704 = vrot.lane.b32.xlu1 %v3684_v54, %s9127_s18  ;;  %v13923_v18 = vrot.slane %v11555_v51, 4  ;;  %v3372_v54 = vld [vmem:[#allocation3 + $0x30] sm:$0x77] }
 0x43a   :  { %3972 = vst [vmem:[#allocation4 + $0x220] sm:$0xcc] %v3938_v47  ;;  %v3951_v42 = vsel %vm156_vm0, %v3928_v49, %v13748_v22  ;;  %v4022_v19 = vrot.slane %v4013_v38, 4 }
 0x43b   :  { %v3952_v57 = vsel %vm3023_vm9, %v3912_v59, %v3951_v42  ;;  %3915 = vrot.lane.b32.xlu0 %v3888_v41, %s9150_s19  ;;  %v12144_v3 = vpop.permute.xlu1 %3639  ;;  %v3630_v59 = vrot.slane %v3616_v17, 7  ;;  %v3456_v17 = vrot.slane %v3449_v11, 4 }
 0x43c   :  { %3980 = vst [vmem:[#allocation4 + $0x25c] sm:$0x11] %v3952_v57  ;;  %v4031_v30 = vsel %vm156_vm0, %v13923_v18, %v4022_v19  ;;  %v3649_v21 = vrot.slane %v12144_v3, 4 }
 0x43d   :  { %v4032_v49 = vsel %vm13924_vm13, %v11555_v51, %v4031_v30  ;;  %v12152_v47 = vpop.permute.xlu0 %3899  ;;  %3392 = vrot.lane.b32.xlu1 %v3372_v54, %s9149_s17  ;;  %v8955_v41 = vld [vmem:[#allocation4 + $0x290] ss:$52 sps:$4 sm:$0xff]   ;;  %v8957_v42 = vld [vmem:[#allocation4 + $0x294] ss:$52 sps:$4 sm:$0xff]   ;;  %vm13930_vm13 = vcmask 1014784   ;;  %s9156_s17 = smov 1  }
 0x43e   :  { %4048 = vst [vmem:[#allocation4 + $0x254] sm:$0xee] %v4032_v49  ;;  %v3658_v57 = vsel %vm156_vm0, %v13925_v48, %v3649_v21  ;;  %v13751_v18 = vrot.slane %v12152_v47, 4  ;;  %5819 = vmatprep.subr.bf16.mxu0 %v8957_v42  ;;  %v3179_v49 = vld [vmem:[#allocation3 + $0x30] sm:$0x77] }
 0x43f   :  { %v3659_v22 = vsel %vm13926_vm3, %v11593_v33, %v3658_v57  ;;  %3643 = vrot.lane.b32.xlu0 %v3630_v59, %s9129_s20  ;;  %v12164_v51 = vpop.permute.xlu1 %3775  ;;  %5820 = vmatpush1.bf16.msra.mxu0 %v8955_v41  ;;  %v13927_v33 = vrot.slane %v11615_v13, 4  ;;  %v3193_v42 = vrot.slane %v3179_v49, 6  ;;  %vm13931_vm3 = vmmov %vm13930_vm13 }
 0x440   :  { %3674 = vst [vmem:[#allocation4 + $0x1b8] sm:$0xee] %v3659_v22  ;;  %v3939_v30 = vsel %vm156_vm0, %v3921_v40, %v13751_v18  ;;  %v3799_v54 = vrot.slane %v12164_v51, 4  ;;  %v12180_v40 = vld [vmem:[#allocation3 + $0x30] sm:$0x77] }
 0x441   :  { %v3940_v48 = vsel %vm3023_vm9, %v3898_v34, %v3939_v30  ;;  %v12171_v63 = vpop.permute.xlu0 %4014  ;;  %3483 = vrot.lane.b32.xlu1 %v3456_v17, %s9151_s22  ;;  %v3303_v17 = vld [vmem:[#allocation3 + $0x30] sm:$0x77] }
 0x442   :  { %3973 = vst [vmem:[#allocation4 + $0x228] sm:$0xcc] %v3940_v48  ;;  %v3815_v22 = vsel %vm156_vm0, %v13927_v33, %v3799_v54  ;;  %v13750_v59 = vrot.slane %v12171_v63, 4 }
 0x443   :  { %v3816_v41 = vsel %vm2960_vm11, %v11615_v13, %v3815_v22  ;;  %3779 = vrot.lane.b32.xlu0 %v3759_v28, %s9152_s23  ;;  %v12187_v34 = vpop.permute.xlu1 %3702  ;;  %v3069_v22 = vrot.slane %v12180_v40, 5 }
 0x444   :  { %3850 = vst [vmem:[#allocation4 + $0x1ec] sm:$0x88] %v3816_v41  ;;  %v4033_v57 = vsel %vm156_vm0, %v4022_v19, %v13750_v59  ;;  %v13754_v50 = vrot.slane %v12187_v34, 4  ;;  %v3317_v19 = vrot.slane %v3303_v17, 7  ;;  %v13929_v41 = vrot.slane %v11569_v24, 4 }
 0x445   :  { %v4034_v30 = vsel %vm13928_vm1, %v4013_v38, %v4033_v57  ;;  %v3701_v48 = vpop.permute.xlu0 %3700  ;;  %3213 = vrot.lane.b32.xlu1 %v3193_v42, %s9135_s26  ;;  %v8958_v33 = vld [vmem:[#allocation4 + $0x220] ss:$52 sps:$4 sm:$0xff]   ;;  %v8960_v13 = vld [vmem:[#allocation4 + $0x224] ss:$52 sps:$4 sm:$0xff]   ;;  %v3076_v17 = vrot.slane %v3069_v22, 4  ;;  %vm13933_vm1 = vcmask 1031168  }
 0x446   :  { %4049 = vst [vmem:[#allocation4 + $0x25c] sm:$0xee] %v4034_v30  ;;  %v3710_v28 = vrot.slane %v3701_v48, 4  ;;  %5778 = vmatprep.subr.bf16.mxu1 %v8960_v13  ;;  %v2923_v30 = vld [vmem:[#allocation3 + $0x30] sm:$0x7]  ;;  %v13932_v13 = vrot.slane %v11652_v12, 4 }
 0x447   :  { %3469 = vrot.lane.b32.xlu0 %v3449_v11, %s9151_s22  ;;  %v12197_v49 = vpop.permute.xlu1 %3388  ;;  %5779 = vmatpush1.bf16.msra.mxu1 %v8958_v33  ;;  %s9158_s22 = smov 117  }
 0x448   :  { %v3719_v38 = vsel %vm156_vm0, %v13929_v41, %v3710_v28  ;;  %v3721_v57 = vsel %vm156_vm0, %v3710_v28, %v13754_v50  ;;  %v3398_v40 = vrot.slane %v12197_v49, 4  ;;  %v12218_v41 = vld [vmem:[#allocation3 + $0x30] sm:$0x7] }
 0x449   :  { %v3720_v59 = vsel %vm13930_vm13, %v11569_v24, %v3719_v38  ;;  %v3722_v11 = vsel %vm13931_vm3, %v3701_v48, %v3721_v57  ;;  %v12209_v18 = vpop.permute.xlu0 %3641  ;;  %3330 = vrot.lane.b32.xlu1 %v3317_v19, %s9137_s28  ;;  %v2937_v19 = vrot.slane %v2923_v30, 7  ;;  %v3200_v57 = vrot.slane %v3193_v42, 4 }
 0x44a   :  { %3735 = vst [vmem:[#allocation4 + $0x1ec] sm:$0x77] %v3720_v59  ;;  %3736 = vst [vmem:[#allocation4 + $0x1f4] sm:$0x77] %v3722_v11  ;;  %v3408_v28 = vsel %vm156_vm0, %v13932_v13, %v3398_v40  ;;  %v13752_v33 = vrot.slane %v12209_v18, 4  ;;  %vm13937_vm13 = vcmask 523264  }
 0x44b   :  { %v3409_v24 = vsel %vm3402_vm8, %v11652_v12, %v3408_v28  ;;  %3103 = vrot.lane.b32.xlu0 %v3076_v17, %s9141_s6  ;;  %v12223_v48 = vpop.permute.xlu1 %3479  ;;  %v2675_v11 = vld [vmem:[#allocation3 + $0x30] sm:$0x7]  ;;  %v2813_v28 = vrot.slane %v12218_v41, 6  ;;  %vm13939_vm3 = vmmov %vm13937_vm13  ;;  %v4472_v41 = vrot.slane %v4465_v2, 4 }
 0x44c   :  { %3425 = vst [vmem:[#allocation4 + $0x150] sm:$0x77] %v3409_v24  ;;  %v3660_v59 = vsel %vm156_vm0, %v3649_v21, %v13752_v33  ;;  %v3496_v38 = vrot.slane %v12223_v48, 4  ;;  %v13934_v21 = vrot.slane %v11670_v0, 4 }
 0x44d   :  { %v3661_v13 = vsel %vm13933_vm1, %v12144_v3, %v3660_v59  ;;  %v12233_v12 = vpop.permute.xlu0 %3777  ;;  %2950 = vrot.lane.b32.xlu1 %v2937_v19, %s9152_s23  ;;  %v8961_v17 = vld [vmem:[#allocation4 + $0x228] ss:$52 sps:$4 sm:$0xff]   ;;  %v8963_v30 = vld [vmem:[#allocation4 + $0x22c] ss:$52 sps:$4 sm:$0xff]   ;;  %v2689_v19 = vrot.slane %v2675_v11, 5  ;;  %vm13942_vm1 = vcmask 490496  }
 0x44e   :  { %3675 = vst [vmem:[#allocation4 + $0x1c0] sm:$0xee] %v3661_v13  ;;  %v3519_v24 = vsel %vm156_vm0, %v13934_v21, %v3496_v38  ;;  %v13753_v42 = vrot.slane %v12233_v12, 4  ;;  %5821 = vmatprep.subr.bf16.mxu0 %v8963_v30 }
 0x44f   :  { %v3520_v3 = vsel %vm3500_vm14, %v11670_v0, %v3519_v24  ;;  %3227 = vrot.lane.b32.xlu0 %v3200_v57, %s9135_s26  ;;  %v12246_v59 = vpop.permute.xlu1 %3467  ;;  %5822 = vmatpush1.bf16.msra.mxu0 %v8961_v17  ;;  %v2820_v0 = vrot.slane %v2813_v28, 4  ;;  %v13935_v17 = vrot.slane %v11627_v62, 4 }
 0x450   :  { %3550 = vst [vmem:[#allocation4 + $0x184] sm:$0x33] %v3520_v3  ;;  %v3817_v13 = vsel %vm156_vm0, %v3799_v54, %v13753_v42  ;;  %v13755_v11 = vrot.slane %v12246_v59, 4  ;;  %v2696_v54 = vrot.slane %v2689_v19, 4 }
 0x451   :  { %v3818_v21 = vsel %vm2960_vm11, %v12164_v51, %v3817_v13  ;;  %v3466_v33 = vpop.permute.xlu0 %3465  ;;  %3089 = vrot.lane.b32.xlu1 %v3069_v22, %s9141_s6  ;;  %v8964_v57 = vld [vmem:[#allocation4 + $0x1b8] ss:$52 sps:$4 sm:$0xff]   ;;  %v8966_v30 = vld [vmem:[#allocation4 + $0x1bc] ss:$52 sps:$4 sm:$0xff]  }
 0x452   :  { %3851 = vst [vmem:[#allocation4 + $0x1f4] sm:$0x88] %v3818_v21  ;;  %v3489_v24 = vrot.slane %v3466_v33, 4  ;;  %5780 = vmatprep.subr.bf16.mxu1 %v8966_v30 }
 0x453   :  { %2847 = vrot.lane.b32.xlu0 %v2820_v0, %s9127_s18  ;;  %v3100_v3 = vpop.permute.xlu1 %3099  ;;  %5781 = vmatpush1.bf16.msra.mxu1 %v8964_v57  ;;  %v13936_v0 = vrot.slane %v11680_v39, 4 }
 0x454   :  { %v3506_v51 = vsel %vm156_vm0, %v13935_v17, %v3489_v24  ;;  %v3508_v22 = vsel %vm156_vm0, %v3489_v24, %v13755_v11  ;;  %v3116_v13 = vrot.slane %v3100_v3, 4  ;;  %v2993_v24 = vld [vmem:[#allocation3 + $0x30] sm:$0x7] }
 0x455   :  { %v3507_v21 = vsel %vm3500_vm14, %v11627_v62, %v3506_v51  ;;  %v3509_v42 = vsel %vm3500_vm14, %v3466_v33, %v3508_v22  ;;  %v12269_v50 = vpop.permute.xlu0 %3390  ;;  %2723 = vrot.lane.b32.xlu1 %v2696_v54, %s9129_s20  ;;  %v4763_v54 = vld [vmem:[#allocation3 + $0x38] sm:$0x7] }
 0x456   :  { %3543 = vst [vmem:[#allocation4 + $0x150] sm:$0x88] %v3507_v21  ;;  %3544 = vst [vmem:[#allocation4 + $0x158] sm:$0x88] %v3509_v42  ;;  %v3138_v30 = vsel %vm156_vm0, %v13936_v0, %v3116_v13  ;;  %v3399_v17 = vrot.slane %v12269_v50, 4 }
 0x457   :  { %v3139_v57 = vsel %vm13937_vm13, %v11680_v39, %v3138_v30  ;;  %3013 = vrot.lane.b32.xlu0 %v2993_v24, %s9150_s19  ;;  %v3224_v62 = vpop.permute.xlu1 %3223  ;;  %v4573_v51 = vld [vmem:[#allocation3 + $0x38] sm:$0x7]  ;;  %v13938_v30 = vrot.slane %v11700_v56, 4  ;;  %vm13944_vm13 = vcmask 1014784  }
 0x458   :  { %3169 = vst [vmem:[#allocation4 + $0xe8] sm:$0x33] %v3139_v57  ;;  %v3410_v33 = vsel %vm156_vm0, %v3398_v40, %v3399_v17  ;;  %v3240_v42 = vrot.slane %v3224_v62, 4 }
 0x459   :  { %v3411_v22 = vsel %vm3402_vm8, %v12197_v49, %v3410_v33  ;;  %v12286_v21 = vpop.permute.xlu0 %3481  ;;  %4783 = vrot.lane.b32.xlu1 %v4763_v54, %s9150_s19  ;;  %v8967_v39 = vld [vmem:[#allocation4 + $0x1c0] ss:$52 sps:$4 sm:$0xff]   ;;  %v8969_v0 = vld [vmem:[#allocation4 + $0x1c4] ss:$52 sps:$4 sm:$0xff]   ;;  %v4587_v49 = vrot.slane %v4573_v51, 6 }
 0x45a   :  { %3426 = vst [vmem:[#allocation4 + $0x158] sm:$0x77] %v3411_v22  ;;  %v3262_v24 = vsel %vm156_vm0, %v13938_v30, %v3240_v42  ;;  %v3497_v57 = vrot.slane %v12286_v21, 4  ;;  %5823 = vmatprep.subr.bf16.mxu0 %v8969_v0  ;;  %v4695_v22 = vld [vmem:[#allocation3 + $0x38] sm:$0x7] }
 0x45b   :  { %v3263_v40 = vsel %vm771_vm10, %v11700_v56, %v3262_v24  ;;  %2709 = vrot.lane.b32.xlu0 %v2689_v19, %s9129_s20  ;;  %v12296_v11 = vpop.permute.xlu1 %3101  ;;  %5824 = vmatpush1.bf16.msra.mxu0 %v8967_v39 }
 0x45c   :  { %3293 = vst [vmem:[#allocation4 + $0x11c] sm:$0x11] %v3263_v40  ;;  %v3521_v33 = vsel %vm156_vm0, %v3496_v38, %v3497_v57  ;;  %v3117_v54 = vrot.slane %v12296_v11, 4  ;;  %v13940_v40 = vrot.slane %v11727_v60, 4 }
 0x45d   :  { %v3522_v56 = vsel %vm3500_vm14, %v12223_v48, %v3521_v33  ;;  %v3210_v30 = vpop.permute.xlu0 %3209  ;;  %4607 = vrot.lane.b32.xlu1 %v4587_v49, %s9127_s18  ;;  %v8970_v19 = vld [vmem:[#allocation4 + $0x150] ss:$52 sps:$4 sm:$0xff]   ;;  %v8972_v0 = vld [vmem:[#allocation4 + $0x154] ss:$52 sps:$4 sm:$0xff]   ;;  %v4709_v48 = vrot.slane %v4695_v22, 7 }
 0x45e   :  { %3551 = vst [vmem:[#allocation4 + $0x18c] sm:$0x33] %v3522_v56  ;;  %v3140_v51 = vsel %vm156_vm0, %v3116_v13, %v3117_v54  ;;  %v3233_v24 = vrot.slane %v3210_v30, 4  ;;  %5782 = vmatprep.subr.bf16.mxu1 %v8972_v0  ;;  %v4954_v0 = vld [vmem:[%s13674_s2 + $0x108] sm:$0xff] }
 0x45f   :  { %v3141_v38 = vsel %vm13939_vm3, %v3100_v3, %v3140_v51  ;;  %2833 = vrot.lane.b32.xlu0 %v2813_v28, %s9127_s18  ;;  %v12314_v39 = vpop.permute.xlu1 %3225  ;;  %5783 = vmatpush1.bf16.msra.mxu1 %v8970_v19  ;;  %v13941_v51 = vrot.slane %v11742_v10, 4  ;;  %vm13946_vm3 = vmmov %vm13942_vm1 }
 0x460   :  { %3170 = vst [vmem:[#allocation4 + $0xf0] sm:$0x33] %v3141_v38  ;;  %v3249_v33 = vsel %vm156_vm0, %v13940_v40, %v3233_v24  ;;  %v3241_v56 = vrot.slane %v12314_v39, 4 }
 0x461   :  { %v3250_v13 = vsel %vm771_vm10, %v11727_v60, %v3249_v33  ;;  %v3327_v3 = vpop.permute.xlu0 %3326  ;;  %4722 = vrot.lane.b32.xlu1 %v4709_v48, %s9152_s23  ;;  %v4594_v48 = vrot.slane %v4587_v49, 4 }
 0x462   :  { %3286 = vst [vmem:[#allocation4 + $0xe8] sm:$0xcc] %v3250_v13  ;;  %v3264_v28 = vsel %vm156_vm0, %v3240_v42, %v3241_v56  ;;  %v3336_v22 = vrot.slane %v3327_v3, 4 }
 0x463   :  { %v3265_v19 = vsel %vm771_vm10, %v3224_v62, %v3264_v28  ;;  %4499 = vrot.lane.b32.xlu0 %v4472_v41, %s9129_s20  ;;  %v2844_v60 = vpop.permute.xlu1 %2843  ;;  %v13943_v62 = vrot.slane %v11752_v1, 4 }
 0x464   :  { %3294 = vst [vmem:[#allocation4 + $0x124] sm:$0x11] %v3265_v19  ;;  %v3345_v61 = vsel %vm156_vm0, %v13941_v51, %v3336_v22  ;;  %v2860_v2 = vrot.slane %v2844_v60, 4 }
 0x465   :  { %v3346_v38 = vsel %vm13942_vm1, %v11742_v10, %v3345_v61  ;;  %v12338_v42 = vpop.permute.xlu0 %3211  ;;  %v8973_v40 = vld [vmem:[#allocation4 + $0x158] ss:$52 sps:$4 sm:$0xff]   ;;  %v8975_v33 = vld [vmem:[#allocation4 + $0x15c] ss:$52 sps:$4 sm:$0xff]   ;;  %4962 = vperm.xlu1 %8709, %v4954_v0   ;;  %vm13947_vm1 = vmmov %vm13944_vm13 }
 0x466   :  { %3362 = vst [vmem:[#allocation4 + $0x11c] sm:$0xee] %v3346_v38  ;;  %v2881_v13 = vsel %vm156_vm0, %v13943_v62, %v2860_v2  ;;  %v3234_v41 = vrot.slane %v12338_v42, 4  ;;  %5825 = vmatprep.subr.bf16.mxu0 %v8975_v33  ;;  %v4953_v0 = vld [vmem:[%s13674_s2 + $0x100] sm:$0xff] }
 0x467   :  { %v2882_v28 = vsel %vm13944_vm13, %v11752_v1, %v2881_v13  ;;  %4621 = vrot.lane.b32.xlu0 %v4594_v48, %s9127_s18  ;;  %v3010_v19 = vpop.permute.xlu1 %3009  ;;  %5826 = vmatpush1.bf16.msra.mxu0 %v8973_v40  ;;  %v13945_v1 = vrot.slane %v11769_v29, 4  ;;  %vm13950_vm13 = vcmask 523264  }
 0x468   :  { %2912 = vst [vmem:[#allocation4 + $0x80] sm:$0x11] %v2882_v28  ;;  %v3251_v10 = vsel %vm156_vm0, %v3233_v24, %v3234_v41  ;;  %v3019_v49 = vrot.slane %v3010_v19, 4 }
 0x469   :  { %v3252_v51 = vsel %vm771_vm10, %v3210_v30, %v3251_v10  ;;  %v12354_v61 = vpop.permute.xlu0 %3328 }
 0x46a   :  { %3287 = vst [vmem:[#allocation4 + $0xf0] sm:$0xcc] %v3252_v51  ;;  %v3029_v38 = vsel %vm156_vm0, %v13945_v1, %v3019_v49  ;;  %v3337_v48 = vrot.slane %v12354_v61, 4 }
 0x46b   :  { %v3030_v24 = vsel %vm3023_vm9, %v11769_v29, %v3029_v38  ;;  %4957 = vperm.xlu0 %8708, %v4953_v0   ;;  %v12362_v40 = vpop.permute.xlu1 %2845 }
 0x46c   :  { %3045 = vst [vmem:[#allocation4 + $0xb4] sm:$0x77] %v3030_v24  ;;  %v3347_v30 = vsel %vm156_vm0, %v3336_v22, %v3337_v48  ;;  %v2861_v33 = vrot.slane %v12362_v40, 4  ;;  %v13948_v22 = vrot.slane %v11796_v23, 4 }
 0x46d   :  { %v3348_v62 = vsel %vm13946_vm3, %v3327_v3, %v3347_v30  ;;  %v2947_v13 = vpop.permute.xlu0 %2946  ;;  %v8976_v28 = vld [vmem:[#allocation4 + $0xe8] ss:$52 sps:$4 sm:$0xff]   ;;  %v8978_v10 = vld [vmem:[#allocation4 + $0xec] ss:$52 sps:$4 sm:$0xff]   ;;  %vm13951_vm3 = vcmask 1031168  }
 0x46e   :  { %3363 = vst [vmem:[#allocation4 + $0x124] sm:$0xee] %v3348_v62  ;;  %v2883_v29 = vsel %vm156_vm0, %v2860_v2, %v2861_v33  ;;  %v2956_v0 = vrot.slane %v2947_v13, 4  ;;  %5784 = vmatprep.subr.bf16.mxu1 %v8978_v10 }
 0x46f   :  { %v2884_v51 = vsel %vm13947_vm1, %v2844_v60, %v2883_v29  ;;  %v12373_v1 = vpop.permute.xlu1 %3011  ;;  %5785 = vmatpush1.bf16.msra.mxu1 %v8976_v28  ;;  %v13949_v29 = vrot.slane %v11816_v4, 4 }
 0x470   :  { %2913 = vst [vmem:[#allocation4 + $0x88] sm:$0x11] %v2884_v51  ;;  %v2966_v38 = vsel %vm156_vm0, %v13948_v22, %v2956_v0  ;;  %v13756_v3 = vrot.slane %v12373_v1, 4 }
 0x471   :  { %v2967_v24 = vsel %vm2960_vm11, %v11796_v23, %v2966_v38  ;;  %v3086_v30 = vpop.permute.xlu0 %3085 }
 0x472   :  { %2982 = vst [vmem:[#allocation4 + $0x80] sm:$0xee] %v2967_v24  ;;  %v3031_v60 = vsel %vm156_vm0, %v3019_v49, %v13756_v3  ;;  %v3109_v2 = vrot.slane %v3086_v30, 4 }
 0x473   :  { %v3032_v62 = vsel %vm3023_vm9, %v3010_v19, %v3031_v60  ;;  %v2706_v10 = vpop.permute.xlu1 %2705 }
 0x474   :  { %3046 = vst [vmem:[#allocation4 + $0xbc] sm:$0x77] %v3032_v62  ;;  %v3125_v51 = vsel %vm156_vm0, %v13949_v29, %v3109_v2  ;;  %v2729_v22 = vrot.slane %v2706_v10, 4 }
 0x475   :  { %v3126_v28 = vsel %vm13950_vm13, %v11816_v4, %v3125_v51  ;;  %v12390_v23 = vpop.permute.xlu0 %2948  ;;  %v8979_v38 = vld [vmem:[#allocation4 + $0xf0] ss:$52 sps:$4 sm:$0xff]   ;;  %v8981_v24 = vld [vmem:[#allocation4 + $0xf4] ss:$52 sps:$4 sm:$0xff]  }
 0x476   :  { %3162 = vst [vmem:[#allocation4 + $0xb4] sm:$0x88] %v3126_v28  ;;  %v2745_v49 = vsel %vm156_vm0, %v2728_v7, %v2729_v22  ;;  %v2957_v19 = vrot.slane %v12390_v23, 4  ;;  %5827 = vmatprep.subr.bf16.mxu0 %v8981_v24 }
 0x477   :  { %v2746_v60 = vsel %vm13951_vm3, %v11851_v27, %v2745_v49  ;;  %v2830_v62 = vpop.permute.xlu1 %2829  ;;  %5828 = vmatpush1.bf16.msra.mxu0 %v8979_v38 }
 0x478   :  { %2780 = vst [vmem:[#allocation4 + $0x18] sm:$0x88] %v2746_v60  ;;  %v2968_v4 = vsel %vm156_vm0, %v2956_v0, %v2957_v19  ;;  %v2853_v29 = vrot.slane %v2830_v62, 4 }
 0x479   :  { %v2969_v51 = vsel %vm2960_vm11, %v2947_v13, %v2968_v4  ;;  %v12402_v28 = vpop.permute.xlu0 %3087 }
 0x47a   :  { %2983 = vst [vmem:[#allocation4 + $0x88] sm:$0xee] %v2969_v51  ;;  %v2869_v7 = vsel %vm156_vm0, %v2852_v14, %v2853_v29  ;;  %v3110_v27 = vrot.slane %v12402_v28, 4 }
 0x47b   :  { %v2870_v24 = vsel %vm13947_vm1, %v11872_v58, %v2869_v7  ;;  %v12410_v49 = vpop.permute.xlu1 %2721  ;;  %v13952_v58 = vrot.slane %v11828_v5, 4  ;;  %vm13953_vm1 = vmmov %vm13951_vm3 }
 0x47c   :  { %2904 = vst [vmem:[#allocation4 + $0x4c] sm:$0xcc] %v2870_v24  ;;  %v3127_v0 = vsel %vm156_vm0, %v3109_v2, %v3110_v27  ;;  %v13757_v14 = vrot.slane %v12410_v49, 4 }
 0x47d   :  { %v3128_v13 = vsel %vm13950_vm13, %v3086_v30, %v3127_v0  ;;  %v2720_v38 = vpop.permute.xlu0 %2719  ;;  %v8982_v60 = vld [vmem:[#allocation4 + $0x80] ss:$52 sps:$4 sm:$0xff]   ;;  %v8984_v4 = vld [vmem:[#allocation4 + $0x84] ss:$52 sps:$4 sm:$0xff]   ;;  %vm13954_vm13 = vmmov %vm13953_vm1 }
 0x47e   :  { %3163 = vst [vmem:[#allocation4 + $0xbc] sm:$0x88] %v3128_v13  ;;  %v2736_v51 = vrot.slane %v2720_v38, 4  ;;  %5786 = vmatprep.subr.bf16.mxu1 %v8984_v4 }
 0x47f   :  { %v4780_v3 = vpop.permute.xlu1 %4779  ;;  %5787 = vmatpush1.bf16.msra.mxu1 %v8982_v60 }
 0x480   :  { %v2757_v7 = vsel %vm156_vm0, %v13952_v58, %v2736_v51  ;;  %v2759_v24 = vsel %vm156_vm0, %v2736_v51, %v13757_v14  ;;  %v4789_v2 = vrot.slane %v4780_v3, 4 }
 0x481   :  { %v2758_v30 = vsel %vm13951_vm3, %v11828_v5, %v2757_v7  ;;  %v2760_v0 = vsel %vm13953_vm1, %v2720_v38, %v2759_v24  ;;  %v12426_v13 = vpop.permute.xlu0 %2707  ;;  %vm13955_vm3 = vmmov %vm13953_vm1  ;;  %vm13956_vm1 = vcmask 1014784  }
 0x482   :  { %2788 = vst [vmem:[#allocation4 + $0x4c] sm:$0x33] %v2758_v30  ;;  %2789 = vst [vmem:[#allocation4 + $0x54] sm:$0x33] %v2760_v0  ;;  %v4798_v4 = vsel %vm156_vm0, %v4788_v31, %v4789_v2  ;;  %v2730_v58 = vrot.slane %v12426_v13, 4 }
 0x483   :  { %v4799_v51 = vsel %vm3023_vm9, %v11890_v9, %v4798_v4  ;;  %v4496_v14 = vpop.permute.xlu1 %4495 }
 0x484   :  { %4814 = vst [vmem:[#allocation4 + $0x3c0] sm:$0x77] %v4799_v51  ;;  %v2747_v5 = vsel %vm156_vm0, %v2729_v22, %v2730_v58  ;;  %v4512_v38 = vrot.slane %v4496_v14, 4 }
 0x485   :  { %v2748_v60 = vsel %vm13954_vm13, %v2706_v10, %v2747_v5  ;;  %v12438_v7 = vpop.permute.xlu0 %2831  ;;  %v8985_v24 = vld [vmem:[#allocation4 + $0x88] ss:$52 sps:$4 sm:$0xff]   ;;  %v8987_v30 = vld [vmem:[#allocation4 + $0x8c] ss:$52 sps:$4 sm:$0xff]   ;;  %vm13957_vm13 = vmmov %vm13956_vm1 }
 0x486   :  { %2781 = vst [vmem:[#allocation4 + $0x20] sm:$0x88] %v2748_v60  ;;  %v4533_v31 = vsel %vm156_vm0, %v4511_v52, %v4512_v38  ;;  %v13758_v9 = vrot.slane %v12438_v7, 4  ;;  %5829 = vmatprep.subr.bf16.mxu0 %v8987_v30 }
 0x487   :  { %v4534_v0 = vsel %vm13955_vm3, %v11904_v37, %v4533_v31  ;;  %v4618_v4 = vpop.permute.xlu1 %4617  ;;  %5830 = vmatpush1.bf16.msra.mxu0 %v8985_v24 }
 0x488   :  { %4563 = vst [vmem:[#allocation4 + $0x358] sm:$0x33] %v4534_v0  ;;  %v2871_v10 = vsel %vm156_vm0, %v2853_v29, %v13758_v9  ;;  %v4634_v22 = vrot.slane %v4618_v4, 4 }
 0x489   :  { %v2872_v51 = vsel %vm13956_vm1, %v2830_v62, %v2871_v10  ;;  %v12450_v5 = vpop.permute.xlu0 %4781  ;;  %v8988_v60 = vld [vmem:[#allocation4 + $0x18] ss:$52 sps:$4 sm:$0xff]   ;;  %v8990_v52 = vld [vmem:[#allocation4 + $0x1c] ss:$52 sps:$4 sm:$0xff]  }
 0x48a   :  { %2905 = vst [vmem:[#allocation4 + $0x54] sm:$0xcc] %v2872_v51  ;;  %v4655_v37 = vsel %vm156_vm0, %v4633_v53, %v4634_v22  ;;  %v4790_v30 = vrot.slane %v12450_v5, 4  ;;  %5788 = vmatprep.subr.bf16.mxu1 %v8990_v52 }
 0x48b   :  { %v4656_v31 = vsel %vm13957_vm13, %v11920_v32, %v4655_v37  ;;  %v12458_v0 = vpop.permute.xlu1 %4497  ;;  %v4949_v29 = vld [vmem:[#allocation4 + $0x3c0] sm:$0x77]  ;;  %5789 = vmatpush1.bf16.msra.mxu1 %v8988_v60  ;;  %vm13958_vm13 = vmmov %vm13956_vm1 }
 0x48c   :  { %4685 = vst [vmem:[#allocation4 + $0x38c] sm:$0x11] %v4656_v31  ;;  %v4800_v62 = vsel %vm156_vm0, %v4789_v2, %v4790_v30  ;;  %v4513_v24 = vrot.slane %v12458_v0, 4  ;;  %v8385_v10 = vcombine.high %v4949_v29, %v4949_v29  ;;  %v8384_v51 = vcombine.low %v4949_v29, %v4949_v29 }
 0x48d   :  { %v4801_v53 = vsel %vm3023_vm9, %v4780_v3, %v4800_v62  ;;  %v4604_v9 = vpop.permute.xlu0 %4603 }
 0x48e   :  { %4815 = vst [vmem:[#allocation4 + $0x3c8] sm:$0x77] %v4801_v53  ;;  %v4535_v32 = vsel %vm156_vm0, %v4512_v38, %v4513_v24  ;;  %v4627_v52 = vrot.slane %v4604_v9, 4  ;;  %8397 = vmatprep.subr.msk.bf16.mxu1 %vm13761_vm15, %v8385_v10  ;;  %v5625_v37 = vsel %vm13761_vm15, %v8384_v51, 0 }
 0x48f   :  { %v4536_v2 = vsel %vm13955_vm3, %v4496_v14, %v4535_v32  ;;  %v12471_v31 = vpop.permute.xlu1 %4619  ;;  %5803 = vmatpush2.bf16.msra.mxu1 %v5625_v37  ;;  %vm2783_vm3 = vcmask 674819  }
 0x490   :  { %4564 = vst [vmem:[#allocation4 + $0x360] sm:$0x33] %v4536_v2  ;;  %v4643_v3 = vsel %vm156_vm0, %v4626_v20, %v4627_v52  ;;  %v4635_v60 = vrot.slane %v12471_v31, 4 }
 0x491   :  { %v4644_v38 = vsel %vm13956_vm1, %v11947_v26, %v4643_v3  ;;  %v4719_v29 = vpop.permute.xlu0 %4718  ;;  %v8993_v62 = vld [vmem:[#allocation4 + $0x20] ss:$52 sps:$4 sm:$0xff]   ;;  %v8995_v10 = vld [vmem:[#allocation4 + $0x24] ss:$52 sps:$4 sm:$0xff]  }
 0x492   :  { %4678 = vst [vmem:[#allocation4 + $0x358] sm:$0xcc] %v4644_v38  ;;  %v4657_v14 = vsel %vm156_vm0, %v4634_v22, %v4635_v60  ;;  %v4728_v51 = vrot.slane %v4719_v29, 4  ;;  %5831 = vmatprep.subr.bf16.mxu0 %v8995_v10 }
 0x493   :  { %v4658_v53 = vsel %vm13958_vm13, %v4618_v4, %v4657_v14  ;;  %v4293_v32 = vpop.permute.xlu1 %4292  ;;  %5832 = vmatpush1.bf16.msra.mxu0 %v8993_v62  ;;  %vm13960_vm13 = vcmask 1031168  }
 0x494   :  { %4686 = vst [vmem:[#allocation4 + $0x394] sm:$0x11] %v4658_v53  ;;  %v4737_v20 = vsel %vm156_vm0, %v4727_v16, %v4728_v51  ;;  %v4307_v37 = vrot.slane %v4293_v32, 4 }
 0x495   :  { %v4738_v26 = vsel %vm2960_vm11, %v11972_v36, %v4737_v20  ;;  %v12488_v2 = vpop.permute.xlu0 %4605  ;;  %v4950_v3 = vld [vmem:[#allocation4 + $0x3c8] sm:$0x77]  ;;  %v13959_v20 = vrot.slane %v12034_v46, 4 }
 0x496   :  { %4753 = vst [vmem:[#allocation4 + $0x38c] sm:$0xee] %v4738_v26  ;;  %v4331_v4 = vsel %vm156_vm0, %v4306_v15, %v4307_v37  ;;  %v4333_v22 = vsel %vm3402_vm8, %v4293_v32, %v4307_v37  ;;  %v4628_v38 = vrot.slane %v12488_v2, 4  ;;  %v8387_v10 = vcombine.high %v4950_v3, %v4950_v3 }
 0x497   :  { %v4332_v16 = vsel %vm3402_vm8, %v12008_v44, %v4331_v4  ;;  %4361 = vst.msk [vmem:[#allocation4 + $0x308] sm:$0x1] %vm2915_vm6, %v4333_v22  ;;  %v4486_v36 = vpop.permute.xlu1 %4485  ;;  %v8386_v62 = vcombine.low %v4950_v3, %v4950_v3 }
 0x498   :  { %4360 = vst [vmem:[#allocation4 + $0x300] sm:$0x11] %v4332_v16  ;;  %v4645_v14 = vsel %vm156_vm0, %v4627_v52, %v4628_v38  ;;  %v4507_v53 = vrot.slane %v4486_v36, 4  ;;  %4559 = vst.msk [vmem:[#allocation4 + $0x33c] sm:$0x8] %vm2783_vm3, %v4486_v36  ;;  %8399 = vmatprep.subr.msk.bf16.mxu0 %vm13761_vm15, %v8387_v10 }
 0x499   :  { %v4646_v15 = vsel %vm13956_vm1, %v4604_v9, %v4645_v14  ;;  %v12504_v32 = vpop.permute.xlu0 %4720  ;;  %v5631_v44 = vsel %vm13761_vm15, %v8386_v62, 0  ;;  %v13961_v62 = vrot.slane %v12086_v6, 4  ;;  %vm13962_vm1 = vcmask 490496  }
 0x49a   :  { %4679 = vst [vmem:[#allocation4 + $0x360] sm:$0xcc] %v4646_v15  ;;  %v4525_v37 = vsel %vm156_vm0, %v13959_v20, %v4507_v53  ;;  %v4729_v26 = vrot.slane %v12504_v32, 4  ;;  %5846 = vmatpush2.bf16.msra.mxu0 %v5631_v44  ;;  %vm13963_vm4 = vmmov %vm13962_vm1  ;;  %vm13972_vm15 = vcmask 523264  }
 0x49b   :  { %v4526_v52 = vsel %vm13960_vm13, %v12034_v46, %v4525_v37  ;;  %v4155_v3 = vpop.permute.xlu1 %4154  ;;  %vm2985_vm13 = vcmask 674817   ;;  %vm13969_vm12 = vmmov %vm13962_vm1 }
 0x49c   :  { %4558 = vst [vmem:[#allocation4 + $0x334] sm:$0x88] %v4526_v52  ;;  %v4739_v9 = vsel %vm156_vm0, %v4728_v51, %v4729_v26  ;;  %v4176_v4 = vrot.slane %v4155_v3, 4 }
 0x49d   :  { %v4740_v22 = vsel %vm2960_vm11, %v4719_v29, %v4739_v9  ;;  %v4396_v10 = vpop.permute.xlu0 %4395  ;;  %v8998_v16 = vld [vmem:[#allocation4 + $0x358] ss:$52 sps:$4 sm:$0xff]   ;;  %v9000_v36 = vld [vmem:[#allocation4 + $0x35c] ss:$52 sps:$4 sm:$0xff]   ;;  %v13964_v29 = vrot.slane %v11984_v55, 4 }
 0x49e   :  { %4754 = vst [vmem:[#allocation4 + $0x394] sm:$0xee] %v4740_v22  ;;  %v4194_v14 = vsel %vm156_vm0, %v13961_v62, %v4176_v4  ;;  %v4196_v53 = vsel %vm13962_vm1, %v4155_v3, %v4176_v4  ;;  %v4403_v46 = vrot.slane %v4396_v10, 4  ;;  %5804 = vmatprep.subr.bf16.mxu1 %v9000_v36 }
 0x49f   :  { %v4195_v15 = vsel %vm13963_vm4, %v12086_v6, %v4194_v14  ;;  %4230 = vst.msk [vmem:[#allocation4 + $0x2a0] sm:$0x8] %vm2783_vm3, %v4196_v53  ;;  %v4279_v51 = vpop.permute.xlu1 %4278  ;;  %5805 = vmatpush2.bf16.msra.mxu1 %v8998_v16  ;;  %v13965_v6 = vrot.slane %v12104_v35, 4  ;;  %v13966_v16 = vrot.slane %v12044_v8, 4  ;;  %vm2791_vm4 = vcmask 672768  }
 0x4a0   :  { %4229 = vst [vmem:[#allocation4 + $0x298] sm:$0x88] %v4195_v15  ;;  %v4414_v44 = vsel %vm156_vm0, %v13964_v29, %v4403_v46  ;;  %v4416_v20 = vsel %vm3500_vm14, %v4396_v10, %v4403_v46  ;;  %v4300_v37 = vrot.slane %v4279_v51, 4 }
 0x4a1   :  { %v4415_v52 = vsel %vm3500_vm14, %v11984_v55, %v4414_v44  ;;  %4430 = vst.msk [vmem:[#allocation4 + $0x308] sm:$0xe] %vm2985_vm13, %v4416_v20  ;;  %v4079_v3 = vpop.permute.xlu0 %4078  ;;  %v12541_v55 = vld [vmem:[%s13673_s1 + $0x200] ss:$16 sps:$4 sm:$0xff]   ;;  %v13967_v44 = vrot.slane %v12152_v47, 4 }
 0x4a2   :  { %4429 = vst [vmem:[#allocation4 + $0x300] sm:$0xee] %v4415_v52  ;;  %v4318_v9 = vsel %vm156_vm0, %v13965_v6, %v4300_v37  ;;  %v4320_v4 = vsel %vm3402_vm8, %v4279_v51, %v4300_v37  ;;  %v4086_v22 = vrot.slane %v4079_v3, 4  ;;  %5807 = vmatmul.mubr.bf16.vlgmr.msra.gmra.mxu1 %v12541_v55 }
 0x4a3   :  { %v4319_v36 = vsel %vm3402_vm8, %v12104_v35, %v4318_v9  ;;  %4354 = vst.msk [vmem:[#allocation4 + $0x2d4] sm:$0xc] %vm2907_vm2, %v4320_v4  ;;  %v3902_v10 = vpop.permute.xlu1 %3901  ;;  %v9125_v35 = vld [vmem:[%s13673_s1 + $0x204] ss:$16 sps:$4 sm:$0xff]  }
 0x4a4   :  { %4353 = vst [vmem:[#allocation4 + $0x2cc] sm:$0xcc] %v4319_v36  ;;  %v4097_v62 = vsel %vm156_vm0, %v13966_v16, %v4086_v22  ;;  %v4099_v14 = vsel %vm771_vm10, %v4079_v3, %v4086_v22  ;;  %v3923_v53 = vrot.slane %v3902_v10, 4  ;;  %3975 = vst.msk [vmem:[#allocation4 + $0x238] sm:$0xc] %vm2907_vm2, %v3902_v10  ;;  %8402 = vmatprep.mubr.msk.bf16.mxu1 %vm5601_vm7, %v9125_v35 }
 0x4a5   :  { %v4098_v46 = vsel %vm771_vm10, %v12044_v8, %v4097_v62  ;;  %4113 = vst.msk [vmem:[#allocation4 + $0x2a0] sm:$0x7] %vm2667_vm5, %v4099_v14  ;;  %v4169_v15 = vpop.permute.xlu0 %4168  ;;  %v9001_v51 = vld [vmem:[#allocation4 + $0x360] ss:$52 sps:$4 sm:$0xff]   ;;  %v9003_v29 = vld [vmem:[#allocation4 + $0x364] ss:$52 sps:$4 sm:$0xff]  }
 0x4a6   :  { %4112 = vst [vmem:[#allocation4 + $0x298] sm:$0x77] %v4098_v46  ;;  %v3941_v20 = vsel %vm156_vm0, %v13967_v44, %v3923_v53  ;;  %v4183_v37 = vrot.slane %v4169_v15, 4  ;;  %5847 = vmatprep.subr.bf16.mxu0 %v9003_v29  ;;  %v13968_v8 = vrot.slane %v12063_v45, 4  ;;  %v13971_v62 = vrot.slane %v12171_v63, 4 }
 0x4a7   :  { %v3942_v52 = vsel %vm3023_vm9, %v12152_v47, %v3941_v20  ;;  %v4017_v3 = vpop.permute.xlu1 %4016  ;;  %5848 = vmatpush2.bf16.msra.mxu0 %v9001_v51  ;;  %v13970_v47 = vmov 0   ;;  %v13974_v29 = vrot.slane %v12115_v25, 4 }
 0x4a8   :  { %3974 = vst [vmem:[#allocation4 + $0x230] sm:$0xcc] %v3942_v52  ;;  %v4207_v6 = vsel %vm156_vm0, %v13968_v8, %v4183_v37  ;;  %v4209_v9 = vsel %vm13962_vm1, %v4169_v15, %v4183_v37  ;;  %v4024_v4 = vrot.slane %v4017_v3, 4  ;;  %5903 = vmatprep.subr.bf16.mxu0 %v13970_v47  ;;  %v9007_v15 = vld [vmem:[#allocation4 + $0x308] ss:$52 sps:$4 sm:$0xff]   ;;  %v13975_v52 = vrot.slane %v12187_v34, 4 }
 0x4a9   :  { %v4208_v22 = vsel %vm13969_vm12, %v12063_v45, %v4207_v6  ;;  %4237 = vst.msk [vmem:[#allocation4 + $0x2d4] sm:$0x3] %vm2791_vm4, %v4209_v9  ;;  %v3794_v36 = vpop.permute.xlu0 %3793  ;;  %v9004_v10 = vld [vmem:[#allocation4 + $0x300] ss:$52 sps:$4 sm:$0xff]   ;;  %v9006_v16 = vld [vmem:[#allocation4 + $0x304] ss:$52 sps:$4 sm:$0xff]   ;;  %vm13973_vm12 = vmmov %vm13972_vm15 }
 0x4aa   :  { %4236 = vst [vmem:[#allocation4 + $0x2cc] sm:$0x33] %v4208_v22  ;;  %v4035_v14 = vsel %vm156_vm0, %v13971_v62, %v4024_v4  ;;  %v4037_v53 = vsel %vm13972_vm15, %v4017_v3, %v4024_v4  ;;  %v3808_v46 = vrot.slane %v3794_v36, 4  ;;  %3860 = vst.msk [vmem:[#allocation4 + $0x238] sm:$0x3] %vm2791_vm4, %v3794_v36  ;;  %5850 = vmatmul.mubr.bf16.vlgmr.msra.gmra.mxu0 %v12541_v55  ;;  %5860 = vmatprep.subr.bf16.mxu1 %v9006_v16  ;;  %vm13976_vm15 = vcmask 1014784  }
 0x4ab   :  { %v4036_v45 = vsel %vm13973_vm12, %v12171_v63, %v4035_v14  ;;  %4051 = vst.msk [vmem:[#allocation4 + $0x26c] sm:$0xe] %vm2985_vm13, %v4037_v53  ;;  %v3705_v51 = vpop.permute.xlu1 %3704  ;;  %5861 = vmatpush1.bf16.msra.mxu1 %v9004_v10  ;;  %5904 = vmatpush1.bf16.msra.mxu0 %v9007_v15  ;;  %v13978_v15 = vrot.slane %v12209_v18, 4 }
 0x4ac   :  { %4050 = vst [vmem:[#allocation4 + $0x264] sm:$0xee] %v4036_v45  ;;  %v3831_v44 = vsel %vm156_vm0, %v13974_v29, %v3808_v46  ;;  %v3712_v20 = vrot.slane %v3705_v51, 4  ;;  %3738 = vst.msk [vmem:[#allocation4 + $0x204] sm:$0x7] %vm2667_vm5, %v3705_v51  ;;  %5905 = vmatprep.subr.bf16.mxu0 %v13970_v47  ;;  %8403 = vmatprep.mubr.msk.bf16.mxu0 %vm5601_vm7, %v9125_v35  ;;  %vm13979_vm7 = vcmask 1031168  }
 0x4ad   :  { %v3832_v37 = vsel %vm2960_vm11, %v12115_v25, %v3831_v44  ;;  %v3916_v63 = vpop.permute.xlu0 %3915  ;;  %v13977_v25 = vrot.slane %v12130_v43, 4 }
 0x4ae   :  { %3859 = vst [vmem:[#allocation4 + $0x230] sm:$0x33] %v3832_v37  ;;  %v3723_v3 = vsel %vm156_vm0, %v13975_v52, %v3712_v20  ;;  %v3930_v8 = vrot.slane %v3916_v63, 4  ;;  %3982 = vst.msk [vmem:[#allocation4 + $0x26c] sm:$0x1] %vm2915_vm6, %v3916_v63 }
 0x4af   :  { %v3724_v6 = vsel %vm13976_vm15, %v12187_v34, %v3723_v3  ;;  %v3393_v9 = vpop.permute.xlu1 %3392  ;;  %vm13984_vm15 = vmmov %vm13973_vm12 }
 0x4b0   :  { %3737 = vst [vmem:[#allocation4 + $0x1fc] sm:$0x77] %v3724_v6  ;;  %v3953_v4 = vsel %vm156_vm0, %v13977_v25, %v3930_v8  ;;  %v3400_v22 = vrot.slane %v3393_v9, 4  ;;  %v9008_v36 = vld [vmem:[#allocation4 + $0x2a0] ss:$52 sps:$4 sm:$0xff]  }
 0x4b1   :  { %v3954_v35 = vsel %vm3023_vm9, %v12130_v43, %v3953_v4  ;;  %v3644_v10 = vpop.permute.xlu0 %3643  ;;  %v9009_v16 = vld [vmem:[#allocation4 + $0x298] ss:$52 sps:$4 sm:$0xff]   ;;  %v9011_v62 = vld [vmem:[#allocation4 + $0x29c] ss:$52 sps:$4 sm:$0xff]   ;;  %5906 = vmatpush1.bf16.msra.mxu0 %v9008_v36 }
 0x4b2   :  { %3981 = vst [vmem:[#allocation4 + $0x264] sm:$0x11] %v3954_v35  ;;  %v3412_v14 = vsel %vm156_vm0, %v3399_v17, %v3400_v22  ;;  %v3414_v34 = vsel %vm3402_vm8, %v3393_v9, %v3400_v22  ;;  %v3651_v53 = vrot.slane %v3644_v10, 4  ;;  %3677 = vst.msk [vmem:[#allocation4 + $0x1d0] sm:$0xe] %vm2985_vm13, %v3644_v10  ;;  %5862 = vmatprep.subr.bf16.mxu1 %v9011_v62  ;;  %5907 = vmatprep.subr.bf16.mxu0 %v13970_v47 }
 0x4b3   :  { %v3413_v46 = vsel %vm3402_vm8, %v12269_v50, %v3412_v14  ;;  %3428 = vst.msk [vmem:[#allocation4 + $0x168] sm:$0x7] %vm2667_vm5, %v3414_v34  ;;  %v3484_v43 = vpop.permute.xlu1 %3483  ;;  %5863 = vmatpush1.bf16.msra.mxu1 %v9009_v16  ;;  %vm13982_vm8 = vmmov %vm13962_vm1 }
 0x4b4   :  { %3427 = vst [vmem:[#allocation4 + $0x160] sm:$0x77] %v3413_v46  ;;  %v3662_v17 = vsel %vm156_vm0, %v13978_v15, %v3651_v53  ;;  %v3498_v45 = vrot.slane %v3484_v43, 4 }
 0x4b5   :  { %v3663_v51 = vsel %vm13979_vm7, %v12209_v18, %v3662_v17  ;;  %v3780_v29 = vpop.permute.xlu0 %3779  ;;  %v9012_v44 = vld [vmem:[#allocation4 + $0x238] ss:$52 sps:$4 sm:$0xff]   ;;  %v13980_v18 = vrot.slane %v12233_v12, 4  ;;  %vm13985_vm7 = vmmov %vm13973_vm12 }
 0x4b6   :  { %3676 = vst [vmem:[#allocation4 + $0x1c8] sm:$0xee] %v3663_v51  ;;  %v3523_v50 = vsel %vm156_vm0, %v3497_v57, %v3498_v45  ;;  %v3525_v20 = vsel %vm3500_vm14, %v3484_v43, %v3498_v45  ;;  %v3801_v37 = vrot.slane %v3780_v29, 4  ;;  %3853 = vst.msk [vmem:[#allocation4 + $0x204] sm:$0x8] %vm2783_vm3, %v3780_v29  ;;  %5908 = vmatpush1.bf16.msra.mxu0 %v9012_v44 }
 0x4b7   :  { %v3524_v63 = vsel %vm3500_vm14, %v12286_v21, %v3523_v50  ;;  %3553 = vst.msk [vmem:[#allocation4 + $0x19c] sm:$0x3] %vm2791_vm4, %v3525_v20  ;;  %v3214_v52 = vpop.permute.xlu1 %3213  ;;  %5909 = vmatprep.subr.bf16.mxu0 %v13970_v47 }
 0x4b8   :  { %3552 = vst [vmem:[#allocation4 + $0x194] sm:$0x33] %v3524_v63  ;;  %v3819_v3 = vsel %vm156_vm0, %v13980_v18, %v3801_v37  ;;  %v3235_v8 = vrot.slane %v3214_v52, 4 }
 0x4b9   :  { %v3820_v57 = vsel %vm2960_vm11, %v12233_v12, %v3819_v3  ;;  %v3470_v6 = vpop.permute.xlu0 %3469  ;;  %v9013_v9 = vld [vmem:[#allocation4 + $0x230] ss:$52 sps:$4 sm:$0xff]   ;;  %v9015_v25 = vld [vmem:[#allocation4 + $0x234] ss:$52 sps:$4 sm:$0xff]   ;;  %v13981_v12 = vrot.slane %v12246_v59, 4 }
 0x4ba   :  { %3852 = vst [vmem:[#allocation4 + $0x1fc] sm:$0x88] %v3820_v57  ;;  %v3253_v21 = vsel %vm156_vm0, %v3234_v41, %v3235_v8  ;;  %v3255_v4 = vsel %vm771_vm10, %v3214_v52, %v3235_v8  ;;  %v3491_v22 = vrot.slane %v3470_v6, 4  ;;  %5864 = vmatprep.subr.bf16.mxu1 %v9015_v25 }
 0x4bb   :  { %v3254_v36 = vsel %vm771_vm10, %v12338_v42, %v3253_v21  ;;  %3289 = vst.msk [vmem:[#allocation4 + $0x100] sm:$0xc] %vm2907_vm2, %v3255_v4  ;;  %v3331_v35 = vpop.permute.xlu1 %3330  ;;  %5865 = vmatpush1.bf16.msra.mxu1 %v9013_v9 }
 0x4bc   :  { %3288 = vst [vmem:[#allocation4 + $0xf8] sm:$0xcc] %v3254_v36  ;;  %v3510_v10 = vsel %vm156_vm0, %v13981_v12, %v3491_v22  ;;  %v3512_v16 = vsel %vm3500_vm14, %v3470_v6, %v3491_v22  ;;  %v3338_v62 = vrot.slane %v3331_v35, 4 }
 0x4bd   :  { %v3511_v41 = vsel %vm3500_vm14, %v12246_v59, %v3510_v10  ;;  %3546 = vst.msk [vmem:[#allocation4 + $0x168] sm:$0x8] %vm2783_vm3, %v3512_v16  ;;  %v3104_v14 = vpop.permute.xlu0 %3103  ;;  %v9016_v42 = vld [vmem:[#allocation4 + $0x1d0] ss:$52 sps:$4 sm:$0xff]   ;;  %vm13983_vm14 = vmmov %vm13973_vm12 }
 0x4be   :  { %3545 = vst [vmem:[#allocation4 + $0x160] sm:$0x88] %v3511_v41  ;;  %v3349_v34 = vsel %vm156_vm0, %v3337_v48, %v3338_v62  ;;  %v3351_v53 = vsel %vm13982_vm8, %v3331_v35, %v3338_v62  ;;  %v3118_v46 = vrot.slane %v3104_v14, 4  ;;  %5910 = vmatpush1.bf16.msra.mxu0 %v9016_v42  ;;  %vm13986_vm8 = vcmask 1014784  }
 0x4bf   :  { %v3350_v43 = vsel %vm13962_vm1, %v12354_v61, %v3349_v34  ;;  %3365 = vst.msk [vmem:[#allocation4 + $0x134] sm:$0xe] %vm2985_vm13, %v3351_v53  ;;  %v2951_v15 = vpop.permute.xlu1 %2950  ;;  %5911 = vmatprep.subr.bf16.mxu0 %v13970_v47  ;;  %vm13988_vm1 = vcmask 1031168   ;;  %v13989_v35 = vrot.slane %v12373_v1, 4 }
 0x4c0   :  { %3364 = vst [vmem:[#allocation4 + $0x12c] sm:$0xee] %v3350_v43  ;;  %v3142_v59 = vsel %vm156_vm0, %v3117_v54, %v3118_v46  ;;  %v3144_v17 = vsel %vm13983_vm14, %v3104_v14, %v3118_v46  ;;  %v2958_v45 = vrot.slane %v2951_v15, 4  ;;  %2986 = vst.msk [vmem:[#allocation4 + $0x98] sm:$0xe] %vm2985_vm13, %v2951_v15 }
 0x4c1   :  { %v3143_v48 = vsel %vm13973_vm12, %v12296_v11, %v3142_v59  ;;  %3172 = vst.msk [vmem:[#allocation4 + $0x100] sm:$0x3] %vm2791_vm4, %v3144_v17  ;;  %v3228_v61 = vpop.permute.xlu0 %3227  ;;  %v9017_v51 = vld [vmem:[#allocation4 + $0x1c8] ss:$52 sps:$4 sm:$0xff]   ;;  %v9019_v29 = vld [vmem:[#allocation4 + $0x1cc] ss:$52 sps:$4 sm:$0xff]   ;;  %vm13999_vm12 = vmmov %vm13988_vm1 }
 0x4c2   :  { %3171 = vst [vmem:[#allocation4 + $0xf8] sm:$0x33] %v3143_v48  ;;  %v2970_v54 = vsel %vm156_vm0, %v2957_v19, %v2958_v45  ;;  %v3242_v44 = vrot.slane %v3228_v61, 4  ;;  %5866 = vmatprep.subr.bf16.mxu1 %v9019_v29  ;;  %v13992_v45 = vrot.slane %v12438_v7, 4 }
 0x4c3   :  { %v2971_v50 = vsel %vm2960_vm11, %v12390_v23, %v2970_v54  ;;  %v3090_v20 = vpop.permute.xlu1 %3089  ;;  %5867 = vmatpush1.bf16.msra.mxu1 %v9017_v51 }
 0x4c4   :  { %2984 = vst [vmem:[#allocation4 + $0x90] sm:$0xee] %v2971_v50  ;;  %v3266_v11 = vsel %vm156_vm0, %v3241_v56, %v3242_v44  ;;  %v3268_v37 = vsel %vm771_vm10, %v3228_v61, %v3242_v44  ;;  %v3111_v63 = vrot.slane %v3090_v20, 4  ;;  %v9020_v52 = vld [vmem:[#allocation4 + $0x168] ss:$52 sps:$4 sm:$0xff]  }
 0x4c5   :  { %v3267_v18 = vsel %vm771_vm10, %v12314_v39, %v3266_v11  ;;  %3296 = vst.msk [vmem:[#allocation4 + $0x134] sm:$0x1] %vm2915_vm6, %v3268_v37  ;;  %v2848_v19 = vpop.permute.xlu0 %2847  ;;  %v9021_v3 = vld [vmem:[#allocation4 + $0x160] ss:$52 sps:$4 sm:$0xff]   ;;  %v9023_v23 = vld [vmem:[#allocation4 + $0x164] ss:$52 sps:$4 sm:$0xff]   ;;  %5912 = vmatpush1.bf16.msra.mxu0 %v9020_v52 }
 0x4c6   :  { %3295 = vst [vmem:[#allocation4 + $0x12c] sm:$0x11] %v3267_v18  ;;  %v3129_v8 = vsel %vm156_vm0, %v3110_v27, %v3111_v63  ;;  %v3131_v56 = vsel %vm13984_vm15, %v3090_v20, %v3111_v63  ;;  %v2862_v57 = vrot.slane %v2848_v19, 4  ;;  %2916 = vst.msk [vmem:[#allocation4 + $0x98] sm:$0x1] %vm2915_vm6, %v2848_v19  ;;  %5868 = vmatprep.subr.bf16.mxu1 %v9023_v23  ;;  %5913 = vmatprep.subr.bf16.mxu0 %v13970_v47  ;;  %v5679_v23 = vpop.f32.mrf.mxu0 }
 0x4c7   :  { %v3130_v6 = vsel %vm13985_vm7, %v12402_v28, %v3129_v8  ;;  %3165 = vst.msk [vmem:[#allocation4 + $0xcc] sm:$0x8] %vm2783_vm3, %v3131_v56  ;;  %v2724_v39 = vpop.permute.xlu1 %2723  ;;  %5869 = vmatpush1.bf16.msra.mxu1 %v9021_v3  ;;  %v13987_v28 = vrot.slane %v12410_v49, 4  ;;  %vm14000_vm15 = vmmov %vm13985_vm7 }
 0x4c8   :  { %3164 = vst [vmem:[#allocation4 + $0xc4] sm:$0x88] %v3130_v6  ;;  %v2885_v27 = vsel %vm156_vm0, %v2861_v33, %v2862_v57  ;;  %v2738_v9 = vrot.slane %v2724_v39, 4  ;;  %2792 = vst.msk [vmem:[#allocation4 + $0x64] sm:$0x3] %vm2791_vm4, %v2724_v39 }
 0x4c9   :  { %v2886_v25 = vsel %vm13986_vm8, %v12362_v40, %v2885_v27  ;;  %v3014_v21 = vpop.permute.xlu0 %3013  ;;  %vm14001_vm7 = vmmov %vm13988_vm1 }
 0x4ca   :  { %2914 = vst [vmem:[#allocation4 + $0x90] sm:$0x11] %v2886_v25  ;;  %v2761_v4 = vsel %vm156_vm0, %v13987_v28, %v2738_v9  ;;  %v3021_v22 = vrot.slane %v3014_v21, 4  ;;  %3048 = vst.msk [vmem:[#allocation4 + $0xcc] sm:$0x7] %vm2667_vm5, %v3014_v21 }
 0x4cb   :  { %v2762_v36 = vsel %vm13988_vm1, %v12410_v49, %v2761_v4  ;;  %v4784_v33 = vpop.permute.xlu1 %4783 }
 0x4cc   :  { %2790 = vst [vmem:[#allocation4 + $0x5c] sm:$0x33] %v2762_v36  ;;  %v3033_v12 = vsel %vm156_vm0, %v13989_v35, %v3021_v22  ;;  %v4791_v10 = vrot.slane %v4784_v33, 4  ;;  %4817 = vst.msk [vmem:[#allocation4 + $0x3d8] sm:$0x7] %vm2667_vm5, %v4784_v33 }
 0x4cd   :  { %v9024_v40 = vld [vmem:[#allocation4 + $0x100] ss:$52 sps:$4 sm:$0xff]   ;;  %v3034_v16 = vsel %vm3023_vm9, %v12373_v1, %v3033_v12  ;;  %v2710_v62 = vpop.permute.xlu0 %2709  ;;  %v9025_v41 = vld [vmem:[#allocation4 + $0xf8] ss:$52 sps:$4 sm:$0xff]   ;;  %v9027_v14 = vld [vmem:[#allocation4 + $0xfc] ss:$52 sps:$4 sm:$0xff]  }
 0x4ce   :  { %3047 = vst [vmem:[#allocation4 + $0xc4] sm:$0x77] %v3034_v16  ;;  %v4802_v49 = vsel %vm156_vm0, %v4790_v30, %v4791_v10  ;;  %v2731_v42 = vrot.slane %v2710_v62, 4  ;;  %2784 = vst.msk [vmem:[#allocation4 + $0x30] sm:$0x8] %vm2783_vm3, %v2710_v62  ;;  %5914 = vmatpush1.bf16.msra.mxu0 %v9024_v40  ;;  %5870 = vmatprep.subr.bf16.mxu1 %v9027_v14 }
 0x4cf   :  { %v4803_v34 = vsel %vm3023_vm9, %v12450_v5, %v4802_v49  ;;  %v4608_v53 = vpop.permute.xlu1 %4607  ;;  %5915 = vmatprep.subr.bf16.mxu0 %v13970_v47  ;;  %5871 = vmatpush1.bf16.msra.mxu1 %v9025_v41  ;;  %vm13990_vm5 = vmmov %vm13988_vm1 }
 0x4d0   :  { %4816 = vst [vmem:[#allocation4 + $0x3d0] sm:$0x77] %v4803_v34  ;;  %v2749_v1 = vsel %vm156_vm0, %v2730_v58, %v2731_v42  ;;  %v4629_v46 = vrot.slane %v4608_v53, 4  ;;  %4681 = vst.msk [vmem:[#allocation4 + $0x370] sm:$0xc] %vm2907_vm2, %v4608_v53 }
 0x4d1   :  { %v2750_v30 = vsel %vm13990_vm5, %v12426_v13, %v2749_v1  ;;  %v2834_v43 = vpop.permute.xlu0 %2833  ;;  %v9028_v15 = vld [vmem:[#allocation4 + $0x98] ss:$52 sps:$4 sm:$0xff]   ;;  %vm13991_vm3 = vmmov %vm13986_vm8 }
 0x4d2   :  { %2782 = vst [vmem:[#allocation4 + $0x28] sm:$0x88] %v2750_v30  ;;  %v4647_v5 = vsel %vm156_vm0, %v4628_v38, %v4629_v46  ;;  %v2855_v59 = vrot.slane %v2834_v43, 4  ;;  %2908 = vst.msk [vmem:[#allocation4 + $0x64] sm:$0xc] %vm2907_vm2, %v2834_v43  ;;  %5916 = vmatpush1.bf16.msra.mxu0 %v9028_v15 }
 0x4d3   :  { %v4648_v58 = vsel %vm13991_vm3, %v12488_v2, %v4647_v5  ;;  %v4723_v17 = vpop.permute.xlu1 %4722  ;;  %5917 = vmatprep.subr.bf16.mxu0 %v13970_v47  ;;  %vm13993_vm14 = vmmov %vm13991_vm3  ;;  %v9036_v37 = vld [vmem:[#allocation4 + $0x3d8] ss:$0 sps:$4 sm:$0x77]  }
 0x4d4   :  { %4680 = vst [vmem:[#allocation4 + $0x368] sm:$0xcc] %v4648_v58  ;;  %v2873_v13 = vsel %vm156_vm0, %v13992_v45, %v2855_v59  ;;  %v4730_v48 = vrot.slane %v4723_v17, 4  ;;  %4756 = vst.msk [vmem:[#allocation4 + $0x3a4] sm:$0xe] %vm2985_vm13, %v4723_v17  ;;  %vm13996_vm13 = vcmask 1042432  }
 0x4d5   :  { %v2874_v38 = vsel %vm13993_vm14, %v12438_v7, %v2873_v13  ;;  %v4500_v61 = vpop.permute.xlu0 %4499  ;;  %v9029_v51 = vld [vmem:[#allocation4 + $0x90] ss:$52 sps:$4 sm:$0xff]   ;;  %v9031_v29 = vld [vmem:[#allocation4 + $0x94] ss:$52 sps:$4 sm:$0xff]   ;;  %vm13994_vm2 = vmmov %vm13988_vm1  ;;  %v5643_v18 = vsel %vm13996_vm13, %v9036_v37, 0  ;;  %vm6532_vm1 = vcmask 3072  }
 0x4d6   :  { %2906 = vst [vmem:[#allocation4 + $0x5c] sm:$0xcc] %v2874_v38  ;;  %v4741_v2 = vsel %vm156_vm0, %v4729_v26, %v4730_v48  ;;  %v4514_v54 = vrot.slane %v4500_v61, 4  ;;  %4566 = vst.msk [vmem:[#allocation4 + $0x370] sm:$0x3] %vm2791_vm4, %v4500_v61  ;;  %5872 = vmatprep.subr.bf16.mxu1 %v9031_v29 }
 0x4d7   :  { %v4742_v44 = vsel %vm2960_vm11, %v12504_v32, %v4741_v2  ;;  %5873 = vmatpush1.bf16.msra.mxu1 %v9029_v51  ;;  %v4951_v63 = vld [vmem:[#allocation4 + $0x3d0] sm:$0x77]  ;;  %vm13995_vm11 = vmmov %vm13991_vm3 }
 0x4d8   :  { %4755 = vst [vmem:[#allocation4 + $0x39c] sm:$0xee] %v4742_v44  ;;  %v4537_v7 = vsel %vm156_vm0, %v4513_v24, %v4514_v54  ;;  %v8389_v19 = vcombine.high %v4951_v63, %v4951_v63  ;;  %v8388_v3 = vcombine.low %v4951_v63, %v4951_v63  ;;  %vm14002_vm8 = vmmov %vm14000_vm15 }
 0x4d9   :  { %v4538_v50 = vsel %vm13994_vm2, %v12458_v0, %v4537_v7  ;;  %v4622_v20 = vpop.permute.xlu0 %4621  ;;  %v9032_v11 = vld [vmem:[#allocation4 + $0x30] ss:$52 sps:$4 sm:$0xff]   ;;  %vm14003_vm5 = vmmov %vm13994_vm2 }
 0x4da   :  { %4565 = vst [vmem:[#allocation4 + $0x368] sm:$0x33] %v4538_v50  ;;  %v4636_v26 = vrot.slane %v4622_v20, 4  ;;  %4688 = vst.msk [vmem:[#allocation4 + $0x3a4] sm:$0x1] %vm2915_vm6, %v4622_v20  ;;  %5918 = vmatpush1.bf16.msra.mxu0 %v9032_v11 }
 0x4db   :  { %5931 = vmatprep.subr.bf16.mxu0 %v13970_v47  ;;  %vm13997_vm6 = vmmov %vm13996_vm13 }
 0x4dc   :  { %v4659_v32 = vsel %vm156_vm0, %v4635_v60, %v4636_v26  ;;  %vm13998_vm4 = vmmov %vm13997_vm6 }
 0x4dd   :  { %v4660_v24 = vsel %vm13995_vm11, %v12471_v31, %v4659_v32  ;;  %v9033_v52 = vld [vmem:[#allocation4 + $0x28] ss:$52 sps:$4 sm:$0xff]   ;;  %v9035_v0 = vld [vmem:[#allocation4 + $0x2c] ss:$52 sps:$4 sm:$0xff]   ;;  %v5637_v8 = vsel %vm13998_vm4, %v8388_v3, 0  ;;  %v5681_v31 = vpop.f32.mrf.mxu0  ;;  %vm14004_vm3 = vmmov %vm14002_vm8 }
 0x4de   :  { %4687 = vst [vmem:[#allocation4 + $0x39c] sm:$0x11] %v4660_v24  ;;  %5874 = vmatprep.subr.bf16.mxu1 %v9035_v0  ;;  %5932 = vmatpush2.bf16.msra.mxu0 %v5643_v18  ;;  %v5722_v36 = vpop.f32.mrf.mxu1  ;;  %vm14005_vm14 = vmmov %vm13994_vm2 }
 0x4df   :  { %5875 = vmatpush1.bf16.msra.mxu1 %v9033_v52  ;;  %5933 = vmatprep.subr.bf16.mxu0 %v13970_v47  ;;  %v5683_v9 = vpop.f32.mrf.mxu0  ;;  %vm14006_vm11 = vmmov %vm13994_vm2 }
 0x4e0   :  { %8401 = vmatprep.subr.msk.bf16.mxu1 %vm13997_vm6, %v8389_v19  ;;  %v12748_v28 = vpop.permute.xlu1 %4962  ;;  %v5724_v10 = vpop.f32.mrf.mxu1  ;;  %vm14007_vm13 = vmmov %vm14004_vm3 }
 0x4e1   :  { %v9038_v60 = vld [vmem:[#allocation4 + $0x370] ss:$52 sps:$4 sm:$0xff]   ;;  %v5685_v33 = vpop.f32.mrf.mxu0  ;;  %v5684_v12 = vadd.f32 %v5683_v9, %v12748_v28  ;;  %vm14008_vm6 = vmmov %vm14004_vm3 }
 0x4e2   :  { %5934 = vmatpush2.bf16.msra.mxu0 %v9038_v60  ;;  %v5686_v35 = vadd.f32 %v5685_v33, %v12748_v28  ;;  %v5726_v16 = vpop.f32.mrf.mxu1  ;;  %vm14009_vm4 = vmmov %vm14004_vm3 }
 0x4e3   :  { %5889 = vmatpush2.bf16.msra.mxu1 %v5637_v8  ;;  %7679 = vmatprep.subr.bf16.mxu0 %v13970_v47  ;;  %v5957_v40 = vmul.f32 0.01, %v5684_v12  ;;  %v5727_v48 = vadd.f32 %v5726_v16, %v12748_v28 }
 0x4e4   :  { %v5728_v14 = vpop.f32.mrf.mxu1 }
 0x4e5   :  { %v9040_v56 = vld [vmem:[#allocation4 + $0x368] ss:$52 sps:$4 sm:$0xff]   ;;  %v9042_v57 = vld [vmem:[#allocation4 + $0x36c] ss:$52 sps:$4 sm:$0xff]   ;;  %5936 = vmatmul.mubr.bf16.vlgmr.msra.gmra.mxu0 %v12541_v55  ;;  %v12771_v41 = vmax.f32 %v5684_v12, %v5957_v40  ;;  %v5729_v49 = vadd.f32 %v5728_v14, %v12748_v28  ;;  %v5959_v61 = vmul.f32 0.01, %v5727_v48 }
 0x4e6   :  { %v12743_v6 = vpop.permute.xlu0 %4957  ;;  %5890 = vmatprep.subr.bf16.mxu1 %v9042_v57 }
 0x4e7   :  { %v5680_v39 = vadd.f32 %v5679_v23, %v12743_v6  ;;  %v5682_v27 = vadd.f32 %v5681_v31, %v12743_v6  ;;  %5891 = vmatpush2.bf16.msra.mxu1 %v9040_v56  ;;  %v5723_v42 = vadd.f32 %v5722_v36, %v12743_v6  ;;  %v5960_v34 = vmul.f32 0.01, %v5729_v49  ;;  %v5765_v1 = vpop.f32.mrf.mxu0 }
 0x4e8   :  { %v5725_v15 = vadd.f32 %v5724_v10, %v12743_v6  ;;  %v12819_v29 = vmax.f32 %v5727_v48, %v5959_v61  ;;  %v5766_v54 = vadd.f32 %v5765_v1, %v12743_v6 }
 0x4e9   :  { %v5944_v25 = vmul.f32 0.01, %v5680_v39  ;;  %v5945_v21 = vmul.f32 0.01, %v5682_v27  ;;  %v5946_v53 = vmul.f32 0.01, %v5723_v42  ;;  %v12783_v46 = vmax.f32 %v5729_v49, %v5960_v34  ;;  %v5767_v43 = vpop.f32.mrf.mxu0 }
 0x4ea   :  { %5893 = vmatmul.mubr.bf16.vlgmr.msra.gmra.mxu1 %v12541_v55  ;;  %v5958_v55 = vmul.f32 0.01, %v5686_v35  ;;  %v5768_v5 = vadd.f32 %v5767_v43, %v12743_v6  ;;  %v5947_v59 = vmul.f32 0.01, %v5725_v15  ;;  %v5948_v44 = vmul.f32 0.01, %v5766_v54 }
 0x4eb   :  { %v12751_v4 = vmax.f32 %v5680_v39, %v5944_v25  ;;  %v12753_v22 = vmax.f32 %v5682_v27, %v5945_v21  ;;  %v12789_v30 = vmax.f32 %v5723_v42, %v5946_v53  ;;  %v5769_v17 = vpop.f32.mrf.mxu0 }
 0x4ec   :  { %v12769_v62 = vmax.f32 %v5686_v35, %v5958_v55  ;;  %v5949_v58 = vmul.f32 0.01, %v5768_v5  ;;  %v12805_v45 = vmax.f32 %v5725_v15, %v5947_v59  ;;  %v5770_v38 = vadd.f32 %v5769_v17, %v12748_v28 }
 0x4ed   :  { %6022 = vrot.lane.b32.xlu0 %v12751_v4, %s9129_s20  ;;  %6024 = vrot.lane.b32.xlu1 %v12753_v22, %s9129_s20  ;;  %v5771_v7 = vpop.f32.mrf.mxu0  ;;  %v12840_v50 = vmax.f32 %v5766_v54, %v5948_v44 }
 0x4ee   :  { %v12807_v13 = vmax.f32 %v5768_v5, %v5949_v58  ;;  %v5961_v51 = vmul.f32 0.01, %v5770_v38  ;;  %v5772_v20 = vadd.f32 %v5771_v7, %v12748_v28 }
 0x4f0   :  { %v12821_v2 = vmax.f32 %v5770_v38, %v5961_v51  ;;  %v5962_v11 = vmul.f32 0.01, %v5772_v20 }
 0x4f1   :  { %6151 = vrot.lane.b32.xlu0 %v12751_v4, %s9141_s6  ;;  %6153 = vrot.lane.b32.xlu1 %v12753_v22, %s9141_s6 }
 0x4f2   :  { %v12847_v26 = vmax.f32 %v5772_v20, %v5962_v11 }
 0x4f5   :  { %6280 = vrot.lane.b32.xlu0 %v12751_v4, %s9135_s26  ;;  %6282 = vrot.lane.b32.xlu1 %v12753_v22, %s9135_s26 }
 0x4f9   :  { %6050 = vrot.lane.b32.xlu1 %v12769_v62, %s9129_s20  ;;  %6048 = vrot.lane.b32.xlu0 %v12771_v41, %s9129_s20 }
 0x4fd   :  { %6179 = vrot.lane.b32.xlu1 %v12769_v62, %s9141_s6  ;;  %6177 = vrot.lane.b32.xlu0 %v12771_v41, %s9141_s6 }
 0x501   :  { %6308 = vrot.lane.b32.xlu1 %v12769_v62, %s9135_s26  ;;  %6306 = vrot.lane.b32.xlu0 %v12771_v41, %s9135_s26 }
 0x505   :  { %6054 = vrot.lane.b32.xlu1 %v12783_v46, %s9129_s20  ;;  %6026 = vrot.lane.b32.xlu0 %v12789_v30, %s9129_s20 }
 0x509   :  { %6183 = vrot.lane.b32.xlu1 %v12783_v46, %s9141_s6  ;;  %6155 = vrot.lane.b32.xlu0 %v12789_v30, %s9141_s6 }
 0x50d   :  { %6312 = vrot.lane.b32.xlu1 %v12783_v46, %s9135_s26  ;;  %6284 = vrot.lane.b32.xlu0 %v12789_v30, %s9135_s26 }
 0x511   :  { %6032 = vrot.lane.b32.xlu1 %v12807_v13, %s9129_s20  ;;  %6028 = vrot.lane.b32.xlu0 %v12805_v45, %s9129_s20 }
 0x515   :  { %6161 = vrot.lane.b32.xlu1 %v12807_v13, %s9141_s6  ;;  %6157 = vrot.lane.b32.xlu0 %v12805_v45, %s9141_s6 }
 0x519   :  { %6290 = vrot.lane.b32.xlu1 %v12807_v13, %s9135_s26  ;;  %6286 = vrot.lane.b32.xlu0 %v12805_v45, %s9135_s26 }
 0x51d   :  { %6056 = vrot.lane.b32.xlu1 %v12821_v2, %s9129_s20  ;;  %6052 = vrot.lane.b32.xlu0 %v12819_v29, %s9129_s20 }
 0x521   :  { %6185 = vrot.lane.b32.xlu1 %v12821_v2, %s9141_s6  ;;  %6181 = vrot.lane.b32.xlu0 %v12819_v29, %s9141_s6 }
 0x525   :  { %6314 = vrot.lane.b32.xlu1 %v12821_v2, %s9135_s26  ;;  %6310 = vrot.lane.b32.xlu0 %v12819_v29, %s9135_s26 }
 0x529   :  { %6030 = vrot.lane.b32.xlu0 %v12840_v50, %s9129_s20 }
 0x52d   :  { %6159 = vrot.lane.b32.xlu0 %v12840_v50, %s9141_s6 }
 0x531   :  { %6288 = vrot.lane.b32.xlu0 %v12840_v50, %s9135_s26 }
 0x535   :  { %6058 = vrot.lane.b32.xlu0 %v12847_v26, %s9129_s20 }
 0x539   :  { %6187 = vrot.lane.b32.xlu0 %v12847_v26, %s9141_s6 }
 0x53d   :  { %6316 = vrot.lane.b32.xlu0 %v12847_v26, %s9135_s26 }
 0x55f   :  { %v6023_v37 = vpop.permute.xlu0 %6022  ;;  %v6025_v32 = vpop.permute.xlu1 %6024 }
 0x560   :  { %v6075_v34 = vsel %vm13999_vm12, %v6023_v37, %v6025_v32  ;;  %vm14010_vm12 = vmmov %vm13994_vm2 }
 0x561   :  { %v6125_v59 = vadd.f32 %v6075_v34, %v12751_v4 }
 0x562   :  { %v5808_v52 = vpop.f32.mrf.mxu1 }
 0x563   :  { %v6152_v63 = vpop.permute.xlu0 %6151  ;;  %v6154_v24 = vpop.permute.xlu1 %6153  ;;  %v5809_v0 = vadd.f32 %v5808_v52, %v12743_v6 }
 0x564   :  { %v12858_v18 = vpop.f32.mrf.mxu1  ;;  %v6204_v43 = vsel %vm14000_vm15, %v6152_v63, %v6154_v24  ;;  %vm14011_vm15 = vmmov %vm14004_vm3 }
 0x565   :  { %v5950_v19 = vmul.f32 0.01, %v5809_v0  ;;  %v6254_v61 = vadd.f32 %v6204_v43, %v6125_v59 }
 0x566   :  { %v5812_v60 = vpop.f32.mrf.mxu1 }
 0x567   :  { %v6281_v3 = vpop.permute.xlu0 %6280  ;;  %v6283_v23 = vpop.permute.xlu1 %6282  ;;  %v5976_v8 = vmax.f32 %v5809_v0, %v5950_v19  ;;  %v5813_v31 = vadd.f32 %v5812_v60, %v12748_v28 }
 0x568   :  { %v6333_v48 = vsel %vm771_vm10, %v6281_v3, %v6283_v23 }
 0x569   :  { %v5963_v56 = vmul.f32 0.01, %v5813_v31  ;;  %6034 = vrot.lane.b32.xlu0 %v5976_v8, %s9129_s20  ;;  %v6383_v44 = vadd.f32 %v6333_v48, %v6254_v61 }
 0x56a   :  { %v5851_v27 = vpop.f32.mrf.mxu0 }
 0x56b   :  { %v12862_v57 = vpop.permute.xlu0 %6048  ;;  %v12864_v39 = vpop.permute.xlu1 %6050  ;;  %v5989_v9 = vmax.f32 %v5813_v31, %v5963_v56  ;;  %v5852_v25 = vadd.f32 %v5851_v27, %v12743_v6  ;;  %v6409_v52 = vmul.f32 0.25, %v6383_v44 }
 0x56c   :  { %v5853_v21 = vpop.f32.mrf.mxu0 }
 0x56d   :  { %6060 = vrot.lane.b32.xlu1 %v5989_v9, %s9129_s20  ;;  %6163 = vrot.lane.b32.xlu0 %v5976_v8, %s9141_s6  ;;  %v5952_v35 = vmul.f32 0.01, %v5852_v25  ;;  %v5854_v12 = vadd.f32 %v5853_v21, %v12743_v6 }
 0x56e   :  { %v5855_v14 = vpop.f32.mrf.mxu0 }
 0x56f   :  { %v12869_v36 = vpop.permute.xlu0 %6177  ;;  %v12871_v33 = vpop.permute.xlu1 %6179  ;;  %v12880_v40 = vmax.f32 %v5852_v25, %v5952_v35  ;;  %v5953_v16 = vmul.f32 0.01, %v5854_v12  ;;  %v5856_v1 = vadd.f32 %v5855_v14, %v12748_v28  ;;  %v6087_v25 = vsel %vm14003_vm5, %v12862_v57, %v12864_v39  ;;  %vm14014_vm5 = vmmov %vm13994_vm2 }
 0x570   :  { %v5857_v15 = vpop.f32.mrf.mxu0  ;;  %v6138_v57 = vadd.f32 %v6087_v25, %v12771_v41 }
 0x571   :  { %6189 = vrot.lane.b32.xlu1 %v5989_v9, %s9141_s6  ;;  %6292 = vrot.lane.b32.xlu0 %v5976_v8, %s9135_s26  ;;  %v12888_v53 = vmax.f32 %v5854_v12, %v5953_v16  ;;  %v5965_v51 = vmul.f32 0.01, %v5856_v1  ;;  %v5858_v54 = vadd.f32 %v5857_v15, %v12748_v28  ;;  %v6216_v12 = vsel %vm14004_vm3, %v12869_v36, %v12871_v33 }
 0x573   :  { %v12876_v10 = vpop.permute.xlu0 %6306  ;;  %v12878_v55 = vpop.permute.xlu1 %6308  ;;  %v5966_v63 = vmul.f32 0.01, %v5858_v54 }
 0x574   :  { %v6345_v36 = vsel %vm771_vm10, %v12876_v10, %v12878_v55 }
 0x575   :  { %6318 = vrot.lane.b32.xlu1 %v5989_v9, %s9135_s26  ;;  %6038 = vrot.lane.b32.xlu0 %v12880_v40, %s9129_s20  ;;  %v12922_v3 = vmax.f32 %v5858_v54, %v5966_v63 }
 0x577   :  { %v12885_v49 = vpop.permute.xlu0 %6026  ;;  %v6055_v42 = vpop.permute.xlu1 %6054 }
 0x578   :  { %v6076_v5 = vsel %vm14001_vm7, %v6025_v32, %v12885_v49  ;;  %v12914_v32 = vmax.f32 %v5856_v1, %v5965_v51  ;;  %vm14012_vm7 = vmmov %vm13994_vm2 }
 0x579   :  { %6040 = vrot.lane.b32.xlu1 %v12888_v53, %s9129_s20  ;;  %6167 = vrot.lane.b32.xlu0 %v12880_v40, %s9141_s6  ;;  %v6126_v4 = vadd.f32 %v6076_v5, %v12753_v22  ;;  %v6267_v5 = vadd.f32 %v6216_v12, %v6138_v57 }
 0x57b   :  { %v12899_v58 = vpop.permute.xlu0 %6155  ;;  %v6184_v17 = vpop.permute.xlu1 %6183 }
 0x57c   :  { %v6205_v38 = vsel %vm14002_vm8, %v6154_v24, %v12899_v58  ;;  %vm14013_vm8 = vmmov %vm14004_vm3 }
 0x57d   :  { %v6255_v7 = vadd.f32 %v6205_v38, %v6126_v4  ;;  %6169 = vrot.lane.b32.xlu1 %v12888_v53, %s9141_s6  ;;  %6296 = vrot.lane.b32.xlu0 %v12880_v40, %s9135_s26  ;;  %v6396_v38 = vadd.f32 %v6345_v36, %v6267_v5 }
 0x57f   :  { %v12910_v20 = vpop.permute.xlu0 %6284  ;;  %v6313_v11 = vpop.permute.xlu1 %6312 }
 0x580   :  { %v6334_v37 = vsel %vm771_vm10, %v6283_v23, %v12910_v20 }
 0x581   :  { %v6384_v24 = vadd.f32 %v6334_v37, %v6255_v7  ;;  %6298 = vrot.lane.b32.xlu1 %v12888_v53, %s9135_s26  ;;  %6064 = vrot.lane.b32.xlu0 %v12914_v32, %s9129_s20  ;;  %v6422_v37 = vmul.f32 0.25, %v6396_v38 }
 0x583   :  { %v6410_v22 = vmul.f32 0.25, %v6384_v24  ;;  %v6029_v0 = vpop.permute.xlu0 %6028  ;;  %v12920_v19 = vpop.permute.xlu1 %6032 }
 0x585   :  { %v8505_v60 = vpack.c.bf16 %v6410_v22, %v6409_v52  ;;  %6066 = vrot.lane.b32.xlu1 %v12922_v3, %s9129_s20  ;;  %6193 = vrot.lane.b32.xlu0 %v12914_v32, %s9141_s6  ;;  %v6077_v22 = vsel %vm14010_vm12, %v12885_v49, %v6029_v0  ;;  %vm14020_vm12 = vmmov %vm13994_vm2 }
 0x586   :  { %v6127_v25 = vadd.f32 %v6077_v22, %v12789_v30 }
 0x587   :  { %6515 = vst [vmem:[#allocation5] sm:$0xff] %v8505_v60  ;;  %v6158_v23 = vpop.permute.xlu0 %6157  ;;  %v12928_v8 = vpop.permute.xlu1 %6161 }
 0x589   :  { %6195 = vrot.lane.b32.xlu1 %v12922_v3, %s9141_s6  ;;  %6322 = vrot.lane.b32.xlu0 %v12914_v32, %s9135_s26 }
 0x58b   :  { %v6287_v31 = vpop.permute.xlu0 %6286  ;;  %v12934_v56 = vpop.permute.xlu1 %6290 }
 0x58d   :  { %6324 = vrot.lane.b32.xlu1 %v12922_v3, %s9135_s26 }
 0x58e   :  { %v6644_v21 = vld [vmem:[#allocation5 + $0x4] sm:$0xf]  ;;  %v6530_v35 = vld [vmem:[#allocation5] sm:$0xf] }
 0x58f   :  { %v6053_v27 = vpop.permute.xlu0 %6052  ;;  %v12938_v9 = vpop.permute.xlu1 %6056  ;;  %6646 = vst.msk [vmem:[#allocation6 + $0x28] sm:$0xf] %vm6532_vm1, %v6644_v21  ;;  %6533 = vst.msk [vmem:[#allocation6] sm:$0xf] %vm6532_vm1, %v6530_v35  ;;  %v6335_v35 = vsel %vm771_vm10, %v12910_v20, %v6287_v31 }
 0x590   :  { %v6088_v16 = vsel %vm14005_vm14, %v12864_v39, %v6053_v27  ;;  %v6089_v14 = vsel %vm13994_vm2, %v6053_v27, %v6055_v42  ;;  %v6090_v34 = vsel %vm14006_vm11, %v6055_v42, %v12938_v9  ;;  %vm14015_vm14 = vmmov %vm13994_vm2 }
 0x591   :  { %v6139_v59 = vadd.f32 %v6088_v16, %v12769_v62  ;;  %v6140_v41 = vadd.f32 %v6089_v14, %v12819_v29  ;;  %v6141_v48 = vadd.f32 %v6090_v34, %v12783_v46  ;;  %vm14016_vm11 = vmmov %vm14004_vm3 }
 0x593   :  { %v6182_v1 = vpop.permute.xlu0 %6181  ;;  %v12954_v43 = vpop.permute.xlu1 %6185 }
 0x594   :  { %v6217_v39 = vsel %vm14007_vm13, %v12871_v33, %v6182_v1  ;;  %v6218_v15 = vsel %vm14008_vm6, %v6182_v1, %v6184_v17  ;;  %v6219_v42 = vsel %vm14009_vm4, %v6184_v17, %v12954_v43  ;;  %vm14017_vm13 = vmmov %vm14004_vm3 }
 0x595   :  { %v6268_v61 = vadd.f32 %v6217_v39, %v6139_v59  ;;  %v6269_v51 = vadd.f32 %v6218_v15, %v6140_v41  ;;  %v6270_v54 = vadd.f32 %v6219_v42, %v6141_v48  ;;  %v12994_v15 = vpop.f32.mrf.mxu1  ;;  %vm14018_vm6 = vmmov %vm13994_vm2 }
 0x596   :  { %vm14019_vm4 = vmmov %vm14004_vm3 }
 0x597   :  { %v6311_v10 = vpop.permute.xlu0 %6310  ;;  %v12967_v4 = vpop.permute.xlu1 %6314 }
 0x598   :  { %v6346_v33 = vsel %vm771_vm10, %v12878_v55, %v6311_v10  ;;  %v6347_v44 = vsel %vm771_vm10, %v6311_v10, %v6313_v11  ;;  %v6348_v17 = vsel %vm771_vm10, %v6313_v11, %v12967_v4  ;;  %v6206_v55 = vsel %vm14011_vm15, %v12899_v58, %v6158_v23  ;;  %vm14021_vm15 = vmmov %vm14004_vm3 }
 0x599   :  { %v6397_v62 = vadd.f32 %v6346_v33, %v6268_v61  ;;  %v6398_v7 = vadd.f32 %v6347_v44, %v6269_v51  ;;  %v6399_v29 = vadd.f32 %v6348_v17, %v6270_v54  ;;  %v6256_v12 = vadd.f32 %v6206_v55, %v6127_v25 }
 0x59b   :  { %v6423_v46 = vmul.f32 0.25, %v6397_v62  ;;  %v6424_v63 = vmul.f32 0.25, %v6398_v7  ;;  %v6425_v24 = vmul.f32 0.25, %v6399_v29  ;;  %v12974_v52 = vpop.permute.xlu0 %6030  ;;  %v6385_v14 = vadd.f32 %v6335_v35, %v6256_v12 }
 0x59c   :  { %v6078_v11 = vsel %vm14012_vm7, %v6029_v0, %v12974_v52  ;;  %vm14022_vm7 = vmmov %vm13994_vm2 }
 0x59d   :  { %v8512_v60 = vpack.c.bf16 %v6423_v46, %v6422_v37  ;;  %v8513_v27 = vpack.c.bf16 %v6425_v24, %v6424_v63  ;;  %v6128_v16 = vadd.f32 %v6078_v11, %v12805_v45  ;;  %v6411_v1 = vmul.f32 0.25, %v6385_v14  ;;  %v6684_v11 = vld [vmem:[#allocation5 + $0x4] sm:$0xf]  ;;  %v6620_v14 = vld [vmem:[#allocation5] sm:$0xf] }
 0x59f   :  { %6523 = vst [vmem:[#allocation5 + $0x34] sm:$0xff] %v8512_v60  ;;  %6524 = vst [vmem:[#allocation5 + $0x3c] sm:$0xff] %v8513_v27  ;;  %v12983_v21 = vpop.permute.xlu0 %6159 }
 0x5a0   :  { %v6207_v49 = vsel %vm14013_vm8, %v6158_v23, %v12983_v21  ;;  %vm14023_vm8 = vmmov %vm14004_vm3 }
 0x5a1   :  { %v6257_v58 = vadd.f32 %v6207_v49, %v6128_v16  ;;  %v6660_v49 = vld [vmem:[#allocation5 + $0x4] sm:$0xf] }
 0x5a3   :  { %v12990_v34 = vpop.permute.xlu0 %6288 }
 0x5a4   :  { %v6336_v30 = vsel %vm771_vm10, %v6287_v31, %v12990_v34 }
 0x5a5   :  { %v6386_v0 = vadd.f32 %v6336_v30, %v6257_v58  ;;  %v5937_v57 = vpop.f32.mrf.mxu0  ;;  %v6596_v30 = vld [vmem:[#allocation5] sm:$0xf] }
 0x5a6   :  { %v6645_v59 = vld [vmem:[#allocation5 + $0x38] sm:$0xf]  ;;  %v6869_v41 = vld [vmem:[#allocation5 + $0x40] sm:$0xf]  ;;  %v6757_v48 = vld [vmem:[#allocation5 + $0x3c] sm:$0xf]  ;;  %v5938_v60 = vadd.f32 %v5937_v57, %v12743_v6 }
 0x5a7   :  { %v6412_v36 = vmul.f32 0.25, %v6386_v0  ;;  %v5939_v39 = vpop.f32.mrf.mxu0  ;;  %6647 = vst.msk [vmem:[#allocation6 + $0x2c] sm:$0xf] %vm6532_vm1, %v6645_v59  ;;  %6871 = vst.msk [vmem:[#allocation6 + $0x7c] sm:$0xf] %vm6532_vm1, %v6869_v41  ;;  %v6059_v35 = vpop.permute.xlu0 %6058 }
 0x5a8   :  { %6759 = vst.msk [vmem:[#allocation6 + $0x54] sm:$0xf] %vm6532_vm1, %v6757_v48  ;;  %v6531_v31 = vld [vmem:[#allocation5 + $0x34] sm:$0xf]  ;;  %v5956_v27 = vmul.f32 0.01, %v5938_v60  ;;  %v6091_v41 = vsel %vm13994_vm2, %v12938_v9, %v6059_v35 }
 0x5a9   :  { %v8506_v20 = vpack.c.bf16 %v6412_v36, %v6411_v1  ;;  %v5940_v42 = vpop.f32.mrf.mxu0  ;;  %6534 = vst.msk [vmem:[#allocation6 + $0x4] sm:$0xf] %vm6532_vm1, %v6531_v31  ;;  %v6572_v57 = vld [vmem:[#allocation5] sm:$0xf]  ;;  %v6079_v36 = vsel %vm14014_vm5, %v12974_v52, %v12920_v19  ;;  %v6732_v39 = vld [vmem:[#allocation5 + $0x4] sm:$0xf]  ;;  %v6337_v52 = vsel %vm771_vm10, %v12990_v34, %v12934_v56  ;;  %vm14024_vm5 = vmmov %vm13994_vm2 }
 0x5aa   :  { %v5894_v23 = vpop.f32.mrf.mxu1  ;;  %v13037_v55 = vmax.f32 %v5938_v60, %v5956_v27  ;;  %v5941_v25 = vadd.f32 %v5940_v42, %v12748_v28  ;;  %v6685_v59 = vld [vmem:[#allocation5 + $0x38] sm:$0xf] }
 0x5ab   :  { %6516 = vst [vmem:[#allocation5 + $0x8] sm:$0xff] %v8506_v20  ;;  %v5895_v45 = vadd.f32 %v5894_v23, %v12743_v6  ;;  %v5942_v5 = vpop.f32.mrf.mxu0  ;;  %v6188_v16 = vpop.permute.xlu0 %6187  ;;  %v6208_v20 = vsel %vm14004_vm3, %v12983_v21, %v12928_v8  ;;  %v6129_v23 = vadd.f32 %v6079_v36, %v12840_v50  ;;  %v6549_v36 = vld [vmem:[#allocation5 + $0x34] sm:$0xf] }
 0x5ac   :  { %v5896_v38 = vpop.f32.mrf.mxu1  ;;  %v5969_v12 = vmul.f32 0.01, %v5941_v25  ;;  %v6220_v50 = vsel %vm14017_vm13, %v12954_v43, %v6188_v16 }
 0x5ad   :  { %v5954_v61 = vmul.f32 0.01, %v5895_v45  ;;  %v5897_v51 = vadd.f32 %v5896_v38, %v12743_v6  ;;  %v6548_v38 = vld [vmem:[#allocation5] sm:$0xf] }
 0x5ae   :  { %v5898_v54 = vpop.f32.mrf.mxu1  ;;  %v13050_v58 = vmax.f32 %v5941_v25, %v5969_v12 }
 0x5af   :  { %v13002_v10 = vmax.f32 %v5895_v45, %v5954_v61  ;;  %v5955_v33 = vmul.f32 0.01, %v5897_v51  ;;  %v5899_v62 = vadd.f32 %v5898_v54, %v12748_v28  ;;  %v6317_v0 = vpop.permute.xlu0 %6316  ;;  %v6142_v61 = vadd.f32 %v6091_v41, %v12821_v2  ;;  %v6797_v41 = vld [vmem:[#allocation5 + $0x3c] sm:$0xf] }
 0x5b0   :  { %v5900_v17 = vpop.f32.mrf.mxu1 }
 0x5b1   :  { %v13004_v44 = vmax.f32 %v5897_v51, %v5955_v33  ;;  %6042 = vrot.lane.b32.xlu1 %v13002_v10, %s9129_s20  ;;  %v5901_v29 = vadd.f32 %v5900_v17, %v12748_v28  ;;  %v5967_v46 = vmul.f32 0.01, %v5899_v62  ;;  %v6349_v33 = vsel %vm771_vm10, %v12967_v4, %v6317_v0  ;;  %v6621_v4 = vld [vmem:[#allocation5 + $0x34] sm:$0xf] }
 0x5b2   :  { %v6868_v7 = vld [vmem:[#allocation5 + $0xc] sm:$0xf]  ;;  %v6756_v37 = vld [vmem:[#allocation5 + $0x8] sm:$0xf]  ;;  %v6271_v43 = vadd.f32 %v6220_v50, %v6142_v61 }
 0x5b3   :  { %6044 = vrot.lane.b32.xlu0 %v13004_v44, %s9129_s20  ;;  %6870 = vst.msk [vmem:[#allocation6 + $0x78] sm:$0xf] %vm6532_vm1, %v6868_v7  ;;  %6758 = vst.msk [vmem:[#allocation6 + $0x50] sm:$0xf] %vm6532_vm1, %v6756_v37  ;;  %v5968_v63 = vmul.f32 0.01, %v5901_v29  ;;  %v13020_v24 = vmax.f32 %v5899_v62, %v5967_v46 }
 0x5b4   :  { %v6400_v37 = vadd.f32 %v6349_v33, %v6271_v43  ;;  %v6820_v25 = vld [vmem:[#allocation5 + $0x8] sm:$0xf] }
 0x5b5   :  { %6171 = vrot.lane.b32.xlu1 %v13002_v10, %s9141_s6  ;;  %v13024_v22 = vmax.f32 %v5901_v29, %v5968_v63  ;;  %v6844_v29 = vld [vmem:[#allocation5 + $0x8] sm:$0xf] }
 0x5b7   :  { %6173 = vrot.lane.b32.xlu0 %v13004_v44, %s9141_s6 }
 0x5b9   :  { %6300 = vrot.lane.b32.xlu1 %v13002_v10, %s9135_s26 }
 0x5bb   :  { %6302 = vrot.lane.b32.xlu0 %v13004_v44, %s9135_s26 }
 0x5bd   :  { %6068 = vrot.lane.b32.xlu1 %v13020_v24, %s9129_s20 }
 0x5bf   :  { %6070 = vrot.lane.b32.xlu0 %v13024_v22, %s9129_s20 }
 0x5c1   :  { %6197 = vrot.lane.b32.xlu1 %v13020_v24, %s9141_s6 }
 0x5c3   :  { %6199 = vrot.lane.b32.xlu0 %v13024_v22, %s9141_s6 }
 0x5c5   :  { %6326 = vrot.lane.b32.xlu1 %v13020_v24, %s9135_s26 }
 0x5c7   :  { %6328 = vrot.lane.b32.xlu0 %v13024_v22, %s9135_s26 }
 0x5c9   :  { %6046 = vrot.lane.b32.xlu1 %v13037_v55, %s9129_s20 }
 0x5cb   :  { %6688 = vrot.lane.b32.xlu0 %v6684_v11, %s9150_s19 }
 0x5cd   :  { %6175 = vrot.lane.b32.xlu1 %v13037_v55, %s9141_s6 }
 0x5cf   :  { %6664 = vrot.lane.b32.xlu0 %v6660_v49, %s9127_s18  ;;  %v6597_v49 = vld [vmem:[#allocation5 + $0x34] sm:$0xf] }
 0x5d1   :  { %6304 = vrot.lane.b32.xlu1 %v13037_v55, %s9135_s26 }
 0x5d3   :  { %6624 = vrot.lane.b32.xlu0 %v6620_v14, %s9153_s14  ;;  %v6573_v14 = vld [vmem:[#allocation5 + $0x34] sm:$0xf] }
 0x5d5   :  { %6072 = vrot.lane.b32.xlu1 %v13050_v58, %s9129_s20 }
 0x5d7   :  { %6600 = vrot.lane.b32.xlu0 %v6596_v30, %s9154_s15  ;;  %v6772_v30 = vld [vmem:[#allocation5 + $0x8] sm:$0xf] }
 0x5d9   :  { %6201 = vrot.lane.b32.xlu1 %v13050_v58, %s9141_s6 }
 0x5db   :  { %6576 = vrot.lane.b32.xlu0 %v6572_v57, %s9150_s19  ;;  %v6035_v1 = vpop.permute.xlu0 %6034 }
 0x5dc   :  { %v6080_v42 = vsel %vm14015_vm14, %v12920_v19, %v6035_v1  ;;  %v6258_v19 = vadd.f32 %v6208_v20, %v6129_v23  ;;  %v6956_v1 = vld [vmem:[#allocation5 + $0xc] sm:$0xf]  ;;  %vm14025_vm14 = vmmov %vm13994_vm2 }
 0x5dd   :  { %6330 = vrot.lane.b32.xlu1 %v13050_v58, %s9135_s26  ;;  %v6130_v48 = vadd.f32 %v6080_v42, %v12807_v13  ;;  %v6932_v20 = vld [vmem:[#allocation5 + $0xc] sm:$0xf]  ;;  %v6845_v42 = vld [vmem:[#allocation5 + $0x3c] sm:$0xf]  ;;  %vm14026_vm2 = vmmov %vm14004_vm3 }
 0x5de   :  { %v6387_v34 = vadd.f32 %v6337_v52, %v6258_v19  ;;  %v6908_v23 = vld [vmem:[#allocation5 + $0xc] sm:$0xf]  ;;  %vm14028_vm13 = vmmov %vm14026_vm2 }
 0x5df   :  { %6736 = vrot.lane.b32.xlu0 %v6732_v39, %s9153_s14  ;;  %v6164_v45 = vpop.permute.xlu0 %6163  ;;  %v6061_v5 = vpop.permute.xlu1 %6060 }
 0x5e0   :  { %v6209_v21 = vsel %vm14016_vm11, %v12928_v8, %v6164_v45  ;;  %v6092_v31 = vsel %vm14018_vm6, %v6059_v35, %v6061_v5  ;;  %v6661_v8 = vld [vmem:[#allocation5 + $0x38] sm:$0xf]  ;;  %v6413_v2 = vmul.f32 0.25, %v6387_v34  ;;  %v6821_v45 = vld [vmem:[#allocation5 + $0x3c] sm:$0xf]  ;;  %vm14027_vm11 = vmmov %vm14024_vm5 }
 0x5e1   :  { %6690 = vrot.lane.b32.xlu1 %v6685_v59, %s9150_s19  ;;  %v6259_v9 = vadd.f32 %v6209_v21, %v6130_v48  ;;  %v6143_v62 = vadd.f32 %v6092_v31, %v12847_v26  ;;  %v6426_v26 = vmul.f32 0.25, %v6400_v37  ;;  %v6773_v48 = vld [vmem:[#allocation5 + $0x3c] sm:$0xf]  ;;  %v6957_v31 = vld [vmem:[#allocation5 + $0x40] sm:$0xf]  ;;  %vm14029_vm6 = vmmov %vm14024_vm5 }
 0x5e3   :  { %6552 = vrot.lane.b32.xlu0 %v6548_v38, %s9127_s18  ;;  %v6293_v51 = vpop.permute.xlu0 %6292  ;;  %v6190_v54 = vpop.permute.xlu1 %6189 }
 0x5e4   :  { %v6338_v13 = vsel %vm771_vm10, %v12934_v56, %v6293_v51  ;;  %v6221_v17 = vsel %vm14019_vm4, %v6188_v16, %v6190_v54  ;;  %v6796_v16 = vld [vmem:[#allocation5 + $0x8] sm:$0xf]  ;;  %v6909_v54 = vld [vmem:[#allocation5 + $0x40] sm:$0xf]  ;;  %vm14030_vm4 = vmmov %vm14026_vm2 }
 0x5e5   :  { %6666 = vrot.lane.b32.xlu1 %v6661_v8, %s9127_s18  ;;  %v6388_v7 = vadd.f32 %v6338_v13, %v6259_v9  ;;  %v6272_v63 = vadd.f32 %v6221_v17, %v6143_v62  ;;  %v6933_v9 = vld [vmem:[#allocation5 + $0x40] sm:$0xf] }
 0x5e7   :  { %6848 = vrot.lane.b32.xlu0 %v6844_v29, %s9153_s14  ;;  %v6414_v46 = vmul.f32 0.25, %v6388_v7  ;;  %v6319_v60 = vpop.permute.xlu1 %6318  ;;  %v6039_v52 = vpop.permute.xlu0 %6038 }
 0x5e8   :  { %v6350_v27 = vsel %vm771_vm10, %v6317_v0, %v6319_v60  ;;  %v6733_v0 = vld [vmem:[#allocation5 + $0x38] sm:$0xf] }
 0x5e9   :  { %6626 = vrot.lane.b32.xlu1 %v6621_v4, %s9153_s14  ;;  %v8507_v56 = vpack.c.bf16 %v6414_v46, %v6413_v2  ;;  %v6401_v11 = vadd.f32 %v6350_v27, %v6272_v63 }
 0x5eb   :  { %6824 = vrot.lane.b32.xlu0 %v6820_v25, %s9154_s15  ;;  %6517 = vst [vmem:[#allocation5 + $0x10] sm:$0xff] %v8507_v56  ;;  %v6427_v35 = vmul.f32 0.25, %v6401_v11  ;;  %v6041_v5 = vpop.permute.xlu1 %6040  ;;  %v6168_v38 = vpop.permute.xlu0 %6167 }
 0x5ec   :  { %v6083_v37 = vsel %vm14020_vm12, %v6039_v52, %v6041_v5  ;;  %vm6521_vm12 = vcmask 134144  }
 0x5ed   :  { %6602 = vrot.lane.b32.xlu1 %v6597_v49, %s9154_s15  ;;  %v8514_v12 = vpack.c.bf16 %v6427_v35, %v6426_v26  ;;  %v6133_v4 = vadd.f32 %v6083_v37, %v12880_v40 }
 0x5ef   :  { %6800 = vrot.lane.b32.xlu0 %v6796_v16, %s9150_s19  ;;  %6525 = vst [vmem:[#allocation5 + $0x44] sm:$0xff] %v8514_v12  ;;  %v6170_v19 = vpop.permute.xlu1 %6169  ;;  %v6297_v61 = vpop.permute.xlu0 %6296 }
 0x5f0   :  { %v6212_v63 = vsel %vm14021_vm15, %v6168_v38, %v6170_v19  ;;  %vm14031_vm15 = vmmov %vm14024_vm5 }
 0x5f1   :  { %6578 = vrot.lane.b32.xlu1 %v6573_v14, %s9150_s19  ;;  %v6262_v25 = vadd.f32 %v6212_v63, %v6133_v4 }
 0x5f2   :  { %v6980_v57 = vld [vmem:[#allocation5 + $0x10] sm:$0xf] }
 0x5f3   :  { %6776 = vrot.lane.b32.xlu0 %v6772_v30, %s9127_s18  ;;  %6982 = vst.msk [vmem:[#allocation6 + $0xa0] sm:$0xf] %vm6532_vm1, %v6980_v57  ;;  %v7044_v59 = vld [vmem:[#allocation5 + $0x10] sm:$0xf]  ;;  %v6299_v34 = vpop.permute.xlu1 %6298  ;;  %v6065_v8 = vpop.permute.xlu0 %6064 }
 0x5f4   :  { %v7020_v21 = vld [vmem:[#allocation5 + $0x10] sm:$0xf]  ;;  %v6341_v56 = vsel %vm771_vm10, %v6297_v61, %v6299_v34 }
 0x5f5   :  { %6738 = vrot.lane.b32.xlu1 %v6733_v0, %s9153_s14  ;;  %v6996_v50 = vld [vmem:[#allocation5 + $0x10] sm:$0xf]  ;;  %v6391_v49 = vadd.f32 %v6341_v56, %v6262_v25 }
 0x5f6   :  { %v6981_v39 = vld [vmem:[#allocation5 + $0x44] sm:$0xf] }
 0x5f7   :  { %6960 = vrot.lane.b32.xlu0 %v6956_v1, %s9153_s14  ;;  %6983 = vst.msk [vmem:[#allocation6 + $0xa4] sm:$0xf] %vm6532_vm1, %v6981_v39  ;;  %v6067_v51 = vpop.permute.xlu1 %6066  ;;  %v7045_v33 = vld [vmem:[#allocation5 + $0x44] sm:$0xf]  ;;  %v6194_v17 = vpop.permute.xlu0 %6193  ;;  %v6417_v57 = vmul.f32 0.25, %v6391_v49 }
 0x5f8   :  { %v7021_v43 = vld [vmem:[#allocation5 + $0x44] sm:$0xf]  ;;  %v6095_v40 = vsel %vm14024_vm5, %v6065_v8, %v6067_v51 }
 0x5f9   :  { %6554 = vrot.lane.b32.xlu1 %v6549_v36, %s9127_s18  ;;  %v6997_v7 = vld [vmem:[#allocation5 + $0x44] sm:$0xf] }
 0x5fb   :  { %6936 = vrot.lane.b32.xlu0 %v6932_v20, %s9154_s15  ;;  %v6196_v13 = vpop.permute.xlu1 %6195  ;;  %v6323_v29 = vpop.permute.xlu0 %6322 }
 0x5fd   :  { %6850 = vrot.lane.b32.xlu1 %v6845_v42, %s9153_s14  ;;  %v6224_v42 = vsel %vm14004_vm3, %v6194_v17, %v6196_v13  ;;  %vm7558_vm3 = vcmask 130048  }
 0x5ff   :  { %6912 = vrot.lane.b32.xlu0 %v6908_v23, %s9150_s19  ;;  %v6325_v62 = vpop.permute.xlu1 %6324  ;;  %v6146_v23 = vadd.f32 %v6095_v40, %v12914_v32 }
 0x601   :  { %6826 = vrot.lane.b32.xlu1 %v6821_v45, %s9154_s15  ;;  %v6275_v52 = vadd.f32 %v6224_v42, %v6146_v23 }
 0x603   :  { %7048 = vrot.lane.b32.xlu0 %v7044_v59, %s9154_s15 }
 0x605   :  { %6802 = vrot.lane.b32.xlu1 %v6797_v41, %s9150_s19 }
 0x607   :  { %7024 = vrot.lane.b32.xlu0 %v7020_v21, %s9150_s19 }
 0x609   :  { %6778 = vrot.lane.b32.xlu1 %v6773_v48, %s9127_s18 }
 0x60b   :  { %7000 = vrot.lane.b32.xlu0 %v6996_v50, %s9127_s18 }
 0x60d   :  { %6962 = vrot.lane.b32.xlu1 %v6957_v31, %s9153_s14 }
 0x611   :  { %6938 = vrot.lane.b32.xlu1 %v6933_v9, %s9154_s15 }
 0x615   :  { %6914 = vrot.lane.b32.xlu1 %v6909_v54, %s9150_s19 }
 0x619   :  { %7050 = vrot.lane.b32.xlu1 %v7045_v33, %s9154_s15 }
 0x61d   :  { %7026 = vrot.lane.b32.xlu1 %v7021_v43, %s9150_s19  ;;  %s9157_s19 = smov 113  }
 0x621   :  { %7002 = vrot.lane.b32.xlu1 %v6997_v7, %s9127_s18 }
 0x623   :  { %v6043_v2 = vpop.permute.xlu1 %6042 }
 0x624   :  { %v6084_v60 = vsel %vm14022_vm7, %v6041_v5, %v6043_v2  ;;  %v6353_v5 = vsel %vm771_vm10, %v6323_v29, %v6325_v62  ;;  %vm14032_vm7 = vmmov %vm14026_vm2 }
 0x625   :  { %v6045_v46 = vpop.permute.xlu0 %6044  ;;  %v6134_v26 = vadd.f32 %v6084_v60, %v12888_v53 }
 0x627   :  { %v6172_v27 = vpop.permute.xlu1 %6171 }
 0x628   :  { %v6213_v11 = vsel %vm14023_vm8, %v6170_v19, %v6172_v27  ;;  %v6404_v19 = vadd.f32 %v6353_v5, %v6275_v52  ;;  %vm14033_vm8 = vmmov %vm14024_vm5 }
 0x629   :  { %v6174_v35 = vpop.permute.xlu0 %6173  ;;  %v6263_v12 = vadd.f32 %v6213_v11, %v6134_v26  ;;  %vm14034_vm5 = vmmov %vm14026_vm2 }
 0x62a   :  { %v6430_v61 = vmul.f32 0.25, %v6404_v19  ;;  %v6214_v33 = vsel %vm14028_vm13, %v6172_v27, %v6174_v35 }
 0x62b   :  { %v6301_v16 = vpop.permute.xlu1 %6300 }
 0x62c   :  { %v6342_v14 = vsel %vm771_vm10, %v6299_v34, %v6301_v16 }
 0x62d   :  { %v6392_v30 = vadd.f32 %v6342_v14, %v6263_v12  ;;  %v6303_v0 = vpop.permute.xlu0 %6302 }
 0x62e   :  { %v6343_v7 = vsel %vm771_vm10, %v6301_v16, %v6303_v0 }
 0x62f   :  { %v6418_v1 = vmul.f32 0.25, %v6392_v30  ;;  %v13128_v36 = vpop.permute.xlu1 %6068 }
 0x630   :  { %v6096_v53 = vsel %vm14025_vm14, %v6067_v51, %v13128_v36  ;;  %vm8116_vm14 = vcmask 15360  }
 0x631   :  { %v8509_v39 = vpack.c.bf16 %v6418_v1, %v6417_v57  ;;  %v13131_v20 = vpop.permute.xlu0 %6070  ;;  %v6147_v41 = vadd.f32 %v6096_v53, %v12922_v3  ;;  %v6085_v3 = vsel %vm14027_vm11, %v6043_v2, %v6045_v46 }
 0x632   :  { %v6135_v43 = vadd.f32 %v6085_v3, %v13002_v10  ;;  %v6097_v30 = vsel %vm14031_vm15, %v13128_v36, %v13131_v20 }
 0x633   :  { %6519 = vst [vmem:[#allocation5 + $0x20] sm:$0xff] %v8509_v39  ;;  %v13137_v45 = vpop.permute.xlu1 %6197  ;;  %v6148_v23 = vadd.f32 %v6097_v30, %v13020_v24 }
 0x634   :  { %v6225_v59 = vsel %vm14026_vm2, %v6196_v13, %v13137_v45  ;;  %v6264_v37 = vadd.f32 %v6214_v33, %v6135_v43  ;;  %vm8118_vm2 = vcmask 9216  }
 0x635   :  { %v13143_v21 = vpop.permute.xlu0 %6199  ;;  %v6276_v48 = vadd.f32 %v6225_v59, %v6147_v41 }
 0x636   :  { %v6393_v27 = vadd.f32 %v6343_v7, %v6264_v37  ;;  %v6226_v40 = vsel %vm14032_vm7, %v13137_v45, %v13143_v21 }
 0x637   :  { %v13145_v38 = vpop.permute.xlu1 %6326  ;;  %v6277_v59 = vadd.f32 %v6226_v40, %v6148_v23 }
 0x638   :  { %v6354_v32 = vsel %vm771_vm10, %v6325_v62, %v13145_v38  ;;  %v6419_v12 = vmul.f32 0.25, %v6393_v27 }
 0x639   :  { %v6405_v50 = vadd.f32 %v6354_v32, %v6276_v48  ;;  %v13149_v31 = vpop.permute.xlu0 %6328 }
 0x63a   :  { %v6696_v34 = vld [vmem:[#allocation5 + $0x24] sm:$0xf]  ;;  %v6608_v42 = vld [vmem:[#allocation5 + $0x20] sm:$0xf]  ;;  %v6355_v45 = vsel %vm771_vm10, %v13145_v38, %v13149_v31 }
 0x63b   :  { %v6431_v9 = vmul.f32 0.25, %v6405_v50  ;;  %6700 = vrot.lane.b32.xlu0 %v6696_v34, %s9155_s16  ;;  %v6047_v51 = vpop.permute.xlu1 %6046  ;;  %v6672_v17 = vld [vmem:[#allocation5 + $0x24] sm:$0xf]  ;;  %v6584_v19 = vld [vmem:[#allocation5 + $0x20] sm:$0xf]  ;;  %v6406_v32 = vadd.f32 %v6355_v45, %v6277_v59 }
 0x63c   :  { %v6086_v13 = vsel %vm14029_vm6, %v6045_v46, %v6047_v51  ;;  %v6137_v29 = vadd.f32 %v6047_v51, %v13037_v55  ;;  %v6648_v4 = vld [vmem:[#allocation5 + $0x24] sm:$0xf] }
 0x63d   :  { %v8516_v54 = vpack.c.bf16 %v6431_v9, %v6430_v61  ;;  %v6689_v8 = vpop.permute.xlu0 %6688  ;;  %v6136_v63 = vadd.f32 %v6086_v13, %v13004_v44  ;;  %v6632_v44 = vld [vmem:[#allocation5 + $0x20] sm:$0xf]  ;;  %v6744_v9 = vld [vmem:[#allocation5 + $0x24] sm:$0xf]  ;;  %v6432_v3 = vmul.f32 0.25, %v6406_v32 }
 0x63e   :  { %6694 = vst.msk [vmem:[#allocation6 + $0x38] sm:$0xf] %vm6532_vm1, %v6689_v8 }
 0x63f   :  { %6527 = vst [vmem:[#allocation5 + $0x54] sm:$0xff] %v8516_v54  ;;  %6676 = vrot.lane.b32.xlu0 %v6672_v17, %s9130_s21  ;;  %v6176_v62 = vpop.permute.xlu1 %6175  ;;  %v6560_v17 = vld [vmem:[#allocation5 + $0x20] sm:$0xf] }
 0x640   :  { %v6215_v2 = vsel %vm14030_vm4, %v6174_v35, %v6176_v62  ;;  %v6266_v46 = vadd.f32 %v6176_v62, %v6137_v29 }
 0x641   :  { %v6665_v60 = vpop.permute.xlu0 %6664  ;;  %v6265_v10 = vadd.f32 %v6215_v2, %v6136_v63 }
 0x642   :  { %6670 = vst.msk [vmem:[#allocation6 + $0x30] sm:$0xf] %vm6532_vm1, %v6665_v60 }
 0x643   :  { %6652 = vrot.lane.b32.xlu0 %v6648_v4, %s9156_s17  ;;  %v6305_v56 = vpop.permute.xlu1 %6304 }
 0x644   :  { %v6344_v11 = vsel %vm771_vm10, %v6303_v0, %v6305_v56  ;;  %v6395_v25 = vadd.f32 %v6305_v56, %v6266_v46 }
 0x645   :  { %v6394_v55 = vadd.f32 %v6344_v11, %v6265_v10  ;;  %v6625_v26 = vpop.permute.xlu0 %6624 }
 0x646   :  { %v6421_v35 = vmul.f32 0.25, %v6395_v25  ;;  %6630 = vst.msk [vmem:[#allocation6 + $0x20] sm:$0xf] %vm6532_vm1, %v6625_v26  ;;  %v6697_v49 = vld [vmem:[#allocation5 + $0x58] sm:$0xf] }
 0x647   :  { %v6420_v16 = vmul.f32 0.25, %v6394_v55  ;;  %6636 = vrot.lane.b32.xlu0 %v6632_v44, %s9157_s19  ;;  %6702 = vrot.lane.b32.xlu1 %v6697_v49, %s9155_s16  ;;  %v6073_v14 = vpop.permute.xlu1 %6072  ;;  %v6673_v53 = vld [vmem:[#allocation5 + $0x58] sm:$0xf]  ;;  %v6633_v51 = vld [vmem:[#allocation5 + $0x54] sm:$0xf] }
 0x648   :  { %v8511_v0 = vpack.c.bf16 %v6421_v35, %v6421_v35  ;;  %v6098_v39 = vsel %vm14033_vm8, %v13131_v20, %v6073_v14  ;;  %v6150_v5 = vadd.f32 %v6073_v14, %v13050_v58  ;;  %v6649_v48 = vld [vmem:[#allocation5 + $0x58] sm:$0xf]  ;;  %v6609_v43 = vld [vmem:[#allocation5 + $0x54] sm:$0xf] }
 0x649   :  { %v8510_v57 = vpack.c.bf16 %v6420_v16, %v6419_v12  ;;  %v6601_v1 = vpop.permute.xlu0 %6600  ;;  %v6149_v52 = vadd.f32 %v6098_v39, %v13024_v22  ;;  %v6585_v29 = vld [vmem:[#allocation5 + $0x54] sm:$0xf]  ;;  %v6745_v60 = vld [vmem:[#allocation5 + $0x58] sm:$0xf] }
 0x64a   :  { %6522 = vst.msk [vmem:[#allocation5 + $0x30] sm:$0xf] %vm6521_vm12, %v8511_v0  ;;  %v6561_v10 = vld [vmem:[#allocation5 + $0x54] sm:$0xf]  ;;  %v6709_v55 = vld [vmem:[#allocation5 + $0x38] sm:$0xf] }
 0x64b   :  { %6606 = vst.msk [vmem:[#allocation6 + $0x18] sm:$0xf] %vm6532_vm1, %v6601_v1  ;;  %6520 = vst [vmem:[#allocation5 + $0x28] sm:$0xff] %v8510_v57  ;;  %6612 = vrot.lane.b32.xlu0 %v6608_v42, %s9158_s22  ;;  %6678 = vrot.lane.b32.xlu1 %v6673_v53, %s9130_s21  ;;  %v6202_v36 = vpop.permute.xlu1 %6201 }
 0x64c   :  { %v6227_v20 = vsel %vm14034_vm5, %v13143_v21, %v6202_v36  ;;  %v6279_v41 = vadd.f32 %v6202_v36, %v6150_v5 }
 0x64d   :  { %v6577_v24 = vpop.permute.xlu0 %6576  ;;  %v6278_v50 = vadd.f32 %v6227_v20, %v6149_v52 }
 0x64e   :  { %6582 = vst.msk [vmem:[#allocation6 + $0x10] sm:$0xf] %vm6532_vm1, %v6577_v24 }
 0x64f   :  { %6588 = vrot.lane.b32.xlu0 %v6584_v19, %s9155_s16  ;;  %6654 = vrot.lane.b32.xlu1 %v6649_v48, %s9156_s17  ;;  %v6331_v38 = vpop.permute.xlu1 %6330 }
 0x650   :  { %v6356_v58 = vsel %vm771_vm10, %v13149_v31, %v6331_v38  ;;  %v6408_v21 = vadd.f32 %v6331_v38, %v6279_v41  ;;  %vm6545_vm10 = vcmask 11272  }
 0x651   :  { %v6407_v34 = vadd.f32 %v6356_v58, %v6278_v50  ;;  %v6737_v61 = vpop.permute.xlu0 %6736  ;;  %v7056_v2 = vld [vmem:[#allocation5 + $0x30] sm:$0xf] }
 0x652   :  { %v6434_v22 = vmul.f32 0.25, %v6408_v21  ;;  %6742 = vst.msk [vmem:[#allocation6 + $0x48] sm:$0xf] %vm6532_vm1, %v6737_v61  ;;  %v7032_v46 = vld [vmem:[#allocation5 + $0x30] sm:$0xf] }
 0x653   :  { %v6433_v54 = vmul.f32 0.25, %v6407_v34  ;;  %6748 = vrot.lane.b32.xlu0 %v6744_v9, %s9157_s19  ;;  %6638 = vrot.lane.b32.xlu1 %v6633_v51, %s9157_s19  ;;  %v6691_v8 = vpop.permute.xlu1 %6690  ;;  %v7008_v56 = vld [vmem:[#allocation5 + $0x30] sm:$0xf]  ;;  %v6872_v49 = vld [vmem:[#allocation5 + $0x2c] sm:$0xf] }
 0x654   :  { %v8518_v33 = vpack.c.bf16 %v6434_v22, %v6434_v22  ;;  %6695 = vst.msk [vmem:[#allocation6 + $0x3c] sm:$0xf] %vm6532_vm1, %v6691_v8  ;;  %v6984_v26 = vld [vmem:[#allocation5 + $0x30] sm:$0xf]  ;;  %v6856_v30 = vld [vmem:[#allocation5 + $0x28] sm:$0xf] }
 0x655   :  { %v8517_v13 = vpack.c.bf16 %v6433_v54, %v6432_v3  ;;  %v6553_v31 = vpop.permute.xlu0 %6552  ;;  %v6832_v40 = vld [vmem:[#allocation5 + $0x28] sm:$0xf]  ;;  %v6968_v41 = vld [vmem:[#allocation5 + $0x2c] sm:$0xf]  ;;  %v6708_v61 = vld [vmem:[#allocation5 + $0x4] sm:$0xf] }
 0x656   :  { %6529 = vst.msk [vmem:[#allocation5 + $0x64] sm:$0xf] %vm6521_vm12, %v8518_v33  ;;  %v6808_v23 = vld [vmem:[#allocation5 + $0x28] sm:$0xf]  ;;  %v6944_v58 = vld [vmem:[#allocation5 + $0x2c] sm:$0xf] }
 0x657   :  { %6558 = vst.msk [vmem:[#allocation6 + $0x8] sm:$0xf] %vm6532_vm1, %v6553_v31  ;;  %6528 = vst [vmem:[#allocation5 + $0x5c] sm:$0xff] %v8517_v13  ;;  %6564 = vrot.lane.b32.xlu0 %v6560_v17, %s9130_s21  ;;  %6614 = vrot.lane.b32.xlu1 %v6609_v43, %s9158_s22  ;;  %v6667_v62 = vpop.permute.xlu1 %6666  ;;  %v6784_v20 = vld [vmem:[#allocation5 + $0x28] sm:$0xf] }
 0x658   :  { %6671 = vst.msk [vmem:[#allocation6 + $0x34] sm:$0xf] %vm6532_vm1, %v6667_v62  ;;  %v6760_v32 = vld [vmem:[#allocation5 + $0x28] sm:$0xf]  ;;  %v6920_v51 = vld [vmem:[#allocation5 + $0x2c] sm:$0xf] }
 0x659   :  { %v6849_v7 = vpop.permute.xlu0 %6848  ;;  %v6720_v8 = vld [vmem:[#allocation5 + $0x24] sm:$0xf]  ;;  %v6535_v31 = vld [vmem:[#allocation5 + $0x20] sm:$0xf]  ;;  %v6884_v43 = vld [vmem:[#allocation5 + $0xc] sm:$0xf] }
 0x65a   :  { %6854 = vst.msk [vmem:[#allocation6 + $0x70] sm:$0xf] %vm6532_vm1, %v6849_v7  ;;  %v6896_v7 = vld [vmem:[#allocation5 + $0x2c] sm:$0xf] }
 0x65b   :  { %6590 = vrot.lane.b32.xlu1 %v6585_v29, %s9155_s16  ;;  %7060 = vrot.lane.b32.xlu0 %v7056_v2, %s9158_s22  ;;  %v6627_v37 = vpop.permute.xlu1 %6626  ;;  %v6721_v29 = vld [vmem:[#allocation5 + $0x58] sm:$0xf]  ;;  %v7068_v2 = vld [vmem:[#allocation5 + $0x10] sm:$0xf] }
 0x65c   :  { %6631 = vst.msk [vmem:[#allocation6 + $0x24] sm:$0xf] %vm6532_vm1, %v6627_v37  ;;  %v6536_v37 = vld [vmem:[#allocation5 + $0x54] sm:$0xf] }
 0x65d   :  { %v6825_v63 = vpop.permute.xlu0 %6824  ;;  %v7057_v12 = vld [vmem:[#allocation5 + $0x64] sm:$0xf] }
 0x65e   :  { %6830 = vst.msk [vmem:[#allocation6 + $0x68] sm:$0xf] %vm6532_vm1, %v6825_v63  ;;  %v7033_v0 = vld [vmem:[#allocation5 + $0x64] sm:$0xf]  ;;  %v6873_v59 = vld [vmem:[#allocation5 + $0x60] sm:$0xf] }
 0x65f   :  { %6750 = vrot.lane.b32.xlu1 %v6745_v60, %s9157_s19  ;;  %7036 = vrot.lane.b32.xlu0 %v7032_v46, %s9155_s16  ;;  %v6603_v4 = vpop.permute.xlu1 %6602  ;;  %v7009_v39 = vld [vmem:[#allocation5 + $0x64] sm:$0xf]  ;;  %v6857_v19 = vld [vmem:[#allocation5 + $0x5c] sm:$0xf]  ;;  %v6969_v3 = vld [vmem:[#allocation5 + $0x60] sm:$0xf] }
 0x660   :  { %6607 = vst.msk [vmem:[#allocation6 + $0x1c] sm:$0xf] %vm6532_vm1, %v6603_v4  ;;  %v6985_v36 = vld [vmem:[#allocation5 + $0x64] sm:$0xf]  ;;  %v6833_v50 = vld [vmem:[#allocation5 + $0x5c] sm:$0xf] }
 0x661   :  { %v6801_v27 = vpop.permute.xlu0 %6800  ;;  %v6809_v21 = vld [vmem:[#allocation5 + $0x5c] sm:$0xf]  ;;  %v6945_v17 = vld [vmem:[#allocation5 + $0x60] sm:$0xf]  ;;  %v7080_v60 = vld [vmem:[#allocation5 + $0x30] sm:$0xf] }
 0x662   :  { %6806 = vst.msk [vmem:[#allocation6 + $0x60] sm:$0xf] %vm6532_vm1, %v6801_v27  ;;  %v6785_v22 = vld [vmem:[#allocation5 + $0x5c] sm:$0xf]  ;;  %v6921_v62 = vld [vmem:[#allocation5 + $0x60] sm:$0xf] }
 0x663   :  { %6566 = vrot.lane.b32.xlu1 %v6561_v10, %s9130_s21  ;;  %7012 = vrot.lane.b32.xlu0 %v7008_v56, %s9130_s21  ;;  %v6579_v11 = vpop.permute.xlu1 %6578  ;;  %v6761_v33 = vld [vmem:[#allocation5 + $0x5c] sm:$0xf]  ;;  %v9068_v63 = vld [vmem:[%s13673_s1 + $0x4] ss:$16 sps:$4 sm:$0xff]   ;;  %v7185_v10 = vld [vmem:[%s13674_s2 + $0x68] sm:$0xff] }
 0x664   :  { %6583 = vst.msk [vmem:[#allocation6 + $0x14] sm:$0xf] %vm6532_vm1, %v6579_v11  ;;  %7615 = vmatprep.mubr.bf16.mxu1 %v9068_v63  ;;  %v6885_v46 = vld [vmem:[#allocation5 + $0x40] sm:$0xf]  ;;  %v7186_v4 = vld [vmem:[%s13674_s2 + $0x70] sm:$0xff] }
 0x665   :  { %v6777_v25 = vpop.permute.xlu0 %6776  ;;  %v6897_v27 = vld [vmem:[#allocation5 + $0x60] sm:$0xf]  ;;  %v7069_v11 = vld [vmem:[#allocation5 + $0x44] sm:$0xf] }
 0x666   :  { %6782 = vst.msk [vmem:[#allocation6 + $0x58] sm:$0xf] %vm6532_vm1, %v6777_v25  ;;  %v9074_v25 = vld [vmem:[%s13673_s1 + $0xc] ss:$16 sps:$4 sm:$0xff]  }
 0x667   :  { %6714 = vrot.lane.b32.xlu1 %v6709_v55, %s9154_s15  ;;  %6988 = vrot.lane.b32.xlu0 %v6984_v26, %s9156_s17  ;;  %v6739_v35 = vpop.permute.xlu1 %6738  ;;  %v7183_v55 = vld [vmem:[%s13674_s2 + $0x58] sm:$0xff] }
 0x668   :  { %6743 = vst.msk [vmem:[#allocation6 + $0x4c] sm:$0xf] %vm6532_vm1, %v6739_v35  ;;  %8475 = vmatprep.mubr.msk.bf16.mxu0 %vm7558_vm3, %v9074_v25  ;;  %v7081_v35 = vld [vmem:[#allocation5 + $0x64] sm:$0xf] }
 0x669   :  { %v6961_v44 = vpop.permute.xlu0 %6960 }
 0x66a   :  { %6966 = vst.msk [vmem:[#allocation6 + $0x98] sm:$0xf] %vm6532_vm1, %v6961_v44  ;;  %v7181_v44 = vld [vmem:[%s13674_s2 + $0x48] sm:$0xff] }
 0x66b   :  { %6876 = vrot.lane.b32.xlu0 %v6872_v49, %s9156_s17  ;;  %7062 = vrot.lane.b32.xlu1 %v7057_v12, %s9158_s22  ;;  %v6555_v16 = vpop.permute.xlu1 %6554  ;;  %v7184_v49 = vld [vmem:[%s13674_s2 + $0x60] sm:$0xff] }
 0x66c   :  { %6559 = vst.msk [vmem:[#allocation6 + $0xc] sm:$0xf] %vm6532_vm1, %v6555_v16  ;;  %v7179_v16 = vld [vmem:[%s13674_s2 + $0x38] sm:$0xff] }
 0x66d   :  { %v6937_v14 = vpop.permute.xlu0 %6936 }
 0x66e   :  { %6942 = vst.msk [vmem:[#allocation6 + $0x90] sm:$0xf] %vm6532_vm1, %v6937_v14  ;;  %v7182_v14 = vld [vmem:[%s13674_s2 + $0x50] sm:$0xff] }
 0x66f   :  { %6860 = vrot.lane.b32.xlu0 %v6856_v30, %s9157_s19  ;;  %7038 = vrot.lane.b32.xlu1 %v7033_v0, %s9155_s16  ;;  %v6851_v57 = vpop.permute.xlu1 %6850 }
 0x670   :  { %6855 = vst.msk [vmem:[#allocation6 + $0x74] sm:$0xf] %vm6532_vm1, %v6851_v57  ;;  %v7177_v57 = vld [vmem:[%s13674_s2 + $0x28] sm:$0xff] }
 0x671   :  { %v6913_v1 = vpop.permute.xlu0 %6912 }
 0x672   :  { %6918 = vst.msk [vmem:[#allocation6 + $0x88] sm:$0xf] %vm6532_vm1, %v6913_v1  ;;  %v7180_v1 = vld [vmem:[%s13674_s2 + $0x40] sm:$0xff] }
 0x673   :  { %6836 = vrot.lane.b32.xlu0 %v6832_v40, %s9158_s22  ;;  %7014 = vrot.lane.b32.xlu1 %v7009_v39, %s9130_s21  ;;  %v6827_v42 = vpop.permute.xlu1 %6826 }
 0x674   :  { %6831 = vst.msk [vmem:[#allocation6 + $0x6c] sm:$0xf] %vm6532_vm1, %v6827_v42  ;;  %v7175_v42 = vld [vmem:[%s13674_s2 + $0x18] sm:$0xff] }
 0x675   :  { %v7049_v53 = vpop.permute.xlu0 %7048 }
 0x676   :  { %7054 = vst.msk [vmem:[#allocation6 + $0xb8] sm:$0xf] %vm6532_vm1, %v7049_v53  ;;  %v7178_v53 = vld [vmem:[%s13674_s2 + $0x30] sm:$0xff] }
 0x677   :  { %6812 = vrot.lane.b32.xlu0 %v6808_v23, %s9155_s16  ;;  %6990 = vrot.lane.b32.xlu1 %v6985_v36, %s9156_s17  ;;  %v6803_v45 = vpop.permute.xlu1 %6802 }
 0x678   :  { %6807 = vst.msk [vmem:[#allocation6 + $0x64] sm:$0xf] %vm6532_vm1, %v6803_v45  ;;  %v7173_v45 = vld [vmem:[%s13674_s2 + $0x8] sm:$0xff] }
 0x679   :  { %v7025_v5 = vpop.permute.xlu0 %7024 }
 0x67a   :  { %7030 = vst.msk [vmem:[#allocation6 + $0xb0] sm:$0xf] %vm6532_vm1, %v7025_v5  ;;  %v7176_v5 = vld [vmem:[%s13674_s2 + $0x20] sm:$0xff] }
 0x67b   :  { %6788 = vrot.lane.b32.xlu0 %v6784_v20, %s9130_s21  ;;  %6878 = vrot.lane.b32.xlu1 %v6873_v59, %s9156_s17  ;;  %v6779_v52 = vpop.permute.xlu1 %6778 }
 0x67c   :  { %6783 = vst.msk [vmem:[#allocation6 + $0x5c] sm:$0xf] %vm6532_vm1, %v6779_v52  ;;  %v7832_v52 = vld [vmem:[%s13674_s2 + $0xc0] sm:$0xff] }
 0x67d   :  { %v7001_v24 = vpop.permute.xlu0 %7000 }
 0x67e   :  { %7006 = vst.msk [vmem:[#allocation6 + $0xa8] sm:$0xf] %vm6532_vm1, %v7001_v24  ;;  %v7174_v24 = vld [vmem:[%s13674_s2 + $0x10] sm:$0xff] }
 0x67f   :  { %6972 = vrot.lane.b32.xlu0 %v6968_v41, %s9157_s19  ;;  %6862 = vrot.lane.b32.xlu1 %v6857_v19, %s9157_s19  ;;  %v6963_v48 = vpop.permute.xlu1 %6962 }
 0x680   :  { %6967 = vst.msk [vmem:[#allocation6 + $0x9c] sm:$0xf] %vm6532_vm1, %v6963_v48  ;;  %v7830_v48 = vld [vmem:[%s13674_s2 + $0xb0] sm:$0xff] }
 0x683   :  { %6764 = vrot.lane.b32.xlu0 %v6760_v32, %s9156_s17  ;;  %6838 = vrot.lane.b32.xlu1 %v6833_v50, %s9158_s22  ;;  %v6939_v38 = vpop.permute.xlu1 %6938  ;;  %v7172_v32 = vld [vmem:[%s13674_s2] sm:$0xff] }
 0x684   :  { %6943 = vst.msk [vmem:[#allocation6 + $0x94] sm:$0xf] %vm6532_vm1, %v6939_v38 }
 0x687   :  { %6948 = vrot.lane.b32.xlu0 %v6944_v58, %s9158_s22  ;;  %6814 = vrot.lane.b32.xlu1 %v6809_v21, %s9155_s16  ;;  %v6915_v34 = vpop.permute.xlu1 %6914  ;;  %v7828_v58 = vld [vmem:[%s13674_s2 + $0xa0] sm:$0xff]  ;;  %v7834_v21 = vld [vmem:[%s13674_s2 + $0xd0] sm:$0xf] }
 0x688   :  { %6919 = vst.msk [vmem:[#allocation6 + $0x8c] sm:$0xf] %vm6532_vm1, %v6915_v34 }
 0x68b   :  { %6712 = vrot.lane.b32.xlu0 %v6708_v61, %s9154_s15  ;;  %6790 = vrot.lane.b32.xlu1 %v6785_v22, %s9130_s21  ;;  %v7051_v9 = vpop.permute.xlu1 %7050  ;;  %v7826_v22 = vld [vmem:[%s13674_s2 + $0x90] sm:$0xff] }
 0x68c   :  { %7055 = vst.msk [vmem:[#allocation6 + $0xbc] sm:$0xf] %vm6532_vm1, %v7051_v9  ;;  %v7833_v9 = vld [vmem:[%s13674_s2 + $0xc8] sm:$0xff] }
 0x68f   :  { %6924 = vrot.lane.b32.xlu0 %v6920_v51, %s9155_s16  ;;  %6974 = vrot.lane.b32.xlu1 %v6969_v3, %s9157_s19  ;;  %v7027_v54 = vpop.permute.xlu1 %7026  ;;  %v5811_v51 = vadd.f32 %v12858_v18, %v12743_v6  ;;  %v7829_v6 = vld [vmem:[%s13674_s2 + $0xa8] sm:$0xff] }
 0x690   :  { %7031 = vst.msk [vmem:[#allocation6 + $0xb4] sm:$0xf] %vm6532_vm1, %v7027_v54 }
 0x693   :  { %6724 = vrot.lane.b32.xlu0 %v6720_v8, %s9158_s22  ;;  %6766 = vrot.lane.b32.xlu1 %v6761_v33, %s9156_s17  ;;  %v7003_v13 = vpop.permute.xlu1 %7002  ;;  %v7824_v8 = vld [vmem:[%s13674_s2 + $0x80] sm:$0xff]  ;;  %v7831_v33 = vld [vmem:[%s13674_s2 + $0xb8] sm:$0xff] }
 0x694   :  { %7007 = vst.msk [vmem:[#allocation6 + $0xac] sm:$0xf] %vm6532_vm1, %v7003_v13  ;;  %v5951_v13 = vmul.f32 0.01, %v5811_v51 }
 0x696   :  { %v5977_v18 = vmax.f32 %v5811_v51, %v5951_v13 }
 0x697   :  { %6539 = vrot.lane.b32.xlu0 %v6535_v31, %s9156_s17  ;;  %6950 = vrot.lane.b32.xlu1 %v6945_v17, %s9158_s22 }
 0x69b   :  { %6888 = vrot.lane.b32.xlu0 %v6884_v43, %s9127_s18  ;;  %6926 = vrot.lane.b32.xlu1 %v6921_v62, %s9155_s16 }
 0x69f   :  { %6900 = vrot.lane.b32.xlu0 %v6896_v7, %s9130_s21  ;;  %6726 = vrot.lane.b32.xlu1 %v6721_v29, %s9158_s22  ;;  %v5815_v7 = vadd.f32 %v12994_v15, %v12748_v28  ;;  %v7827_v29 = vld [vmem:[%s13674_s2 + $0x98] sm:$0xff] }
 0x6a1   :  { %v5964_v63 = vmul.f32 0.01, %v5815_v7 }
 0x6a3   :  { %7072 = vrot.lane.b32.xlu0 %v7068_v2, %s9153_s14  ;;  %6541 = vrot.lane.b32.xlu1 %v6536_v37, %s9156_s17 }
 0x6a7   :  { %7084 = vrot.lane.b32.xlu0 %v7080_v60, %s9157_s19  ;;  %6890 = vrot.lane.b32.xlu1 %v6885_v46, %s9127_s18  ;;  %v7825_v60 = vld [vmem:[%s13674_s2 + $0x88] sm:$0xff] }
 0x6ab   :  { %7259 = vperm.xlu0 %8708, %v7186_v4   ;;  %6902 = vrot.lane.b32.xlu1 %v6897_v27, %s9130_s21  ;;  %v8051_v4 = vld [vmem:[%s13674_s2 + $0xe0] sm:$0xff]  ;;  %v5990_v27 = vmax.f32 %v5815_v7, %v5964_v63 }
 0x6ac   :  { %v9072_v63 = vld [vmem:[%s13673_s1 + $0x20] ss:$16 sps:$4 sm:$0xff]  }
 0x6ad   :  { %v6701_v56 = vpop.permute.xlu0 %6700 }
 0x6ae   :  { %6706 = vst.msk [vmem:[#allocation6 + $0x38] sm:$0xf] %vm6545_vm10, %v6701_v56 }
 0x6af   :  { %7254 = vperm.xlu0 %8708, %v7185_v10   ;;  %7074 = vrot.lane.b32.xlu1 %v7069_v11, %s9153_s14 }
 0x6b1   :  { %v6677_v26 = vpop.permute.xlu0 %6676 }
 0x6b2   :  { %6682 = vst.msk [vmem:[#allocation6 + $0x30] sm:$0xf] %vm6545_vm10, %v6677_v26 }
 0x6b3   :  { %7244 = vperm.xlu0 %8708, %v7183_v55   ;;  %7086 = vrot.lane.b32.xlu1 %v7081_v35, %s9157_s19 }
 0x6b5   :  { %v6653_v12 = vpop.permute.xlu0 %6652 }
 0x6b6   :  { %6658 = vst.msk [vmem:[#allocation6 + $0x28] sm:$0xf] %vm6545_vm10, %v6653_v12  ;;  %v8052_v12 = vld [vmem:[%s13674_s2 + $0xe8] sm:$0x3] }
 0x6b7   :  { %7234 = vperm.xlu0 %8708, %v7181_v44   ;;  %7249 = vperm.xlu1 %8709, %v7184_v49  }
 0x6b9   :  { %v6637_v30 = vpop.permute.xlu0 %6636  ;;  %v6703_v0 = vpop.permute.xlu1 %6702 }
 0x6ba   :  { %6642 = vst.msk [vmem:[#allocation6 + $0x20] sm:$0xf] %vm6545_vm10, %v6637_v30  ;;  %6707 = vst.msk [vmem:[#allocation6 + $0x3c] sm:$0xf] %vm6545_vm10, %v6703_v0 }
 0x6bb   :  { %7224 = vperm.xlu0 %8708, %v7179_v16   ;;  %7239 = vperm.xlu1 %8709, %v7182_v14  }
 0x6bd   :  { %v6613_v40 = vpop.permute.xlu0 %6612  ;;  %v6679_v39 = vpop.permute.xlu1 %6678 }
 0x6be   :  { %6618 = vst.msk [vmem:[#allocation6 + $0x18] sm:$0xf] %vm6545_vm10, %v6613_v40  ;;  %6683 = vst.msk [vmem:[#allocation6 + $0x34] sm:$0xf] %vm6545_vm10, %v6679_v39 }
 0x6bf   :  { %7214 = vperm.xlu0 %8708, %v7177_v57   ;;  %7229 = vperm.xlu1 %8709, %v7180_v1  }
 0x6c1   :  { %v6589_v23 = vpop.permute.xlu0 %6588  ;;  %v6655_v36 = vpop.permute.xlu1 %6654  ;;  %v9048_v0 = vld [vmem:[#allocation6 + $0x38] sm:$0xff]  }
 0x6c2   :  { %6594 = vst.msk [vmem:[#allocation6 + $0x10] sm:$0xf] %vm6545_vm10, %v6589_v23  ;;  %6659 = vst.msk [vmem:[#allocation6 + $0x2c] sm:$0xf] %vm6545_vm10, %v6655_v36 }
 0x6c3   :  { %7204 = vperm.xlu0 %8708, %v7175_v42   ;;  %7219 = vperm.xlu1 %8709, %v7178_v53  }
 0x6c5   :  { %v6749_v20 = vpop.permute.xlu0 %6748  ;;  %v6639_v59 = vpop.permute.xlu1 %6638  ;;  %v9050_v39 = vld [vmem:[#allocation6 + $0x30] sm:$0xff]  }
 0x6c6   :  { %6754 = vst.msk [vmem:[#allocation6 + $0x48] sm:$0xf] %vm6545_vm10, %v6749_v20  ;;  %6643 = vst.msk [vmem:[#allocation6 + $0x24] sm:$0xf] %vm6545_vm10, %v6639_v59 }
 0x6c7   :  { %7194 = vperm.xlu0 %8708, %v7173_v45   ;;  %7209 = vperm.xlu1 %8709, %v7176_v5  }
 0x6c9   :  { %v6565_v41 = vpop.permute.xlu0 %6564  ;;  %v6615_v19 = vpop.permute.xlu1 %6614  ;;  %v9052_v36 = vld [vmem:[#allocation6 + $0x28] sm:$0xff]  }
 0x6ca   :  { %6570 = vst.msk [vmem:[#allocation6 + $0x8] sm:$0xf] %vm6545_vm10, %v6565_v41  ;;  %6619 = vst.msk [vmem:[#allocation6 + $0x1c] sm:$0xf] %vm6545_vm10, %v6615_v19 }
 0x6cb   :  { %7877 = vperm.xlu0 %8708, %v7832_v52   ;;  %7199 = vperm.xlu1 %8709, %v7174_v24  }
 0x6cd   :  { %v7061_v50 = vpop.permute.xlu0 %7060  ;;  %v6591_v38 = vpop.permute.xlu1 %6590  ;;  %v9054_v59 = vld [vmem:[#allocation6 + $0x20] sm:$0xff]  }
 0x6ce   :  { %7066 = vst.msk [vmem:[#allocation6 + $0xb8] sm:$0xf] %vm6545_vm10, %v7061_v50  ;;  %6595 = vst.msk [vmem:[#allocation6 + $0x14] sm:$0xf] %vm6545_vm10, %v6591_v38 }
 0x6cf   :  { %7867 = vperm.xlu0 %8708, %v7830_v48   ;;  %7189 = vperm.xlu1 %8709, %v7172_v32  }
 0x6d1   :  { %v7037_v34 = vpop.permute.xlu0 %7036  ;;  %v6751_v61 = vpop.permute.xlu1 %6750  ;;  %v9056_v19 = vld [vmem:[#allocation6 + $0x18] sm:$0xff]  }
 0x6d2   :  { %7042 = vst.msk [vmem:[#allocation6 + $0xb0] sm:$0xf] %vm6545_vm10, %v7037_v34  ;;  %6755 = vst.msk [vmem:[#allocation6 + $0x4c] sm:$0xf] %vm6545_vm10, %v6751_v61 }
 0x6d3   :  { %7857 = vperm.xlu0 %8708, %v7828_v58   ;;  %7887 = vperm.xlu1 %8709, %v7834_v21  }
 0x6d5   :  { %v7013_v3 = vpop.permute.xlu0 %7012  ;;  %v6567_v54 = vpop.permute.xlu1 %6566  ;;  %v9059_v34 = vld [vmem:[#allocation6 + $0x10] sm:$0xff]  }
 0x6d6   :  { %7018 = vst.msk [vmem:[#allocation6 + $0xa8] sm:$0xf] %vm6545_vm10, %v7013_v3  ;;  %6571 = vst.msk [vmem:[#allocation6 + $0xc] sm:$0xf] %vm6545_vm10, %v6567_v54 }
 0x6d7   :  { %7847 = vperm.xlu0 %8708, %v7826_v22   ;;  %7882 = vperm.xlu1 %8709, %v7833_v9  }
 0x6d9   :  { %v6989_v31 = vpop.permute.xlu0 %6988  ;;  %v6715_v17 = vpop.permute.xlu1 %6714  ;;  %v9060_v61 = vld [vmem:[#allocation6 + $0x48] sm:$0xff]  }
 0x6da   :  { %6994 = vst.msk [vmem:[#allocation6 + $0xa0] sm:$0xf] %vm6545_vm10, %v6989_v31 }
 0x6db   :  { %6719 = vst.msk [vmem:[#allocation6 + $0x44] sm:$0xf] %vm6532_vm1, %v6715_v17  ;;  %7837 = vperm.xlu0 %8708, %v7824_v8   ;;  %7872 = vperm.xlu1 %8709, %v7831_v33  }
 0x6dd   :  { %v6877_v43 = vpop.permute.xlu0 %6876  ;;  %v7063_v62 = vpop.permute.xlu1 %7062  ;;  %v9062_v3 = vld [vmem:[#allocation6 + $0x8] sm:$0xff]  }
 0x6de   :  { %6882 = vst.msk [vmem:[#allocation6 + $0x78] sm:$0xf] %vm6545_vm10, %v6877_v43  ;;  %7067 = vst.msk [vmem:[#allocation6 + $0xbc] sm:$0xf] %vm6545_vm10, %v7063_v62  ;;  %v9066_v43 = vld [vmem:[%s13673_s1] ss:$16 sps:$4 sm:$0xff]  }
 0x6df   :  { %6036 = vrot.lane.b32.xlu0 %v5977_v18, %s9129_s20  ;;  %7862 = vperm.xlu1 %8709, %v7829_v6   ;;  %v9070_v62 = vld [vmem:[%s13673_s1 + $0x24] ss:$16 sps:$4 sm:$0xff]  }
 0x6e1   :  { %v6861_v2 = vpop.permute.xlu0 %6860  ;;  %v7039_v37 = vpop.permute.xlu1 %7038 }
 0x6e2   :  { %6866 = vst.msk [vmem:[#allocation6 + $0x70] sm:$0xf] %vm6545_vm10, %v6861_v2  ;;  %7043 = vst.msk [vmem:[#allocation6 + $0xb4] sm:$0xf] %vm6545_vm10, %v7039_v37 }
 0x6e3   :  { %6165 = vrot.lane.b32.xlu0 %v5977_v18, %s9141_s6  ;;  %7852 = vperm.xlu1 %8709, %v7827_v29  }
 0x6e5   :  { %v6837_v46 = vpop.permute.xlu0 %6836  ;;  %v7015_v28 = vpop.permute.xlu1 %7014  ;;  %v9043_v15 = vld [vmem:[#allocation6 + $0xb8] sm:$0xff]  }
 0x6e6   :  { %6842 = vst.msk [vmem:[#allocation6 + $0x68] sm:$0xf] %vm6545_vm10, %v6837_v46  ;;  %7019 = vst.msk [vmem:[#allocation6 + $0xac] sm:$0xf] %vm6545_vm10, %v7015_v28  ;;  %7680 = vmatpush1.bf16.msra.mxu0 %v9043_v15 }
 0x6e7   :  { %6294 = vrot.lane.b32.xlu0 %v5977_v18, %s9135_s26  ;;  %7842 = vperm.xlu1 %8709, %v7825_v60   ;;  %v9076_v60 = vld [vmem:[%s13673_s1 + $0x44] ss:$16 sps:$4 sm:$0xff]  }
 0x6e8   :  { %7681 = vmatprep.subr.bf16.mxu0 %v13970_v47 }
 0x6e9   :  { %v6813_v10 = vpop.permute.xlu0 %6812  ;;  %v6991_v56 = vpop.permute.xlu1 %6990  ;;  %v9044_v11 = vld [vmem:[#allocation6 + $0xb0] sm:$0xff]  }
 0x6ea   :  { %6818 = vst.msk [vmem:[#allocation6 + $0x60] sm:$0xf] %vm6545_vm10, %v6813_v10  ;;  %6995 = vst.msk [vmem:[#allocation6 + $0xa4] sm:$0xf] %vm6545_vm10, %v6991_v56  ;;  %7682 = vmatpush1.bf16.msra.mxu0 %v9044_v11  ;;  %v9082_v10 = vld [vmem:[%s13673_s1 + $0x2c] ss:$16 sps:$4 sm:$0xff]  }
 0x6eb   :  { %8055 = vperm.xlu0 %8708, %v8051_v4   ;;  %6062 = vrot.lane.b32.xlu1 %v5990_v27, %s9129_s20  ;;  %v9078_v4 = vld [vmem:[%s13673_s1 + $0x40] ss:$16 sps:$4 sm:$0xff]  }
 0x6ec   :  { %7683 = vmatprep.subr.bf16.mxu0 %v13970_v47 }
 0x6ed   :  { %v6789_v25 = vpop.permute.xlu0 %6788  ;;  %v6879_v55 = vpop.permute.xlu1 %6878  ;;  %v9045_v26 = vld [vmem:[#allocation6 + $0xa8] sm:$0xff]  }
 0x6ee   :  { %6794 = vst.msk [vmem:[#allocation6 + $0x58] sm:$0xf] %vm6545_vm10, %v6789_v25  ;;  %6883 = vst.msk [vmem:[#allocation6 + $0x7c] sm:$0xf] %vm6545_vm10, %v6879_v55  ;;  %7684 = vmatpush1.bf16.msra.mxu0 %v9045_v26  ;;  %v9084_v26 = vld [vmem:[%s13673_s1 + $0x60] ss:$16 sps:$4 sm:$0xff]  }
 0x6ef   :  { %6191 = vrot.lane.b32.xlu1 %v5990_v27, %s9141_s6  ;;  %7685 = vmatprep.subr.bf16.mxu0 %v13970_v47 }
 0x6f1   :  { %v6973_v35 = vpop.permute.xlu0 %6972  ;;  %v6863_v44 = vpop.permute.xlu1 %6862  ;;  %v9046_v49 = vld [vmem:[#allocation6 + $0xa0] sm:$0xff]  }
 0x6f2   :  { %6978 = vst.msk [vmem:[#allocation6 + $0x98] sm:$0xf] %vm6545_vm10, %v6973_v35  ;;  %6867 = vst.msk [vmem:[#allocation6 + $0x74] sm:$0xf] %vm6545_vm10, %v6863_v44  ;;  %7686 = vmatpush1.bf16.msra.mxu0 %v9046_v49  ;;  %v9085_v35 = vld [vmem:[%s13673_s1 + $0x28] ss:$16 sps:$4 sm:$0xff]  }
 0x6f3   :  { %6320 = vrot.lane.b32.xlu1 %v5990_v27, %s9135_s26  ;;  %7687 = vmatprep.subr.bf16.mxu0 %v13970_v47  ;;  %v9079_v27 = vld [vmem:[%s13673_s1 + $0x8] ss:$16 sps:$4 sm:$0xff]   ;;  %v9086_v44 = vld [vmem:[%s13673_s1 + $0x84] ss:$16 sps:$4 sm:$0xff]   ;;  %v9088_v49 = vld [vmem:[%s13673_s1 + $0x4c] ss:$16 sps:$4 sm:$0xff]  }
 0x6f5   :  { %v6765_v16 = vpop.permute.xlu0 %6764  ;;  %v6839_v14 = vpop.permute.xlu1 %6838  ;;  %v9047_v30 = vld [vmem:[#allocation6 + $0x78] sm:$0xff]  }
 0x6f6   :  { %6770 = vst.msk [vmem:[#allocation6 + $0x50] sm:$0xf] %vm6545_vm10, %v6765_v16  ;;  %6843 = vst.msk [vmem:[#allocation6 + $0x6c] sm:$0xf] %vm6545_vm10, %v6839_v14  ;;  %8527 = vmatprep.subr.bf16.mxu1 %v9047_v30 }
 0x6f7   :  { %8060 = vperm.xlu1 %8709, %v8052_v12   ;;  %8528 = vmatpush3.bf16.msra.mxu1 %v9048_v0  ;;  %v9090_v0 = vld [vmem:[%s13673_s1 + $0x80] ss:$16 sps:$4 sm:$0xff]  }
 0x6f9   :  { %v6949_v57 = vpop.permute.xlu0 %6948  ;;  %v6815_v1 = vpop.permute.xlu1 %6814  ;;  %v9049_v40 = vld [vmem:[#allocation6 + $0x70] sm:$0xff]  }
 0x6fa   :  { %6954 = vst.msk [vmem:[#allocation6 + $0x90] sm:$0xf] %vm6545_vm10, %v6949_v57  ;;  %6819 = vst.msk [vmem:[#allocation6 + $0x64] sm:$0xf] %vm6545_vm10, %v6815_v1  ;;  %8529 = vmatprep.subr.bf16.mxu1 %v9049_v40  ;;  %v9091_v57 = vld [vmem:[%s13673_s1 + $0x48] ss:$16 sps:$4 sm:$0xff]  }
 0x6fb   :  { %8530 = vmatpush3.bf16.msra.mxu1 %v9050_v39  ;;  %v9092_v1 = vld [vmem:[%s13673_s1 + $0xa4] ss:$16 sps:$4 sm:$0xff]   ;;  %v9094_v40 = vld [vmem:[%s13673_s1 + $0x6c] ss:$16 sps:$4 sm:$0xff]  }
 0x6fd   :  { %v6713_v42 = vpop.permute.xlu0 %6712  ;;  %v6791_v53 = vpop.permute.xlu1 %6790  ;;  %v9051_v23 = vld [vmem:[#allocation6 + $0x68] sm:$0xff]  }
 0x6fe   :  { %6718 = vst.msk [vmem:[#allocation6 + $0x40] sm:$0xf] %vm6532_vm1, %v6713_v42  ;;  %8531 = vmatprep.subr.bf16.mxu1 %v9051_v23 }
 0x6ff   :  { %6795 = vst.msk [vmem:[#allocation6 + $0x5c] sm:$0xf] %vm6545_vm10, %v6791_v53  ;;  %8532 = vmatpush3.bf16.msra.mxu1 %v9052_v36  ;;  %v9096_v36 = vld [vmem:[%s13673_s1 + $0xa0] ss:$16 sps:$4 sm:$0xff]  }
 0x701   :  { %v6925_v45 = vpop.permute.xlu0 %6924  ;;  %v6975_v5 = vpop.permute.xlu1 %6974  ;;  %v9053_v20 = vld [vmem:[#allocation6 + $0x60] sm:$0xff]  }
 0x702   :  { %6930 = vst.msk [vmem:[#allocation6 + $0x88] sm:$0xf] %vm6545_vm10, %v6925_v45  ;;  %6979 = vst.msk [vmem:[#allocation6 + $0x9c] sm:$0xf] %vm6545_vm10, %v6975_v5  ;;  %8533 = vmatprep.subr.bf16.mxu1 %v9053_v20  ;;  %v9097_v45 = vld [vmem:[%s13673_s1 + $0x68] ss:$16 sps:$4 sm:$0xff]  }
 0x703   :  { %8534 = vmatpush3.bf16.msra.mxu1 %v9054_v59  ;;  %v9098_v5 = vld [vmem:[%s13673_s1 + $0xc4] ss:$16 sps:$4 sm:$0xff]   ;;  %v9100_v20 = vld [vmem:[%s13673_s1 + $0x8c] ss:$16 sps:$4 sm:$0xff]  }
 0x705   :  { %v6725_v52 = vpop.permute.xlu0 %6724  ;;  %v6767_v24 = vpop.permute.xlu1 %6766 }
 0x706   :  { %v9055_v41 = vld [vmem:[#allocation6 + $0x58] sm:$0xff]   ;;  %6730 = vst.msk [vmem:[#allocation6 + $0x40] sm:$0xf] %vm6545_vm10, %v6725_v52  ;;  %6771 = vst.msk [vmem:[#allocation6 + $0x54] sm:$0xf] %vm6545_vm10, %v6767_v24 }
 0x707   :  { %8535 = vmatprep.subr.bf16.mxu1 %v9055_v41  ;;  %v7120_v24 = vld [vmem:[%s13673_s1 + $0xe0] sm:$0xff] }
 0x708   :  { %8536 = vmatpush3.bf16.msra.mxu1 %v9056_v19 }
 0x709   :  { %v6540_v48 = vpop.permute.xlu0 %6539  ;;  %v6951_v32 = vpop.permute.xlu1 %6950  ;;  %v9057_v50 = vld [vmem:[#allocation6 + $0x98] sm:$0xff]  }
 0x70a   :  { %6546 = vst.msk [vmem:[#allocation6] sm:$0xf] %vm6545_vm10, %v6540_v48  ;;  %6955 = vst.msk [vmem:[#allocation6 + $0x94] sm:$0xf] %vm6545_vm10, %v6951_v32  ;;  %7688 = vmatpush1.bf16.msra.mxu0 %v9057_v50  ;;  %v9102_v48 = vld [vmem:[%s13673_s1 + $0xc0] ss:$16 sps:$4 sm:$0xff]   ;;  %v8447_v50 = vcombine.high %v7120_v24, %v7120_v24 }
 0x70b   :  { %7689 = vmatprep.subr.bf16.mxu0 %v13970_v47  ;;  %v9103_v32 = vld [vmem:[%s13673_s1 + $0x88] ss:$16 sps:$4 sm:$0xff]  }
 0x70d   :  { %v6889_v38 = vpop.permute.xlu0 %6888  ;;  %v6927_v58 = vpop.permute.xlu1 %6926  ;;  %v9058_v21 = vld [vmem:[#allocation6 + $0x50] sm:$0xff]  }
 0x70e   :  { %6894 = vst.msk [vmem:[#allocation6 + $0x80] sm:$0xf] %vm6532_vm1, %v6889_v38  ;;  %8537 = vmatprep.subr.bf16.mxu1 %v9058_v21  ;;  %v9105_v38 = vld [vmem:[%s13673_s1 + $0xac] ss:$16 sps:$4 sm:$0xff]  }
 0x70f   :  { %6931 = vst.msk [vmem:[#allocation6 + $0x8c] sm:$0xf] %vm6545_vm10, %v6927_v58  ;;  %8538 = vmatpush3.bf16.msra.mxu1 %v9059_v34 }
 0x710   :  { %8539 = vmatprep.subr.bf16.mxu1 %v9060_v61 }
 0x711   :  { %v6901_v22 = vpop.permute.xlu0 %6900  ;;  %v6727_v9 = vpop.permute.xlu1 %6726  ;;  %v9061_v51 = vld [vmem:[#allocation6 + $0x90] sm:$0xff]  }
 0x712   :  { %6906 = vst.msk [vmem:[#allocation6 + $0x80] sm:$0xf] %vm6545_vm10, %v6901_v22  ;;  %6731 = vst.msk [vmem:[#allocation6 + $0x44] sm:$0xf] %vm6545_vm10, %v6727_v9  ;;  %7690 = vmatpush1.bf16.msra.mxu0 %v9061_v51  ;;  %v8446_v22 = vcombine.low %v7120_v24, %v7120_v24  ;;  %v9108_v9 = vld [vmem:[%s13673_s1 + $0xa8] ss:$16 sps:$4 sm:$0xff]  }
 0x713   :  { %8540 = vmatpush3.bf16.msra.mxu1 %v9062_v3  ;;  %7691 = vmatprep.subr.bf16.mxu0 %v13970_v47  ;;  %v9109_v51 = vld [vmem:[%s13673_s1 + $0xcc] ss:$16 sps:$4 sm:$0xff]  }
 0x715   :  { %v7073_v54 = vpop.permute.xlu0 %7072  ;;  %v6542_v8 = vpop.permute.xlu1 %6541 }
 0x716   :  { %v9063_v33 = vld [vmem:[#allocation6 + $0x88] sm:$0xff]   ;;  %7078 = vst.msk [vmem:[#allocation6 + $0xc0] sm:$0xf] %vm6532_vm1, %v7073_v54 }
 0x717   :  { %6547 = vst.msk [vmem:[#allocation6 + $0x4] sm:$0xf] %vm6545_vm10, %v6542_v8  ;;  %7692 = vmatpush1.bf16.msra.mxu0 %v9063_v33  ;;  %v7121_v8 = vld [vmem:[%s13673_s1 + $0xe8] sm:$0xff] }
 0x718   :  { %7693 = vmatprep.subr.bf16.mxu0 %v13970_v47 }
 0x719   :  { %v7085_v13 = vpop.permute.xlu0 %7084  ;;  %v6891_v31 = vpop.permute.xlu1 %6890  ;;  %v9064_v17 = vld [vmem:[#allocation6 + $0x40] sm:$0xff]  }
 0x71a   :  { %7090 = vst.msk [vmem:[#allocation6 + $0xc0] sm:$0xf] %vm6545_vm10, %v7085_v13  ;;  %8541 = vmatprep.subr.bf16.mxu1 %v9064_v17  ;;  %v8449_v17 = vcombine.high %v7121_v8, %v7121_v8 }
 0x71b   :  { %6895 = vst.msk [vmem:[#allocation6 + $0x84] sm:$0xf] %vm6532_vm1, %v6891_v31  ;;  %v9111_v31 = vld [vmem:[%s13673_s1 + $0xc8] ss:$16 sps:$4 sm:$0xff]  }
 0x71d   :  { %v6903_v6 = vpop.permute.xlu1 %6902 }
 0x71e   :  { %v9065_v18 = vld [vmem:[#allocation6] sm:$0xff]   ;;  %6907 = vst.msk [vmem:[#allocation6 + $0x84] sm:$0xf] %vm6545_vm10, %v6903_v6 }
 0x71f   :  { %8542 = vmatpush3.bf16.msra.mxu1 %v9065_v18 }
 0x721   :  { %v7075_v7 = vpop.permute.xlu1 %7074 }
 0x722   :  { %7079 = vst.msk [vmem:[#allocation6 + $0xc4] sm:$0xf] %vm6532_vm1, %v7075_v7  ;;  %7616 = vmatmul.mubr.bf16.vlgmr.msra.gmra.mxu1 %v9066_v43  ;;  %vm8068_vm1 = vcmask 687104  }
 0x723   :  { %7623 = vmatprep.mubr.bf16.mxu1 %v9070_v62  ;;  %v8448_v62 = vcombine.low %v7121_v8, %v7121_v8 }
 0x725   :  { %v7087_v29 = vpop.permute.xlu1 %7086  ;;  %v9069_v2 = vld [vmem:[#allocation6 + $0x80] sm:$0xff]  }
 0x726   :  { %7091 = vst.msk [vmem:[#allocation6 + $0xc4] sm:$0xf] %vm6545_vm10, %v7087_v29  ;;  %v13440_v37 = vpop.permute.xlu0 %7259  ;;  %7694 = vmatpush1.bf16.msra.mxu0 %v9069_v2  ;;  %v9114_v2 = vld [vmem:[%s13673_s1 + $0x100] ss:$16 sps:$4 sm:$0xff]  }
 0x727   :  { %7709 = vmatprep.subr.bf16.mxu0 %v13970_v47  ;;  %v9080_v47 = vld [vmem:[%s13673_s1 + $0x64] ss:$16 sps:$4 sm:$0xff]  }
 0x72a   :  { %v13449_v46 = vpop.permute.xlu0 %7254  ;;  %7624 = vmatmul.mubr.bf16.gmra.mxu1 %v9072_v63 }
 0x72b   :  { %7631 = vmatprep.mubr.bf16.mxu1 %v9076_v60 }
 0x72d   :  { %v9073_v28 = vld [vmem:[#allocation6 + $0xc0] sm:$0xff]  }
 0x72e   :  { %v13451_v15 = vpop.permute.xlu0 %7244  ;;  %7710 = vmatpush2.bf16.msra.mxu0 %v9073_v28 }
 0x731   :  { %7712 = vmatmul.mubr.bf16.vlgmr.msra.gmra.mxu0 %v9079_v27 }
 0x732   :  { %v13465_v56 = vpop.permute.xlu0 %7234  ;;  %v13467_v11 = vpop.permute.xlu1 %7249  ;;  %7632 = vmatmul.mubr.bf16.gmra.mxu1 %v9078_v4  ;;  %8476 = vmatprep.mubr.msk.bf16.mxu0 %vm7558_vm3, %v9082_v10 }
 0x733   :  { %7639 = vmatprep.mubr.bf16.mxu1 %v9080_v47 }
 0x736   :  { %v13470_v25 = vpop.permute.xlu0 %7224  ;;  %v13472_v55 = vpop.permute.xlu1 %7239 }
 0x739   :  { %7720 = vmatmul.mubr.bf16.gmra.mxu0 %v9085_v35 }
 0x73a   :  { %v13486_v12 = vpop.permute.xlu0 %7214  ;;  %v13488_v16 = vpop.permute.xlu1 %7229  ;;  %7640 = vmatmul.mubr.bf16.gmra.mxu1 %v9084_v26  ;;  %8477 = vmatprep.mubr.msk.bf16.mxu0 %vm7558_vm3, %v9088_v49 }
 0x73b   :  { %7647 = vmatprep.mubr.bf16.mxu1 %v9086_v44 }
 0x73e   :  { %v13491_v14 = vpop.permute.xlu0 %7204  ;;  %v13493_v30 = vpop.permute.xlu1 %7219 }
 0x741   :  { %7728 = vmatmul.mubr.bf16.gmra.mxu0 %v9091_v57 }
 0x742   :  { %v13507_v39 = vpop.permute.xlu0 %7194  ;;  %v13509_v42 = vpop.permute.xlu1 %7209  ;;  %7648 = vmatmul.mubr.bf16.gmra.mxu1 %v9090_v0  ;;  %8478 = vmatprep.mubr.msk.bf16.mxu0 %vm7558_vm3, %v9094_v40 }
 0x743   :  { %7655 = vmatprep.mubr.bf16.mxu1 %v9092_v1 }
 0x746   :  { %v13512_v53 = vpop.permute.xlu0 %7877  ;;  %v13514_v23 = vpop.permute.xlu1 %7199 }
 0x749   :  { %7736 = vmatmul.mubr.bf16.gmra.mxu0 %v9097_v45 }
 0x74a   :  { %v13528_v59 = vpop.permute.xlu0 %7867  ;;  %v7190_v52 = vpop.permute.xlu1 %7189  ;;  %7656 = vmatmul.mubr.bf16.gmra.mxu1 %v9096_v36  ;;  %8479 = vmatprep.mubr.msk.bf16.mxu0 %vm7558_vm3, %v9100_v20 }
 0x74b   :  { %7663 = vmatprep.mubr.bf16.mxu1 %v9098_v5 }
 0x74e   :  { %v13534_v41 = vpop.permute.xlu0 %7857  ;;  %v13536_v19 = vpop.permute.xlu1 %7887 }
 0x751   :  { %7744 = vmatmul.mubr.bf16.gmra.mxu0 %v9103_v32 }
 0x752   :  { %v13547_v58 = vpop.permute.xlu0 %7847  ;;  %v13549_v21 = vpop.permute.xlu1 %7882  ;;  %7664 = vmatmul.mubr.bf16.gmra.mxu1 %v9102_v48  ;;  %8480 = vmatprep.mubr.msk.bf16.mxu0 %vm7558_vm3, %v9105_v38 }
 0x753   :  { %7671 = vmatprep.mubr.bf16.mxu1 %v8447_v50 }
 0x756   :  { %v13552_v34 = vpop.permute.xlu0 %7837  ;;  %v13554_v61 = vpop.permute.xlu1 %7872 }
 0x759   :  { %7752 = vmatmul.mubr.bf16.gmra.mxu0 %v9108_v9 }
 0x75a   :  { %v6037_v3 = vpop.permute.xlu0 %6036  ;;  %v13562_v54 = vpop.permute.xlu1 %7862  ;;  %7672 = vmatmul.mubr.bf16.gmra.mxu1 %v8446_v22  ;;  %8481 = vmatprep.mubr.msk.bf16.mxu0 %vm7558_vm3, %v9109_v51 }
 0x75b   :  { %8646 = vmatprep.mubr.msk.bf16.mxu1 %vm3023_vm9, %v9114_v2 }
 0x75e   :  { %v6166_v33 = vpop.permute.xlu0 %6165  ;;  %v13568_v13 = vpop.permute.xlu1 %7852 }
 0x761   :  { %7760 = vmatmul.mubr.bf16.gmra.mxu0 %v9111_v31 }
 0x762   :  { %v6295_v6 = vpop.permute.xlu0 %6294  ;;  %v13573_v18 = vpop.permute.xlu1 %7842  ;;  %8482 = vmatprep.mubr.msk.bf16.mxu0 %vm7558_vm3, %v8449_v17 }
 0x766   :  { %v6063_v43 = vpop.permute.xlu1 %6062 }
 0x769   :  { %7768 = vmatmul.mubr.bf16.gmra.mxu0 %v8448_v62 }
 0x76a   :  { %v6192_v7 = vpop.permute.xlu1 %6191 }
 0x76e   :  { %v6321_v29 = vpop.permute.xlu1 %6320 }
 0x7e2   :  { %v8543_v63 = vpop.f32.mrf.mxu1 }
 0x7e4   :  { %v8544_v60 = vpop.f32.mrf.mxu1 }
 0x7e5   :  { %v8545_v28 = vadd.f32 %v8544_v60, %v8543_v63 }
 0x7e6   :  { %v8546_v4 = vpop.f32.mrf.mxu1 }
 0x7e7   :  { %v7618_v57 = vadd.f32 %v8545_v28, %v7190_v52 }
 0x7e8   :  { %v8547_v27 = vpop.f32.mrf.mxu1 }
 0x7e9   :  { %v8548_v47 = vadd.f32 %v8547_v27, %v8546_v4 }
 0x7ea   :  { %v8549_v10 = vpop.f32.mrf.mxu1 }
 0x7eb   :  { %v7621_v24 = vadd.f32 %v8548_v47, %v13507_v39 }
 0x7ec   :  { %v8550_v26 = vpop.f32.mrf.mxu1 }
 0x7ed   :  { %v8551_v35 = vadd.f32 %v8550_v26, %v8549_v10 }
 0x7ee   :  { %v8552_v44 = vpop.f32.mrf.mxu1 }
 0x7ef   :  { %v7626_v8 = vadd.f32 %v8551_v35, %v13514_v23 }
 0x7f0   :  { %v8553_v49 = vpop.f32.mrf.mxu1 }
 0x7f1   :  { %v8554_v0 = vadd.f32 %v8553_v49, %v8552_v44  ;;  %v7713_v40 = vpop.f32.mrf.mxu0 }
 0x7f2   :  { %v8555_v1 = vpop.f32.mrf.mxu1  ;;  %v7714_v36 = vadd.f32 %v7713_v40, %v7618_v57 }
 0x7f3   :  { %v7715_v5 = vpop.f32.mrf.mxu0  ;;  %v7629_v39 = vadd.f32 %v8554_v0, %v13491_v14 }
 0x7f4   :  { %v8556_v45 = vpop.f32.mrf.mxu1  ;;  %v7775_v50 = vmul.f32 0.01, %v7714_v36 }
 0x7f5   :  { %v8557_v20 = vadd.f32 %v8556_v45, %v8555_v1  ;;  %v7716_v32 = vpop.f32.mrf.mxu0 }
 0x7f6   :  { %v8558_v48 = vpop.f32.mrf.mxu1  ;;  %v7717_v38 = vadd.f32 %v7716_v32, %v7621_v24  ;;  %v7790_v31 = vmax.f32 %v7714_v36, %v7775_v50 }
 0x7f7   :  { %v7718_v9 = vpop.f32.mrf.mxu0  ;;  %v7634_v27 = vadd.f32 %v8557_v20, %v13509_v42 }
 0x7f8   :  { %v8559_v22 = vpop.f32.mrf.mxu1  ;;  %v7776_v51 = vmul.f32 0.01, %v7717_v38 }
 0x7f9   :  { %v8560_v3 = vadd.f32 %v8559_v22, %v8558_v48  ;;  %v7721_v52 = vpop.f32.mrf.mxu0 }
 0x7fa   :  { %v13582_v33 = vpop.f32.mrf.mxu1  ;;  %v7791_v17 = vmax.f32 %v7717_v38, %v7776_v51  ;;  %v7722_v6 = vadd.f32 %v7721_v52, %v7626_v8 }
 0x7fb   :  { %v7723_v62 = vpop.f32.mrf.mxu0  ;;  %v7637_v0 = vadd.f32 %v8560_v3, %v13486_v12 }
 0x7fc   :  { %v13584_v43 = vpop.f32.mrf.mxu1  ;;  %v13587_v7 = vpack.c.bf16 %v7791_v17, %v7790_v31  ;;  %v7777_v63 = vmul.f32 0.01, %v7722_v6 }
 0x7fd   :  { %v7724_v2 = vpop.f32.mrf.mxu0 }
 0x7fe   :  { %v13589_v29 = vpop.f32.mrf.mxu1  ;;  %v7725_v60 = vadd.f32 %v7724_v2, %v7629_v39  ;;  %v7792_v26 = vmax.f32 %v7722_v6, %v7777_v63 }
 0x7ff   :  { %v7726_v23 = vpop.f32.mrf.mxu0 }
 0x800   :  { %v13591_v28 = vpop.f32.mrf.mxu1  ;;  %v7778_v4 = vmul.f32 0.01, %v7725_v60 }
 0x801   :  { %v7729_v10 = vpop.f32.mrf.mxu0 }
 0x802   :  { %v8567_v47 = vpop.f32.mrf.mxu1  ;;  %v7793_v35 = vmax.f32 %v7725_v60, %v7778_v4  ;;  %v7730_v44 = vadd.f32 %v7729_v10, %v7634_v27 }
 0x803   :  { %v7731_v14 = vpop.f32.mrf.mxu0 }
 0x804   :  { %v8568_v49 = vpop.f32.mrf.mxu1  ;;  %v13595_v57 = vpack.c.bf16 %v7793_v35, %v7792_v26  ;;  %v7779_v36 = vmul.f32 0.01, %v7730_v44 }
 0x805   :  { %v7732_v40 = vpop.f32.mrf.mxu0 }
 0x806   :  { %v8570_v1 = vpop.f32.mrf.mxu1  ;;  %v7733_v45 = vadd.f32 %v7732_v40, %v7637_v0  ;;  %v7794_v20 = vmax.f32 %v7730_v44, %v7779_v36 }
 0x807   :  { %v7734_v24 = vpop.f32.mrf.mxu0 }
 0x808   :  { %v8571_v5 = vpop.f32.mrf.mxu1  ;;  %v7780_v48 = vmul.f32 0.01, %v7733_v45 }
 0x809   :  { %v13597_v42 = vpop.f32.mrf.mxu0 }
 0x80a   :  { %v8573_v32 = vpop.f32.mrf.mxu1  ;;  %v7795_v50 = vmax.f32 %v7733_v45, %v7780_v48 }
 0x80b   :  { %v7739_v22 = vpop.f32.mrf.mxu0 }
 0x80c   :  { %v8574_v38 = vpop.f32.mrf.mxu1  ;;  %v13599_v9 = vpack.c.bf16 %v7795_v50, %v7794_v20 }
 0x80d   :  { %v7740_v12 = vpop.f32.mrf.mxu0  ;;  %v8575_v50 = vadd.f32 %v8574_v38, %v8573_v32 }
 0x80e   :  { %v8576_v51 = vpop.f32.mrf.mxu1 }
 0x80f   :  { %v7742_v8 = vpop.f32.mrf.mxu0 }
 0x810   :  { %v8577_v3 = vpop.f32.mrf.mxu1 }
 0x811   :  { %v7745_v31 = vpop.f32.mrf.mxu0  ;;  %v8578_v45 = vadd.f32 %v8577_v3, %v8576_v51 }
 0x812   :  { %v8579_v52 = vpop.f32.mrf.mxu1 }
 0x813   :  { %v7747_v6 = vpop.f32.mrf.mxu0 }
 0x814   :  { %v8580_v17 = vpop.f32.mrf.mxu1 }
 0x815   :  { %v7748_v39 = vpop.f32.mrf.mxu0  ;;  %v8581_v40 = vadd.f32 %v8580_v17, %v8579_v52  ;;  %v7658_v52 = vadd.f32 %v8575_v50, %v13472_v55 }
 0x816   :  { %v8582_v62 = vpop.f32.mrf.mxu1 }
 0x817   :  { %v7750_v63 = vpop.f32.mrf.mxu0  ;;  %v7666_v22 = vadd.f32 %v8581_v40, %v13467_v11 }
 0x818   :  { %v8583_v2 = vpop.f32.mrf.mxu1  ;;  %v8572_v63 = vadd.f32 %v8571_v5, %v8570_v1 }
 0x819   :  { %v7753_v23 = vpop.f32.mrf.mxu0  ;;  %v8584_v14 = vadd.f32 %v8583_v2, %v8582_v62  ;;  %v8569_v62 = vadd.f32 %v8568_v49, %v8567_v47 }
 0x81a   :  { %v8585_v60 = vpop.f32.mrf.mxu1  ;;  %v7653_v11 = vadd.f32 %v8572_v63, %v13465_v56  ;;  %v7754_v38 = vadd.f32 %v7753_v23, %v7658_v52 }
 0x81b   :  { %v7755_v27 = vpop.f32.mrf.mxu0  ;;  %v7669_v48 = vadd.f32 %v8584_v14, %v13449_v46  ;;  %v8566_v46 = vadd.f32 %v13591_v28, %v13589_v29 }
 0x81c   :  { %v8586_v4 = vpop.f32.mrf.mxu1  ;;  %v7661_v27 = vadd.f32 %v8578_v45, %v13451_v15  ;;  %v8563_v15 = vadd.f32 %v13584_v43, %v13582_v33  ;;  %v7749_v49 = vadd.f32 %v7748_v39, %v7653_v11  ;;  %v7785_v28 = vmul.f32 0.01, %v7754_v38 }
 0x81d   :  { %v7756_v10 = vpop.f32.mrf.mxu0  ;;  %v8587_v24 = vadd.f32 %v8586_v4, %v8585_v60 }
 0x81e   :  { %v8588_v26 = vpop.f32.mrf.mxu1  ;;  %v7757_v51 = vadd.f32 %v7756_v10, %v7661_v27  ;;  %v7645_v10 = vadd.f32 %v8566_v46, %v13470_v25  ;;  %v7642_v23 = vadd.f32 %v8563_v15, %v13493_v30  ;;  %v7784_v40 = vmul.f32 0.01, %v7749_v49 }
 0x81f   :  { %v7758_v35 = vpop.f32.mrf.mxu0  ;;  %v7800_v25 = vmax.f32 %v7754_v38, %v7785_v28 }
 0x820   :  { %v8589_v44 = vpop.f32.mrf.mxu1  ;;  %v7674_v35 = vadd.f32 %v8587_v24, %v13440_v37  ;;  %v7650_v37 = vadd.f32 %v8569_v62, %v13488_v16  ;;  %v7786_v55 = vmul.f32 0.01, %v7757_v51  ;;  %v7738_v43 = vadd.f32 %v13597_v42, %v7642_v23  ;;  %v9115_v42 = vld [vmem:[%s13673_s1 + $0x120] ss:$16 sps:$4 sm:$0xff]  }
 0x821   :  { %v7761_v0 = vpop.f32.mrf.mxu0  ;;  %v7799_v45 = vmax.f32 %v7749_v49, %v7784_v40 }
 0x822   :  { %v7762_v26 = vadd.f32 %v7761_v0, %v7666_v22  ;;  %v7746_v29 = vadd.f32 %v7745_v31, %v7650_v37  ;;  %v7741_v0 = vadd.f32 %v7740_v12, %v7645_v10 }
 0x823   :  { %v7763_v36 = vpop.f32.mrf.mxu0 }
 0x824   :  { %v7787_v1 = vmul.f32 0.01, %v7762_v26  ;;  %v7801_v36 = vmax.f32 %v7757_v51, %v7786_v55  ;;  %v7783_v39 = vmul.f32 0.01, %v7746_v29  ;;  %v7782_v31 = vmul.f32 0.01, %v7741_v0 }
 0x825   :  { %v7764_v20 = vpop.f32.mrf.mxu0 }
 0x826   :  { %v7765_v8 = vadd.f32 %v7764_v20, %v7669_v48  ;;  %v7802_v14 = vmax.f32 %v7762_v26, %v7787_v1  ;;  %v7821_v24 = vpack.c.bf16 %v7801_v36, %v7800_v25  ;;  %v7781_v48 = vmul.f32 0.01, %v7738_v43 }
 0x827   :  { %v7766_v6 = vpop.f32.mrf.mxu0  ;;  %v7798_v30 = vmax.f32 %v7746_v29, %v7783_v39  ;;  %v7797_v12 = vmax.f32 %v7741_v0, %v7782_v31 }
 0x828   :  { %v7788_v3 = vmul.f32 0.01, %v7765_v8  ;;  %v7796_v50 = vmax.f32 %v7738_v43, %v7781_v48  ;;  %v14035_v6 = vmov 0.0  }
 0x829   :  { %v7769_v2 = vpop.f32.mrf.mxu0  ;;  %v7820_v20 = vpack.c.bf16 %v7799_v45, %v7798_v30  ;;  %v8056_v30 = vpop.permute.xlu0 %8055 }
 0x82a   :  { %v7770_v17 = vadd.f32 %v7769_v2, %v7674_v35  ;;  %v7803_v60 = vmax.f32 %v7765_v8, %v7788_v3  ;;  %v7819_v22 = vpack.c.bf16 %v7797_v12, %v7796_v50  ;;  %v9116_v8 = vld [vmem:[%s13673_s1 + $0x140] ss:$16 sps:$4 sm:$0xff]  }
 0x82b   :  { %v7771_v32 = vpop.f32.mrf.mxu0 }
 0x82c   :  { %v7789_v5 = vmul.f32 0.01, %v7770_v17  ;;  %v7822_v33 = vpack.c.bf16 %v7803_v60, %v7802_v14 }
 0x82d   :  { %v7772_v47 = vpop.f32.mrf.mxu0 }
 0x82e   :  { %v7804_v4 = vmax.f32 %v7770_v17, %v7789_v5 }
 0x82f   :  { %v7773_v44 = vpop.f32.mrf.mxu0 }
 0x830   :  { %v7823_v56 = vpack.c.bf16 %v7804_v4, %v7804_v4 }
 0x832   :  { %8674 = vmatprep.subr.msk.bf16.mxu1 %vm156_vm0, %v7823_v56  ;;  %v7939_v16 = vsel %vm156_vm0, %v7823_v56, 0  ;;  %vm14036_vm0 = vmmov 0  }
 0x833   :  { %8631 = vmatpush3.bf16.msra.mxu1 %v7939_v16 }
 0x834   :  { %8632 = vmatprep.subr.bf16.mxu1 %v7822_v33 }
 0x837   :  { %8633 = vmatpush3.bf16.msra.mxu1 %v7822_v33 }
 0x838   :  { %8634 = vmatprep.subr.bf16.mxu1 %v7821_v24 }
 0x83b   :  { %8635 = vmatpush3.bf16.msra.mxu1 %v7821_v24 }
 0x83c   :  { %8636 = vmatprep.subr.bf16.mxu1 %v7820_v20 }
 0x83f   :  { %8637 = vmatpush3.bf16.msra.mxu1 %v7820_v20 }
 0x840   :  { %8638 = vmatprep.subr.bf16.mxu1 %v7819_v22 }
 0x843   :  { %8639 = vmatpush3.bf16.msra.mxu1 %v7819_v22  ;;  %v8061_v22 = vpop.permute.xlu1 %8060 }
 0x844   :  { %8640 = vmatprep.subr.bf16.mxu1 %v13599_v9 }
 0x847   :  { %8641 = vmatpush3.bf16.msra.mxu1 %v13599_v9  ;;  %v9118_v9 = vld [vmem:[%s13673_s1 + $0x180] ss:$16 sps:$4 sm:$0xff]  }
 0x848   :  { %8642 = vmatprep.subr.bf16.mxu1 %v13595_v57 }
 0x84b   :  { %8643 = vmatpush3.bf16.msra.mxu1 %v13595_v57  ;;  %v9117_v57 = vld [vmem:[%s13673_s1 + $0x160] ss:$16 sps:$4 sm:$0xff]  }
 0x84c   :  { %8644 = vmatprep.subr.bf16.mxu1 %v13587_v7 }
 0x84f   :  { %8645 = vmatpush3.bf16.msra.mxu1 %v13587_v7  ;;  %v9119_v7 = vld [vmem:[%s13673_s1 + $0x1a0] ss:$0 sps:$4 sm:$0x33]  }
 0x850   :  { %8658 = vmatprep.subr.bf16.mxu1 %v14035_v6 }
 0x852   :  { %8647 = vmatmul.mubr.msk.bf16.vlgmr.msra.gmra.mxu1 %vm3023_vm9, %v9115_v42 }
 0x853   :  { %8650 = vmatprep.mubr.msk.bf16.mxu1 %vm3023_vm9, %v9116_v8 }
 0x85a   :  { %8651 = vmatmul.mubr.msk.bf16.gmra.mxu1 %vm3023_vm9, %v9117_v57 }
 0x85b   :  { %8654 = vmatprep.mubr.msk.bf16.mxu1 %vm3023_vm9, %v9118_v9 }
 0x862   :  { %8655 = vmatmul.mubr.msk.bf16.gmra.mxu1 %vm3023_vm9, %v9119_v7  ;;  %vm14037_vm9 = vcmask 1041408  }
 0x863   :  { %8670 = vmatprep.mubr.msk.bf16.mxu1 %vm14036_vm0, %v14035_v6 }
 0x912   :  { %v8648_v63 = vpop.f32.mrf.mxu1 }
 0x914   :  { %v7975_v27 = vpop.f32.mrf.mxu1 }
 0x915   :  { %v7976_v33 = vadd.f32 %v7975_v27, %v13552_v34  ;;  %v9120_v34 = vld [vmem:[%s13673_s1 + $0x1c0] ss:$16 sps:$4 sm:$0x1f]  }
 0x916   :  { %v8649_v26 = vpop.f32.mrf.mxu1 }
 0x917   :  { %v8021_v31 = vmul.f32 0.01, %v7976_v33 }
 0x918   :  { %v7978_v35 = vpop.f32.mrf.mxu1 }
 0x919   :  { %v7979_v40 = vadd.f32 %v7978_v35, %v13573_v18  ;;  %v8032_v18 = vmax.f32 %v7976_v33, %v8021_v31 }
 0x91a   :  { %v8652_v62 = vpop.f32.mrf.mxu1 }
 0x91b   :  { %v8000_v37 = vadd.f32 %v8652_v62, %v13528_v59  ;;  %v7987_v59 = vadd.f32 %v8649_v26, %v13568_v13  ;;  %v8022_v39 = vmul.f32 0.01, %v7979_v40 }
 0x91c   :  { %v7991_v2 = vpop.f32.mrf.mxu1 }
 0x91d   :  { %v8027_v44 = vmul.f32 0.01, %v8000_v37  ;;  %v8024_v0 = vmul.f32 0.01, %v7987_v59  ;;  %v8033_v24 = vmax.f32 %v7979_v40, %v8022_v39 }
 0x91e   :  { %v8653_v52 = vpop.f32.mrf.mxu1 }
 0x91f   :  { %v8003_v1 = vadd.f32 %v8653_v52, %v13554_v61  ;;  %v8038_v23 = vmax.f32 %v8000_v37, %v8027_v44  ;;  %v8035_v13 = vmax.f32 %v7987_v59, %v8024_v0  ;;  %v8045_v48 = vpack.c.bf16 %v8033_v24, %v8032_v18 }
 0x920   :  { %v7994_v51 = vpop.f32.mrf.mxu1 }
 0x921   :  { %v8028_v60 = vmul.f32 0.01, %v8003_v1  ;;  %v7995_v4 = vadd.f32 %v7994_v51, %v13562_v54 }
 0x922   :  { %v8656_v3 = vpop.f32.mrf.mxu1 }
 0x923   :  { %v8016_v17 = vadd.f32 %v8656_v3, %v13536_v19  ;;  %v8039_v28 = vmax.f32 %v8003_v1, %v8028_v60  ;;  %v8026_v14 = vmul.f32 0.01, %v7995_v4 }
 0x924   :  { %v8007_v46 = vpop.f32.mrf.mxu1 }
 0x925   :  { %v8031_v32 = vmul.f32 0.01, %v8016_v17  ;;  %v8008_v11 = vadd.f32 %v8007_v46, %v13512_v53  ;;  %v7992_v53 = vadd.f32 %v7991_v2, %v13534_v41  ;;  %v8048_v41 = vpack.c.bf16 %v8039_v28, %v8038_v23 }
 0x926   :  { %v8657_v38 = vpop.f32.mrf.mxu1  ;;  %v8037_v36 = vmax.f32 %v7995_v4, %v8026_v14 }
 0x927   :  { %v8042_v5 = vmax.f32 %v8016_v17, %v8031_v32  ;;  %v8029_v49 = vmul.f32 0.01, %v8008_v11  ;;  %v8025_v54 = vmul.f32 0.01, %v7992_v53 }
 0x928   :  { %v8010_v15 = vpop.f32.mrf.mxu1 }
 0x929   :  { %v8050_v47 = vpack.c.bf16 %v8042_v5, %v8042_v5  ;;  %v8011_v55 = vadd.f32 %v8010_v15, %v13549_v21  ;;  %v8040_v29 = vmax.f32 %v8008_v11, %v8029_v49  ;;  %v7984_v21 = vadd.f32 %v8648_v63, %v13547_v58 }
 0x92a   :  { %v8036_v43 = vmax.f32 %v7992_v53, %v8025_v54 }
 0x92b   :  { %v8030_v10 = vmul.f32 0.01, %v8011_v55  ;;  %v8073_v19 = vsel %vm14037_vm9, %v8050_v47, 0  ;;  %v8023_v16 = vmul.f32 0.01, %v7984_v21 }
 0x92c   :  { %8659 = vmatpush3.bf16.msra.mxu1 %v8073_v19  ;;  %v8047_v58 = vpack.c.bf16 %v8037_v36, %v8036_v43 }
 0x92d   :  { %v8041_v61 = vmax.f32 %v8011_v55, %v8030_v10  ;;  %8660 = vmatprep.subr.bf16.mxu1 %v14035_v6  ;;  %v8034_v25 = vmax.f32 %v7984_v21, %v8023_v16 }
 0x92f   :  { %v8049_v56 = vpack.c.bf16 %v8041_v61, %v8040_v29  ;;  %v8046_v45 = vpack.c.bf16 %v8035_v13, %v8034_v25 }
 0x931   :  { %8661 = vmatpush3.bf16.msra.mxu1 %v8049_v56 }
 0x932   :  { %8662 = vmatprep.subr.bf16.mxu1 %v14035_v6 }
 0x935   :  { %8663 = vmatpush3.bf16.msra.mxu1 %v8048_v41 }
 0x936   :  { %8664 = vmatprep.subr.bf16.mxu1 %v14035_v6 }
 0x939   :  { %8665 = vmatpush3.bf16.msra.mxu1 %v8047_v58 }
 0x93a   :  { %8666 = vmatprep.subr.bf16.mxu1 %v14035_v6 }
 0x93d   :  { %8667 = vmatpush3.bf16.msra.mxu1 %v8046_v45 }
 0x93e   :  { %8668 = vmatprep.subr.bf16.mxu1 %v14035_v6 }
 0x941   :  { %8669 = vmatpush3.bf16.msra.mxu1 %v8045_v48 }
 0x944   :  { %8671 = vmatmul.mubr.msk.bf16.vlgmr.msra.gmra.mxu1 %vm8068_vm1, %v9120_v34 }
 0xa04   :  { %v8109_v12 = vpop.f32.mrf.mxu1 }
 0xa05   :  { %v8110_v20 = vadd.f32 %v8109_v12, %v8056_v30 }
 0xa06   :  { %v8672_v50 = vpop.f32.mrf.mxu1 }
 0xa07   :  { %8117 = vst.msk [vmem:[%s13675_s3] sm:$0xff] %vm8116_vm14, %v8110_v20 }
 0xa08   :  { %v8112_v42 = vpop.f32.mrf.mxu1 }
 0xa09   :  { %v8113_v8 = vadd.f32 %v8112_v42, %v8061_v22 }
 0xa0a   :  { %v8673_v6 = vpop.f32.mrf.mxu1 }
 0xa0b   :  { %8119 = vst.msk [vmem:[%s13675_s3 + $0x8] sm:$0x3] %vm8118_vm2, %v8113_v8 }

</bundles_post_ra>
